<compile_context>
chip_gen: v7x
topology: tpu7x:2x2x1
jax: 0.10.0
libtpu: 0.0.40
codegen_flags: <defaults>
</compile_context>

<pallas_src>
import functools
import math

import jax
import jax.numpy as jnp
from jax import lax
from jax.experimental import pallas as pl
from jax.experimental.pallas import tpu as pltpu


# --------------------------------------------------------- in-kernel helpers

def _ln(z, g, b, eps=1e-5):
    """LayerNorm over the last dim.  z: (S, E); g, b: (1, E)."""
    mean = jnp.mean(z, axis=-1, keepdims=True)
    c = z - mean
    var = jnp.mean(c * c, axis=-1, keepdims=True)
    return c * lax.rsqrt(var + eps) * g + b


def _mha(x_q, x_kv, q_w, q_b, kv_w, kv_b, out_w, out_b, bias, num_heads, scale):
    """Multi-head attention on VMEM-resident 2-D slabs.

    x_q: (Sq, E), x_kv: (Sk, E); q_w: (E, E), kv_w: (E, 2E), out_w: (E, E).
    bias: additive score bias broadcastable to (Sq, Sk) or None.
    """
    E = q_w.shape[1]
    hd = E // num_heads
    Sq = x_q.shape[0]

    # Fused projections (wide MXU N-dim); 1/sqrt(hd) folded into q.
    q_all = (jnp.dot(x_q, q_w, preferred_element_type=jnp.float32) + q_b) * scale
    kv = jnp.dot(x_kv, kv_w, preferred_element_type=jnp.float32) + kv_b

    acc = jnp.zeros((Sq, E), jnp.float32)
    for h in range(num_heads):
        q = q_all[:, h * hd:(h + 1) * hd]            # (Sq, hd)
        k = kv[:, h * hd:(h + 1) * hd]               # (Sk, hd)
        v = kv[:, E + h * hd:E + (h + 1) * hd]       # (Sk, hd)
        s = lax.dot_general(q, k, (((1,), (1,)), ((), ())),
                            preferred_element_type=jnp.float32)   # (Sq, Sk)
        if bias is not None:
            s = s + bias
        s = s - jnp.max(s, axis=-1, keepdims=True)
        p = jnp.exp(s)
        p = p * pl.reciprocal(jnp.sum(p, axis=-1, keepdims=True), approx=True)
        o = jnp.dot(p, v, preferred_element_type=jnp.float32)     # (Sq, hd)
        # out-projection decomposed per head (avoids concat): o @ Wout[rows_h]
        acc = acc + jnp.dot(o, out_w[h * hd:(h + 1) * hd, :],
                            preferred_element_type=jnp.float32)
    return acc + out_b


def _ffn(x, w1, b1, w2, b2):
    h = jnp.maximum(jnp.dot(x, w1, preferred_element_type=jnp.float32) + b1, 0.0)
    return jnp.dot(h, w2, preferred_element_type=jnp.float32) + b2


# --------------------------------------------------------------- encoder

def _encoder_stack_kernel(x_ref, kbias_ref,
                          q_w_ref, q_b_ref, kv_w_ref, kv_b_ref,
                          out_w_ref, out_b_ref, n1g_ref, n1b_ref,
                          l1w_ref, l1b_ref, l2w_ref, l2b_ref,
                          n2g_ref, n2b_ref,
                          fng_ref, fnb_ref,
                          mem_ref, *, num_heads):
    layer = pl.program_id(0)
    n_layers = pl.num_programs(0)

    # The output ref is the resident activation carry across the layer grid.
    @pl.when(layer == 0)
    def _():
        mem_ref[...] = x_ref[...]

    N = mem_ref.shape[0]
    E = mem_ref.shape[2]
    scale = 1.0 / math.sqrt(E // num_heads)

    q_w, q_b = q_w_ref[0], q_b_ref[0]
    kv_w, kv_b = kv_w_ref[0], kv_b_ref[0]
    out_w, out_b = out_w_ref[0], out_b_ref[0]
    n1_g, n1_b = n1g_ref[0], n1b_ref[0]
    l1_w, l1_b = l1w_ref[0], l1b_ref[0]
    l2_w, l2_b = l2w_ref[0], l2b_ref[0]
    n2_g, n2_b = n2g_ref[0], n2b_ref[0]

    for n in range(N):
        x = mem_ref[n]                      # (S, E)
        kbias = kbias_ref[n]                # (1, S) additive key-padding bias
        attn = _mha(x, x, q_w, q_b, kv_w, kv_b, out_w, out_b,
                    kbias, num_heads, scale)
        x2 = _ln(x + attn, n1_g, n1_b)
        x3 = _ln(x2 + _ffn(x2, l1_w, l1_b, l2_w, l2_b), n2_g, n2_b)
        mem_ref[n] = x3

    # Final encoder LayerNorm (nn.Transformer encoder.norm) on the last layer.
    @pl.when(layer == n_layers - 1)
    def _():
        for n in range(N):
            mem_ref[n] = _ln(mem_ref[n], fng_ref[...], fnb_ref[...])


def _stacked_spec(a):
    return pl.BlockSpec((1,) + a.shape[1:], lambda l: (l, 0, 0))


def _const_spec(a):
    if a.ndim == 2:
        return pl.BlockSpec(a.shape, lambda l: (0, 0))
    return pl.BlockSpec(a.shape, lambda l: (0, 0, 0))


def encoder_forward(x0, key_bias, enc, final_g, final_b, *, num_heads):
    N, S, E = x0.shape
    L = enc["q_w"].shape[0]
    stacked_names = ["q_w", "q_b", "kv_w", "kv_b", "out_w", "out_b",
                     "n1_g", "n1_b", "lin1_w", "lin1_b", "lin2_w", "lin2_b",
                     "n2_g", "n2_b"]
    stacked = [enc[k] for k in stacked_names]
    in_specs = ([_const_spec(x0), _const_spec(key_bias)]
                + [_stacked_spec(a) for a in stacked]
                + [_const_spec(final_g), _const_spec(final_b)])
    return pl.pallas_call(
        functools.partial(_encoder_stack_kernel, num_heads=num_heads),
        out_shape=jax.ShapeDtypeStruct((N, S, E), jnp.float32),
        grid=(L,),
        in_specs=in_specs,
        out_specs=pl.BlockSpec((N, S, E), lambda l: (0, 0, 0)),
        compiler_params=pltpu.CompilerParams(dimension_semantics=("arbitrary",)),
    )(x0, key_bias, *stacked, final_g, final_b)


# --------------------------------------------------------------- decoder

def _decoder_stack_kernel(y0_ref, mem_ref,
                          sq_w_ref, sq_b_ref, skv_w_ref, skv_b_ref,
                          so_w_ref, so_b_ref, n1g_ref, n1b_ref,
                          cq_w_ref, cq_b_ref, ckv_w_ref, ckv_b_ref,
                          co_w_ref, co_b_ref, n2g_ref, n2b_ref,
                          l1w_ref, l1b_ref, l2w_ref, l2b_ref,
                          n3g_ref, n3b_ref,
                          fng_ref, fnb_ref, fcw_ref, fcb_ref,
                          logits_ref, h_ref, *, num_heads):
    layer = pl.program_id(0)
    n_layers = pl.num_programs(0)

    @pl.when(layer == 0)
    def _():
        h_ref[...] = y0_ref[...]

    N, S_t, E = h_ref.shape
    scale = 1.0 / math.sqrt(E // num_heads)

    # Causal (subsequent-position) additive mask, built in-kernel.
    row = lax.broadcasted_iota(jnp.int32, (S_t, S_t), 0)
    col = lax.broadcasted_iota(jnp.int32, (S_t, S_t), 1)
    causal = jnp.where(col > row, -1e9, 0.0).astype(jnp.float32)

    sq_w, sq_b = sq_w_ref[0], sq_b_ref[0]
    skv_w, skv_b = skv_w_ref[0], skv_b_ref[0]
    so_w, so_b = so_w_ref[0], so_b_ref[0]
    n1_g, n1_b = n1g_ref[0], n1b_ref[0]
    cq_w, cq_b = cq_w_ref[0], cq_b_ref[0]
    ckv_w, ckv_b = ckv_w_ref[0], ckv_b_ref[0]
    co_w, co_b = co_w_ref[0], co_b_ref[0]
    n2_g, n2_b = n2g_ref[0], n2b_ref[0]
    l1_w, l1_b = l1w_ref[0], l1b_ref[0]
    l2_w, l2_b = l2w_ref[0], l2b_ref[0]
    n3_g, n3_b = n3g_ref[0], n3b_ref[0]

    for n in range(N):
        y = h_ref[n]                         # (S_t, E)
        mem = mem_ref[n]                     # (S_s, E)
        sa = _mha(y, y, sq_w, sq_b, skv_w, skv_b, so_w, so_b,
                  causal, num_heads, scale)
        y2 = _ln(y + sa, n1_g, n1_b)
        ca = _mha(y2, mem, cq_w, cq_b, ckv_w, ckv_b, co_w, co_b,
                  None, num_heads, scale)
        y3 = _ln(y2 + ca, n2_g, n2_b)
        y4 = _ln(y3 + _ffn(y3, l1_w, l1_b, l2_w, l2_b), n3_g, n3_b)
        h_ref[n] = y4

    # Final decoder LayerNorm + fc_out (lane-padded to 128) on the last layer.
    @pl.when(layer == n_layers - 1)
    def _():
        fc_w = fcw_ref[...]
        fc_b = fcb_ref[...]
        for n in range(N):
            z = _ln(h_ref[n], fng_ref[...], fnb_ref[...])
            logits_ref[n] = (jnp.dot(z, fc_w, preferred_element_type=jnp.float32)
                             + fc_b)


def decoder_forward(y0, memory, dec, final_g, final_b, fc_w, fc_b, *, num_heads):
    N, S_t, E = y0.shape
    Vp = fc_w.shape[1]
    L = dec["s_q_w"].shape[0]
    stacked_names = ["s_q_w", "s_q_b", "s_kv_w", "s_kv_b", "s_out_w", "s_out_b",
                     "n1_g", "n1_b",
                     "c_q_w", "c_q_b", "c_kv_w", "c_kv_b", "c_out_w", "c_out_b",
                     "n2_g", "n2_b",
                     "lin1_w", "lin1_b", "lin2_w", "lin2_b",
                     "n3_g", "n3_b"]
    stacked = [dec[k] for k in stacked_names]
    in_specs = ([_const_spec(y0), _const_spec(memory)]
                + [_stacked_spec(a) for a in stacked]
                + [_const_spec(final_g), _const_spec(final_b),
                   _const_spec(fc_w), _const_spec(fc_b)])
    return pl.pallas_call(
        functools.partial(_decoder_stack_kernel, num_heads=num_heads),
        out_shape=jax.ShapeDtypeStruct((N, S_t, Vp), jnp.float32),
        grid=(L,),
        in_specs=in_specs,
        out_specs=pl.BlockSpec((N, S_t, Vp), lambda l: (0, 0, 0)),
        scratch_shapes=[pltpu.VMEM((N, S_t, E), jnp.float32)],
        compiler_params=pltpu.CompilerParams(dimension_semantics=("arbitrary",)),
    )(y0, memory, *stacked, final_g, final_b, fc_w, fc_b)


# --------------------------------------------------------------- forward

def transformer_forward(params, src, trg, *, num_heads, src_pad_idx, trg_vocab):
    """Mirrors Transformer.forward(src, trg); src/trg: (seq, batch) int32."""
    S_src, N = src.shape
    S_trg, _ = trg.shape

    src_t = src.T                                   # (N, S_src)
    trg_t = trg.T                                   # (N, S_trg)

    # TODO(synk): embedding gathers stay in plain JAX (no clean BlockSpec gather
    # for tiny vocabularies); dropout is identity (eval mode).
    embed_src = (jnp.take(params["src_word_emb"], src_t, axis=0)
                 + params["src_pos_emb"][None, :S_src, :])      # (N, S_src, E)
    embed_trg = (jnp.take(params["trg_word_emb"], trg_t, axis=0)
                 + params["trg_pos_emb"][None, :S_trg, :])      # (N, S_trg, E)

    key_bias = jnp.where(src_t == src_pad_idx, -1e9, 0.0).astype(jnp.float32)
    key_bias = key_bias.reshape(N, 1, S_src)

    memory = encoder_forward(embed_src, key_bias, params["enc"],
                             params["enc_norm_g"], params["enc_norm_b"],
                             num_heads=num_heads)
    logits = decoder_forward(embed_trg, memory, params["dec"],
                             params["dec_norm_g"], params["dec_norm_b"],
                             params["fc_w"], params["fc_b"],
                             num_heads=num_heads)                # (N, S_trg, Vp)
    return jnp.transpose(logits[:, :, :trg_vocab], (1, 0, 2))    # (S_trg, N, V)


# --------------------------------------------------------- parameter init

def _normal(key, shape, scale=0.02):
    return (scale * jax.random.normal(key, shape)).astype(jnp.float32)


def _ones(shape):
    return jnp.ones(shape, jnp.float32)


def _zeros(shape):
    return jnp.zeros(shape, jnp.float32)


def _init_attn(key, L, E, prefix=""):
    k1, k2, k3 = jax.random.split(key, 3)
    return {
        prefix + "q_w": _normal(k1, (L, E, E)),
        prefix + "q_b": _zeros((L, 1, E)),
        prefix + "kv_w": _normal(k2, (L, E, 2 * E)),
        prefix + "kv_b": _zeros((L, 1, 2 * E)),
        prefix + "out_w": _normal(k3, (L, E, E)),
        prefix + "out_b": _zeros((L, 1, E)),
    }


def init_params(key, *, E, src_vocab, trg_vocab, vocab_pad, max_len,
                n_enc, n_dec, ff):
    keys = jax.random.split(key, 10)

    enc = _init_attn(keys[0], n_enc, E)
    enc.update(
        n1_g=_ones((n_enc, 1, E)), n1_b=_zeros((n_enc, 1, E)),
        lin1_w=_normal(keys[1], (n_enc, E, ff)), lin1_b=_zeros((n_enc, 1, ff)),
        lin2_w=_normal(keys[2], (n_enc, ff, E)), lin2_b=_zeros((n_enc, 1, E)),
        n2_g=_ones((n_enc, 1, E)), n2_b=_zeros((n_enc, 1, E)),
    )

    dec = {}
    dec.update(_init_attn(keys[3], n_dec, E, "s_"))
    dec.update(_init_attn(keys[4], n_dec, E, "c_"))
    dec.update(
        n1_g=_ones((n_dec, 1, E)), n1_b=_zeros((n_dec, 1, E)),
        n2_g=_ones((n_dec, 1, E)), n2_b=_zeros((n_dec, 1, E)),
        lin1_w=_normal(keys[5], (n_dec, E, ff)), lin1_b=_zeros((n_dec, 1, ff)),
        lin2_w=_normal(keys[6], (n_dec, ff, E)), lin2_b=_zeros((n_dec, 1, E)),
        n3_g=_ones((n_dec, 1, E)), n3_b=_zeros((n_dec, 1, E)),
    )

    # Lane-padded output projection (trg_vocab -> vocab_pad columns).
    fc_w = _zeros((E, vocab_pad)).at[:, :trg_vocab].set(
        _normal(keys[7], (E, trg_vocab)))
    fc_b = _zeros((1, vocab_pad))

    return {
        "src_word_emb": _normal(keys[8], (src_vocab, E), 1.0),
        "src_pos_emb": _normal(jax.random.fold_in(keys[8], 1), (max_len, E), 1.0),
        "trg_word_emb": _normal(keys[9], (trg_vocab, E), 1.0),
        "trg_pos_emb": _normal(jax.random.fold_in(keys[9], 1), (max_len, E), 1.0),
        "enc": enc,
        "dec": dec,
        "enc_norm_g": _ones((1, E)), "enc_norm_b": _zeros((1, E)),
        "dec_norm_g": _ones((1, E)), "dec_norm_b": _zeros((1, E)),
        "fc_w": fc_w, "fc_b": fc_b,
    }


# ------------------------------------------------------------------- main

if __name__ == "__main__":
    # Small, module-consistent hyperparameters.
    embedding_size = 64
    num_heads = 4                      # head_dim = 16
    num_encoder_layers = 2
    num_decoder_layers = 2
    forward_expansion = 128            # passed directly as dim_feedforward
    max_len = 100
    src_vocab_size = 50
    trg_vocab_size = 48
    vocab_pad = 128                    # lane-dense fc output, sliced back to 48
    src_pad_idx = 1

    key = jax.random.PRNGKey(0)
    k_param, k_src, k_trg = jax.random.split(key, 3)

    params = init_params(
        k_param, E=embedding_size, src_vocab=src_vocab_size,
        trg_vocab=trg_vocab_size, vocab_pad=vocab_pad, max_len=max_len,
        n_enc=num_encoder_layers, n_dec=num_decoder_layers,
        ff=forward_expansion)

    S_src, S_trg, N = 12, 10, 2
    src = jax.random.randint(k_src, (S_src, N), 0, src_vocab_size, dtype=jnp.int32)
    trg = jax.random.randint(k_trg, (S_trg, N), 0, trg_vocab_size, dtype=jnp.int32)
    # Make sure the src key-padding mask is actually exercised.
    src = src.at[-1, 0].set(src_pad_idx)
    src = src.at[-2, 1].set(src_pad_idx)

    fwd = jax.jit(functools.partial(
        transformer_forward, num_heads=num_heads,
        src_pad_idx=src_pad_idx, trg_vocab=trg_vocab_size))

    out = jax.block_until_ready(fwd(params, src, trg))

    assert out.shape == (S_trg, N, trg_vocab_size), out.shape
    assert bool(jnp.all(jnp.isfinite(out))), "non-finite output"
    print("KERNEL_OK")
</pallas_src>

<mosaic_0001>
module attributes {stable_mosaic.version = 11 : i64} {
  func.func @_encoder_stack_kernel(%arg0: i32, %arg1: memref<2x12x64xf32, #tpu.memory_space<vmem>>, %arg2: memref<2x1x12xf32, #tpu.memory_space<vmem>>, %arg3: memref<1x64x64xf32, #tpu.memory_space<vmem>>, %arg4: memref<1x1x64xf32, #tpu.memory_space<vmem>>, %arg5: memref<1x64x128xf32, #tpu.memory_space<vmem>>, %arg6: memref<1x1x128xf32, #tpu.memory_space<vmem>>, %arg7: memref<1x64x64xf32, #tpu.memory_space<vmem>>, %arg8: memref<1x1x64xf32, #tpu.memory_space<vmem>>, %arg9: memref<1x1x64xf32, #tpu.memory_space<vmem>>, %arg10: memref<1x1x64xf32, #tpu.memory_space<vmem>>, %arg11: memref<1x64x128xf32, #tpu.memory_space<vmem>>, %arg12: memref<1x1x128xf32, #tpu.memory_space<vmem>>, %arg13: memref<1x128x64xf32, #tpu.memory_space<vmem>>, %arg14: memref<1x1x64xf32, #tpu.memory_space<vmem>>, %arg15: memref<1x1x64xf32, #tpu.memory_space<vmem>>, %arg16: memref<1x1x64xf32, #tpu.memory_space<vmem>>, %arg17: memref<1x64xf32, #tpu.memory_space<vmem>>, %arg18: memref<1x64xf32, #tpu.memory_space<vmem>>, %arg19: memref<2x12x64xf32, #tpu.memory_space<vmem>>) attributes {dimension_semantics = [#tpu.dimension_semantics<arbitrary>], iteration_bounds = array<i64: 2>, scalar_prefetch = 0 : i64, scratch_operands = 0 : i64, tpu.core_type = #tpu.core_type<tc>, window_params = [{pipeline_mode = #tpu.pipeline_mode<synchronous>, transform_indices = @transform_0, window_bounds = array<i64: 2, 12, 64>}, {pipeline_mode = #tpu.pipeline_mode<synchronous>, transform_indices = @transform_1, window_bounds = array<i64: 2, 1, 12>}, {transform_indices = @transform_2, window_bounds = array<i64: 1, 64, 64>}, {transform_indices = @transform_3, window_bounds = array<i64: 1, 1, 64>}, {transform_indices = @transform_4, window_bounds = array<i64: 1, 64, 128>}, {transform_indices = @transform_5, window_bounds = array<i64: 1, 1, 128>}, {transform_indices = @transform_6, window_bounds = array<i64: 1, 64, 64>}, {transform_indices = @transform_7, window_bounds = array<i64: 1, 1, 64>}, {transform_indices = @transform_8, window_bounds = array<i64: 1, 1, 64>}, {transform_indices = @transform_9, window_bounds = array<i64: 1, 1, 64>}, {transform_indices = @transform_10, window_bounds = array<i64: 1, 64, 128>}, {transform_indices = @transform_11, window_bounds = array<i64: 1, 1, 128>}, {transform_indices = @transform_12, window_bounds = array<i64: 1, 128, 64>}, {transform_indices = @transform_13, window_bounds = array<i64: 1, 1, 64>}, {transform_indices = @transform_14, window_bounds = array<i64: 1, 1, 64>}, {transform_indices = @transform_15, window_bounds = array<i64: 1, 1, 64>}, {pipeline_mode = #tpu.pipeline_mode<synchronous>, transform_indices = @transform_16, window_bounds = array<i64: 1, 64>}, {pipeline_mode = #tpu.pipeline_mode<synchronous>, transform_indices = @transform_17, window_bounds = array<i64: 1, 64>}, {pipeline_mode = #tpu.pipeline_mode<synchronous>, transform_indices = @transform_18, window_bounds = array<i64: 2, 12, 64>}]} {
    %c0_i32 = arith.constant 0 : i32
    %0 = arith.cmpi eq, %arg0, %c0_i32 : i32
    %1 = arith.extui %0 : i1 to i32
    %c0_i32_0 = arith.constant 0 : i32
    %2 = arith.cmpi ne, %1, %c0_i32_0 : i32
    scf.if %2 {
      %c0_133 = arith.constant 0 : index
      %c0_134 = arith.constant 0 : index
      %c0_135 = arith.constant 0 : index
      %330 = vector.load %arg1[%c0_133, %c0_134, %c0_135] : memref<2x12x64xf32, #tpu.memory_space<vmem>>, vector<2x12x64xf32>
      %c0_136 = arith.constant 0 : index
      %c0_137 = arith.constant 0 : index
      %c0_138 = arith.constant 0 : index
      %331 = vector.load %arg19[%c0_136, %c0_137, %c0_138] : memref<2x12x64xf32, #tpu.memory_space<vmem>>, vector<2x12x64xf32>
      tpu.vector_store %arg19[%c0_136, %c0_137, %c0_138], %330 {strides = array<i32>} : memref<2x12x64xf32, #tpu.memory_space<vmem>>, vector<2x12x64xf32>,
    } else {
    }
    %c0 = arith.constant 0 : index
    %c0_1 = arith.constant 0 : index
    %c0_2 = arith.constant 0 : index
    %3 = vector.load %arg3[%c0, %c0_1, %c0_2] : memref<1x64x64xf32, #tpu.memory_space<vmem>>, vector<1x64x64xf32>
    %4 = vector.shape_cast %3 : vector<1x64x64xf32> to vector<64x64xf32>
    %c0_3 = arith.constant 0 : index
    %c0_4 = arith.constant 0 : index
    %c0_5 = arith.constant 0 : index
    %5 = vector.load %arg4[%c0_3, %c0_4, %c0_5] : memref<1x1x64xf32, #tpu.memory_space<vmem>>, vector<1x1x64xf32>
    %6 = vector.shape_cast %5 : vector<1x1x64xf32> to vector<1x64xf32>
    %c0_6 = arith.constant 0 : index
    %c0_7 = arith.constant 0 : index
    %c0_8 = arith.constant 0 : index
    %7 = vector.load %arg5[%c0_6, %c0_7, %c0_8] : memref<1x64x128xf32, #tpu.memory_space<vmem>>, vector<1x64x128xf32>
    %8 = vector.shape_cast %7 : vector<1x64x128xf32> to vector<64x128xf32>
    %c0_9 = arith.constant 0 : index
    %c0_10 = arith.constant 0 : index
    %c0_11 = arith.constant 0 : index
    %9 = vector.load %arg6[%c0_9, %c0_10, %c0_11] : memref<1x1x128xf32, #tpu.memory_space<vmem>>, vector<1x1x128xf32>
    %10 = vector.shape_cast %9 : vector<1x1x128xf32> to vector<1x128xf32>
    %c0_12 = arith.constant 0 : index
    %c0_13 = arith.constant 0 : index
    %c0_14 = arith.constant 0 : index
    %11 = vector.load %arg7[%c0_12, %c0_13, %c0_14] : memref<1x64x64xf32, #tpu.memory_space<vmem>>, vector<1x64x64xf32>
    %12 = vector.shape_cast %11 : vector<1x64x64xf32> to vector<64x64xf32>
    %c0_15 = arith.constant 0 : index
    %c0_16 = arith.constant 0 : index
    %c0_17 = arith.constant 0 : index
    %13 = vector.load %arg8[%c0_15, %c0_16, %c0_17] : memref<1x1x64xf32, #tpu.memory_space<vmem>>, vector<1x1x64xf32>
    %14 = vector.shape_cast %13 : vector<1x1x64xf32> to vector<1x64xf32>
    %c0_18 = arith.constant 0 : index
    %c0_19 = arith.constant 0 : index
    %c0_20 = arith.constant 0 : index
    %15 = vector.load %arg9[%c0_18, %c0_19, %c0_20] : memref<1x1x64xf32, #tpu.memory_space<vmem>>, vector<1x1x64xf32>
    %16 = vector.shape_cast %15 : vector<1x1x64xf32> to vector<1x64xf32>
    %c0_21 = arith.constant 0 : index
    %c0_22 = arith.constant 0 : index
    %c0_23 = arith.constant 0 : index
    %17 = vector.load %arg10[%c0_21, %c0_22, %c0_23] : memref<1x1x64xf32, #tpu.memory_space<vmem>>, vector<1x1x64xf32>
    %18 = vector.shape_cast %17 : vector<1x1x64xf32> to vector<1x64xf32>
    %c0_24 = arith.constant 0 : index
    %c0_25 = arith.constant 0 : index
    %c0_26 = arith.constant 0 : index
    %19 = vector.load %arg11[%c0_24, %c0_25, %c0_26] : memref<1x64x128xf32, #tpu.memory_space<vmem>>, vector<1x64x128xf32>
    %20 = vector.shape_cast %19 : vector<1x64x128xf32> to vector<64x128xf32>
    %c0_27 = arith.constant 0 : index
    %c0_28 = arith.constant 0 : index
    %c0_29 = arith.constant 0 : index
    %21 = vector.load %arg12[%c0_27, %c0_28, %c0_29] : memref<1x1x128xf32, #tpu.memory_space<vmem>>, vector<1x1x128xf32>
    %22 = vector.shape_cast %21 : vector<1x1x128xf32> to vector<1x128xf32>
    %c0_30 = arith.constant 0 : index
    %c0_31 = arith.constant 0 : index
    %c0_32 = arith.constant 0 : index
    %23 = vector.load %arg13[%c0_30, %c0_31, %c0_32] : memref<1x128x64xf32, #tpu.memory_space<vmem>>, vector<1x128x64xf32>
    %24 = vector.shape_cast %23 : vector<1x128x64xf32> to vector<128x64xf32>
    %c0_33 = arith.constant 0 : index
    %c0_34 = arith.constant 0 : index
    %c0_35 = arith.constant 0 : index
    %25 = vector.load %arg14[%c0_33, %c0_34, %c0_35] : memref<1x1x64xf32, #tpu.memory_space<vmem>>, vector<1x1x64xf32>
    %26 = vector.shape_cast %25 : vector<1x1x64xf32> to vector<1x64xf32>
    %c0_36 = arith.constant 0 : index
    %c0_37 = arith.constant 0 : index
    %c0_38 = arith.constant 0 : index
    %27 = vector.load %arg15[%c0_36, %c0_37, %c0_38] : memref<1x1x64xf32, #tpu.memory_space<vmem>>, vector<1x1x64xf32>
    %28 = vector.shape_cast %27 : vector<1x1x64xf32> to vector<1x64xf32>
    %c0_39 = arith.constant 0 : index
    %c0_40 = arith.constant 0 : index
    %c0_41 = arith.constant 0 : index
    %29 = vector.load %arg16[%c0_39, %c0_40, %c0_41] : memref<1x1x64xf32, #tpu.memory_space<vmem>>, vector<1x1x64xf32>
    %30 = vector.shape_cast %29 : vector<1x1x64xf32> to vector<1x64xf32>
    %c0_42 = arith.constant 0 : index
    %c0_43 = arith.constant 0 : index
    %c0_44 = arith.constant 0 : index
    %31 = vector.load %arg19[%c0_42, %c0_43, %c0_44] : memref<2x12x64xf32, #tpu.memory_space<vmem>>, vector<1x12x64xf32>
    %32 = vector.shape_cast %31 : vector<1x12x64xf32> to vector<12x64xf32>
    %c0_45 = arith.constant 0 : index
    %c0_46 = arith.constant 0 : index
    %c0_47 = arith.constant 0 : index
    %33 = vector.load %arg2[%c0_45, %c0_46, %c0_47] : memref<2x1x12xf32, #tpu.memory_space<vmem>>, vector<1x1x12xf32>
    %34 = vector.shape_cast %33 : vector<1x1x12xf32> to vector<1x12xf32>
    %cst = arith.constant dense<0.000000e+00> : vector<12x64xf32>
    %35 = tpu.matmul %32, %4, %cst {dimension_numbers = #tpu.dot_dimension_numbers<[1], [0], [0], [1], [0, 0, 1, 1], [], []>} : vector<12x64xf32>, vector<64x64xf32>, vector<12x64xf32> -> vector<12x64xf32>
    %36 = vector.broadcast %6 : vector<1x64xf32> to vector<12x64xf32>
    %37 = arith.addf %35, %36 : vector<12x64xf32>
    %cst_48 = arith.constant 2.500000e-01 : f32
    %38 = vector.broadcast %cst_48 : f32 to vector<12x64xf32>
    %39 = arith.mulf %37, %38 : vector<12x64xf32>
    %cst_49 = arith.constant dense<0.000000e+00> : vector<12x128xf32>
    %40 = tpu.matmul %32, %8, %cst_49 {dimension_numbers = #tpu.dot_dimension_numbers<[1], [0], [0], [1], [0, 0, 1, 1], [], []>} : vector<12x64xf32>, vector<64x128xf32>, vector<12x128xf32> -> vector<12x128xf32>
    %41 = vector.broadcast %10 : vector<1x128xf32> to vector<12x128xf32>
    %42 = arith.addf %40, %41 : vector<12x128xf32>
    %cst_50 = arith.constant 0.000000e+00 : f32
    %43 = vector.broadcast %cst_50 : f32 to vector<12x64xf32>
    %44 = vector.extract_strided_slice %39 {offsets = [0, 0], sizes = [12, 16], strides = [1, 1]} : vector<12x64xf32> to vector<12x16xf32>
    %45 = vector.extract_strided_slice %42 {offsets = [0, 0], sizes = [12, 16], strides = [1, 1]} : vector<12x128xf32> to vector<12x16xf32>
    %46 = vector.extract_strided_slice %42 {offsets = [0, 64], sizes = [12, 16], strides = [1, 1]} : vector<12x128xf32> to vector<12x16xf32>
    %cst_51 = arith.constant dense<0.000000e+00> : vector<12x12xf32>
    %47 = tpu.matmul %44, %45, %cst_51 {dimension_numbers = #tpu.dot_dimension_numbers<[1], [1], [0], [0], [0, 0, 1, 0], [], []>} : vector<12x16xf32>, vector<12x16xf32>, vector<12x12xf32> -> vector<12x12xf32>
    %48 = vector.broadcast %34 : vector<1x12xf32> to vector<12x12xf32>
    %49 = arith.addf %47, %48 : vector<12x12xf32>
    %cst_52 = arith.constant dense<0xFF800000> : vector<12xf32>
    %50 = vector.multi_reduction <maximumf>, %49, %cst_52 [1] : vector<12x12xf32> to vector<12xf32>
    %51 = vector.shape_cast %50 : vector<12xf32> to vector<12x1xf32>
    %52 = vector.broadcast %51 : vector<12x1xf32> to vector<12x12xf32>
    %53 = arith.subf %49, %52 : vector<12x12xf32>
    %54 = math.exp %53 : vector<12x12xf32>
    %cst_53 = arith.constant dense<0.000000e+00> : vector<12xf32>
    %55 = vector.multi_reduction <add>, %54, %cst_53 [1] : vector<12x12xf32> to vector<12xf32>
    %56 = vector.shape_cast %55 : vector<12xf32> to vector<12x1xf32>
    %57 = tpu.reciprocal %56 {approx = true} : vector<12x1xf32> -> vector<12x1xf32>
    %58 = vector.broadcast %57 : vector<12x1xf32> to vector<12x12xf32>
    %59 = arith.mulf %54, %58 : vector<12x12xf32>
    %cst_54 = arith.constant dense<0.000000e+00> : vector<12x16xf32>
    %60 = tpu.matmul %59, %46, %cst_54 {dimension_numbers = #tpu.dot_dimension_numbers<[1], [0], [0], [1], [0, 0, 1, 1], [], []>} : vector<12x12xf32>, vector<12x16xf32>, vector<12x16xf32> -> vector<12x16xf32>
    %61 = vector.extract_strided_slice %12 {offsets = [0, 0], sizes = [16, 64], strides = [1, 1]} : vector<64x64xf32> to vector<16x64xf32>
    %cst_55 = arith.constant dense<0.000000e+00> : vector<12x64xf32>
    %62 = tpu.matmul %60, %61, %cst_55 {dimension_numbers = #tpu.dot_dimension_numbers<[1], [0], [0], [1], [0, 0, 1, 1], [], []>} : vector<12x16xf32>, vector<16x64xf32>, vector<12x64xf32> -> vector<12x64xf32>
    %63 = arith.addf %43, %62 : vector<12x64xf32>
    %64 = vector.extract_strided_slice %39 {offsets = [0, 16], sizes = [12, 16], strides = [1, 1]} : vector<12x64xf32> to vector<12x16xf32>
    %65 = vector.extract_strided_slice %42 {offsets = [0, 16], sizes = [12, 16], strides = [1, 1]} : vector<12x128xf32> to vector<12x16xf32>
    %66 = vector.extract_strided_slice %42 {offsets = [0, 80], sizes = [12, 16], strides = [1, 1]} : vector<12x128xf32> to vector<12x16xf32>
    %cst_56 = arith.constant dense<0.000000e+00> : vector<12x12xf32>
    %67 = tpu.matmul %64, %65, %cst_56 {dimension_numbers = #tpu.dot_dimension_numbers<[1], [1], [0], [0], [0, 0, 1, 0], [], []>} : vector<12x16xf32>, vector<12x16xf32>, vector<12x12xf32> -> vector<12x12xf32>
    %68 = vector.broadcast %34 : vector<1x12xf32> to vector<12x12xf32>
    %69 = arith.addf %67, %68 : vector<12x12xf32>
    %cst_57 = arith.constant dense<0xFF800000> : vector<12xf32>
    %70 = vector.multi_reduction <maximumf>, %69, %cst_57 [1] : vector<12x12xf32> to vector<12xf32>
    %71 = vector.shape_cast %70 : vector<12xf32> to vector<12x1xf32>
    %72 = vector.broadcast %71 : vector<12x1xf32> to vector<12x12xf32>
    %73 = arith.subf %69, %72 : vector<12x12xf32>
    %74 = math.exp %73 : vector<12x12xf32>
    %cst_58 = arith.constant dense<0.000000e+00> : vector<12xf32>
    %75 = vector.multi_reduction <add>, %74, %cst_58 [1] : vector<12x12xf32> to vector<12xf32>
    %76 = vector.shape_cast %75 : vector<12xf32> to vector<12x1xf32>
    %77 = tpu.reciprocal %76 {approx = true} : vector<12x1xf32> -> vector<12x1xf32>
    %78 = vector.broadcast %77 : vector<12x1xf32> to vector<12x12xf32>
    %79 = arith.mulf %74, %78 : vector<12x12xf32>
    %cst_59 = arith.constant dense<0.000000e+00> : vector<12x16xf32>
    %80 = tpu.matmul %79, %66, %cst_59 {dimension_numbers = #tpu.dot_dimension_numbers<[1], [0], [0], [1], [0, 0, 1, 1], [], []>} : vector<12x12xf32>, vector<12x16xf32>, vector<12x16xf32> -> vector<12x16xf32>
    %81 = vector.extract_strided_slice %12 {offsets = [16, 0], sizes = [16, 64], strides = [1, 1]} : vector<64x64xf32> to vector<16x64xf32>
    %cst_60 = arith.constant dense<0.000000e+00> : vector<12x64xf32>
    %82 = tpu.matmul %80, %81, %cst_60 {dimension_numbers = #tpu.dot_dimension_numbers<[1], [0], [0], [1], [0, 0, 1, 1], [], []>} : vector<12x16xf32>, vector<16x64xf32>, vector<12x64xf32> -> vector<12x64xf32>
    %83 = arith.addf %63, %82 : vector<12x64xf32>
    %84 = vector.extract_strided_slice %39 {offsets = [0, 32], sizes = [12, 16], strides = [1, 1]} : vector<12x64xf32> to vector<12x16xf32>
    %85 = vector.extract_strided_slice %42 {offsets = [0, 32], sizes = [12, 16], strides = [1, 1]} : vector<12x128xf32> to vector<12x16xf32>
    %86 = vector.extract_strided_slice %42 {offsets = [0, 96], sizes = [12, 16], strides = [1, 1]} : vector<12x128xf32> to vector<12x16xf32>
    %cst_61 = arith.constant dense<0.000000e+00> : vector<12x12xf32>
    %87 = tpu.matmul %84, %85, %cst_61 {dimension_numbers = #tpu.dot_dimension_numbers<[1], [1], [0], [0], [0, 0, 1, 0], [], []>} : vector<12x16xf32>, vector<12x16xf32>, vector<12x12xf32> -> vector<12x12xf32>
    %88 = vector.broadcast %34 : vector<1x12xf32> to vector<12x12xf32>
    %89 = arith.addf %87, %88 : vector<12x12xf32>
    %cst_62 = arith.constant dense<0xFF800000> : vector<12xf32>
    %90 = vector.multi_reduction <maximumf>, %89, %cst_62 [1] : vector<12x12xf32> to vector<12xf32>
    %91 = vector.shape_cast %90 : vector<12xf32> to vector<12x1xf32>
    %92 = vector.broadcast %91 : vector<12x1xf32> to vector<12x12xf32>
    %93 = arith.subf %89, %92 : vector<12x12xf32>
    %94 = math.exp %93 : vector<12x12xf32>
    %cst_63 = arith.constant dense<0.000000e+00> : vector<12xf32>
    %95 = vector.multi_reduction <add>, %94, %cst_63 [1] : vector<12x12xf32> to vector<12xf32>
    %96 = vector.shape_cast %95 : vector<12xf32> to vector<12x1xf32>
    %97 = tpu.reciprocal %96 {approx = true} : vector<12x1xf32> -> vector<12x1xf32>
    %98 = vector.broadcast %97 : vector<12x1xf32> to vector<12x12xf32>
    %99 = arith.mulf %94, %98 : vector<12x12xf32>
    %cst_64 = arith.constant dense<0.000000e+00> : vector<12x16xf32>
    %100 = tpu.matmul %99, %86, %cst_64 {dimension_numbers = #tpu.dot_dimension_numbers<[1], [0], [0], [1], [0, 0, 1, 1], [], []>} : vector<12x12xf32>, vector<12x16xf32>, vector<12x16xf32> -> vector<12x16xf32>
    %101 = vector.extract_strided_slice %12 {offsets = [32, 0], sizes = [16, 64], strides = [1, 1]} : vector<64x64xf32> to vector<16x64xf32>
    %cst_65 = arith.constant dense<0.000000e+00> : vector<12x64xf32>
    %102 = tpu.matmul %100, %101, %cst_65 {dimension_numbers = #tpu.dot_dimension_numbers<[1], [0], [0], [1], [0, 0, 1, 1], [], []>} : vector<12x16xf32>, vector<16x64xf32>, vector<12x64xf32> -> vector<12x64xf32>
    %103 = arith.addf %83, %102 : vector<12x64xf32>
    %104 = vector.extract_strided_slice %39 {offsets = [0, 48], sizes = [12, 16], strides = [1, 1]} : vector<12x64xf32> to vector<12x16xf32>
    %105 = vector.extract_strided_slice %42 {offsets = [0, 48], sizes = [12, 16], strides = [1, 1]} : vector<12x128xf32> to vector<12x16xf32>
    %106 = vector.extract_strided_slice %42 {offsets = [0, 112], sizes = [12, 16], strides = [1, 1]} : vector<12x128xf32> to vector<12x16xf32>
    %cst_66 = arith.constant dense<0.000000e+00> : vector<12x12xf32>
    %107 = tpu.matmul %104, %105, %cst_66 {dimension_numbers = #tpu.dot_dimension_numbers<[1], [1], [0], [0], [0, 0, 1, 0], [], []>} : vector<12x16xf32>, vector<12x16xf32>, vector<12x12xf32> -> vector<12x12xf32>
    %108 = vector.broadcast %34 : vector<1x12xf32> to vector<12x12xf32>
    %109 = arith.addf %107, %108 : vector<12x12xf32>
    %cst_67 = arith.constant dense<0xFF800000> : vector<12xf32>
    %110 = vector.multi_reduction <maximumf>, %109, %cst_67 [1] : vector<12x12xf32> to vector<12xf32>
    %111 = vector.shape_cast %110 : vector<12xf32> to vector<12x1xf32>
    %112 = vector.broadcast %111 : vector<12x1xf32> to vector<12x12xf32>
    %113 = arith.subf %109, %112 : vector<12x12xf32>
    %114 = math.exp %113 : vector<12x12xf32>
    %cst_68 = arith.constant dense<0.000000e+00> : vector<12xf32>
    %115 = vector.multi_reduction <add>, %114, %cst_68 [1] : vector<12x12xf32> to vector<12xf32>
    %116 = vector.shape_cast %115 : vector<12xf32> to vector<12x1xf32>
    %117 = tpu.reciprocal %116 {approx = true} : vector<12x1xf32> -> vector<12x1xf32>
    %118 = vector.broadcast %117 : vector<12x1xf32> to vector<12x12xf32>
    %119 = arith.mulf %114, %118 : vector<12x12xf32>
    %cst_69 = arith.constant dense<0.000000e+00> : vector<12x16xf32>
    %120 = tpu.matmul %119, %106, %cst_69 {dimension_numbers = #tpu.dot_dimension_numbers<[1], [0], [0], [1], [0, 0, 1, 1], [], []>} : vector<12x12xf32>, vector<12x16xf32>, vector<12x16xf32> -> vector<12x16xf32>
    %121 = vector.extract_strided_slice %12 {offsets = [48, 0], sizes = [16, 64], strides = [1, 1]} : vector<64x64xf32> to vector<16x64xf32>
    %cst_70 = arith.constant dense<0.000000e+00> : vector<12x64xf32>
    %122 = tpu.matmul %120, %121, %cst_70 {dimension_numbers = #tpu.dot_dimension_numbers<[1], [0], [0], [1], [0, 0, 1, 1], [], []>} : vector<12x16xf32>, vector<16x64xf32>, vector<12x64xf32> -> vector<12x64xf32>
    %123 = arith.addf %103, %122 : vector<12x64xf32>
    %124 = vector.broadcast %14 : vector<1x64xf32> to vector<12x64xf32>
    %125 = arith.addf %123, %124 : vector<12x64xf32>
    %126 = arith.addf %32, %125 : vector<12x64xf32>
    %cst_71 = arith.constant dense<0.000000e+00> : vector<12xf32>
    %127 = vector.multi_reduction <add>, %126, %cst_71 [1] : vector<12x64xf32> to vector<12xf32>
    %128 = vector.shape_cast %127 : vector<12xf32> to vector<12x1xf32>
    %cst_72 = arith.constant 6.400000e+01 : f32
    %129 = vector.broadcast %cst_72 : f32 to vector<12x1xf32>
    %130 = arith.divf %128, %129 : vector<12x1xf32>
    %131 = vector.broadcast %130 : vector<12x1xf32> to vector<12x64xf32>
    %132 = arith.subf %126, %131 : vector<12x64xf32>
    %133 = arith.mulf %132, %132 : vector<12x64xf32>
    %cst_73 = arith.constant dense<0.000000e+00> : vector<12xf32>
    %134 = vector.multi_reduction <add>, %133, %cst_73 [1] : vector<12x64xf32> to vector<12xf32>
    %135 = vector.shape_cast %134 : vector<12xf32> to vector<12x1xf32>
    %cst_74 = arith.constant 6.400000e+01 : f32
    %136 = vector.broadcast %cst_74 : f32 to vector<12x1xf32>
    %137 = arith.divf %135, %136 : vector<12x1xf32>
    %cst_75 = arith.constant 9.99999974E-6 : f32
    %138 = vector.broadcast %cst_75 : f32 to vector<12x1xf32>
    %139 = arith.addf %137, %138 : vector<12x1xf32>
    %140 = math.rsqrt %139 : vector<12x1xf32>
    %141 = vector.broadcast %140 : vector<12x1xf32> to vector<12x64xf32>
    %142 = arith.mulf %132, %141 : vector<12x64xf32>
    %143 = vector.broadcast %16 : vector<1x64xf32> to vector<12x64xf32>
    %144 = arith.mulf %142, %143 : vector<12x64xf32>
    %145 = vector.broadcast %18 : vector<1x64xf32> to vector<12x64xf32>
    %146 = arith.addf %144, %145 : vector<12x64xf32>
    %cst_76 = arith.constant dense<0.000000e+00> : vector<12x128xf32>
    %147 = tpu.matmul %146, %20, %cst_76 {dimension_numbers = #tpu.dot_dimension_numbers<[1], [0], [0], [1], [0, 0, 1, 1], [], []>} : vector<12x64xf32>, vector<64x128xf32>, vector<12x128xf32> -> vector<12x128xf32>
    %148 = vector.broadcast %22 : vector<1x128xf32> to vector<12x128xf32>
    %149 = arith.addf %147, %148 : vector<12x128xf32>
    %cst_77 = arith.constant 0.000000e+00 : f32
    %150 = vector.broadcast %cst_77 : f32 to vector<12x128xf32>
    %151 = arith.maximumf %149, %150 : vector<12x128xf32>
    %cst_78 = arith.constant dense<0.000000e+00> : vector<12x64xf32>
    %152 = tpu.matmul %151, %24, %cst_78 {dimension_numbers = #tpu.dot_dimension_numbers<[1], [0], [0], [1], [0, 0, 1, 1], [], []>} : vector<12x128xf32>, vector<128x64xf32>, vector<12x64xf32> -> vector<12x64xf32>
    %153 = vector.broadcast %26 : vector<1x64xf32> to vector<12x64xf32>
    %154 = arith.addf %152, %153 : vector<12x64xf32>
    %155 = arith.addf %146, %154 : vector<12x64xf32>
    %cst_79 = arith.constant dense<0.000000e+00> : vector<12xf32>
    %156 = vector.multi_reduction <add>, %155, %cst_79 [1] : vector<12x64xf32> to vector<12xf32>
    %157 = vector.shape_cast %156 : vector<12xf32> to vector<12x1xf32>
    %cst_80 = arith.constant 6.400000e+01 : f32
    %158 = vector.broadcast %cst_80 : f32 to vector<12x1xf32>
    %159 = arith.divf %157, %158 : vector<12x1xf32>
    %160 = vector.broadcast %159 : vector<12x1xf32> to vector<12x64xf32>
    %161 = arith.subf %155, %160 : vector<12x64xf32>
    %162 = arith.mulf %161, %161 : vector<12x64xf32>
    %cst_81 = arith.constant dense<0.000000e+00> : vector<12xf32>
    %163 = vector.multi_reduction <add>, %162, %cst_81 [1] : vector<12x64xf32> to vector<12xf32>
    %164 = vector.shape_cast %163 : vector<12xf32> to vector<12x1xf32>
    %cst_82 = arith.constant 6.400000e+01 : f32
    %165 = vector.broadcast %cst_82 : f32 to vector<12x1xf32>
    %166 = arith.divf %164, %165 : vector<12x1xf32>
    %cst_83 = arith.constant 9.99999974E-6 : f32
    %167 = vector.broadcast %cst_83 : f32 to vector<12x1xf32>
    %168 = arith.addf %166, %167 : vector<12x1xf32>
    %169 = math.rsqrt %168 : vector<12x1xf32>
    %170 = vector.broadcast %169 : vector<12x1xf32> to vector<12x64xf32>
    %171 = arith.mulf %161, %170 : vector<12x64xf32>
    %172 = vector.broadcast %28 : vector<1x64xf32> to vector<12x64xf32>
    %173 = arith.mulf %171, %172 : vector<12x64xf32>
    %174 = vector.broadcast %30 : vector<1x64xf32> to vector<12x64xf32>
    %175 = arith.addf %173, %174 : vector<12x64xf32>
    %c0_84 = arith.constant 0 : index
    %c0_85 = arith.constant 0 : index
    %c0_86 = arith.constant 0 : index
    %176 = vector.load %arg19[%c0_84, %c0_85, %c0_86] : memref<2x12x64xf32, #tpu.memory_space<vmem>>, vector<1x12x64xf32>
    %177 = vector.shape_cast %176 : vector<1x12x64xf32> to vector<12x64xf32>
    %178 = vector.shape_cast %175 : vector<12x64xf32> to vector<1x12x64xf32>
    tpu.vector_store %arg19[%c0_84, %c0_85, %c0_86], %178 {strides = array<i32>} : memref<2x12x64xf32, #tpu.memory_space<vmem>>, vector<1x12x64xf32>,
    %c1 = arith.constant 1 : index
    %c0_87 = arith.constant 0 : index
    %c0_88 = arith.constant 0 : index
    %179 = vector.load %arg19[%c1, %c0_87, %c0_88] : memref<2x12x64xf32, #tpu.memory_space<vmem>>, vector<1x12x64xf32>
    %180 = vector.shape_cast %179 : vector<1x12x64xf32> to vector<12x64xf32>
    %c1_89 = arith.constant 1 : index
    %c0_90 = arith.constant 0 : index
    %c0_91 = arith.constant 0 : index
    %181 = vector.load %arg2[%c1_89, %c0_90, %c0_91] : memref<2x1x12xf32, #tpu.memory_space<vmem>>, vector<1x1x12xf32>
    %182 = vector.shape_cast %181 : vector<1x1x12xf32> to vector<1x12xf32>
    %cst_92 = arith.constant dense<0.000000e+00> : vector<12x64xf32>
    %183 = tpu.matmul %180, %4, %cst_92 {dimension_numbers = #tpu.dot_dimension_numbers<[1], [0], [0], [1], [0, 0, 1, 1], [], []>} : vector<12x64xf32>, vector<64x64xf32>, vector<12x64xf32> -> vector<12x64xf32>
    %184 = vector.broadcast %6 : vector<1x64xf32> to vector<12x64xf32>
    %185 = arith.addf %183, %184 : vector<12x64xf32>
    %cst_93 = arith.constant 2.500000e-01 : f32
    %186 = vector.broadcast %cst_93 : f32 to vector<12x64xf32>
    %187 = arith.mulf %185, %186 : vector<12x64xf32>
    %cst_94 = arith.constant dense<0.000000e+00> : vector<12x128xf32>
    %188 = tpu.matmul %180, %8, %cst_94 {dimension_numbers = #tpu.dot_dimension_numbers<[1], [0], [0], [1], [0, 0, 1, 1], [], []>} : vector<12x64xf32>, vector<64x128xf32>, vector<12x128xf32> -> vector<12x128xf32>
    %189 = vector.broadcast %10 : vector<1x128xf32> to vector<12x128xf32>
    %190 = arith.addf %188, %189 : vector<12x128xf32>
    %cst_95 = arith.constant 0.000000e+00 : f32
    %191 = vector.broadcast %cst_95 : f32 to vector<12x64xf32>
    %192 = vector.extract_strided_slice %187 {offsets = [0, 0], sizes = [12, 16], strides = [1, 1]} : vector<12x64xf32> to vector<12x16xf32>
    %193 = vector.extract_strided_slice %190 {offsets = [0, 0], sizes = [12, 16], strides = [1, 1]} : vector<12x128xf32> to vector<12x16xf32>
    %194 = vector.extract_strided_slice %190 {offsets = [0, 64], sizes = [12, 16], strides = [1, 1]} : vector<12x128xf32> to vector<12x16xf32>
    %cst_96 = arith.constant dense<0.000000e+00> : vector<12x12xf32>
    %195 = tpu.matmul %192, %193, %cst_96 {dimension_numbers = #tpu.dot_dimension_numbers<[1], [1], [0], [0], [0, 0, 1, 0], [], []>} : vector<12x16xf32>, vector<12x16xf32>, vector<12x12xf32> -> vector<12x12xf32>
    %196 = vector.broadcast %182 : vector<1x12xf32> to vector<12x12xf32>
    %197 = arith.addf %195, %196 : vector<12x12xf32>
    %cst_97 = arith.constant dense<0xFF800000> : vector<12xf32>
    %198 = vector.multi_reduction <maximumf>, %197, %cst_97 [1] : vector<12x12xf32> to vector<12xf32>
    %199 = vector.shape_cast %198 : vector<12xf32> to vector<12x1xf32>
    %200 = vector.broadcast %199 : vector<12x1xf32> to vector<12x12xf32>
    %201 = arith.subf %197, %200 : vector<12x12xf32>
    %202 = math.exp %201 : vector<12x12xf32>
    %cst_98 = arith.constant dense<0.000000e+00> : vector<12xf32>
    %203 = vector.multi_reduction <add>, %202, %cst_98 [1] : vector<12x12xf32> to vector<12xf32>
    %204 = vector.shape_cast %203 : vector<12xf32> to vector<12x1xf32>
    %205 = tpu.reciprocal %204 {approx = true} : vector<12x1xf32> -> vector<12x1xf32>
    %206 = vector.broadcast %205 : vector<12x1xf32> to vector<12x12xf32>
    %207 = arith.mulf %202, %206 : vector<12x12xf32>
    %cst_99 = arith.constant dense<0.000000e+00> : vector<12x16xf32>
    %208 = tpu.matmul %207, %194, %cst_99 {dimension_numbers = #tpu.dot_dimension_numbers<[1], [0], [0], [1], [0, 0, 1, 1], [], []>} : vector<12x12xf32>, vector<12x16xf32>, vector<12x16xf32> -> vector<12x16xf32>
    %209 = vector.extract_strided_slice %12 {offsets = [0, 0], sizes = [16, 64], strides = [1, 1]} : vector<64x64xf32> to vector<16x64xf32>
    %cst_100 = arith.constant dense<0.000000e+00> : vector<12x64xf32>
    %210 = tpu.matmul %208, %209, %cst_100 {dimension_numbers = #tpu.dot_dimension_numbers<[1], [0], [0], [1], [0, 0, 1, 1], [], []>} : vector<12x16xf32>, vector<16x64xf32>, vector<12x64xf32> -> vector<12x64xf32>
    %211 = arith.addf %191, %210 : vector<12x64xf32>
    %212 = vector.extract_strided_slice %187 {offsets = [0, 16], sizes = [12, 16], strides = [1, 1]} : vector<12x64xf32> to vector<12x16xf32>
    %213 = vector.extract_strided_slice %190 {offsets = [0, 16], sizes = [12, 16], strides = [1, 1]} : vector<12x128xf32> to vector<12x16xf32>
    %214 = vector.extract_strided_slice %190 {offsets = [0, 80], sizes = [12, 16], strides = [1, 1]} : vector<12x128xf32> to vector<12x16xf32>
    %cst_101 = arith.constant dense<0.000000e+00> : vector<12x12xf32>
    %215 = tpu.matmul %212, %213, %cst_101 {dimension_numbers = #tpu.dot_dimension_numbers<[1], [1], [0], [0], [0, 0, 1, 0], [], []>} : vector<12x16xf32>, vector<12x16xf32>, vector<12x12xf32> -> vector<12x12xf32>
    %216 = vector.broadcast %182 : vector<1x12xf32> to vector<12x12xf32>
    %217 = arith.addf %215, %216 : vector<12x12xf32>
    %cst_102 = arith.constant dense<0xFF800000> : vector<12xf32>
    %218 = vector.multi_reduction <maximumf>, %217, %cst_102 [1] : vector<12x12xf32> to vector<12xf32>
    %219 = vector.shape_cast %218 : vector<12xf32> to vector<12x1xf32>
    %220 = vector.broadcast %219 : vector<12x1xf32> to vector<12x12xf32>
    %221 = arith.subf %217, %220 : vector<12x12xf32>
    %222 = math.exp %221 : vector<12x12xf32>
    %cst_103 = arith.constant dense<0.000000e+00> : vector<12xf32>
    %223 = vector.multi_reduction <add>, %222, %cst_103 [1] : vector<12x12xf32> to vector<12xf32>
    %224 = vector.shape_cast %223 : vector<12xf32> to vector<12x1xf32>
    %225 = tpu.reciprocal %224 {approx = true} : vector<12x1xf32> -> vector<12x1xf32>
    %226 = vector.broadcast %225 : vector<12x1xf32> to vector<12x12xf32>
    %227 = arith.mulf %222, %226 : vector<12x12xf32>
    %cst_104 = arith.constant dense<0.000000e+00> : vector<12x16xf32>
    %228 = tpu.matmul %227, %214, %cst_104 {dimension_numbers = #tpu.dot_dimension_numbers<[1], [0], [0], [1], [0, 0, 1, 1], [], []>} : vector<12x12xf32>, vector<12x16xf32>, vector<12x16xf32> -> vector<12x16xf32>
    %229 = vector.extract_strided_slice %12 {offsets = [16, 0], sizes = [16, 64], strides = [1, 1]} : vector<64x64xf32> to vector<16x64xf32>
    %cst_105 = arith.constant dense<0.000000e+00> : vector<12x64xf32>
    %230 = tpu.matmul %228, %229, %cst_105 {dimension_numbers = #tpu.dot_dimension_numbers<[1], [0], [0], [1], [0, 0, 1, 1], [], []>} : vector<12x16xf32>, vector<16x64xf32>, vector<12x64xf32> -> vector<12x64xf32>
    %231 = arith.addf %211, %230 : vector<12x64xf32>
    %232 = vector.extract_strided_slice %187 {offsets = [0, 32], sizes = [12, 16], strides = [1, 1]} : vector<12x64xf32> to vector<12x16xf32>
    %233 = vector.extract_strided_slice %190 {offsets = [0, 32], sizes = [12, 16], strides = [1, 1]} : vector<12x128xf32> to vector<12x16xf32>
    %234 = vector.extract_strided_slice %190 {offsets = [0, 96], sizes = [12, 16], strides = [1, 1]} : vector<12x128xf32> to vector<12x16xf32>
    %cst_106 = arith.constant dense<0.000000e+00> : vector<12x12xf32>
    %235 = tpu.matmul %232, %233, %cst_106 {dimension_numbers = #tpu.dot_dimension_numbers<[1], [1], [0], [0], [0, 0, 1, 0], [], []>} : vector<12x16xf32>, vector<12x16xf32>, vector<12x12xf32> -> vector<12x12xf32>
    %236 = vector.broadcast %182 : vector<1x12xf32> to vector<12x12xf32>
    %237 = arith.addf %235, %236 : vector<12x12xf32>
    %cst_107 = arith.constant dense<0xFF800000> : vector<12xf32>
    %238 = vector.multi_reduction <maximumf>, %237, %cst_107 [1] : vector<12x12xf32> to vector<12xf32>
    %239 = vector.shape_cast %238 : vector<12xf32> to vector<12x1xf32>
    %240 = vector.broadcast %239 : vector<12x1xf32> to vector<12x12xf32>
    %241 = arith.subf %237, %240 : vector<12x12xf32>
    %242 = math.exp %241 : vector<12x12xf32>
    %cst_108 = arith.constant dense<0.000000e+00> : vector<12xf32>
    %243 = vector.multi_reduction <add>, %242, %cst_108 [1] : vector<12x12xf32> to vector<12xf32>
    %244 = vector.shape_cast %243 : vector<12xf32> to vector<12x1xf32>
    %245 = tpu.reciprocal %244 {approx = true} : vector<12x1xf32> -> vector<12x1xf32>
    %246 = vector.broadcast %245 : vector<12x1xf32> to vector<12x12xf32>
    %247 = arith.mulf %242, %246 : vector<12x12xf32>
    %cst_109 = arith.constant dense<0.000000e+00> : vector<12x16xf32>
    %248 = tpu.matmul %247, %234, %cst_109 {dimension_numbers = #tpu.dot_dimension_numbers<[1], [0], [0], [1], [0, 0, 1, 1], [], []>} : vector<12x12xf32>, vector<12x16xf32>, vector<12x16xf32> -> vector<12x16xf32>
    %249 = vector.extract_strided_slice %12 {offsets = [32, 0], sizes = [16, 64], strides = [1, 1]} : vector<64x64xf32> to vector<16x64xf32>
    %cst_110 = arith.constant dense<0.000000e+00> : vector<12x64xf32>
    %250 = tpu.matmul %248, %249, %cst_110 {dimension_numbers = #tpu.dot_dimension_numbers<[1], [0], [0], [1], [0, 0, 1, 1], [], []>} : vector<12x16xf32>, vector<16x64xf32>, vector<12x64xf32> -> vector<12x64xf32>
    %251 = arith.addf %231, %250 : vector<12x64xf32>
    %252 = vector.extract_strided_slice %187 {offsets = [0, 48], sizes = [12, 16], strides = [1, 1]} : vector<12x64xf32> to vector<12x16xf32>
    %253 = vector.extract_strided_slice %190 {offsets = [0, 48], sizes = [12, 16], strides = [1, 1]} : vector<12x128xf32> to vector<12x16xf32>
    %254 = vector.extract_strided_slice %190 {offsets = [0, 112], sizes = [12, 16], strides = [1, 1]} : vector<12x128xf32> to vector<12x16xf32>
    %cst_111 = arith.constant dense<0.000000e+00> : vector<12x12xf32>
    %255 = tpu.matmul %252, %253, %cst_111 {dimension_numbers = #tpu.dot_dimension_numbers<[1], [1], [0], [0], [0, 0, 1, 0], [], []>} : vector<12x16xf32>, vector<12x16xf32>, vector<12x12xf32> -> vector<12x12xf32>
    %256 = vector.broadcast %182 : vector<1x12xf32> to vector<12x12xf32>
    %257 = arith.addf %255, %256 : vector<12x12xf32>
    %cst_112 = arith.constant dense<0xFF800000> : vector<12xf32>
    %258 = vector.multi_reduction <maximumf>, %257, %cst_112 [1] : vector<12x12xf32> to vector<12xf32>
    %259 = vector.shape_cast %258 : vector<12xf32> to vector<12x1xf32>
    %260 = vector.broadcast %259 : vector<12x1xf32> to vector<12x12xf32>
    %261 = arith.subf %257, %260 : vector<12x12xf32>
    %262 = math.exp %261 : vector<12x12xf32>
    %cst_113 = arith.constant dense<0.000000e+00> : vector<12xf32>
    %263 = vector.multi_reduction <add>, %262, %cst_113 [1] : vector<12x12xf32> to vector<12xf32>
    %264 = vector.shape_cast %263 : vector<12xf32> to vector<12x1xf32>
    %265 = tpu.reciprocal %264 {approx = true} : vector<12x1xf32> -> vector<12x1xf32>
    %266 = vector.broadcast %265 : vector<12x1xf32> to vector<12x12xf32>
    %267 = arith.mulf %262, %266 : vector<12x12xf32>
    %cst_114 = arith.constant dense<0.000000e+00> : vector<12x16xf32>
    %268 = tpu.matmul %267, %254, %cst_114 {dimension_numbers = #tpu.dot_dimension_numbers<[1], [0], [0], [1], [0, 0, 1, 1], [], []>} : vector<12x12xf32>, vector<12x16xf32>, vector<12x16xf32> -> vector<12x16xf32>
    %269 = vector.extract_strided_slice %12 {offsets = [48, 0], sizes = [16, 64], strides = [1, 1]} : vector<64x64xf32> to vector<16x64xf32>
    %cst_115 = arith.constant dense<0.000000e+00> : vector<12x64xf32>
    %270 = tpu.matmul %268, %269, %cst_115 {dimension_numbers = #tpu.dot_dimension_numbers<[1], [0], [0], [1], [0, 0, 1, 1], [], []>} : vector<12x16xf32>, vector<16x64xf32>, vector<12x64xf32> -> vector<12x64xf32>
    %271 = arith.addf %251, %270 : vector<12x64xf32>
    %272 = vector.broadcast %14 : vector<1x64xf32> to vector<12x64xf32>
    %273 = arith.addf %271, %272 : vector<12x64xf32>
    %274 = arith.addf %180, %273 : vector<12x64xf32>
    %cst_116 = arith.constant dense<0.000000e+00> : vector<12xf32>
    %275 = vector.multi_reduction <add>, %274, %cst_116 [1] : vector<12x64xf32> to vector<12xf32>
    %276 = vector.shape_cast %275 : vector<12xf32> to vector<12x1xf32>
    %cst_117 = arith.constant 6.400000e+01 : f32
    %277 = vector.broadcast %cst_117 : f32 to vector<12x1xf32>
    %278 = arith.divf %276, %277 : vector<12x1xf32>
    %279 = vector.broadcast %278 : vector<12x1xf32> to vector<12x64xf32>
    %280 = arith.subf %274, %279 : vector<12x64xf32>
    %281 = arith.mulf %280, %280 : vector<12x64xf32>
    %cst_118 = arith.constant dense<0.000000e+00> : vector<12xf32>
    %282 = vector.multi_reduction <add>, %281, %cst_118 [1] : vector<12x64xf32> to vector<12xf32>
    %283 = vector.shape_cast %282 : vector<12xf32> to vector<12x1xf32>
    %cst_119 = arith.constant 6.400000e+01 : f32
    %284 = vector.broadcast %cst_119 : f32 to vector<12x1xf32>
    %285 = arith.divf %283, %284 : vector<12x1xf32>
    %cst_120 = arith.constant 9.99999974E-6 : f32
    %286 = vector.broadcast %cst_120 : f32 to vector<12x1xf32>
    %287 = arith.addf %285, %286 : vector<12x1xf32>
    %288 = math.rsqrt %287 : vector<12x1xf32>
    %289 = vector.broadcast %288 : vector<12x1xf32> to vector<12x64xf32>
    %290 = arith.mulf %280, %289 : vector<12x64xf32>
    %291 = vector.broadcast %16 : vector<1x64xf32> to vector<12x64xf32>
    %292 = arith.mulf %290, %291 : vector<12x64xf32>
    %293 = vector.broadcast %18 : vector<1x64xf32> to vector<12x64xf32>
    %294 = arith.addf %292, %293 : vector<12x64xf32>
    %cst_121 = arith.constant dense<0.000000e+00> : vector<12x128xf32>
    %295 = tpu.matmul %294, %20, %cst_121 {dimension_numbers = #tpu.dot_dimension_numbers<[1], [0], [0], [1], [0, 0, 1, 1], [], []>} : vector<12x64xf32>, vector<64x128xf32>, vector<12x128xf32> -> vector<12x128xf32>
    %296 = vector.broadcast %22 : vector<1x128xf32> to vector<12x128xf32>
    %297 = arith.addf %295, %296 : vector<12x128xf32>
    %cst_122 = arith.constant 0.000000e+00 : f32
    %298 = vector.broadcast %cst_122 : f32 to vector<12x128xf32>
    %299 = arith.maximumf %297, %298 : vector<12x128xf32>
    %cst_123 = arith.constant dense<0.000000e+00> : vector<12x64xf32>
    %300 = tpu.matmul %299, %24, %cst_123 {dimension_numbers = #tpu.dot_dimension_numbers<[1], [0], [0], [1], [0, 0, 1, 1], [], []>} : vector<12x128xf32>, vector<128x64xf32>, vector<12x64xf32> -> vector<12x64xf32>
    %301 = vector.broadcast %26 : vector<1x64xf32> to vector<12x64xf32>
    %302 = arith.addf %300, %301 : vector<12x64xf32>
    %303 = arith.addf %294, %302 : vector<12x64xf32>
    %cst_124 = arith.constant dense<0.000000e+00> : vector<12xf32>
    %304 = vector.multi_reduction <add>, %303, %cst_124 [1] : vector<12x64xf32> to vector<12xf32>
    %305 = vector.shape_cast %304 : vector<12xf32> to vector<12x1xf32>
    %cst_125 = arith.constant 6.400000e+01 : f32
    %306 = vector.broadcast %cst_125 : f32 to vector<12x1xf32>
    %307 = arith.divf %305, %306 : vector<12x1xf32>
    %308 = vector.broadcast %307 : vector<12x1xf32> to vector<12x64xf32>
    %309 = arith.subf %303, %308 : vector<12x64xf32>
    %310 = arith.mulf %309, %309 : vector<12x64xf32>
    %cst_126 = arith.constant dense<0.000000e+00> : vector<12xf32>
    %311 = vector.multi_reduction <add>, %310, %cst_126 [1] : vector<12x64xf32> to vector<12xf32>
    %312 = vector.shape_cast %311 : vector<12xf32> to vector<12x1xf32>
    %cst_127 = arith.constant 6.400000e+01 : f32
    %313 = vector.broadcast %cst_127 : f32 to vector<12x1xf32>
    %314 = arith.divf %312, %313 : vector<12x1xf32>
    %cst_128 = arith.constant 9.99999974E-6 : f32
    %315 = vector.broadcast %cst_128 : f32 to vector<12x1xf32>
    %316 = arith.addf %314, %315 : vector<12x1xf32>
    %317 = math.rsqrt %316 : vector<12x1xf32>
    %318 = vector.broadcast %317 : vector<12x1xf32> to vector<12x64xf32>
    %319 = arith.mulf %309, %318 : vector<12x64xf32>
    %320 = vector.broadcast %28 : vector<1x64xf32> to vector<12x64xf32>
    %321 = arith.mulf %319, %320 : vector<12x64xf32>
    %322 = vector.broadcast %30 : vector<1x64xf32> to vector<12x64xf32>
    %323 = arith.addf %321, %322 : vector<12x64xf32>
    %c1_129 = arith.constant 1 : index
    %c0_130 = arith.constant 0 : index
    %c0_131 = arith.constant 0 : index
    %324 = vector.load %arg19[%c1_129, %c0_130, %c0_131] : memref<2x12x64xf32, #tpu.memory_space<vmem>>, vector<1x12x64xf32>
    %325 = vector.shape_cast %324 : vector<1x12x64xf32> to vector<12x64xf32>
    %326 = vector.shape_cast %323 : vector<12x64xf32> to vector<1x12x64xf32>
    tpu.vector_store %arg19[%c1_129, %c0_130, %c0_131], %326 {strides = array<i32>} : memref<2x12x64xf32, #tpu.memory_space<vmem>>, vector<1x12x64xf32>,
    %c1_i32 = arith.constant 1 : i32
    %327 = arith.cmpi eq, %arg0, %c1_i32 : i32
    %328 = arith.extui %327 : i1 to i32
    %c0_i32_132 = arith.constant 0 : i32
    %329 = arith.cmpi ne, %328, %c0_i32_132 : i32
    scf.if %329 {
      %c0_133 = arith.constant 0 : index
      %c0_134 = arith.constant 0 : index
      %c0_135 = arith.constant 0 : index
      %330 = vector.load %arg19[%c0_133, %c0_134, %c0_135] : memref<2x12x64xf32, #tpu.memory_space<vmem>>, vector<1x12x64xf32>
      %331 = vector.shape_cast %330 : vector<1x12x64xf32> to vector<12x64xf32>
      %c0_136 = arith.constant 0 : index
      %c0_137 = arith.constant 0 : index
      %332 = vector.load %arg17[%c0_136, %c0_137] : memref<1x64xf32, #tpu.memory_space<vmem>>, vector<1x64xf32>
      %c0_138 = arith.constant 0 : index
      %c0_139 = arith.constant 0 : index
      %333 = vector.load %arg18[%c0_138, %c0_139] : memref<1x64xf32, #tpu.memory_space<vmem>>, vector<1x64xf32>
      %cst_140 = arith.constant dense<0.000000e+00> : vector<12xf32>
      %334 = vector.multi_reduction <add>, %331, %cst_140 [1] : vector<12x64xf32> to vector<12xf32>
      %335 = vector.shape_cast %334 : vector<12xf32> to vector<12x1xf32>
      %cst_141 = arith.constant 6.400000e+01 : f32
      %336 = vector.broadcast %cst_141 : f32 to vector<12x1xf32>
      %337 = arith.divf %335, %336 : vector<12x1xf32>
      %338 = vector.broadcast %337 : vector<12x1xf32> to vector<12x64xf32>
      %339 = arith.subf %331, %338 : vector<12x64xf32>
      %340 = arith.mulf %339, %339 : vector<12x64xf32>
      %cst_142 = arith.constant dense<0.000000e+00> : vector<12xf32>
      %341 = vector.multi_reduction <add>, %340, %cst_142 [1] : vector<12x64xf32> to vector<12xf32>
      %342 = vector.shape_cast %341 : vector<12xf32> to vector<12x1xf32>
      %cst_143 = arith.constant 6.400000e+01 : f32
      %343 = vector.broadcast %cst_143 : f32 to vector<12x1xf32>
      %344 = arith.divf %342, %343 : vector<12x1xf32>
      %cst_144 = arith.constant 9.99999974E-6 : f32
      %345 = vector.broadcast %cst_144 : f32 to vector<12x1xf32>
      %346 = arith.addf %344, %345 : vector<12x1xf32>
      %347 = math.rsqrt %346 : vector<12x1xf32>
      %348 = vector.broadcast %347 : vector<12x1xf32> to vector<12x64xf32>
      %349 = arith.mulf %339, %348 : vector<12x64xf32>
      %350 = vector.broadcast %332 : vector<1x64xf32> to vector<12x64xf32>
      %351 = arith.mulf %349, %350 : vector<12x64xf32>
      %352 = vector.broadcast %333 : vector<1x64xf32> to vector<12x64xf32>
      %353 = arith.addf %351, %352 : vector<12x64xf32>
      %c0_145 = arith.constant 0 : index
      %c0_146 = arith.constant 0 : index
      %c0_147 = arith.constant 0 : index
      %354 = vector.load %arg19[%c0_145, %c0_146, %c0_147] : memref<2x12x64xf32, #tpu.memory_space<vmem>>, vector<1x12x64xf32>
      %355 = vector.shape_cast %354 : vector<1x12x64xf32> to vector<12x64xf32>
      %356 = vector.shape_cast %353 : vector<12x64xf32> to vector<1x12x64xf32>
      tpu.vector_store %arg19[%c0_145, %c0_146, %c0_147], %356 {strides = array<i32>} : memref<2x12x64xf32, #tpu.memory_space<vmem>>, vector<1x12x64xf32>,
      %c1_148 = arith.constant 1 : index
      %c0_149 = arith.constant 0 : index
      %c0_150 = arith.constant 0 : index
      %357 = vector.load %arg19[%c1_148, %c0_149, %c0_150] : memref<2x12x64xf32, #tpu.memory_space<vmem>>, vector<1x12x64xf32>
      %358 = vector.shape_cast %357 : vector<1x12x64xf32> to vector<12x64xf32>
      %c0_151 = arith.constant 0 : index
      %c0_152 = arith.constant 0 : index
      %359 = vector.load %arg17[%c0_151, %c0_152] : memref<1x64xf32, #tpu.memory_space<vmem>>, vector<1x64xf32>
      %c0_153 = arith.constant 0 : index
      %c0_154 = arith.constant 0 : index
      %360 = vector.load %arg18[%c0_153, %c0_154] : memref<1x64xf32, #tpu.memory_space<vmem>>, vector<1x64xf32>
      %cst_155 = arith.constant dense<0.000000e+00> : vector<12xf32>
      %361 = vector.multi_reduction <add>, %358, %cst_155 [1] : vector<12x64xf32> to vector<12xf32>
      %362 = vector.shape_cast %361 : vector<12xf32> to vector<12x1xf32>
      %cst_156 = arith.constant 6.400000e+01 : f32
      %363 = vector.broadcast %cst_156 : f32 to vector<12x1xf32>
      %364 = arith.divf %362, %363 : vector<12x1xf32>
      %365 = vector.broadcast %364 : vector<12x1xf32> to vector<12x64xf32>
      %366 = arith.subf %358, %365 : vector<12x64xf32>
      %367 = arith.mulf %366, %366 : vector<12x64xf32>
      %cst_157 = arith.constant dense<0.000000e+00> : vector<12xf32>
      %368 = vector.multi_reduction <add>, %367, %cst_157 [1] : vector<12x64xf32> to vector<12xf32>
      %369 = vector.shape_cast %368 : vector<12xf32> to vector<12x1xf32>
      %cst_158 = arith.constant 6.400000e+01 : f32
      %370 = vector.broadcast %cst_158 : f32 to vector<12x1xf32>
      %371 = arith.divf %369, %370 : vector<12x1xf32>
      %cst_159 = arith.constant 9.99999974E-6 : f32
      %372 = vector.broadcast %cst_159 : f32 to vector<12x1xf32>
      %373 = arith.addf %371, %372 : vector<12x1xf32>
      %374 = math.rsqrt %373 : vector<12x1xf32>
      %375 = vector.broadcast %374 : vector<12x1xf32> to vector<12x64xf32>
      %376 = arith.mulf %366, %375 : vector<12x64xf32>
      %377 = vector.broadcast %359 : vector<1x64xf32> to vector<12x64xf32>
      %378 = arith.mulf %376, %377 : vector<12x64xf32>
      %379 = vector.broadcast %360 : vector<1x64xf32> to vector<12x64xf32>
      %380 = arith.addf %378, %379 : vector<12x64xf32>
      %c1_160 = arith.constant 1 : index
      %c0_161 = arith.constant 0 : index
      %c0_162 = arith.constant 0 : index
      %381 = vector.load %arg19[%c1_160, %c0_161, %c0_162] : memref<2x12x64xf32, #tpu.memory_space<vmem>>, vector<1x12x64xf32>
      %382 = vector.shape_cast %381 : vector<1x12x64xf32> to vector<12x64xf32>
      %383 = vector.shape_cast %380 : vector<12x64xf32> to vector<1x12x64xf32>
      tpu.vector_store %arg19[%c1_160, %c0_161, %c0_162], %383 {strides = array<i32>} : memref<2x12x64xf32, #tpu.memory_space<vmem>>, vector<1x12x64xf32>,
    } else {
    }
    return
  }
  func.func @transform_0(%arg0: i32) -> (i32, i32, i32) {
    %c0_i32 = arith.constant 0 : i32
    %c0_i32_0 = arith.constant 0 : i32
    %c0_i32_1 = arith.constant 0 : i32
    %c0_i32_2 = arith.constant 0 : i32
    return %c0_i32, %c0_i32_0, %c0_i32_1 : i32, i32, i32
  }
  func.func @transform_1(%arg0: i32) -> (i32, i32, i32) {
    %c0_i32 = arith.constant 0 : i32
    %c0_i32_0 = arith.constant 0 : i32
    %c0_i32_1 = arith.constant 0 : i32
    %c0_i32_2 = arith.constant 0 : i32
    return %c0_i32, %c0_i32_0, %c0_i32_1 : i32, i32, i32
  }
  func.func @transform_2(%arg0: i32) -> (i32, i32, i32) {
    %c0_i32 = arith.constant 0 : i32
    %c0_i32_0 = arith.constant 0 : i32
    %c0_i32_1 = arith.constant 0 : i32
    return %arg0, %c0_i32, %c0_i32_0 : i32, i32, i32
  }
  func.func @transform_3(%arg0: i32) -> (i32, i32, i32) {
    %c0_i32 = arith.constant 0 : i32
    %c0_i32_0 = arith.constant 0 : i32
    %c0_i32_1 = arith.constant 0 : i32
    return %arg0, %c0_i32, %c0_i32_0 : i32, i32, i32
  }
  func.func @transform_4(%arg0: i32) -> (i32, i32, i32) {
    %c0_i32 = arith.constant 0 : i32
    %c0_i32_0 = arith.constant 0 : i32
    %c0_i32_1 = arith.constant 0 : i32
    return %arg0, %c0_i32, %c0_i32_0 : i32, i32, i32
  }
  func.func @transform_5(%arg0: i32) -> (i32, i32, i32) {
    %c0_i32 = arith.constant 0 : i32
    %c0_i32_0 = arith.constant 0 : i32
    %c0_i32_1 = arith.constant 0 : i32
    return %arg0, %c0_i32, %c0_i32_0 : i32, i32, i32
  }
  func.func @transform_6(%arg0: i32) -> (i32, i32, i32) {
    %c0_i32 = arith.constant 0 : i32
    %c0_i32_0 = arith.constant 0 : i32
    %c0_i32_1 = arith.constant 0 : i32
    return %arg0, %c0_i32, %c0_i32_0 : i32, i32, i32
  }
  func.func @transform_7(%arg0: i32) -> (i32, i32, i32) {
    %c0_i32 = arith.constant 0 : i32
    %c0_i32_0 = arith.constant 0 : i32
    %c0_i32_1 = arith.constant 0 : i32
    return %arg0, %c0_i32, %c0_i32_0 : i32, i32, i32
  }
  func.func @transform_8(%arg0: i32) -> (i32, i32, i32) {
    %c0_i32 = arith.constant 0 : i32
    %c0_i32_0 = arith.constant 0 : i32
    %c0_i32_1 = arith.constant 0 : i32
    return %arg0, %c0_i32, %c0_i32_0 : i32, i32, i32
  }
  func.func @transform_9(%arg0: i32) -> (i32, i32, i32) {
    %c0_i32 = arith.constant 0 : i32
    %c0_i32_0 = arith.constant 0 : i32
    %c0_i32_1 = arith.constant 0 : i32
    return %arg0, %c0_i32, %c0_i32_0 : i32, i32, i32
  }
  func.func @transform_10(%arg0: i32) -> (i32, i32, i32) {
    %c0_i32 = arith.constant 0 : i32
    %c0_i32_0 = arith.constant 0 : i32
    %c0_i32_1 = arith.constant 0 : i32
    return %arg0, %c0_i32, %c0_i32_0 : i32, i32, i32
  }
  func.func @transform_11(%arg0: i32) -> (i32, i32, i32) {
    %c0_i32 = arith.constant 0 : i32
    %c0_i32_0 = arith.constant 0 : i32
    %c0_i32_1 = arith.constant 0 : i32
    return %arg0, %c0_i32, %c0_i32_0 : i32, i32, i32
  }
  func.func @transform_12(%arg0: i32) -> (i32, i32, i32) {
    %c0_i32 = arith.constant 0 : i32
    %c0_i32_0 = arith.constant 0 : i32
    %c0_i32_1 = arith.constant 0 : i32
    return %arg0, %c0_i32, %c0_i32_0 : i32, i32, i32
  }
  func.func @transform_13(%arg0: i32) -> (i32, i32, i32) {
    %c0_i32 = arith.constant 0 : i32
    %c0_i32_0 = arith.constant 0 : i32
    %c0_i32_1 = arith.constant 0 : i32
    return %arg0, %c0_i32, %c0_i32_0 : i32, i32, i32
  }
  func.func @transform_14(%arg0: i32) -> (i32, i32, i32) {
    %c0_i32 = arith.constant 0 : i32
    %c0_i32_0 = arith.constant 0 : i32
    %c0_i32_1 = arith.constant 0 : i32
    return %arg0, %c0_i32, %c0_i32_0 : i32, i32, i32
  }
  func.func @transform_15(%arg0: i32) -> (i32, i32, i32) {
    %c0_i32 = arith.constant 0 : i32
    %c0_i32_0 = arith.constant 0 : i32
    %c0_i32_1 = arith.constant 0 : i32
    return %arg0, %c0_i32, %c0_i32_0 : i32, i32, i32
  }
  func.func @transform_16(%arg0: i32) -> (i32, i32) {
    %c0_i32 = arith.constant 0 : i32
    %c0_i32_0 = arith.constant 0 : i32
    %c0_i32_1 = arith.constant 0 : i32
    return %c0_i32, %c0_i32_0 : i32, i32
  }
  func.func @transform_17(%arg0: i32) -> (i32, i32) {
    %c0_i32 = arith.constant 0 : i32
    %c0_i32_0 = arith.constant 0 : i32
    %c0_i32_1 = arith.constant 0 : i32
    return %c0_i32, %c0_i32_0 : i32, i32
  }
  func.func @transform_18(%arg0: i32) -> (i32, i32, i32) {
    %c0_i32 = arith.constant 0 : i32
    %c0_i32_0 = arith.constant 0 : i32
    %c0_i32_1 = arith.constant 0 : i32
    %c0_i32_2 = arith.constant 0 : i32
    return %c0_i32, %c0_i32_0, %c0_i32_1 : i32, i32, i32
  }
}

module attributes {stable_mosaic.version = 11 : i64} {
  func.func @_decoder_stack_kernel(%arg0: i32, %arg1: memref<2x10x64xf32, #tpu.memory_space<vmem>>, %arg2: memref<2x12x64xf32, #tpu.memory_space<vmem>>, %arg3: memref<1x64x64xf32, #tpu.memory_space<vmem>>, %arg4: memref<1x1x64xf32, #tpu.memory_space<vmem>>, %arg5: memref<1x64x128xf32, #tpu.memory_space<vmem>>, %arg6: memref<1x1x128xf32, #tpu.memory_space<vmem>>, %arg7: memref<1x64x64xf32, #tpu.memory_space<vmem>>, %arg8: memref<1x1x64xf32, #tpu.memory_space<vmem>>, %arg9: memref<1x1x64xf32, #tpu.memory_space<vmem>>, %arg10: memref<1x1x64xf32, #tpu.memory_space<vmem>>, %arg11: memref<1x64x64xf32, #tpu.memory_space<vmem>>, %arg12: memref<1x1x64xf32, #tpu.memory_space<vmem>>, %arg13: memref<1x64x128xf32, #tpu.memory_space<vmem>>, %arg14: memref<1x1x128xf32, #tpu.memory_space<vmem>>, %arg15: memref<1x64x64xf32, #tpu.memory_space<vmem>>, %arg16: memref<1x1x64xf32, #tpu.memory_space<vmem>>, %arg17: memref<1x1x64xf32, #tpu.memory_space<vmem>>, %arg18: memref<1x1x64xf32, #tpu.memory_space<vmem>>, %arg19: memref<1x64x128xf32, #tpu.memory_space<vmem>>, %arg20: memref<1x1x128xf32, #tpu.memory_space<vmem>>, %arg21: memref<1x128x64xf32, #tpu.memory_space<vmem>>, %arg22: memref<1x1x64xf32, #tpu.memory_space<vmem>>, %arg23: memref<1x1x64xf32, #tpu.memory_space<vmem>>, %arg24: memref<1x1x64xf32, #tpu.memory_space<vmem>>, %arg25: memref<1x64xf32, #tpu.memory_space<vmem>>, %arg26: memref<1x64xf32, #tpu.memory_space<vmem>>, %arg27: memref<64x128xf32, #tpu.memory_space<vmem>>, %arg28: memref<1x128xf32, #tpu.memory_space<vmem>>, %arg29: memref<2x10x128xf32, #tpu.memory_space<vmem>>, %arg30: memref<2x10x64xf32, #tpu.memory_space<vmem>>) attributes {dimension_semantics = [#tpu.dimension_semantics<arbitrary>], iteration_bounds = array<i64: 2>, scalar_prefetch = 0 : i64, scratch_operands = 1 : i64, tpu.core_type = #tpu.core_type<tc>, window_params = [{pipeline_mode = #tpu.pipeline_mode<synchronous>, transform_indices = @transform_0, window_bounds = array<i64: 2, 10, 64>}, {pipeline_mode = #tpu.pipeline_mode<synchronous>, transform_indices = @transform_1, window_bounds = array<i64: 2, 12, 64>}, {transform_indices = @transform_2, window_bounds = array<i64: 1, 64, 64>}, {transform_indices = @transform_3, window_bounds = array<i64: 1, 1, 64>}, {transform_indices = @transform_4, window_bounds = array<i64: 1, 64, 128>}, {transform_indices = @transform_5, window_bounds = array<i64: 1, 1, 128>}, {transform_indices = @transform_6, window_bounds = array<i64: 1, 64, 64>}, {transform_indices = @transform_7, window_bounds = array<i64: 1, 1, 64>}, {transform_indices = @transform_8, window_bounds = array<i64: 1, 1, 64>}, {transform_indices = @transform_9, window_bounds = array<i64: 1, 1, 64>}, {transform_indices = @transform_10, window_bounds = array<i64: 1, 64, 64>}, {transform_indices = @transform_11, window_bounds = array<i64: 1, 1, 64>}, {transform_indices = @transform_12, window_bounds = array<i64: 1, 64, 128>}, {transform_indices = @transform_13, window_bounds = array<i64: 1, 1, 128>}, {transform_indices = @transform_14, window_bounds = array<i64: 1, 64, 64>}, {transform_indices = @transform_15, window_bounds = array<i64: 1, 1, 64>}, {transform_indices = @transform_16, window_bounds = array<i64: 1, 1, 64>}, {transform_indices = @transform_17, window_bounds = array<i64: 1, 1, 64>}, {transform_indices = @transform_18, window_bounds = array<i64: 1, 64, 128>}, {transform_indices = @transform_19, window_bounds = array<i64: 1, 1, 128>}, {transform_indices = @transform_20, window_bounds = array<i64: 1, 128, 64>}, {transform_indices = @transform_21, window_bounds = array<i64: 1, 1, 64>}, {transform_indices = @transform_22, window_bounds = array<i64: 1, 1, 64>}, {transform_indices = @transform_23, window_bounds = array<i64: 1, 1, 64>}, {pipeline_mode = #tpu.pipeline_mode<synchronous>, transform_indices = @transform_24, window_bounds = array<i64: 1, 64>}, {pipeline_mode = #tpu.pipeline_mode<synchronous>, transform_indices = @transform_25, window_bounds = array<i64: 1, 64>}, {pipeline_mode = #tpu.pipeline_mode<synchronous>, transform_indices = @transform_26, window_bounds = array<i64: 64, 128>}, {pipeline_mode = #tpu.pipeline_mode<synchronous>, transform_indices = @transform_27, window_bounds = array<i64: 1, 128>}, {pipeline_mode = #tpu.pipeline_mode<synchronous>, transform_indices = @transform_28, window_bounds = array<i64: 2, 10, 128>}]} {
    %c0_i32 = arith.constant 0 : i32
    %0 = arith.cmpi eq, %arg0, %c0_i32 : i32
    %1 = arith.extui %0 : i1 to i32
    %c0_i32_0 = arith.constant 0 : i32
    %2 = arith.cmpi ne, %1, %c0_i32_0 : i32
    scf.if %2 {
      %c0_217 = arith.constant 0 : index
      %c0_218 = arith.constant 0 : index
      %c0_219 = arith.constant 0 : index
      %552 = vector.load %arg1[%c0_217, %c0_218, %c0_219] : memref<2x10x64xf32, #tpu.memory_space<vmem>>, vector<2x10x64xf32>
      %c0_220 = arith.constant 0 : index
      %c0_221 = arith.constant 0 : index
      %c0_222 = arith.constant 0 : index
      %553 = vector.load %arg30[%c0_220, %c0_221, %c0_222] : memref<2x10x64xf32, #tpu.memory_space<vmem>>, vector<2x10x64xf32>
      tpu.vector_store %arg30[%c0_220, %c0_221, %c0_222], %552 {strides = array<i32>} : memref<2x10x64xf32, #tpu.memory_space<vmem>>, vector<2x10x64xf32>,
    } else {
    }
    %3 = tpu.iota {dimensions = array<i32: 0>} : vector<10x10xi32>
    %4 = tpu.iota {dimensions = array<i32: 1>} : vector<10x10xi32>
    %5 = arith.cmpi sgt, %4, %3 : vector<10x10xi32>
    %cst = arith.constant -1.000000e+09 : f32
    %cst_1 = arith.constant 0.000000e+00 : f32
    %6 = vector.broadcast %cst : f32 to vector<10x10xf32>
    %7 = vector.broadcast %cst_1 : f32 to vector<10x10xf32>
    %8 = arith.select %5, %6, %7 : vector<10x10xi1>, vector<10x10xf32>
    %c0 = arith.constant 0 : index
    %c0_2 = arith.constant 0 : index
    %c0_3 = arith.constant 0 : index
    %9 = vector.load %arg3[%c0, %c0_2, %c0_3] : memref<1x64x64xf32, #tpu.memory_space<vmem>>, vector<1x64x64xf32>
    %10 = vector.shape_cast %9 : vector<1x64x64xf32> to vector<64x64xf32>
    %c0_4 = arith.constant 0 : index
    %c0_5 = arith.constant 0 : index
    %c0_6 = arith.constant 0 : index
    %11 = vector.load %arg4[%c0_4, %c0_5, %c0_6] : memref<1x1x64xf32, #tpu.memory_space<vmem>>, vector<1x1x64xf32>
    %12 = vector.shape_cast %11 : vector<1x1x64xf32> to vector<1x64xf32>
    %c0_7 = arith.constant 0 : index
    %c0_8 = arith.constant 0 : index
    %c0_9 = arith.constant 0 : index
    %13 = vector.load %arg5[%c0_7, %c0_8, %c0_9] : memref<1x64x128xf32, #tpu.memory_space<vmem>>, vector<1x64x128xf32>
    %14 = vector.shape_cast %13 : vector<1x64x128xf32> to vector<64x128xf32>
    %c0_10 = arith.constant 0 : index
    %c0_11 = arith.constant 0 : index
    %c0_12 = arith.constant 0 : index
    %15 = vector.load %arg6[%c0_10, %c0_11, %c0_12] : memref<1x1x128xf32, #tpu.memory_space<vmem>>, vector<1x1x128xf32>
    %16 = vector.shape_cast %15 : vector<1x1x128xf32> to vector<1x128xf32>
    %c0_13 = arith.constant 0 : index
    %c0_14 = arith.constant 0 : index
    %c0_15 = arith.constant 0 : index
    %17 = vector.load %arg7[%c0_13, %c0_14, %c0_15] : memref<1x64x64xf32, #tpu.memory_space<vmem>>, vector<1x64x64xf32>
    %18 = vector.shape_cast %17 : vector<1x64x64xf32> to vector<64x64xf32>
    %c0_16 = arith.constant 0 : index
    %c0_17 = arith.constant 0 : index
    %c0_18 = arith.constant 0 : index
    %19 = vector.load %arg8[%c0_16, %c0_17, %c0_18] : memref<1x1x64xf32, #tpu.memory_space<vmem>>, vector<1x1x64xf32>
    %20 = vector.shape_cast %19 : vector<1x1x64xf32> to vector<1x64xf32>
    %c0_19 = arith.constant 0 : index
    %c0_20 = arith.constant 0 : index
    %c0_21 = arith.constant 0 : index
    %21 = vector.load %arg9[%c0_19, %c0_20, %c0_21] : memref<1x1x64xf32, #tpu.memory_space<vmem>>, vector<1x1x64xf32>
    %22 = vector.shape_cast %21 : vector<1x1x64xf32> to vector<1x64xf32>
    %c0_22 = arith.constant 0 : index
    %c0_23 = arith.constant 0 : index
    %c0_24 = arith.constant 0 : index
    %23 = vector.load %arg10[%c0_22, %c0_23, %c0_24] : memref<1x1x64xf32, #tpu.memory_space<vmem>>, vector<1x1x64xf32>
    %24 = vector.shape_cast %23 : vector<1x1x64xf32> to vector<1x64xf32>
    %c0_25 = arith.constant 0 : index
    %c0_26 = arith.constant 0 : index
    %c0_27 = arith.constant 0 : index
    %25 = vector.load %arg11[%c0_25, %c0_26, %c0_27] : memref<1x64x64xf32, #tpu.memory_space<vmem>>, vector<1x64x64xf32>
    %26 = vector.shape_cast %25 : vector<1x64x64xf32> to vector<64x64xf32>
    %c0_28 = arith.constant 0 : index
    %c0_29 = arith.constant 0 : index
    %c0_30 = arith.constant 0 : index
    %27 = vector.load %arg12[%c0_28, %c0_29, %c0_30] : memref<1x1x64xf32, #tpu.memory_space<vmem>>, vector<1x1x64xf32>
    %28 = vector.shape_cast %27 : vector<1x1x64xf32> to vector<1x64xf32>
    %c0_31 = arith.constant 0 : index
    %c0_32 = arith.constant 0 : index
    %c0_33 = arith.constant 0 : index
    %29 = vector.load %arg13[%c0_31, %c0_32, %c0_33] : memref<1x64x128xf32, #tpu.memory_space<vmem>>, vector<1x64x128xf32>
    %30 = vector.shape_cast %29 : vector<1x64x128xf32> to vector<64x128xf32>
    %c0_34 = arith.constant 0 : index
    %c0_35 = arith.constant 0 : index
    %c0_36 = arith.constant 0 : index
    %31 = vector.load %arg14[%c0_34, %c0_35, %c0_36] : memref<1x1x128xf32, #tpu.memory_space<vmem>>, vector<1x1x128xf32>
    %32 = vector.shape_cast %31 : vector<1x1x128xf32> to vector<1x128xf32>
    %c0_37 = arith.constant 0 : index
    %c0_38 = arith.constant 0 : index
    %c0_39 = arith.constant 0 : index
    %33 = vector.load %arg15[%c0_37, %c0_38, %c0_39] : memref<1x64x64xf32, #tpu.memory_space<vmem>>, vector<1x64x64xf32>
    %34 = vector.shape_cast %33 : vector<1x64x64xf32> to vector<64x64xf32>
    %c0_40 = arith.constant 0 : index
    %c0_41 = arith.constant 0 : index
    %c0_42 = arith.constant 0 : index
    %35 = vector.load %arg16[%c0_40, %c0_41, %c0_42] : memref<1x1x64xf32, #tpu.memory_space<vmem>>, vector<1x1x64xf32>
    %36 = vector.shape_cast %35 : vector<1x1x64xf32> to vector<1x64xf32>
    %c0_43 = arith.constant 0 : index
    %c0_44 = arith.constant 0 : index
    %c0_45 = arith.constant 0 : index
    %37 = vector.load %arg17[%c0_43, %c0_44, %c0_45] : memref<1x1x64xf32, #tpu.memory_space<vmem>>, vector<1x1x64xf32>
    %38 = vector.shape_cast %37 : vector<1x1x64xf32> to vector<1x64xf32>
    %c0_46 = arith.constant 0 : index
    %c0_47 = arith.constant 0 : index
    %c0_48 = arith.constant 0 : index
    %39 = vector.load %arg18[%c0_46, %c0_47, %c0_48] : memref<1x1x64xf32, #tpu.memory_space<vmem>>, vector<1x1x64xf32>
    %40 = vector.shape_cast %39 : vector<1x1x64xf32> to vector<1x64xf32>
    %c0_49 = arith.constant 0 : index
    %c0_50 = arith.constant 0 : index
    %c0_51 = arith.constant 0 : index
    %41 = vector.load %arg19[%c0_49, %c0_50, %c0_51] : memref<1x64x128xf32, #tpu.memory_space<vmem>>, vector<1x64x128xf32>
    %42 = vector.shape_cast %41 : vector<1x64x128xf32> to vector<64x128xf32>
    %c0_52 = arith.constant 0 : index
    %c0_53 = arith.constant 0 : index
    %c0_54 = arith.constant 0 : index
    %43 = vector.load %arg20[%c0_52, %c0_53, %c0_54] : memref<1x1x128xf32, #tpu.memory_space<vmem>>, vector<1x1x128xf32>
    %44 = vector.shape_cast %43 : vector<1x1x128xf32> to vector<1x128xf32>
    %c0_55 = arith.constant 0 : index
    %c0_56 = arith.constant 0 : index
    %c0_57 = arith.constant 0 : index
    %45 = vector.load %arg21[%c0_55, %c0_56, %c0_57] : memref<1x128x64xf32, #tpu.memory_space<vmem>>, vector<1x128x64xf32>
    %46 = vector.shape_cast %45 : vector<1x128x64xf32> to vector<128x64xf32>
    %c0_58 = arith.constant 0 : index
    %c0_59 = arith.constant 0 : index
    %c0_60 = arith.constant 0 : index
    %47 = vector.load %arg22[%c0_58, %c0_59, %c0_60] : memref<1x1x64xf32, #tpu.memory_space<vmem>>, vector<1x1x64xf32>
    %48 = vector.shape_cast %47 : vector<1x1x64xf32> to vector<1x64xf32>
    %c0_61 = arith.constant 0 : index
    %c0_62 = arith.constant 0 : index
    %c0_63 = arith.constant 0 : index
    %49 = vector.load %arg23[%c0_61, %c0_62, %c0_63] : memref<1x1x64xf32, #tpu.memory_space<vmem>>, vector<1x1x64xf32>
    %50 = vector.shape_cast %49 : vector<1x1x64xf32> to vector<1x64xf32>
    %c0_64 = arith.constant 0 : index
    %c0_65 = arith.constant 0 : index
    %c0_66 = arith.constant 0 : index
    %51 = vector.load %arg24[%c0_64, %c0_65, %c0_66] : memref<1x1x64xf32, #tpu.memory_space<vmem>>, vector<1x1x64xf32>
    %52 = vector.shape_cast %51 : vector<1x1x64xf32> to vector<1x64xf32>
    %c0_67 = arith.constant 0 : index
    %c0_68 = arith.constant 0 : index
    %c0_69 = arith.constant 0 : index
    %53 = vector.load %arg30[%c0_67, %c0_68, %c0_69] : memref<2x10x64xf32, #tpu.memory_space<vmem>>, vector<1x10x64xf32>
    %54 = vector.shape_cast %53 : vector<1x10x64xf32> to vector<10x64xf32>
    %c0_70 = arith.constant 0 : index
    %c0_71 = arith.constant 0 : index
    %c0_72 = arith.constant 0 : index
    %55 = vector.load %arg2[%c0_70, %c0_71, %c0_72] : memref<2x12x64xf32, #tpu.memory_space<vmem>>, vector<1x12x64xf32>
    %56 = vector.shape_cast %55 : vector<1x12x64xf32> to vector<12x64xf32>
    %cst_73 = arith.constant dense<0.000000e+00> : vector<10x64xf32>
    %57 = tpu.matmul %54, %10, %cst_73 {dimension_numbers = #tpu.dot_dimension_numbers<[1], [0], [0], [1], [0, 0, 1, 1], [], []>} : vector<10x64xf32>, vector<64x64xf32>, vector<10x64xf32> -> vector<10x64xf32>
    %58 = vector.broadcast %12 : vector<1x64xf32> to vector<10x64xf32>
    %59 = arith.addf %57, %58 : vector<10x64xf32>
    %cst_74 = arith.constant 2.500000e-01 : f32
    %60 = vector.broadcast %cst_74 : f32 to vector<10x64xf32>
    %61 = arith.mulf %59, %60 : vector<10x64xf32>
    %cst_75 = arith.constant dense<0.000000e+00> : vector<10x128xf32>
    %62 = tpu.matmul %54, %14, %cst_75 {dimension_numbers = #tpu.dot_dimension_numbers<[1], [0], [0], [1], [0, 0, 1, 1], [], []>} : vector<10x64xf32>, vector<64x128xf32>, vector<10x128xf32> -> vector<10x128xf32>
    %63 = vector.broadcast %16 : vector<1x128xf32> to vector<10x128xf32>
    %64 = arith.addf %62, %63 : vector<10x128xf32>
    %cst_76 = arith.constant 0.000000e+00 : f32
    %65 = vector.broadcast %cst_76 : f32 to vector<10x64xf32>
    %66 = vector.extract_strided_slice %61 {offsets = [0, 0], sizes = [10, 16], strides = [1, 1]} : vector<10x64xf32> to vector<10x16xf32>
    %67 = vector.extract_strided_slice %64 {offsets = [0, 0], sizes = [10, 16], strides = [1, 1]} : vector<10x128xf32> to vector<10x16xf32>
    %68 = vector.extract_strided_slice %64 {offsets = [0, 64], sizes = [10, 16], strides = [1, 1]} : vector<10x128xf32> to vector<10x16xf32>
    %cst_77 = arith.constant dense<0.000000e+00> : vector<10x10xf32>
    %69 = tpu.matmul %66, %67, %cst_77 {dimension_numbers = #tpu.dot_dimension_numbers<[1], [1], [0], [0], [0, 0, 1, 0], [], []>} : vector<10x16xf32>, vector<10x16xf32>, vector<10x10xf32> -> vector<10x10xf32>
    %70 = arith.addf %69, %8 : vector<10x10xf32>
    %cst_78 = arith.constant dense<0xFF800000> : vector<10xf32>
    %71 = vector.multi_reduction <maximumf>, %70, %cst_78 [1] : vector<10x10xf32> to vector<10xf32>
    %72 = vector.shape_cast %71 : vector<10xf32> to vector<10x1xf32>
    %73 = vector.broadcast %72 : vector<10x1xf32> to vector<10x10xf32>
    %74 = arith.subf %70, %73 : vector<10x10xf32>
    %75 = math.exp %74 : vector<10x10xf32>
    %cst_79 = arith.constant dense<0.000000e+00> : vector<10xf32>
    %76 = vector.multi_reduction <add>, %75, %cst_79 [1] : vector<10x10xf32> to vector<10xf32>
    %77 = vector.shape_cast %76 : vector<10xf32> to vector<10x1xf32>
    %78 = tpu.reciprocal %77 {approx = true} : vector<10x1xf32> -> vector<10x1xf32>
    %79 = vector.broadcast %78 : vector<10x1xf32> to vector<10x10xf32>
    %80 = arith.mulf %75, %79 : vector<10x10xf32>
    %cst_80 = arith.constant dense<0.000000e+00> : vector<10x16xf32>
    %81 = tpu.matmul %80, %68, %cst_80 {dimension_numbers = #tpu.dot_dimension_numbers<[1], [0], [0], [1], [0, 0, 1, 1], [], []>} : vector<10x10xf32>, vector<10x16xf32>, vector<10x16xf32> -> vector<10x16xf32>
    %82 = vector.extract_strided_slice %18 {offsets = [0, 0], sizes = [16, 64], strides = [1, 1]} : vector<64x64xf32> to vector<16x64xf32>
    %cst_81 = arith.constant dense<0.000000e+00> : vector<10x64xf32>
    %83 = tpu.matmul %81, %82, %cst_81 {dimension_numbers = #tpu.dot_dimension_numbers<[1], [0], [0], [1], [0, 0, 1, 1], [], []>} : vector<10x16xf32>, vector<16x64xf32>, vector<10x64xf32> -> vector<10x64xf32>
    %84 = arith.addf %65, %83 : vector<10x64xf32>
    %85 = vector.extract_strided_slice %61 {offsets = [0, 16], sizes = [10, 16], strides = [1, 1]} : vector<10x64xf32> to vector<10x16xf32>
    %86 = vector.extract_strided_slice %64 {offsets = [0, 16], sizes = [10, 16], strides = [1, 1]} : vector<10x128xf32> to vector<10x16xf32>
    %87 = vector.extract_strided_slice %64 {offsets = [0, 80], sizes = [10, 16], strides = [1, 1]} : vector<10x128xf32> to vector<10x16xf32>
    %cst_82 = arith.constant dense<0.000000e+00> : vector<10x10xf32>
    %88 = tpu.matmul %85, %86, %cst_82 {dimension_numbers = #tpu.dot_dimension_numbers<[1], [1], [0], [0], [0, 0, 1, 0], [], []>} : vector<10x16xf32>, vector<10x16xf32>, vector<10x10xf32> -> vector<10x10xf32>
    %89 = arith.addf %88, %8 : vector<10x10xf32>
    %cst_83 = arith.constant dense<0xFF800000> : vector<10xf32>
    %90 = vector.multi_reduction <maximumf>, %89, %cst_83 [1] : vector<10x10xf32> to vector<10xf32>
    %91 = vector.shape_cast %90 : vector<10xf32> to vector<10x1xf32>
    %92 = vector.broadcast %91 : vector<10x1xf32> to vector<10x10xf32>
    %93 = arith.subf %89, %92 : vector<10x10xf32>
    %94 = math.exp %93 : vector<10x10xf32>
    %cst_84 = arith.constant dense<0.000000e+00> : vector<10xf32>
    %95 = vector.multi_reduction <add>, %94, %cst_84 [1] : vector<10x10xf32> to vector<10xf32>
    %96 = vector.shape_cast %95 : vector<10xf32> to vector<10x1xf32>
    %97 = tpu.reciprocal %96 {approx = true} : vector<10x1xf32> -> vector<10x1xf32>
    %98 = vector.broadcast %97 : vector<10x1xf32> to vector<10x10xf32>
    %99 = arith.mulf %94, %98 : vector<10x10xf32>
    %cst_85 = arith.constant dense<0.000000e+00> : vector<10x16xf32>
    %100 = tpu.matmul %99, %87, %cst_85 {dimension_numbers = #tpu.dot_dimension_numbers<[1], [0], [0], [1], [0, 0, 1, 1], [], []>} : vector<10x10xf32>, vector<10x16xf32>, vector<10x16xf32> -> vector<10x16xf32>
    %101 = vector.extract_strided_slice %18 {offsets = [16, 0], sizes = [16, 64], strides = [1, 1]} : vector<64x64xf32> to vector<16x64xf32>
    %cst_86 = arith.constant dense<0.000000e+00> : vector<10x64xf32>
    %102 = tpu.matmul %100, %101, %cst_86 {dimension_numbers = #tpu.dot_dimension_numbers<[1], [0], [0], [1], [0, 0, 1, 1], [], []>} : vector<10x16xf32>, vector<16x64xf32>, vector<10x64xf32> -> vector<10x64xf32>
    %103 = arith.addf %84, %102 : vector<10x64xf32>
    %104 = vector.extract_strided_slice %61 {offsets = [0, 32], sizes = [10, 16], strides = [1, 1]} : vector<10x64xf32> to vector<10x16xf32>
    %105 = vector.extract_strided_slice %64 {offsets = [0, 32], sizes = [10, 16], strides = [1, 1]} : vector<10x128xf32> to vector<10x16xf32>
    %106 = vector.extract_strided_slice %64 {offsets = [0, 96], sizes = [10, 16], strides = [1, 1]} : vector<10x128xf32> to vector<10x16xf32>
    %cst_87 = arith.constant dense<0.000000e+00> : vector<10x10xf32>
    %107 = tpu.matmul %104, %105, %cst_87 {dimension_numbers = #tpu.dot_dimension_numbers<[1], [1], [0], [0], [0, 0, 1, 0], [], []>} : vector<10x16xf32>, vector<10x16xf32>, vector<10x10xf32> -> vector<10x10xf32>
    %108 = arith.addf %107, %8 : vector<10x10xf32>
    %cst_88 = arith.constant dense<0xFF800000> : vector<10xf32>
    %109 = vector.multi_reduction <maximumf>, %108, %cst_88 [1] : vector<10x10xf32> to vector<10xf32>
    %110 = vector.shape_cast %109 : vector<10xf32> to vector<10x1xf32>
    %111 = vector.broadcast %110 : vector<10x1xf32> to vector<10x10xf32>
    %112 = arith.subf %108, %111 : vector<10x10xf32>
    %113 = math.exp %112 : vector<10x10xf32>
    %cst_89 = arith.constant dense<0.000000e+00> : vector<10xf32>
    %114 = vector.multi_reduction <add>, %113, %cst_89 [1] : vector<10x10xf32> to vector<10xf32>
    %115 = vector.shape_cast %114 : vector<10xf32> to vector<10x1xf32>
    %116 = tpu.reciprocal %115 {approx = true} : vector<10x1xf32> -> vector<10x1xf32>
    %117 = vector.broadcast %116 : vector<10x1xf32> to vector<10x10xf32>
    %118 = arith.mulf %113, %117 : vector<10x10xf32>
    %cst_90 = arith.constant dense<0.000000e+00> : vector<10x16xf32>
    %119 = tpu.matmul %118, %106, %cst_90 {dimension_numbers = #tpu.dot_dimension_numbers<[1], [0], [0], [1], [0, 0, 1, 1], [], []>} : vector<10x10xf32>, vector<10x16xf32>, vector<10x16xf32> -> vector<10x16xf32>
    %120 = vector.extract_strided_slice %18 {offsets = [32, 0], sizes = [16, 64], strides = [1, 1]} : vector<64x64xf32> to vector<16x64xf32>
    %cst_91 = arith.constant dense<0.000000e+00> : vector<10x64xf32>
    %121 = tpu.matmul %119, %120, %cst_91 {dimension_numbers = #tpu.dot_dimension_numbers<[1], [0], [0], [1], [0, 0, 1, 1], [], []>} : vector<10x16xf32>, vector<16x64xf32>, vector<10x64xf32> -> vector<10x64xf32>
    %122 = arith.addf %103, %121 : vector<10x64xf32>
    %123 = vector.extract_strided_slice %61 {offsets = [0, 48], sizes = [10, 16], strides = [1, 1]} : vector<10x64xf32> to vector<10x16xf32>
    %124 = vector.extract_strided_slice %64 {offsets = [0, 48], sizes = [10, 16], strides = [1, 1]} : vector<10x128xf32> to vector<10x16xf32>
    %125 = vector.extract_strided_slice %64 {offsets = [0, 112], sizes = [10, 16], strides = [1, 1]} : vector<10x128xf32> to vector<10x16xf32>
    %cst_92 = arith.constant dense<0.000000e+00> : vector<10x10xf32>
    %126 = tpu.matmul %123, %124, %cst_92 {dimension_numbers = #tpu.dot_dimension_numbers<[1], [1], [0], [0], [0, 0, 1, 0], [], []>} : vector<10x16xf32>, vector<10x16xf32>, vector<10x10xf32> -> vector<10x10xf32>
    %127 = arith.addf %126, %8 : vector<10x10xf32>
    %cst_93 = arith.constant dense<0xFF800000> : vector<10xf32>
    %128 = vector.multi_reduction <maximumf>, %127, %cst_93 [1] : vector<10x10xf32> to vector<10xf32>
    %129 = vector.shape_cast %128 : vector<10xf32> to vector<10x1xf32>
    %130 = vector.broadcast %129 : vector<10x1xf32> to vector<10x10xf32>
    %131 = arith.subf %127, %130 : vector<10x10xf32>
    %132 = math.exp %131 : vector<10x10xf32>
    %cst_94 = arith.constant dense<0.000000e+00> : vector<10xf32>
    %133 = vector.multi_reduction <add>, %132, %cst_94 [1] : vector<10x10xf32> to vector<10xf32>
    %134 = vector.shape_cast %133 : vector<10xf32> to vector<10x1xf32>
    %135 = tpu.reciprocal %134 {approx = true} : vector<10x1xf32> -> vector<10x1xf32>
    %136 = vector.broadcast %135 : vector<10x1xf32> to vector<10x10xf32>
    %137 = arith.mulf %132, %136 : vector<10x10xf32>
    %cst_95 = arith.constant dense<0.000000e+00> : vector<10x16xf32>
    %138 = tpu.matmul %137, %125, %cst_95 {dimension_numbers = #tpu.dot_dimension_numbers<[1], [0], [0], [1], [0, 0, 1, 1], [], []>} : vector<10x10xf32>, vector<10x16xf32>, vector<10x16xf32> -> vector<10x16xf32>
    %139 = vector.extract_strided_slice %18 {offsets = [48, 0], sizes = [16, 64], strides = [1, 1]} : vector<64x64xf32> to vector<16x64xf32>
    %cst_96 = arith.constant dense<0.000000e+00> : vector<10x64xf32>
    %140 = tpu.matmul %138, %139, %cst_96 {dimension_numbers = #tpu.dot_dimension_numbers<[1], [0], [0], [1], [0, 0, 1, 1], [], []>} : vector<10x16xf32>, vector<16x64xf32>, vector<10x64xf32> -> vector<10x64xf32>
    %141 = arith.addf %122, %140 : vector<10x64xf32>
    %142 = vector.broadcast %20 : vector<1x64xf32> to vector<10x64xf32>
    %143 = arith.addf %141, %142 : vector<10x64xf32>
    %144 = arith.addf %54, %143 : vector<10x64xf32>
    %cst_97 = arith.constant dense<0.000000e+00> : vector<10xf32>
    %145 = vector.multi_reduction <add>, %144, %cst_97 [1] : vector<10x64xf32> to vector<10xf32>
    %146 = vector.shape_cast %145 : vector<10xf32> to vector<10x1xf32>
    %cst_98 = arith.constant 6.400000e+01 : f32
    %147 = vector.broadcast %cst_98 : f32 to vector<10x1xf32>
    %148 = arith.divf %146, %147 : vector<10x1xf32>
    %149 = vector.broadcast %148 : vector<10x1xf32> to vector<10x64xf32>
    %150 = arith.subf %144, %149 : vector<10x64xf32>
    %151 = arith.mulf %150, %150 : vector<10x64xf32>
    %cst_99 = arith.constant dense<0.000000e+00> : vector<10xf32>
    %152 = vector.multi_reduction <add>, %151, %cst_99 [1] : vector<10x64xf32> to vector<10xf32>
    %153 = vector.shape_cast %152 : vector<10xf32> to vector<10x1xf32>
    %cst_100 = arith.constant 6.400000e+01 : f32
    %154 = vector.broadcast %cst_100 : f32 to vector<10x1xf32>
    %155 = arith.divf %153, %154 : vector<10x1xf32>
    %cst_101 = arith.constant 9.99999974E-6 : f32
    %156 = vector.broadcast %cst_101 : f32 to vector<10x1xf32>
    %157 = arith.addf %155, %156 : vector<10x1xf32>
    %158 = math.rsqrt %157 : vector<10x1xf32>
    %159 = vector.broadcast %158 : vector<10x1xf32> to vector<10x64xf32>
    %160 = arith.mulf %150, %159 : vector<10x64xf32>
    %161 = vector.broadcast %22 : vector<1x64xf32> to vector<10x64xf32>
    %162 = arith.mulf %160, %161 : vector<10x64xf32>
    %163 = vector.broadcast %24 : vector<1x64xf32> to vector<10x64xf32>
    %164 = arith.addf %162, %163 : vector<10x64xf32>
    %cst_102 = arith.constant dense<0.000000e+00> : vector<10x64xf32>
    %165 = tpu.matmul %164, %26, %cst_102 {dimension_numbers = #tpu.dot_dimension_numbers<[1], [0], [0], [1], [0, 0, 1, 1], [], []>} : vector<10x64xf32>, vector<64x64xf32>, vector<10x64xf32> -> vector<10x64xf32>
    %166 = vector.broadcast %28 : vector<1x64xf32> to vector<10x64xf32>
    %167 = arith.addf %165, %166 : vector<10x64xf32>
    %cst_103 = arith.constant 2.500000e-01 : f32
    %168 = vector.broadcast %cst_103 : f32 to vector<10x64xf32>
    %169 = arith.mulf %167, %168 : vector<10x64xf32>
    %cst_104 = arith.constant dense<0.000000e+00> : vector<12x128xf32>
    %170 = tpu.matmul %56, %30, %cst_104 {dimension_numbers = #tpu.dot_dimension_numbers<[1], [0], [0], [1], [0, 0, 1, 1], [], []>} : vector<12x64xf32>, vector<64x128xf32>, vector<12x128xf32> -> vector<12x128xf32>
    %171 = vector.broadcast %32 : vector<1x128xf32> to vector<12x128xf32>
    %172 = arith.addf %170, %171 : vector<12x128xf32>
    %cst_105 = arith.constant 0.000000e+00 : f32
    %173 = vector.broadcast %cst_105 : f32 to vector<10x64xf32>
    %174 = vector.extract_strided_slice %169 {offsets = [0, 0], sizes = [10, 16], strides = [1, 1]} : vector<10x64xf32> to vector<10x16xf32>
    %175 = vector.extract_strided_slice %172 {offsets = [0, 0], sizes = [12, 16], strides = [1, 1]} : vector<12x128xf32> to vector<12x16xf32>
    %176 = vector.extract_strided_slice %172 {offsets = [0, 64], sizes = [12, 16], strides = [1, 1]} : vector<12x128xf32> to vector<12x16xf32>
    %cst_106 = arith.constant dense<0.000000e+00> : vector<10x12xf32>
    %177 = tpu.matmul %174, %175, %cst_106 {dimension_numbers = #tpu.dot_dimension_numbers<[1], [1], [0], [0], [0, 0, 1, 0], [], []>} : vector<10x16xf32>, vector<12x16xf32>, vector<10x12xf32> -> vector<10x12xf32>
    %cst_107 = arith.constant dense<0xFF800000> : vector<10xf32>
    %178 = vector.multi_reduction <maximumf>, %177, %cst_107 [1] : vector<10x12xf32> to vector<10xf32>
    %179 = vector.shape_cast %178 : vector<10xf32> to vector<10x1xf32>
    %180 = vector.broadcast %179 : vector<10x1xf32> to vector<10x12xf32>
    %181 = arith.subf %177, %180 : vector<10x12xf32>
    %182 = math.exp %181 : vector<10x12xf32>
    %cst_108 = arith.constant dense<0.000000e+00> : vector<10xf32>
    %183 = vector.multi_reduction <add>, %182, %cst_108 [1] : vector<10x12xf32> to vector<10xf32>
    %184 = vector.shape_cast %183 : vector<10xf32> to vector<10x1xf32>
    %185 = tpu.reciprocal %184 {approx = true} : vector<10x1xf32> -> vector<10x1xf32>
    %186 = vector.broadcast %185 : vector<10x1xf32> to vector<10x12xf32>
    %187 = arith.mulf %182, %186 : vector<10x12xf32>
    %cst_109 = arith.constant dense<0.000000e+00> : vector<10x16xf32>
    %188 = tpu.matmul %187, %176, %cst_109 {dimension_numbers = #tpu.dot_dimension_numbers<[1], [0], [0], [1], [0, 0, 1, 1], [], []>} : vector<10x12xf32>, vector<12x16xf32>, vector<10x16xf32> -> vector<10x16xf32>
    %189 = vector.extract_strided_slice %34 {offsets = [0, 0], sizes = [16, 64], strides = [1, 1]} : vector<64x64xf32> to vector<16x64xf32>
    %cst_110 = arith.constant dense<0.000000e+00> : vector<10x64xf32>
    %190 = tpu.matmul %188, %189, %cst_110 {dimension_numbers = #tpu.dot_dimension_numbers<[1], [0], [0], [1], [0, 0, 1, 1], [], []>} : vector<10x16xf32>, vector<16x64xf32>, vector<10x64xf32> -> vector<10x64xf32>
    %191 = arith.addf %173, %190 : vector<10x64xf32>
    %192 = vector.extract_strided_slice %169 {offsets = [0, 16], sizes = [10, 16], strides = [1, 1]} : vector<10x64xf32> to vector<10x16xf32>
    %193 = vector.extract_strided_slice %172 {offsets = [0, 16], sizes = [12, 16], strides = [1, 1]} : vector<12x128xf32> to vector<12x16xf32>
    %194 = vector.extract_strided_slice %172 {offsets = [0, 80], sizes = [12, 16], strides = [1, 1]} : vector<12x128xf32> to vector<12x16xf32>
    %cst_111 = arith.constant dense<0.000000e+00> : vector<10x12xf32>
    %195 = tpu.matmul %192, %193, %cst_111 {dimension_numbers = #tpu.dot_dimension_numbers<[1], [1], [0], [0], [0, 0, 1, 0], [], []>} : vector<10x16xf32>, vector<12x16xf32>, vector<10x12xf32> -> vector<10x12xf32>
    %cst_112 = arith.constant dense<0xFF800000> : vector<10xf32>
    %196 = vector.multi_reduction <maximumf>, %195, %cst_112 [1] : vector<10x12xf32> to vector<10xf32>
    %197 = vector.shape_cast %196 : vector<10xf32> to vector<10x1xf32>
    %198 = vector.broadcast %197 : vector<10x1xf32> to vector<10x12xf32>
    %199 = arith.subf %195, %198 : vector<10x12xf32>
    %200 = math.exp %199 : vector<10x12xf32>
    %cst_113 = arith.constant dense<0.000000e+00> : vector<10xf32>
    %201 = vector.multi_reduction <add>, %200, %cst_113 [1] : vector<10x12xf32> to vector<10xf32>
    %202 = vector.shape_cast %201 : vector<10xf32> to vector<10x1xf32>
    %203 = tpu.reciprocal %202 {approx = true} : vector<10x1xf32> -> vector<10x1xf32>
    %204 = vector.broadcast %203 : vector<10x1xf32> to vector<10x12xf32>
    %205 = arith.mulf %200, %204 : vector<10x12xf32>
    %cst_114 = arith.constant dense<0.000000e+00> : vector<10x16xf32>
    %206 = tpu.matmul %205, %194, %cst_114 {dimension_numbers = #tpu.dot_dimension_numbers<[1], [0], [0], [1], [0, 0, 1, 1], [], []>} : vector<10x12xf32>, vector<12x16xf32>, vector<10x16xf32> -> vector<10x16xf32>
    %207 = vector.extract_strided_slice %34 {offsets = [16, 0], sizes = [16, 64], strides = [1, 1]} : vector<64x64xf32> to vector<16x64xf32>
    %cst_115 = arith.constant dense<0.000000e+00> : vector<10x64xf32>
    %208 = tpu.matmul %206, %207, %cst_115 {dimension_numbers = #tpu.dot_dimension_numbers<[1], [0], [0], [1], [0, 0, 1, 1], [], []>} : vector<10x16xf32>, vector<16x64xf32>, vector<10x64xf32> -> vector<10x64xf32>
    %209 = arith.addf %191, %208 : vector<10x64xf32>
    %210 = vector.extract_strided_slice %169 {offsets = [0, 32], sizes = [10, 16], strides = [1, 1]} : vector<10x64xf32> to vector<10x16xf32>
    %211 = vector.extract_strided_slice %172 {offsets = [0, 32], sizes = [12, 16], strides = [1, 1]} : vector<12x128xf32> to vector<12x16xf32>
    %212 = vector.extract_strided_slice %172 {offsets = [0, 96], sizes = [12, 16], strides = [1, 1]} : vector<12x128xf32> to vector<12x16xf32>
    %cst_116 = arith.constant dense<0.000000e+00> : vector<10x12xf32>
    %213 = tpu.matmul %210, %211, %cst_116 {dimension_numbers = #tpu.dot_dimension_numbers<[1], [1], [0], [0], [0, 0, 1, 0], [], []>} : vector<10x16xf32>, vector<12x16xf32>, vector<10x12xf32> -> vector<10x12xf32>
    %cst_117 = arith.constant dense<0xFF800000> : vector<10xf32>
    %214 = vector.multi_reduction <maximumf>, %213, %cst_117 [1] : vector<10x12xf32> to vector<10xf32>
    %215 = vector.shape_cast %214 : vector<10xf32> to vector<10x1xf32>
    %216 = vector.broadcast %215 : vector<10x1xf32> to vector<10x12xf32>
    %217 = arith.subf %213, %216 : vector<10x12xf32>
    %218 = math.exp %217 : vector<10x12xf32>
    %cst_118 = arith.constant dense<0.000000e+00> : vector<10xf32>
    %219 = vector.multi_reduction <add>, %218, %cst_118 [1] : vector<10x12xf32> to vector<10xf32>
    %220 = vector.shape_cast %219 : vector<10xf32> to vector<10x1xf32>
    %221 = tpu.reciprocal %220 {approx = true} : vector<10x1xf32> -> vector<10x1xf32>
    %222 = vector.broadcast %221 : vector<10x1xf32> to vector<10x12xf32>
    %223 = arith.mulf %218, %222 : vector<10x12xf32>
    %cst_119 = arith.constant dense<0.000000e+00> : vector<10x16xf32>
    %224 = tpu.matmul %223, %212, %cst_119 {dimension_numbers = #tpu.dot_dimension_numbers<[1], [0], [0], [1], [0, 0, 1, 1], [], []>} : vector<10x12xf32>, vector<12x16xf32>, vector<10x16xf32> -> vector<10x16xf32>
    %225 = vector.extract_strided_slice %34 {offsets = [32, 0], sizes = [16, 64], strides = [1, 1]} : vector<64x64xf32> to vector<16x64xf32>
    %cst_120 = arith.constant dense<0.000000e+00> : vector<10x64xf32>
    %226 = tpu.matmul %224, %225, %cst_120 {dimension_numbers = #tpu.dot_dimension_numbers<[1], [0], [0], [1], [0, 0, 1, 1], [], []>} : vector<10x16xf32>, vector<16x64xf32>, vector<10x64xf32> -> vector<10x64xf32>
    %227 = arith.addf %209, %226 : vector<10x64xf32>
    %228 = vector.extract_strided_slice %169 {offsets = [0, 48], sizes = [10, 16], strides = [1, 1]} : vector<10x64xf32> to vector<10x16xf32>
    %229 = vector.extract_strided_slice %172 {offsets = [0, 48], sizes = [12, 16], strides = [1, 1]} : vector<12x128xf32> to vector<12x16xf32>
    %230 = vector.extract_strided_slice %172 {offsets = [0, 112], sizes = [12, 16], strides = [1, 1]} : vector<12x128xf32> to vector<12x16xf32>
    %cst_121 = arith.constant dense<0.000000e+00> : vector<10x12xf32>
    %231 = tpu.matmul %228, %229, %cst_121 {dimension_numbers = #tpu.dot_dimension_numbers<[1], [1], [0], [0], [0, 0, 1, 0], [], []>} : vector<10x16xf32>, vector<12x16xf32>, vector<10x12xf32> -> vector<10x12xf32>
    %cst_122 = arith.constant dense<0xFF800000> : vector<10xf32>
    %232 = vector.multi_reduction <maximumf>, %231, %cst_122 [1] : vector<10x12xf32> to vector<10xf32>
    %233 = vector.shape_cast %232 : vector<10xf32> to vector<10x1xf32>
    %234 = vector.broadcast %233 : vector<10x1xf32> to vector<10x12xf32>
    %235 = arith.subf %231, %234 : vector<10x12xf32>
    %236 = math.exp %235 : vector<10x12xf32>
    %cst_123 = arith.constant dense<0.000000e+00> : vector<10xf32>
    %237 = vector.multi_reduction <add>, %236, %cst_123 [1] : vector<10x12xf32> to vector<10xf32>
    %238 = vector.shape_cast %237 : vector<10xf32> to vector<10x1xf32>
    %239 = tpu.reciprocal %238 {approx = true} : vector<10x1xf32> -> vector<10x1xf32>
    %240 = vector.broadcast %239 : vector<10x1xf32> to vector<10x12xf32>
    %241 = arith.mulf %236, %240 : vector<10x12xf32>
    %cst_124 = arith.constant dense<0.000000e+00> : vector<10x16xf32>
    %242 = tpu.matmul %241, %230, %cst_124 {dimension_numbers = #tpu.dot_dimension_numbers<[1], [0], [0], [1], [0, 0, 1, 1], [], []>} : vector<10x12xf32>, vector<12x16xf32>, vector<10x16xf32> -> vector<10x16xf32>
    %243 = vector.extract_strided_slice %34 {offsets = [48, 0], sizes = [16, 64], strides = [1, 1]} : vector<64x64xf32> to vector<16x64xf32>
    %cst_125 = arith.constant dense<0.000000e+00> : vector<10x64xf32>
    %244 = tpu.matmul %242, %243, %cst_125 {dimension_numbers = #tpu.dot_dimension_numbers<[1], [0], [0], [1], [0, 0, 1, 1], [], []>} : vector<10x16xf32>, vector<16x64xf32>, vector<10x64xf32> -> vector<10x64xf32>
    %245 = arith.addf %227, %244 : vector<10x64xf32>
    %246 = vector.broadcast %36 : vector<1x64xf32> to vector<10x64xf32>
    %247 = arith.addf %245, %246 : vector<10x64xf32>
    %248 = arith.addf %164, %247 : vector<10x64xf32>
    %cst_126 = arith.constant dense<0.000000e+00> : vector<10xf32>
    %249 = vector.multi_reduction <add>, %248, %cst_126 [1] : vector<10x64xf32> to vector<10xf32>
    %250 = vector.shape_cast %249 : vector<10xf32> to vector<10x1xf32>
    %cst_127 = arith.constant 6.400000e+01 : f32
    %251 = vector.broadcast %cst_127 : f32 to vector<10x1xf32>
    %252 = arith.divf %250, %251 : vector<10x1xf32>
    %253 = vector.broadcast %252 : vector<10x1xf32> to vector<10x64xf32>
    %254 = arith.subf %248, %253 : vector<10x64xf32>
    %255 = arith.mulf %254, %254 : vector<10x64xf32>
    %cst_128 = arith.constant dense<0.000000e+00> : vector<10xf32>
    %256 = vector.multi_reduction <add>, %255, %cst_128 [1] : vector<10x64xf32> to vector<10xf32>
    %257 = vector.shape_cast %256 : vector<10xf32> to vector<10x1xf32>
    %cst_129 = arith.constant 6.400000e+01 : f32
    %258 = vector.broadcast %cst_129 : f32 to vector<10x1xf32>
    %259 = arith.divf %257, %258 : vector<10x1xf32>
    %cst_130 = arith.constant 9.99999974E-6 : f32
    %260 = vector.broadcast %cst_130 : f32 to vector<10x1xf32>
    %261 = arith.addf %259, %260 : vector<10x1xf32>
    %262 = math.rsqrt %261 : vector<10x1xf32>
    %263 = vector.broadcast %262 : vector<10x1xf32> to vector<10x64xf32>
    %264 = arith.mulf %254, %263 : vector<10x64xf32>
    %265 = vector.broadcast %38 : vector<1x64xf32> to vector<10x64xf32>
    %266 = arith.mulf %264, %265 : vector<10x64xf32>
    %267 = vector.broadcast %40 : vector<1x64xf32> to vector<10x64xf32>
    %268 = arith.addf %266, %267 : vector<10x64xf32>
    %cst_131 = arith.constant dense<0.000000e+00> : vector<10x128xf32>
    %269 = tpu.matmul %268, %42, %cst_131 {dimension_numbers = #tpu.dot_dimension_numbers<[1], [0], [0], [1], [0, 0, 1, 1], [], []>} : vector<10x64xf32>, vector<64x128xf32>, vector<10x128xf32> -> vector<10x128xf32>
    %270 = vector.broadcast %44 : vector<1x128xf32> to vector<10x128xf32>
    %271 = arith.addf %269, %270 : vector<10x128xf32>
    %cst_132 = arith.constant 0.000000e+00 : f32
    %272 = vector.broadcast %cst_132 : f32 to vector<10x128xf32>
    %273 = arith.maximumf %271, %272 : vector<10x128xf32>
    %cst_133 = arith.constant dense<0.000000e+00> : vector<10x64xf32>
    %274 = tpu.matmul %273, %46, %cst_133 {dimension_numbers = #tpu.dot_dimension_numbers<[1], [0], [0], [1], [0, 0, 1, 1], [], []>} : vector<10x128xf32>, vector<128x64xf32>, vector<10x64xf32> -> vector<10x64xf32>
    %275 = vector.broadcast %48 : vector<1x64xf32> to vector<10x64xf32>
    %276 = arith.addf %274, %275 : vector<10x64xf32>
    %277 = arith.addf %268, %276 : vector<10x64xf32>
    %cst_134 = arith.constant dense<0.000000e+00> : vector<10xf32>
    %278 = vector.multi_reduction <add>, %277, %cst_134 [1] : vector<10x64xf32> to vector<10xf32>
    %279 = vector.shape_cast %278 : vector<10xf32> to vector<10x1xf32>
    %cst_135 = arith.constant 6.400000e+01 : f32
    %280 = vector.broadcast %cst_135 : f32 to vector<10x1xf32>
    %281 = arith.divf %279, %280 : vector<10x1xf32>
    %282 = vector.broadcast %281 : vector<10x1xf32> to vector<10x64xf32>
    %283 = arith.subf %277, %282 : vector<10x64xf32>
    %284 = arith.mulf %283, %283 : vector<10x64xf32>
    %cst_136 = arith.constant dense<0.000000e+00> : vector<10xf32>
    %285 = vector.multi_reduction <add>, %284, %cst_136 [1] : vector<10x64xf32> to vector<10xf32>
    %286 = vector.shape_cast %285 : vector<10xf32> to vector<10x1xf32>
    %cst_137 = arith.constant 6.400000e+01 : f32
    %287 = vector.broadcast %cst_137 : f32 to vector<10x1xf32>
    %288 = arith.divf %286, %287 : vector<10x1xf32>
    %cst_138 = arith.constant 9.99999974E-6 : f32
    %289 = vector.broadcast %cst_138 : f32 to vector<10x1xf32>
    %290 = arith.addf %288, %289 : vector<10x1xf32>
    %291 = math.rsqrt %290 : vector<10x1xf32>
    %292 = vector.broadcast %291 : vector<10x1xf32> to vector<10x64xf32>
    %293 = arith.mulf %283, %292 : vector<10x64xf32>
    %294 = vector.broadcast %50 : vector<1x64xf32> to vector<10x64xf32>
    %295 = arith.mulf %293, %294 : vector<10x64xf32>
    %296 = vector.broadcast %52 : vector<1x64xf32> to vector<10x64xf32>
    %297 = arith.addf %295, %296 : vector<10x64xf32>
    %c0_139 = arith.constant 0 : index
    %c0_140 = arith.constant 0 : index
    %c0_141 = arith.constant 0 : index
    %298 = vector.load %arg30[%c0_139, %c0_140, %c0_141] : memref<2x10x64xf32, #tpu.memory_space<vmem>>, vector<1x10x64xf32>
    %299 = vector.shape_cast %298 : vector<1x10x64xf32> to vector<10x64xf32>
    %300 = vector.shape_cast %297 : vector<10x64xf32> to vector<1x10x64xf32>
    tpu.vector_store %arg30[%c0_139, %c0_140, %c0_141], %300 {strides = array<i32>} : memref<2x10x64xf32, #tpu.memory_space<vmem>>, vector<1x10x64xf32>,
    %c1 = arith.constant 1 : index
    %c0_142 = arith.constant 0 : index
    %c0_143 = arith.constant 0 : index
    %301 = vector.load %arg30[%c1, %c0_142, %c0_143] : memref<2x10x64xf32, #tpu.memory_space<vmem>>, vector<1x10x64xf32>
    %302 = vector.shape_cast %301 : vector<1x10x64xf32> to vector<10x64xf32>
    %c1_144 = arith.constant 1 : index
    %c0_145 = arith.constant 0 : index
    %c0_146 = arith.constant 0 : index
    %303 = vector.load %arg2[%c1_144, %c0_145, %c0_146] : memref<2x12x64xf32, #tpu.memory_space<vmem>>, vector<1x12x64xf32>
    %304 = vector.shape_cast %303 : vector<1x12x64xf32> to vector<12x64xf32>
    %cst_147 = arith.constant dense<0.000000e+00> : vector<10x64xf32>
    %305 = tpu.matmul %302, %10, %cst_147 {dimension_numbers = #tpu.dot_dimension_numbers<[1], [0], [0], [1], [0, 0, 1, 1], [], []>} : vector<10x64xf32>, vector<64x64xf32>, vector<10x64xf32> -> vector<10x64xf32>
    %306 = vector.broadcast %12 : vector<1x64xf32> to vector<10x64xf32>
    %307 = arith.addf %305, %306 : vector<10x64xf32>
    %cst_148 = arith.constant 2.500000e-01 : f32
    %308 = vector.broadcast %cst_148 : f32 to vector<10x64xf32>
    %309 = arith.mulf %307, %308 : vector<10x64xf32>
    %cst_149 = arith.constant dense<0.000000e+00> : vector<10x128xf32>
    %310 = tpu.matmul %302, %14, %cst_149 {dimension_numbers = #tpu.dot_dimension_numbers<[1], [0], [0], [1], [0, 0, 1, 1], [], []>} : vector<10x64xf32>, vector<64x128xf32>, vector<10x128xf32> -> vector<10x128xf32>
    %311 = vector.broadcast %16 : vector<1x128xf32> to vector<10x128xf32>
    %312 = arith.addf %310, %311 : vector<10x128xf32>
    %cst_150 = arith.constant 0.000000e+00 : f32
    %313 = vector.broadcast %cst_150 : f32 to vector<10x64xf32>
    %314 = vector.extract_strided_slice %309 {offsets = [0, 0], sizes = [10, 16], strides = [1, 1]} : vector<10x64xf32> to vector<10x16xf32>
    %315 = vector.extract_strided_slice %312 {offsets = [0, 0], sizes = [10, 16], strides = [1, 1]} : vector<10x128xf32> to vector<10x16xf32>
    %316 = vector.extract_strided_slice %312 {offsets = [0, 64], sizes = [10, 16], strides = [1, 1]} : vector<10x128xf32> to vector<10x16xf32>
    %cst_151 = arith.constant dense<0.000000e+00> : vector<10x10xf32>
    %317 = tpu.matmul %314, %315, %cst_151 {dimension_numbers = #tpu.dot_dimension_numbers<[1], [1], [0], [0], [0, 0, 1, 0], [], []>} : vector<10x16xf32>, vector<10x16xf32>, vector<10x10xf32> -> vector<10x10xf32>
    %318 = arith.addf %317, %8 : vector<10x10xf32>
    %cst_152 = arith.constant dense<0xFF800000> : vector<10xf32>
    %319 = vector.multi_reduction <maximumf>, %318, %cst_152 [1] : vector<10x10xf32> to vector<10xf32>
    %320 = vector.shape_cast %319 : vector<10xf32> to vector<10x1xf32>
    %321 = vector.broadcast %320 : vector<10x1xf32> to vector<10x10xf32>
    %322 = arith.subf %318, %321 : vector<10x10xf32>
    %323 = math.exp %322 : vector<10x10xf32>
    %cst_153 = arith.constant dense<0.000000e+00> : vector<10xf32>
    %324 = vector.multi_reduction <add>, %323, %cst_153 [1] : vector<10x10xf32> to vector<10xf32>
    %325 = vector.shape_cast %324 : vector<10xf32> to vector<10x1xf32>
    %326 = tpu.reciprocal %325 {approx = true} : vector<10x1xf32> -> vector<10x1xf32>
    %327 = vector.broadcast %326 : vector<10x1xf32> to vector<10x10xf32>
    %328 = arith.mulf %323, %327 : vector<10x10xf32>
    %cst_154 = arith.constant dense<0.000000e+00> : vector<10x16xf32>
    %329 = tpu.matmul %328, %316, %cst_154 {dimension_numbers = #tpu.dot_dimension_numbers<[1], [0], [0], [1], [0, 0, 1, 1], [], []>} : vector<10x10xf32>, vector<10x16xf32>, vector<10x16xf32> -> vector<10x16xf32>
    %330 = vector.extract_strided_slice %18 {offsets = [0, 0], sizes = [16, 64], strides = [1, 1]} : vector<64x64xf32> to vector<16x64xf32>
    %cst_155 = arith.constant dense<0.000000e+00> : vector<10x64xf32>
    %331 = tpu.matmul %329, %330, %cst_155 {dimension_numbers = #tpu.dot_dimension_numbers<[1], [0], [0], [1], [0, 0, 1, 1], [], []>} : vector<10x16xf32>, vector<16x64xf32>, vector<10x64xf32> -> vector<10x64xf32>
    %332 = arith.addf %313, %331 : vector<10x64xf32>
    %333 = vector.extract_strided_slice %309 {offsets = [0, 16], sizes = [10, 16], strides = [1, 1]} : vector<10x64xf32> to vector<10x16xf32>
    %334 = vector.extract_strided_slice %312 {offsets = [0, 16], sizes = [10, 16], strides = [1, 1]} : vector<10x128xf32> to vector<10x16xf32>
    %335 = vector.extract_strided_slice %312 {offsets = [0, 80], sizes = [10, 16], strides = [1, 1]} : vector<10x128xf32> to vector<10x16xf32>
    %cst_156 = arith.constant dense<0.000000e+00> : vector<10x10xf32>
    %336 = tpu.matmul %333, %334, %cst_156 {dimension_numbers = #tpu.dot_dimension_numbers<[1], [1], [0], [0], [0, 0, 1, 0], [], []>} : vector<10x16xf32>, vector<10x16xf32>, vector<10x10xf32> -> vector<10x10xf32>
    %337 = arith.addf %336, %8 : vector<10x10xf32>
    %cst_157 = arith.constant dense<0xFF800000> : vector<10xf32>
    %338 = vector.multi_reduction <maximumf>, %337, %cst_157 [1] : vector<10x10xf32> to vector<10xf32>
    %339 = vector.shape_cast %338 : vector<10xf32> to vector<10x1xf32>
    %340 = vector.broadcast %339 : vector<10x1xf32> to vector<10x10xf32>
    %341 = arith.subf %337, %340 : vector<10x10xf32>
    %342 = math.exp %341 : vector<10x10xf32>
    %cst_158 = arith.constant dense<0.000000e+00> : vector<10xf32>
    %343 = vector.multi_reduction <add>, %342, %cst_158 [1] : vector<10x10xf32> to vector<10xf32>
    %344 = vector.shape_cast %343 : vector<10xf32> to vector<10x1xf32>
    %345 = tpu.reciprocal %344 {approx = true} : vector<10x1xf32> -> vector<10x1xf32>
    %346 = vector.broadcast %345 : vector<10x1xf32> to vector<10x10xf32>
    %347 = arith.mulf %342, %346 : vector<10x10xf32>
    %cst_159 = arith.constant dense<0.000000e+00> : vector<10x16xf32>
    %348 = tpu.matmul %347, %335, %cst_159 {dimension_numbers = #tpu.dot_dimension_numbers<[1], [0], [0], [1], [0, 0, 1, 1], [], []>} : vector<10x10xf32>, vector<10x16xf32>, vector<10x16xf32> -> vector<10x16xf32>
    %349 = vector.extract_strided_slice %18 {offsets = [16, 0], sizes = [16, 64], strides = [1, 1]} : vector<64x64xf32> to vector<16x64xf32>
    %cst_160 = arith.constant dense<0.000000e+00> : vector<10x64xf32>
    %350 = tpu.matmul %348, %349, %cst_160 {dimension_numbers = #tpu.dot_dimension_numbers<[1], [0], [0], [1], [0, 0, 1, 1], [], []>} : vector<10x16xf32>, vector<16x64xf32>, vector<10x64xf32> -> vector<10x64xf32>
    %351 = arith.addf %332, %350 : vector<10x64xf32>
    %352 = vector.extract_strided_slice %309 {offsets = [0, 32], sizes = [10, 16], strides = [1, 1]} : vector<10x64xf32> to vector<10x16xf32>
    %353 = vector.extract_strided_slice %312 {offsets = [0, 32], sizes = [10, 16], strides = [1, 1]} : vector<10x128xf32> to vector<10x16xf32>
    %354 = vector.extract_strided_slice %312 {offsets = [0, 96], sizes = [10, 16], strides = [1, 1]} : vector<10x128xf32> to vector<10x16xf32>
    %cst_161 = arith.constant dense<0.000000e+00> : vector<10x10xf32>
    %355 = tpu.matmul %352, %353, %cst_161 {dimension_numbers = #tpu.dot_dimension_numbers<[1], [1], [0], [0], [0, 0, 1, 0], [], []>} : vector<10x16xf32>, vector<10x16xf32>, vector<10x10xf32> -> vector<10x10xf32>
    %356 = arith.addf %355, %8 : vector<10x10xf32>
    %cst_162 = arith.constant dense<0xFF800000> : vector<10xf32>
    %357 = vector.multi_reduction <maximumf>, %356, %cst_162 [1] : vector<10x10xf32> to vector<10xf32>
    %358 = vector.shape_cast %357 : vector<10xf32> to vector<10x1xf32>
    %359 = vector.broadcast %358 : vector<10x1xf32> to vector<10x10xf32>
    %360 = arith.subf %356, %359 : vector<10x10xf32>
    %361 = math.exp %360 : vector<10x10xf32>
    %cst_163 = arith.constant dense<0.000000e+00> : vector<10xf32>
    %362 = vector.multi_reduction <add>, %361, %cst_163 [1] : vector<10x10xf32> to vector<10xf32>
    %363 = vector.shape_cast %362 : vector<10xf32> to vector<10x1xf32>
    %364 = tpu.reciprocal %363 {approx = true} : vector<10x1xf32> -> vector<10x1xf32>
    %365 = vector.broadcast %364 : vector<10x1xf32> to vector<10x10xf32>
    %366 = arith.mulf %361, %365 : vector<10x10xf32>
    %cst_164 = arith.constant dense<0.000000e+00> : vector<10x16xf32>
    %367 = tpu.matmul %366, %354, %cst_164 {dimension_numbers = #tpu.dot_dimension_numbers<[1], [0], [0], [1], [0, 0, 1, 1], [], []>} : vector<10x10xf32>, vector<10x16xf32>, vector<10x16xf32> -> vector<10x16xf32>
    %368 = vector.extract_strided_slice %18 {offsets = [32, 0], sizes = [16, 64], strides = [1, 1]} : vector<64x64xf32> to vector<16x64xf32>
    %cst_165 = arith.constant dense<0.000000e+00> : vector<10x64xf32>
    %369 = tpu.matmul %367, %368, %cst_165 {dimension_numbers = #tpu.dot_dimension_numbers<[1], [0], [0], [1], [0, 0, 1, 1], [], []>} : vector<10x16xf32>, vector<16x64xf32>, vector<10x64xf32> -> vector<10x64xf32>
    %370 = arith.addf %351, %369 : vector<10x64xf32>
    %371 = vector.extract_strided_slice %309 {offsets = [0, 48], sizes = [10, 16], strides = [1, 1]} : vector<10x64xf32> to vector<10x16xf32>
    %372 = vector.extract_strided_slice %312 {offsets = [0, 48], sizes = [10, 16], strides = [1, 1]} : vector<10x128xf32> to vector<10x16xf32>
    %373 = vector.extract_strided_slice %312 {offsets = [0, 112], sizes = [10, 16], strides = [1, 1]} : vector<10x128xf32> to vector<10x16xf32>
    %cst_166 = arith.constant dense<0.000000e+00> : vector<10x10xf32>
    %374 = tpu.matmul %371, %372, %cst_166 {dimension_numbers = #tpu.dot_dimension_numbers<[1], [1], [0], [0], [0, 0, 1, 0], [], []>} : vector<10x16xf32>, vector<10x16xf32>, vector<10x10xf32> -> vector<10x10xf32>
    %375 = arith.addf %374, %8 : vector<10x10xf32>
    %cst_167 = arith.constant dense<0xFF800000> : vector<10xf32>
    %376 = vector.multi_reduction <maximumf>, %375, %cst_167 [1] : vector<10x10xf32> to vector<10xf32>
    %377 = vector.shape_cast %376 : vector<10xf32> to vector<10x1xf32>
    %378 = vector.broadcast %377 : vector<10x1xf32> to vector<10x10xf32>
    %379 = arith.subf %375, %378 : vector<10x10xf32>
    %380 = math.exp %379 : vector<10x10xf32>
    %cst_168 = arith.constant dense<0.000000e+00> : vector<10xf32>
    %381 = vector.multi_reduction <add>, %380, %cst_168 [1] : vector<10x10xf32> to vector<10xf32>
    %382 = vector.shape_cast %381 : vector<10xf32> to vector<10x1xf32>
    %383 = tpu.reciprocal %382 {approx = true} : vector<10x1xf32> -> vector<10x1xf32>
    %384 = vector.broadcast %383 : vector<10x1xf32> to vector<10x10xf32>
    %385 = arith.mulf %380, %384 : vector<10x10xf32>
    %cst_169 = arith.constant dense<0.000000e+00> : vector<10x16xf32>
    %386 = tpu.matmul %385, %373, %cst_169 {dimension_numbers = #tpu.dot_dimension_numbers<[1], [0], [0], [1], [0, 0, 1, 1], [], []>} : vector<10x10xf32>, vector<10x16xf32>, vector<10x16xf32> -> vector<10x16xf32>
    %387 = vector.extract_strided_slice %18 {offsets = [48, 0], sizes = [16, 64], strides = [1, 1]} : vector<64x64xf32> to vector<16x64xf32>
    %cst_170 = arith.constant dense<0.000000e+00> : vector<10x64xf32>
    %388 = tpu.matmul %386, %387, %cst_170 {dimension_numbers = #tpu.dot_dimension_numbers<[1], [0], [0], [1], [0, 0, 1, 1], [], []>} : vector<10x16xf32>, vector<16x64xf32>, vector<10x64xf32> -> vector<10x64xf32>
    %389 = arith.addf %370, %388 : vector<10x64xf32>
    %390 = vector.broadcast %20 : vector<1x64xf32> to vector<10x64xf32>
    %391 = arith.addf %389, %390 : vector<10x64xf32>
    %392 = arith.addf %302, %391 : vector<10x64xf32>
    %cst_171 = arith.constant dense<0.000000e+00> : vector<10xf32>
    %393 = vector.multi_reduction <add>, %392, %cst_171 [1] : vector<10x64xf32> to vector<10xf32>
    %394 = vector.shape_cast %393 : vector<10xf32> to vector<10x1xf32>
    %cst_172 = arith.constant 6.400000e+01 : f32
    %395 = vector.broadcast %cst_172 : f32 to vector<10x1xf32>
    %396 = arith.divf %394, %395 : vector<10x1xf32>
    %397 = vector.broadcast %396 : vector<10x1xf32> to vector<10x64xf32>
    %398 = arith.subf %392, %397 : vector<10x64xf32>
    %399 = arith.mulf %398, %398 : vector<10x64xf32>
    %cst_173 = arith.constant dense<0.000000e+00> : vector<10xf32>
    %400 = vector.multi_reduction <add>, %399, %cst_173 [1] : vector<10x64xf32> to vector<10xf32>
    %401 = vector.shape_cast %400 : vector<10xf32> to vector<10x1xf32>
    %cst_174 = arith.constant 6.400000e+01 : f32
    %402 = vector.broadcast %cst_174 : f32 to vector<10x1xf32>
    %403 = arith.divf %401, %402 : vector<10x1xf32>
    %cst_175 = arith.constant 9.99999974E-6 : f32
    %404 = vector.broadcast %cst_175 : f32 to vector<10x1xf32>
    %405 = arith.addf %403, %404 : vector<10x1xf32>
    %406 = math.rsqrt %405 : vector<10x1xf32>
    %407 = vector.broadcast %406 : vector<10x1xf32> to vector<10x64xf32>
    %408 = arith.mulf %398, %407 : vector<10x64xf32>
    %409 = vector.broadcast %22 : vector<1x64xf32> to vector<10x64xf32>
    %410 = arith.mulf %408, %409 : vector<10x64xf32>
    %411 = vector.broadcast %24 : vector<1x64xf32> to vector<10x64xf32>
    %412 = arith.addf %410, %411 : vector<10x64xf32>
    %cst_176 = arith.constant dense<0.000000e+00> : vector<10x64xf32>
    %413 = tpu.matmul %412, %26, %cst_176 {dimension_numbers = #tpu.dot_dimension_numbers<[1], [0], [0], [1], [0, 0, 1, 1], [], []>} : vector<10x64xf32>, vector<64x64xf32>, vector<10x64xf32> -> vector<10x64xf32>
    %414 = vector.broadcast %28 : vector<1x64xf32> to vector<10x64xf32>
    %415 = arith.addf %413, %414 : vector<10x64xf32>
    %cst_177 = arith.constant 2.500000e-01 : f32
    %416 = vector.broadcast %cst_177 : f32 to vector<10x64xf32>
    %417 = arith.mulf %415, %416 : vector<10x64xf32>
    %cst_178 = arith.constant dense<0.000000e+00> : vector<12x128xf32>
    %418 = tpu.matmul %304, %30, %cst_178 {dimension_numbers = #tpu.dot_dimension_numbers<[1], [0], [0], [1], [0, 0, 1, 1], [], []>} : vector<12x64xf32>, vector<64x128xf32>, vector<12x128xf32> -> vector<12x128xf32>
    %419 = vector.broadcast %32 : vector<1x128xf32> to vector<12x128xf32>
    %420 = arith.addf %418, %419 : vector<12x128xf32>
    %cst_179 = arith.constant 0.000000e+00 : f32
    %421 = vector.broadcast %cst_179 : f32 to vector<10x64xf32>
    %422 = vector.extract_strided_slice %417 {offsets = [0, 0], sizes = [10, 16], strides = [1, 1]} : vector<10x64xf32> to vector<10x16xf32>
    %423 = vector.extract_strided_slice %420 {offsets = [0, 0], sizes = [12, 16], strides = [1, 1]} : vector<12x128xf32> to vector<12x16xf32>
    %424 = vector.extract_strided_slice %420 {offsets = [0, 64], sizes = [12, 16], strides = [1, 1]} : vector<12x128xf32> to vector<12x16xf32>
    %cst_180 = arith.constant dense<0.000000e+00> : vector<10x12xf32>
    %425 = tpu.matmul %422, %423, %cst_180 {dimension_numbers = #tpu.dot_dimension_numbers<[1], [1], [0], [0], [0, 0, 1, 0], [], []>} : vector<10x16xf32>, vector<12x16xf32>, vector<10x12xf32> -> vector<10x12xf32>
    %cst_181 = arith.constant dense<0xFF800000> : vector<10xf32>
    %426 = vector.multi_reduction <maximumf>, %425, %cst_181 [1] : vector<10x12xf32> to vector<10xf32>
    %427 = vector.shape_cast %426 : vector<10xf32> to vector<10x1xf32>
    %428 = vector.broadcast %427 : vector<10x1xf32> to vector<10x12xf32>
    %429 = arith.subf %425, %428 : vector<10x12xf32>
    %430 = math.exp %429 : vector<10x12xf32>
    %cst_182 = arith.constant dense<0.000000e+00> : vector<10xf32>
    %431 = vector.multi_reduction <add>, %430, %cst_182 [1] : vector<10x12xf32> to vector<10xf32>
    %432 = vector.shape_cast %431 : vector<10xf32> to vector<10x1xf32>
    %433 = tpu.reciprocal %432 {approx = true} : vector<10x1xf32> -> vector<10x1xf32>
    %434 = vector.broadcast %433 : vector<10x1xf32> to vector<10x12xf32>
    %435 = arith.mulf %430, %434 : vector<10x12xf32>
    %cst_183 = arith.constant dense<0.000000e+00> : vector<10x16xf32>
    %436 = tpu.matmul %435, %424, %cst_183 {dimension_numbers = #tpu.dot_dimension_numbers<[1], [0], [0], [1], [0, 0, 1, 1], [], []>} : vector<10x12xf32>, vector<12x16xf32>, vector<10x16xf32> -> vector<10x16xf32>
    %437 = vector.extract_strided_slice %34 {offsets = [0, 0], sizes = [16, 64], strides = [1, 1]} : vector<64x64xf32> to vector<16x64xf32>
    %cst_184 = arith.constant dense<0.000000e+00> : vector<10x64xf32>
    %438 = tpu.matmul %436, %437, %cst_184 {dimension_numbers = #tpu.dot_dimension_numbers<[1], [0], [0], [1], [0, 0, 1, 1], [], []>} : vector<10x16xf32>, vector<16x64xf32>, vector<10x64xf32> -> vector<10x64xf32>
    %439 = arith.addf %421, %438 : vector<10x64xf32>
    %440 = vector.extract_strided_slice %417 {offsets = [0, 16], sizes = [10, 16], strides = [1, 1]} : vector<10x64xf32> to vector<10x16xf32>
    %441 = vector.extract_strided_slice %420 {offsets = [0, 16], sizes = [12, 16], strides = [1, 1]} : vector<12x128xf32> to vector<12x16xf32>
    %442 = vector.extract_strided_slice %420 {offsets = [0, 80], sizes = [12, 16], strides = [1, 1]} : vector<12x128xf32> to vector<12x16xf32>
    %cst_185 = arith.constant dense<0.000000e+00> : vector<10x12xf32>
    %443 = tpu.matmul %440, %441, %cst_185 {dimension_numbers = #tpu.dot_dimension_numbers<[1], [1], [0], [0], [0, 0, 1, 0], [], []>} : vector<10x16xf32>, vector<12x16xf32>, vector<10x12xf32> -> vector<10x12xf32>
    %cst_186 = arith.constant dense<0xFF800000> : vector<10xf32>
    %444 = vector.multi_reduction <maximumf>, %443, %cst_186 [1] : vector<10x12xf32> to vector<10xf32>
    %445 = vector.shape_cast %444 : vector<10xf32> to vector<10x1xf32>
    %446 = vector.broadcast %445 : vector<10x1xf32> to vector<10x12xf32>
    %447 = arith.subf %443, %446 : vector<10x12xf32>
    %448 = math.exp %447 : vector<10x12xf32>
    %cst_187 = arith.constant dense<0.000000e+00> : vector<10xf32>
    %449 = vector.multi_reduction <add>, %448, %cst_187 [1] : vector<10x12xf32> to vector<10xf32>
    %450 = vector.shape_cast %449 : vector<10xf32> to vector<10x1xf32>
    %451 = tpu.reciprocal %450 {approx = true} : vector<10x1xf32> -> vector<10x1xf32>
    %452 = vector.broadcast %451 : vector<10x1xf32> to vector<10x12xf32>
    %453 = arith.mulf %448, %452 : vector<10x12xf32>
    %cst_188 = arith.constant dense<0.000000e+00> : vector<10x16xf32>
    %454 = tpu.matmul %453, %442, %cst_188 {dimension_numbers = #tpu.dot_dimension_numbers<[1], [0], [0], [1], [0, 0, 1, 1], [], []>} : vector<10x12xf32>, vector<12x16xf32>, vector<10x16xf32> -> vector<10x16xf32>
    %455 = vector.extract_strided_slice %34 {offsets = [16, 0], sizes = [16, 64], strides = [1, 1]} : vector<64x64xf32> to vector<16x64xf32>
    %cst_189 = arith.constant dense<0.000000e+00> : vector<10x64xf32>
    %456 = tpu.matmul %454, %455, %cst_189 {dimension_numbers = #tpu.dot_dimension_numbers<[1], [0], [0], [1], [0, 0, 1, 1], [], []>} : vector<10x16xf32>, vector<16x64xf32>, vector<10x64xf32> -> vector<10x64xf32>
    %457 = arith.addf %439, %456 : vector<10x64xf32>
    %458 = vector.extract_strided_slice %417 {offsets = [0, 32], sizes = [10, 16], strides = [1, 1]} : vector<10x64xf32> to vector<10x16xf32>
    %459 = vector.extract_strided_slice %420 {offsets = [0, 32], sizes = [12, 16], strides = [1, 1]} : vector<12x128xf32> to vector<12x16xf32>
    %460 = vector.extract_strided_slice %420 {offsets = [0, 96], sizes = [12, 16], strides = [1, 1]} : vector<12x128xf32> to vector<12x16xf32>
    %cst_190 = arith.constant dense<0.000000e+00> : vector<10x12xf32>
    %461 = tpu.matmul %458, %459, %cst_190 {dimension_numbers = #tpu.dot_dimension_numbers<[1], [1], [0], [0], [0, 0, 1, 0], [], []>} : vector<10x16xf32>, vector<12x16xf32>, vector<10x12xf32> -> vector<10x12xf32>
    %cst_191 = arith.constant dense<0xFF800000> : vector<10xf32>
    %462 = vector.multi_reduction <maximumf>, %461, %cst_191 [1] : vector<10x12xf32> to vector<10xf32>
    %463 = vector.shape_cast %462 : vector<10xf32> to vector<10x1xf32>
    %464 = vector.broadcast %463 : vector<10x1xf32> to vector<10x12xf32>
    %465 = arith.subf %461, %464 : vector<10x12xf32>
    %466 = math.exp %465 : vector<10x12xf32>
    %cst_192 = arith.constant dense<0.000000e+00> : vector<10xf32>
    %467 = vector.multi_reduction <add>, %466, %cst_192 [1] : vector<10x12xf32> to vector<10xf32>
    %468 = vector.shape_cast %467 : vector<10xf32> to vector<10x1xf32>
    %469 = tpu.reciprocal %468 {approx = true} : vector<10x1xf32> -> vector<10x1xf32>
    %470 = vector.broadcast %469 : vector<10x1xf32> to vector<10x12xf32>
    %471 = arith.mulf %466, %470 : vector<10x12xf32>
    %cst_193 = arith.constant dense<0.000000e+00> : vector<10x16xf32>
    %472 = tpu.matmul %471, %460, %cst_193 {dimension_numbers = #tpu.dot_dimension_numbers<[1], [0], [0], [1], [0, 0, 1, 1], [], []>} : vector<10x12xf32>, vector<12x16xf32>, vector<10x16xf32> -> vector<10x16xf32>
    %473 = vector.extract_strided_slice %34 {offsets = [32, 0], sizes = [16, 64], strides = [1, 1]} : vector<64x64xf32> to vector<16x64xf32>
    %cst_194 = arith.constant dense<0.000000e+00> : vector<10x64xf32>
    %474 = tpu.matmul %472, %473, %cst_194 {dimension_numbers = #tpu.dot_dimension_numbers<[1], [0], [0], [1], [0, 0, 1, 1], [], []>} : vector<10x16xf32>, vector<16x64xf32>, vector<10x64xf32> -> vector<10x64xf32>
    %475 = arith.addf %457, %474 : vector<10x64xf32>
    %476 = vector.extract_strided_slice %417 {offsets = [0, 48], sizes = [10, 16], strides = [1, 1]} : vector<10x64xf32> to vector<10x16xf32>
    %477 = vector.extract_strided_slice %420 {offsets = [0, 48], sizes = [12, 16], strides = [1, 1]} : vector<12x128xf32> to vector<12x16xf32>
    %478 = vector.extract_strided_slice %420 {offsets = [0, 112], sizes = [12, 16], strides = [1, 1]} : vector<12x128xf32> to vector<12x16xf32>
    %cst_195 = arith.constant dense<0.000000e+00> : vector<10x12xf32>
    %479 = tpu.matmul %476, %477, %cst_195 {dimension_numbers = #tpu.dot_dimension_numbers<[1], [1], [0], [0], [0, 0, 1, 0], [], []>} : vector<10x16xf32>, vector<12x16xf32>, vector<10x12xf32> -> vector<10x12xf32>
    %cst_196 = arith.constant dense<0xFF800000> : vector<10xf32>
    %480 = vector.multi_reduction <maximumf>, %479, %cst_196 [1] : vector<10x12xf32> to vector<10xf32>
    %481 = vector.shape_cast %480 : vector<10xf32> to vector<10x1xf32>
    %482 = vector.broadcast %481 : vector<10x1xf32> to vector<10x12xf32>
    %483 = arith.subf %479, %482 : vector<10x12xf32>
    %484 = math.exp %483 : vector<10x12xf32>
    %cst_197 = arith.constant dense<0.000000e+00> : vector<10xf32>
    %485 = vector.multi_reduction <add>, %484, %cst_197 [1] : vector<10x12xf32> to vector<10xf32>
    %486 = vector.shape_cast %485 : vector<10xf32> to vector<10x1xf32>
    %487 = tpu.reciprocal %486 {approx = true} : vector<10x1xf32> -> vector<10x1xf32>
    %488 = vector.broadcast %487 : vector<10x1xf32> to vector<10x12xf32>
    %489 = arith.mulf %484, %488 : vector<10x12xf32>
    %cst_198 = arith.constant dense<0.000000e+00> : vector<10x16xf32>
    %490 = tpu.matmul %489, %478, %cst_198 {dimension_numbers = #tpu.dot_dimension_numbers<[1], [0], [0], [1], [0, 0, 1, 1], [], []>} : vector<10x12xf32>, vector<12x16xf32>, vector<10x16xf32> -> vector<10x16xf32>
    %491 = vector.extract_strided_slice %34 {offsets = [48, 0], sizes = [16, 64], strides = [1, 1]} : vector<64x64xf32> to vector<16x64xf32>
    %cst_199 = arith.constant dense<0.000000e+00> : vector<10x64xf32>
    %492 = tpu.matmul %490, %491, %cst_199 {dimension_numbers = #tpu.dot_dimension_numbers<[1], [0], [0], [1], [0, 0, 1, 1], [], []>} : vector<10x16xf32>, vector<16x64xf32>, vector<10x64xf32> -> vector<10x64xf32>
    %493 = arith.addf %475, %492 : vector<10x64xf32>
    %494 = vector.broadcast %36 : vector<1x64xf32> to vector<10x64xf32>
    %495 = arith.addf %493, %494 : vector<10x64xf32>
    %496 = arith.addf %412, %495 : vector<10x64xf32>
    %cst_200 = arith.constant dense<0.000000e+00> : vector<10xf32>
    %497 = vector.multi_reduction <add>, %496, %cst_200 [1] : vector<10x64xf32> to vector<10xf32>
    %498 = vector.shape_cast %497 : vector<10xf32> to vector<10x1xf32>
    %cst_201 = arith.constant 6.400000e+01 : f32
    %499 = vector.broadcast %cst_201 : f32 to vector<10x1xf32>
    %500 = arith.divf %498, %499 : vector<10x1xf32>
    %501 = vector.broadcast %500 : vector<10x1xf32> to vector<10x64xf32>
    %502 = arith.subf %496, %501 : vector<10x64xf32>
    %503 = arith.mulf %502, %502 : vector<10x64xf32>
    %cst_202 = arith.constant dense<0.000000e+00> : vector<10xf32>
    %504 = vector.multi_reduction <add>, %503, %cst_202 [1] : vector<10x64xf32> to vector<10xf32>
    %505 = vector.shape_cast %504 : vector<10xf32> to vector<10x1xf32>
    %cst_203 = arith.constant 6.400000e+01 : f32
    %506 = vector.broadcast %cst_203 : f32 to vector<10x1xf32>
    %507 = arith.divf %505, %506 : vector<10x1xf32>
    %cst_204 = arith.constant 9.99999974E-6 : f32
    %508 = vector.broadcast %cst_204 : f32 to vector<10x1xf32>
    %509 = arith.addf %507, %508 : vector<10x1xf32>
    %510 = math.rsqrt %509 : vector<10x1xf32>
    %511 = vector.broadcast %510 : vector<10x1xf32> to vector<10x64xf32>
    %512 = arith.mulf %502, %511 : vector<10x64xf32>
    %513 = vector.broadcast %38 : vector<1x64xf32> to vector<10x64xf32>
    %514 = arith.mulf %512, %513 : vector<10x64xf32>
    %515 = vector.broadcast %40 : vector<1x64xf32> to vector<10x64xf32>
    %516 = arith.addf %514, %515 : vector<10x64xf32>
    %cst_205 = arith.constant dense<0.000000e+00> : vector<10x128xf32>
    %517 = tpu.matmul %516, %42, %cst_205 {dimension_numbers = #tpu.dot_dimension_numbers<[1], [0], [0], [1], [0, 0, 1, 1], [], []>} : vector<10x64xf32>, vector<64x128xf32>, vector<10x128xf32> -> vector<10x128xf32>
    %518 = vector.broadcast %44 : vector<1x128xf32> to vector<10x128xf32>
    %519 = arith.addf %517, %518 : vector<10x128xf32>
    %cst_206 = arith.constant 0.000000e+00 : f32
    %520 = vector.broadcast %cst_206 : f32 to vector<10x128xf32>
    %521 = arith.maximumf %519, %520 : vector<10x128xf32>
    %cst_207 = arith.constant dense<0.000000e+00> : vector<10x64xf32>
    %522 = tpu.matmul %521, %46, %cst_207 {dimension_numbers = #tpu.dot_dimension_numbers<[1], [0], [0], [1], [0, 0, 1, 1], [], []>} : vector<10x128xf32>, vector<128x64xf32>, vector<10x64xf32> -> vector<10x64xf32>
    %523 = vector.broadcast %48 : vector<1x64xf32> to vector<10x64xf32>
    %524 = arith.addf %522, %523 : vector<10x64xf32>
    %525 = arith.addf %516, %524 : vector<10x64xf32>
    %cst_208 = arith.constant dense<0.000000e+00> : vector<10xf32>
    %526 = vector.multi_reduction <add>, %525, %cst_208 [1] : vector<10x64xf32> to vector<10xf32>
    %527 = vector.shape_cast %526 : vector<10xf32> to vector<10x1xf32>
    %cst_209 = arith.constant 6.400000e+01 : f32
    %528 = vector.broadcast %cst_209 : f32 to vector<10x1xf32>
    %529 = arith.divf %527, %528 : vector<10x1xf32>
    %530 = vector.broadcast %529 : vector<10x1xf32> to vector<10x64xf32>
    %531 = arith.subf %525, %530 : vector<10x64xf32>
    %532 = arith.mulf %531, %531 : vector<10x64xf32>
    %cst_210 = arith.constant dense<0.000000e+00> : vector<10xf32>
    %533 = vector.multi_reduction <add>, %532, %cst_210 [1] : vector<10x64xf32> to vector<10xf32>
    %534 = vector.shape_cast %533 : vector<10xf32> to vector<10x1xf32>
    %cst_211 = arith.constant 6.400000e+01 : f32
    %535 = vector.broadcast %cst_211 : f32 to vector<10x1xf32>
    %536 = arith.divf %534, %535 : vector<10x1xf32>
    %cst_212 = arith.constant 9.99999974E-6 : f32
    %537 = vector.broadcast %cst_212 : f32 to vector<10x1xf32>
    %538 = arith.addf %536, %537 : vector<10x1xf32>
    %539 = math.rsqrt %538 : vector<10x1xf32>
    %540 = vector.broadcast %539 : vector<10x1xf32> to vector<10x64xf32>
    %541 = arith.mulf %531, %540 : vector<10x64xf32>
    %542 = vector.broadcast %50 : vector<1x64xf32> to vector<10x64xf32>
    %543 = arith.mulf %541, %542 : vector<10x64xf32>
    %544 = vector.broadcast %52 : vector<1x64xf32> to vector<10x64xf32>
    %545 = arith.addf %543, %544 : vector<10x64xf32>
    %c1_213 = arith.constant 1 : index
    %c0_214 = arith.constant 0 : index
    %c0_215 = arith.constant 0 : index
    %546 = vector.load %arg30[%c1_213, %c0_214, %c0_215] : memref<2x10x64xf32, #tpu.memory_space<vmem>>, vector<1x10x64xf32>
    %547 = vector.shape_cast %546 : vector<1x10x64xf32> to vector<10x64xf32>
    %548 = vector.shape_cast %545 : vector<10x64xf32> to vector<1x10x64xf32>
    tpu.vector_store %arg30[%c1_213, %c0_214, %c0_215], %548 {strides = array<i32>} : memref<2x10x64xf32, #tpu.memory_space<vmem>>, vector<1x10x64xf32>,
    %c1_i32 = arith.constant 1 : i32
    %549 = arith.cmpi eq, %arg0, %c1_i32 : i32
    %550 = arith.extui %549 : i1 to i32
    %c0_i32_216 = arith.constant 0 : i32
    %551 = arith.cmpi ne, %550, %c0_i32_216 : i32
    scf.if %551 {
      %c0_217 = arith.constant 0 : index
      %c0_218 = arith.constant 0 : index
      %552 = vector.load %arg27[%c0_217, %c0_218] : memref<64x128xf32, #tpu.memory_space<vmem>>, vector<64x128xf32>
      %c0_219 = arith.constant 0 : index
      %c0_220 = arith.constant 0 : index
      %553 = vector.load %arg28[%c0_219, %c0_220] : memref<1x128xf32, #tpu.memory_space<vmem>>, vector<1x128xf32>
      %c0_221 = arith.constant 0 : index
      %c0_222 = arith.constant 0 : index
      %c0_223 = arith.constant 0 : index
      %554 = vector.load %arg30[%c0_221, %c0_222, %c0_223] : memref<2x10x64xf32, #tpu.memory_space<vmem>>, vector<1x10x64xf32>
      %555 = vector.shape_cast %554 : vector<1x10x64xf32> to vector<10x64xf32>
      %c0_224 = arith.constant 0 : index
      %c0_225 = arith.constant 0 : index
      %556 = vector.load %arg25[%c0_224, %c0_225] : memref<1x64xf32, #tpu.memory_space<vmem>>, vector<1x64xf32>
      %c0_226 = arith.constant 0 : index
      %c0_227 = arith.constant 0 : index
      %557 = vector.load %arg26[%c0_226, %c0_227] : memref<1x64xf32, #tpu.memory_space<vmem>>, vector<1x64xf32>
      %cst_228 = arith.constant dense<0.000000e+00> : vector<10xf32>
      %558 = vector.multi_reduction <add>, %555, %cst_228 [1] : vector<10x64xf32> to vector<10xf32>
      %559 = vector.shape_cast %558 : vector<10xf32> to vector<10x1xf32>
      %cst_229 = arith.constant 6.400000e+01 : f32
      %560 = vector.broadcast %cst_229 : f32 to vector<10x1xf32>
      %561 = arith.divf %559, %560 : vector<10x1xf32>
      %562 = vector.broadcast %561 : vector<10x1xf32> to vector<10x64xf32>
      %563 = arith.subf %555, %562 : vector<10x64xf32>
      %564 = arith.mulf %563, %563 : vector<10x64xf32>
      %cst_230 = arith.constant dense<0.000000e+00> : vector<10xf32>
      %565 = vector.multi_reduction <add>, %564, %cst_230 [1] : vector<10x64xf32> to vector<10xf32>
      %566 = vector.shape_cast %565 : vector<10xf32> to vector<10x1xf32>
      %cst_231 = arith.constant 6.400000e+01 : f32
      %567 = vector.broadcast %cst_231 : f32 to vector<10x1xf32>
      %568 = arith.divf %566, %567 : vector<10x1xf32>
      %cst_232 = arith.constant 9.99999974E-6 : f32
      %569 = vector.broadcast %cst_232 : f32 to vector<10x1xf32>
      %570 = arith.addf %568, %569 : vector<10x1xf32>
      %571 = math.rsqrt %570 : vector<10x1xf32>
      %572 = vector.broadcast %571 : vector<10x1xf32> to vector<10x64xf32>
      %573 = arith.mulf %563, %572 : vector<10x64xf32>
      %574 = vector.broadcast %556 : vector<1x64xf32> to vector<10x64xf32>
      %575 = arith.mulf %573, %574 : vector<10x64xf32>
      %576 = vector.broadcast %557 : vector<1x64xf32> to vector<10x64xf32>
      %577 = arith.addf %575, %576 : vector<10x64xf32>
      %cst_233 = arith.constant dense<0.000000e+00> : vector<10x128xf32>
      %578 = tpu.matmul %577, %552, %cst_233 {dimension_numbers = #tpu.dot_dimension_numbers<[1], [0], [0], [1], [0, 0, 1, 1], [], []>} : vector<10x64xf32>, vector<64x128xf32>, vector<10x128xf32> -> vector<10x128xf32>
      %579 = vector.broadcast %553 : vector<1x128xf32> to vector<10x128xf32>
      %580 = arith.addf %578, %579 : vector<10x128xf32>
      %c0_234 = arith.constant 0 : index
      %c0_235 = arith.constant 0 : index
      %c0_236 = arith.constant 0 : index
      %581 = vector.load %arg29[%c0_234, %c0_235, %c0_236] : memref<2x10x128xf32, #tpu.memory_space<vmem>>, vector<1x10x128xf32>
      %582 = vector.shape_cast %581 : vector<1x10x128xf32> to vector<10x128xf32>
      %583 = vector.shape_cast %580 : vector<10x128xf32> to vector<1x10x128xf32>
      tpu.vector_store %arg29[%c0_234, %c0_235, %c0_236], %583 {strides = array<i32>} : memref<2x10x128xf32, #tpu.memory_space<vmem>>, vector<1x10x128xf32>,
      %c1_237 = arith.constant 1 : index
      %c0_238 = arith.constant 0 : index
      %c0_239 = arith.constant 0 : index
      %584 = vector.load %arg30[%c1_237, %c0_238, %c0_239] : memref<2x10x64xf32, #tpu.memory_space<vmem>>, vector<1x10x64xf32>
      %585 = vector.shape_cast %584 : vector<1x10x64xf32> to vector<10x64xf32>
      %c0_240 = arith.constant 0 : index
      %c0_241 = arith.constant 0 : index
      %586 = vector.load %arg25[%c0_240, %c0_241] : memref<1x64xf32, #tpu.memory_space<vmem>>, vector<1x64xf32>
      %c0_242 = arith.constant 0 : index
      %c0_243 = arith.constant 0 : index
      %587 = vector.load %arg26[%c0_242, %c0_243] : memref<1x64xf32, #tpu.memory_space<vmem>>, vector<1x64xf32>
      %cst_244 = arith.constant dense<0.000000e+00> : vector<10xf32>
      %588 = vector.multi_reduction <add>, %585, %cst_244 [1] : vector<10x64xf32> to vector<10xf32>
      %589 = vector.shape_cast %588 : vector<10xf32> to vector<10x1xf32>
      %cst_245 = arith.constant 6.400000e+01 : f32
      %590 = vector.broadcast %cst_245 : f32 to vector<10x1xf32>
      %591 = arith.divf %589, %590 : vector<10x1xf32>
      %592 = vector.broadcast %591 : vector<10x1xf32> to vector<10x64xf32>
      %593 = arith.subf %585, %592 : vector<10x64xf32>
      %594 = arith.mulf %593, %593 : vector<10x64xf32>
      %cst_246 = arith.constant dense<0.000000e+00> : vector<10xf32>
      %595 = vector.multi_reduction <add>, %594, %cst_246 [1] : vector<10x64xf32> to vector<10xf32>
      %596 = vector.shape_cast %595 : vector<10xf32> to vector<10x1xf32>
      %cst_247 = arith.constant 6.400000e+01 : f32
      %597 = vector.broadcast %cst_247 : f32 to vector<10x1xf32>
      %598 = arith.divf %596, %597 : vector<10x1xf32>
      %cst_248 = arith.constant 9.99999974E-6 : f32
      %599 = vector.broadcast %cst_248 : f32 to vector<10x1xf32>
      %600 = arith.addf %598, %599 : vector<10x1xf32>
      %601 = math.rsqrt %600 : vector<10x1xf32>
      %602 = vector.broadcast %601 : vector<10x1xf32> to vector<10x64xf32>
      %603 = arith.mulf %593, %602 : vector<10x64xf32>
      %604 = vector.broadcast %586 : vector<1x64xf32> to vector<10x64xf32>
      %605 = arith.mulf %603, %604 : vector<10x64xf32>
      %606 = vector.broadcast %587 : vector<1x64xf32> to vector<10x64xf32>
      %607 = arith.addf %605, %606 : vector<10x64xf32>
      %cst_249 = arith.constant dense<0.000000e+00> : vector<10x128xf32>
      %608 = tpu.matmul %607, %552, %cst_249 {dimension_numbers = #tpu.dot_dimension_numbers<[1], [0], [0], [1], [0, 0, 1, 1], [], []>} : vector<10x64xf32>, vector<64x128xf32>, vector<10x128xf32> -> vector<10x128xf32>
      %609 = vector.broadcast %553 : vector<1x128xf32> to vector<10x128xf32>
      %610 = arith.addf %608, %609 : vector<10x128xf32>
      %c1_250 = arith.constant 1 : index
      %c0_251 = arith.constant 0 : index
      %c0_252 = arith.constant 0 : index
      %611 = vector.load %arg29[%c1_250, %c0_251, %c0_252] : memref<2x10x128xf32, #tpu.memory_space<vmem>>, vector<1x10x128xf32>
      %612 = vector.shape_cast %611 : vector<1x10x128xf32> to vector<10x128xf32>
      %613 = vector.shape_cast %610 : vector<10x128xf32> to vector<1x10x128xf32>
      tpu.vector_store %arg29[%c1_250, %c0_251, %c0_252], %613 {strides = array<i32>} : memref<2x10x128xf32, #tpu.memory_space<vmem>>, vector<1x10x128xf32>,
    } else {
    }
    return
  }
  func.func @transform_0(%arg0: i32) -> (i32, i32, i32) {
    %c0_i32 = arith.constant 0 : i32
    %c0_i32_0 = arith.constant 0 : i32
    %c0_i32_1 = arith.constant 0 : i32
    %c0_i32_2 = arith.constant 0 : i32
    return %c0_i32, %c0_i32_0, %c0_i32_1 : i32, i32, i32
  }
  func.func @transform_1(%arg0: i32) -> (i32, i32, i32) {
    %c0_i32 = arith.constant 0 : i32
    %c0_i32_0 = arith.constant 0 : i32
    %c0_i32_1 = arith.constant 0 : i32
    %c0_i32_2 = arith.constant 0 : i32
    return %c0_i32, %c0_i32_0, %c0_i32_1 : i32, i32, i32
  }
  func.func @transform_2(%arg0: i32) -> (i32, i32, i32) {
    %c0_i32 = arith.constant 0 : i32
    %c0_i32_0 = arith.constant 0 : i32
    %c0_i32_1 = arith.constant 0 : i32
    return %arg0, %c0_i32, %c0_i32_0 : i32, i32, i32
  }
  func.func @transform_3(%arg0: i32) -> (i32, i32, i32) {
    %c0_i32 = arith.constant 0 : i32
    %c0_i32_0 = arith.constant 0 : i32
    %c0_i32_1 = arith.constant 0 : i32
    return %arg0, %c0_i32, %c0_i32_0 : i32, i32, i32
  }
  func.func @transform_4(%arg0: i32) -> (i32, i32, i32) {
    %c0_i32 = arith.constant 0 : i32
    %c0_i32_0 = arith.constant 0 : i32
    %c0_i32_1 = arith.constant 0 : i32
    return %arg0, %c0_i32, %c0_i32_0 : i32, i32, i32
  }
  func.func @transform_5(%arg0: i32) -> (i32, i32, i32) {
    %c0_i32 = arith.constant 0 : i32
    %c0_i32_0 = arith.constant 0 : i32
    %c0_i32_1 = arith.constant 0 : i32
    return %arg0, %c0_i32, %c0_i32_0 : i32, i32, i32
  }
  func.func @transform_6(%arg0: i32) -> (i32, i32, i32) {
    %c0_i32 = arith.constant 0 : i32
    %c0_i32_0 = arith.constant 0 : i32
    %c0_i32_1 = arith.constant 0 : i32
    return %arg0, %c0_i32, %c0_i32_0 : i32, i32, i32
  }
  func.func @transform_7(%arg0: i32) -> (i32, i32, i32) {
    %c0_i32 = arith.constant 0 : i32
    %c0_i32_0 = arith.constant 0 : i32
    %c0_i32_1 = arith.constant 0 : i32
    return %arg0, %c0_i32, %c0_i32_0 : i32, i32, i32
  }
  func.func @transform_8(%arg0: i32) -> (i32, i32, i32) {
    %c0_i32 = arith.constant 0 : i32
    %c0_i32_0 = arith.constant 0 : i32
    %c0_i32_1 = arith.constant 0 : i32
    return %arg0, %c0_i32, %c0_i32_0 : i32, i32, i32
  }
  func.func @transform_9(%arg0: i32) -> (i32, i32, i32) {
    %c0_i32 = arith.constant 0 : i32
    %c0_i32_0 = arith.constant 0 : i32
    %c0_i32_1 = arith.constant 0 : i32
    return %arg0, %c0_i32, %c0_i32_0 : i32, i32, i32
  }
  func.func @transform_10(%arg0: i32) -> (i32, i32, i32) {
    %c0_i32 = arith.constant 0 : i32
    %c0_i32_0 = arith.constant 0 : i32
    %c0_i32_1 = arith.constant 0 : i32
    return %arg0, %c0_i32, %c0_i32_0 : i32, i32, i32
  }
  func.func @transform_11(%arg0: i32) -> (i32, i32, i32) {
    %c0_i32 = arith.constant 0 : i32
    %c0_i32_0 = arith.constant 0 : i32
    %c0_i32_1 = arith.constant 0 : i32
    return %arg0, %c0_i32, %c0_i32_0 : i32, i32, i32
  }
  func.func @transform_12(%arg0: i32) -> (i32, i32, i32) {
    %c0_i32 = arith.constant 0 : i32
    %c0_i32_0 = arith.constant 0 : i32
    %c0_i32_1 = arith.constant 0 : i32
    return %arg0, %c0_i32, %c0_i32_0 : i32, i32, i32
  }
  func.func @transform_13(%arg0: i32) -> (i32, i32, i32) {
    %c0_i32 = arith.constant 0 : i32
    %c0_i32_0 = arith.constant 0 : i32
    %c0_i32_1 = arith.constant 0 : i32
    return %arg0, %c0_i32, %c0_i32_0 : i32, i32, i32
  }
  func.func @transform_14(%arg0: i32) -> (i32, i32, i32) {
    %c0_i32 = arith.constant 0 : i32
    %c0_i32_0 = arith.constant 0 : i32
    %c0_i32_1 = arith.constant 0 : i32
    return %arg0, %c0_i32, %c0_i32_0 : i32, i32, i32
  }
  func.func @transform_15(%arg0: i32) -> (i32, i32, i32) {
    %c0_i32 = arith.constant 0 : i32
    %c0_i32_0 = arith.constant 0 : i32
    %c0_i32_1 = arith.constant 0 : i32
    return %arg0, %c0_i32, %c0_i32_0 : i32, i32, i32
  }
  func.func @transform_16(%arg0: i32) -> (i32, i32, i32) {
    %c0_i32 = arith.constant 0 : i32
    %c0_i32_0 = arith.constant 0 : i32
    %c0_i32_1 = arith.constant 0 : i32
    return %arg0, %c0_i32, %c0_i32_0 : i32, i32, i32
  }
  func.func @transform_17(%arg0: i32) -> (i32, i32, i32) {
    %c0_i32 = arith.constant 0 : i32
    %c0_i32_0 = arith.constant 0 : i32
    %c0_i32_1 = arith.constant 0 : i32
    return %arg0, %c0_i32, %c0_i32_0 : i32, i32, i32
  }
  func.func @transform_18(%arg0: i32) -> (i32, i32, i32) {
    %c0_i32 = arith.constant 0 : i32
    %c0_i32_0 = arith.constant 0 : i32
    %c0_i32_1 = arith.constant 0 : i32
    return %arg0, %c0_i32, %c0_i32_0 : i32, i32, i32
  }
  func.func @transform_19(%arg0: i32) -> (i32, i32, i32) {
    %c0_i32 = arith.constant 0 : i32
    %c0_i32_0 = arith.constant 0 : i32
    %c0_i32_1 = arith.constant 0 : i32
    return %arg0, %c0_i32, %c0_i32_0 : i32, i32, i32
  }
  func.func @transform_20(%arg0: i32) -> (i32, i32, i32) {
    %c0_i32 = arith.constant 0 : i32
    %c0_i32_0 = arith.constant 0 : i32
    %c0_i32_1 = arith.constant 0 : i32
    return %arg0, %c0_i32, %c0_i32_0 : i32, i32, i32
  }
  func.func @transform_21(%arg0: i32) -> (i32, i32, i32) {
    %c0_i32 = arith.constant 0 : i32
    %c0_i32_0 = arith.constant 0 : i32
    %c0_i32_1 = arith.constant 0 : i32
    return %arg0, %c0_i32, %c0_i32_0 : i32, i32, i32
  }
  func.func @transform_22(%arg0: i32) -> (i32, i32, i32) {
    %c0_i32 = arith.constant 0 : i32
    %c0_i32_0 = arith.constant 0 : i32
    %c0_i32_1 = arith.constant 0 : i32
    return %arg0, %c0_i32, %c0_i32_0 : i32, i32, i32
  }
  func.func @transform_23(%arg0: i32) -> (i32, i32, i32) {
    %c0_i32 = arith.constant 0 : i32
    %c0_i32_0 = arith.constant 0 : i32
    %c0_i32_1 = arith.constant 0 : i32
    return %arg0, %c0_i32, %c0_i32_0 : i32, i32, i32
  }
  func.func @transform_24(%arg0: i32) -> (i32, i32) {
    %c0_i32 = arith.constant 0 : i32
    %c0_i32_0 = arith.constant 0 : i32
    %c0_i32_1 = arith.constant 0 : i32
    return %c0_i32, %c0_i32_0 : i32, i32
  }
  func.func @transform_25(%arg0: i32) -> (i32, i32) {
    %c0_i32 = arith.constant 0 : i32
    %c0_i32_0 = arith.constant 0 : i32
    %c0_i32_1 = arith.constant 0 : i32
    return %c0_i32, %c0_i32_0 : i32, i32
  }
  func.func @transform_26(%arg0: i32) -> (i32, i32) {
    %c0_i32 = arith.constant 0 : i32
    %c0_i32_0 = arith.constant 0 : i32
    %c0_i32_1 = arith.constant 0 : i32
    return %c0_i32, %c0_i32_0 : i32, i32
  }
  func.func @transform_27(%arg0: i32) -> (i32, i32) {
    %c0_i32 = arith.constant 0 : i32
    %c0_i32_0 = arith.constant 0 : i32
    %c0_i32_1 = arith.constant 0 : i32
    return %c0_i32, %c0_i32_0 : i32, i32
  }
  func.func @transform_28(%arg0: i32) -> (i32, i32, i32) {
    %c0_i32 = arith.constant 0 : i32
    %c0_i32_0 = arith.constant 0 : i32
    %c0_i32_1 = arith.constant 0 : i32
    %c0_i32_2 = arith.constant 0 : i32
    return %c0_i32, %c0_i32_0, %c0_i32_1 : i32, i32, i32
  }
}

</mosaic_0001>

<bundles_post_ra>
// kernel: transformer_forward.2
= control target key start
LH: loop header
LB: loop body
LE: loop exit
PB: predicated region body
PF: predicated region fallthrough
CT: control target
= control target key end

     0   :  { %s5460_s27 = smov 0   ;;  %s6229_s0 = inlined_call_operand.vmem [shape: f32[2,12,64], index: 0, kind: input, shape index: {}]   ;;  %s6230_s1 = inlined_call_operand.vmem [shape: f32[2,1,12], index: 1, kind: input, shape index: {}]   ;;  %s6231_s2 = inlined_call_operand.vmem [shape: f32[2,64,64], index: 2, kind: input, shape index: {}]   ;;  %s6232_s3 = inlined_call_operand.vmem [shape: f32[2,1,64], index: 3, kind: input, shape index: {}]   ;;  %s6233_s4 = inlined_call_operand.vmem [shape: f32[2,64,128], index: 4, kind: input, shape index: {}]   ;;  %s6234_s5 = inlined_call_operand.vmem [shape: f32[2,1,128], index: 5, kind: input, shape index: {}]   ;;  %s6235_s6 = inlined_call_operand.vmem [shape: f32[2,64,64], index: 6, kind: input, shape index: {}]   ;;  %s6236_s7 = inlined_call_operand.vmem [shape: f32[2,1,64], index: 7, kind: input, shape index: {}]   ;;  %s6237_s8 = inlined_call_operand.vmem [shape: f32[2,1,64], index: 8, kind: input, shape index: {}]   ;;  %s6238_s9 = inlined_call_operand.vmem [shape: f32[2,1,64], index: 9, kind: input, shape index: {}]   ;;  %s6239_s10 = inlined_call_operand.vmem [shape: f32[2,64,128], index: 10, kind: input, shape index: {}]   ;;  %s6240_s11 = inlined_call_operand.vmem [shape: f32[2,1,128], index: 11, kind: input, shape index: {}]   ;;  %s6241_s12 = inlined_call_operand.vmem [shape: f32[2,128,64], index: 12, kind: input, shape index: {}]   ;;  %s6242_s13 = inlined_call_operand.vmem [shape: f32[2,1,64], index: 13, kind: input, shape index: {}]   ;;  %s6243_s14 = inlined_call_operand.vmem [shape: f32[2,1,64], index: 14, kind: input, shape index: {}]   ;;  %s6244_s15 = inlined_call_operand.vmem [shape: f32[2,1,64], index: 15, kind: input, shape index: {}]   ;;  %s6245_s16 = inlined_call_operand.vmem [shape: f32[1,64], index: 16, kind: input, shape index: {}]   ;;  %s6246_s17 = inlined_call_operand.vmem [shape: f32[1,64], index: 17, kind: input, shape index: {}]   ;;  %s6247_s18 = inlined_call_operand.vmem [shape: f32[2,12,64], index: 18, kind: output, shape index: {}]  }
   0x1   :  { %6255 = sst [smem:[#allocation4_spill]] %s6229_s0 }
   0x2   :  { %6256 = sst [smem:[#allocation5_spill]] %s6230_s1 }
   0x3   :  { %6257 = sst [smem:[#allocation6_spill]] %s6231_s2 }
   0x4   :  { %6258 = sst [smem:[#allocation7_spill]] %s6232_s3 }
   0x5   :  { %6259 = sst [smem:[#allocation8_spill]] %s6233_s4 }
   0x6   :  { %6260 = sst [smem:[#allocation9_spill]] %s6235_s6 }
   0x7   :  { %6261 = sst [smem:[#allocation10_spill]] %s6245_s16 }
   0x8   :  { %6262 = sst [smem:[#allocation11_spill]] %s6246_s17 }
   0x9   :  { %6263 = sst [smem:[#allocation12_spill]] %s6247_s18 }
   0xa LB: > { %6264 = sst [smem:[#allocation2_spill]] %s5355_s27  ;;  %s5466_s28 = sadd.s32 4294967295, %s5355_s27   ;;  %s5355_s27 = sphi %s5460_s27, %s28_s27  }
   0xb   : > { %6265 = sst [smem:[#allocation3_spill]] %s5466_s28  ;;  %p4203_p0 = scmp.ge.s32.totalorder %s5355_s27, 1 }
   0xc   : > { %p619_p1 = scmp.lt.s32.totalorder %s5355_s27, 3 }
   0xe   : > { %p620_p2 = pnand %p4203_p0, %p619_p1 }
   0xf   : > { %p715_p3 = scmp.lt.s32.totalorder (!%p620_p2), %s5466_s28, 1  ;;  %s6267_s22 = sld [smem:[#allocation6_spill]] (!%p620_p2) }
  0x10   : > { %623 = sbr.rel (%p620_p2) target bundleno = 5515 (0x158b), region = 92  ;;  %s6268_s4 = sld [smem:[#allocation8_spill]] (!%p620_p2) }
  0x11   : > { %s6269_s6 = sld [smem:[#allocation9_spill]] (!%p620_p2)  ;;  %s6270_s16 = sld [smem:[#allocation3_spill]] (!%p620_p2) }
  0x17   : > { %s5472_s29 = scalar_select %p715_p3, %s5466_s28, 1 }
  0x18   : > { %p4214_p4 = scmp.ne.s32.totalorder %s6270_s16, 0 }
  0x19   : > { %s4326_s30 = sshll.u32 %s5472_s29, 6  ;;  %s760_s23 = scalar_lea.vmem %s6242_s13, %s5472_s29  ;;  %vm775_vm0 = vcmask (!%p4214_p4), 523264   ;;  %vm777_vm1 = vcmask (!%p4214_p4), 519168  }
  0x1a   : > { %s5482_s2 = scalar_lea.vmem %s6267_s22, %s4326_s30  ;;  %s5487_s25 = scalar_lea.vmem %s6268_s4, %s4326_s30 }
  0x1b   : > { %s5496_s28 = scalar_lea.vmem %s6269_s6, %s4326_s30  ;;  %s5513_s26 = scalar_lea.vmem %s6239_s10, %s4326_s30 }
  0x1c   : > { %s4330_s6 = sshll.u32 %s5472_s29, 7  ;;  %770 = sbr.rel (%p4214_p4) target bundleno = 38 (0x26), region = 96 }
  0x1d   : > { %s5523_s20 = scalar_lea.vmem %s6241_s12, %s4330_s6  ;;  %s6271_s0 = sld [smem:[#allocation4_spill]] (!%p4214_p4) }
  0x1e   : > { %s6272_s30 = sld [smem:[#allocation12_spill]] (!%p4214_p4) }
  0x23   : > { %v771_v0 = vld [vmem:[%s6271_s0] sm:$0xff]  ;;  %v772_v1 = vld [vmem:[%s6271_s0 + $0x8] sm:$0xf]  ;;  %v773_v2 = vld [vmem:[%s6271_s0 + $0x10] sm:$0xff] }
  0x24   : > { %776 = vst.msk [vmem:[%s6272_s30] sm:$0xff] %vm775_vm0, %v771_v0  ;;  %779 = vst.msk [vmem:[%s6272_s30 + $0x10] sm:$0xff] %vm775_vm0, %v773_v2  ;;  %v774_v3 = vld [vmem:[%s6271_s0 + $0x18] sm:$0xf] }
  0x25   : > { %778 = vst.msk [vmem:[%s6272_s30 + $0x8] sm:$0xf] %vm777_vm1, %v772_v1  ;;  %780 = vst.msk [vmem:[%s6272_s30 + $0x18] sm:$0xf] %vm777_vm1, %v774_v3 }
  0x26 PF: > { %v781_v4 = vld [vmem:[%s5482_s2] sm:$0xff]  ;;  %v782_v5 = vld [vmem:[%s5482_s2 + $0x8] sm:$0xff]  ;;  %v783_v6 = vld [vmem:[%s5482_s2 + $0x10] sm:$0xff]  ;;  %vm847_vm2 = vcmask 523264   ;;  %s6273_s21 = sld [smem:[#allocation12_spill]]  ;;  %s6274_s30 = sld [smem:[#allocation7_spill]] }
  0x27   : > { %v5565_v7 = vpack.c.bf16 %v782_v5, %v781_v4  ;;  %v784_v8 = vld [vmem:[%s5482_s2 + $0x18] sm:$0xff]  ;;  %v785_v10 = vld [vmem:[%s5482_s2 + $0x20] sm:$0xff]  ;;  %v786_v11 = vld [vmem:[%s5482_s2 + $0x28] sm:$0xff]  ;;  %vm1018_vm3 = vcmask 130048   ;;  %s5357_s27 = smov 112   ;;  %s6276_s18 = scalar_lea.vmem %s6234_s5, %s5472_s29  ;;  %vm1110_vm5 = vcmask 93184  }
  0x28   : > { %v5568_v9 = vpack.c.bf16 %v784_v8, %v783_v6  ;;  %v5582_v13 = vpack.c.bf16 %v786_v11, %v785_v10  ;;  %v787_v14 = vld [vmem:[%s5482_s2 + $0x30] sm:$0xff]  ;;  %v788_v15 = vld [vmem:[%s5482_s2 + $0x38] sm:$0xff]  ;;  %v790_v17 = vld [vmem:[%s5487_s25] sm:$0xff]  ;;  %s5358_s6 = smov 96   ;;  %s6279_s3 = sld [smem:[#allocation5_spill]]  ;;  %vm1106_vm6 = vcmask 97280  }
  0x29   : > { %4876 = vmatprep.subr.bf16.mxu1 %v5565_v7  ;;  %v5588_v16 = vpack.c.bf16 %v788_v15, %v787_v14  ;;  %v791_v18 = vld [vmem:[%s5487_s25 + $0x8] sm:$0xff]  ;;  %v792_v20 = vld [vmem:[%s5487_s25 + $0x10] sm:$0xff]  ;;  %v793_v21 = vld [vmem:[%s5487_s25 + $0x18] sm:$0xff]  ;;  %s5359_s2 = smov 64   ;;  %s5360_s4 = smov 80   ;;  %vm1141_vm7 = vcmask 1043456  }
  0x2a   : > { %4878 = vmatpush3.bf16.msra.mxu1 %v5565_v7  ;;  %v5594_v19 = vpack.c.bf16 %v791_v18, %v790_v17  ;;  %v5605_v23 = vpack.c.bf16 %v793_v21, %v792_v20  ;;  %v794_v24 = vld [vmem:[%s5487_s25 + $0x20] sm:$0xff]  ;;  %v795_v25 = vld [vmem:[%s5487_s25 + $0x28] sm:$0xff]  ;;  %v796_v27 = vld [vmem:[%s5487_s25 + $0x30] sm:$0xff]  ;;  %s5361_s22 = smov 48   ;;  %vm5362_vm8 = vmmov 1   ;;  %s5363_s24 = smov 32  }
  0x2b   : > { %4880 = vmatprep.subr.bf16.mxu1 %v5568_v9  ;;  %v5615_v26 = vpack.c.bf16 %v795_v25, %v794_v24  ;;  %v797_v28 = vld [vmem:[%s5487_s25 + $0x38] sm:$0xff]  ;;  %v5650_v37 = vld [vmem:[%s6276_s18] ss:$0 sm:$0xff]  ;;  %vm5658_vm4 = vmpackc.low %vm1018_vm3, %vm1018_vm3  ;;  %s6282_s16 = scalar_lea.vmem %s6236_s7, %s5472_s29  ;;  %vm2163_vm10 = vcmask 519168   ;;  %s6283_s18 = scalar_lea.vmem %s6237_s8, %s5472_s29 }
  0x2c   : > { %v5575_v12 = vld [vmem:[%s6273_s21] sm:$0xff]  ;;  %v5602_v22 = vld [vmem:[%s6273_s21 + $0x8] sm:$0xf]  ;;  %v5621_v29 = vpack.c.bf16 %v797_v28, %v796_v27  ;;  %s6275_s25 = scalar_lea.vmem %s6274_s30, %s5472_s29  ;;  %vm5722_vm9 = vmpackc.low %vm1141_vm7, %vm5362_vm8  ;;  %s5364_s30 = smov 16  }
  0x2d   : > { %4539 = vmatprep.mubr.msk.f32.mxu1 %vm847_vm2, %v5575_v12  ;;  %v5633_v30 = vld [vmem:[%s6275_s25] ss:$0 sm:$0xff]  ;;  %s6285_s1 = scalar_lea.vmem %s6240_s11, %s5472_s29 }
  0x2e   : > { %4882 = vmatpush3.bf16.msra.mxu1 %v5568_v9  ;;  %v5693_v57 = vld [vmem:[%s6279_s3] ss:$0 sm:$0xff] }
  0x2f   : > { %4884 = vmatprep.subr.bf16.mxu1 %v5582_v13 }
  0x32   : > { %4886 = vmatpush3.bf16.msra.mxu1 %v5582_v13 }
  0x33   : > { %4888 = vmatprep.subr.bf16.mxu1 %v5588_v16 }
  0x36   : > { %4890 = vmatpush3.bf16.msra.mxu1 %v5588_v16 }
  0x37   : > { %4892 = vmatprep.subr.bf16.mxu1 %v5594_v19 }
  0x39   : > { %4540 = vmatmul.mubr.msk.f32.vlgmr.msra.gmra.mrb[0].mxu1 %vm847_vm2, %v5602_v22 }
  0x3a   : > { %4894 = vmatpush3.bf16.msra.mxu1 %v5594_v19  ;;  %4558 = vmatprep.mubr.msk.f32.mxu1 %vm847_vm2, %v5575_v12 }
  0x3b   : > { %4896 = vmatprep.subr.bf16.mxu1 %v5605_v23 }
  0x3e   : > { %4898 = vmatpush3.bf16.msra.mxu1 %v5605_v23 }
  0x3f   : > { %4900 = vmatprep.subr.bf16.mxu1 %v5615_v26 }
  0x42   : > { %4902 = vmatpush3.bf16.msra.mxu1 %v5615_v26 }
  0x43   : > { %4904 = vmatprep.subr.bf16.mxu1 %v5621_v29 }
  0x46   : > { %4906 = vmatpush3.bf16.msra.mxu1 %v5621_v29 }
  0x49   : > { %4559 = vmatmul.mubr.msk.f32.vlgmr.msra.gmra.mrb[2].mxu1 %vm847_vm2, %v5602_v22 }
 0x10c   : > { %v4541_v31 = vpop.f32.mrb[0].mxu1 }
 0x10d   : > { %v926_v32 = vadd.f32 %v4541_v31, %v5633_v30  ;;  %v920_v33 = vpop.f32.mrb[1].mxu1 }
 0x10e   : > { %v921_v34 = vadd.f32 %v5633_v30, %v920_v33 }
 0x10f   : > { %v5637_v35 = vmul.f32 0.25, %v926_v32 }
 0x110   : > { %v5639_v36 = vmul.f32 0.25, %v921_v34 }
 0x111   : > { %1221 = vrot.lane.b32.xlu1 %v5637_v35, %s5357_s27 }
 0x112   : > { %4565 = vmatprep.mubr.msk.f32.mxu0 %vm1018_vm3, %v5639_v36 }
 0x11c   : > { %v4560_v38 = vpop.f32.mrb[2].mxu1 }
 0x11d   : > { %v1009_v39 = vadd.f32 %v4560_v38, %v5650_v37  ;;  %v1003_v40 = vpop.f32.mrb[3].mxu1 }
 0x11e   : > { %v1004_v41 = vadd.f32 %v5650_v37, %v1003_v40 }
 0x120   : > { %v5654_v42 = vpack.i.bf16 %v1009_v39, %v1004_v41  ;;  %v4907_v43 = vpack.c.bf16 %v1009_v39, %v1004_v41 }
 0x122   : > { %5197 = vrot.lane.b32.xlu1 %v5654_v42, %s5358_s6  ;;  %5192 = vrot.lane.b32.xlu0 %v5654_v42, %s5357_s27 }
 0x123   : > { %4909 = vmatprep.subr.msk.bf16.mxu0 %vm5658_vm4, %v4907_v43 }
 0x124   : > { %4912 = vmatpush3.bf16.xpose.msk.msra.mxu0 %vm5658_vm4, %v4907_v43 }
 0x126   : > { %1584 = vrot.lane.b32.xlu1 %v5637_v35, %s5358_s6  ;;  %1219 = vrot.lane.b32.xlu0 %v5639_v36, %s5357_s27 }
 0x12a   : > { %1582 = vrot.lane.b32.xlu0 %v5639_v36, %s5358_s6 }
 0x12b   : > { %4566 = vmatmul.mubr.msk.f32.vlgmr.msra.gmra.mrb[0].mxu0 %vm1018_vm3, %v5637_v35 }
 0x183   : > { %v1222_v45 = vpop.permute.xlu1 %1221 }
 0x194   : > { %v5198_v46 = vpop.permute.xlu1 %5197  ;;  %v5193_v47 = vpop.permute.xlu0 %5192 }
 0x195   : > { %v5200_v48 = vunpack.i.h.bf16 %v5198_v46  ;;  %v5199_v49 = vunpack.i.l.bf16 %v5198_v46  ;;  %v5195_v50 = vunpack.i.h.bf16 %v5193_v47  ;;  %v5194_v51 = vunpack.i.l.bf16 %v5193_v47 }
 0x197   : > { %v4919_v52 = vpack.c.bf16 %v5195_v50, %v5194_v51  ;;  %v4939_v54 = vpack.c.bf16 %v5200_v48, %v5199_v49 }
 0x198   : > { %v1220_v53 = vpop.permute.xlu0 %1219  ;;  %v1585_v56 = vpop.permute.xlu1 %1584 }
 0x199   : > { %4921 = vmatprep.subr.msk.bf16.mxu1 %vm5658_vm4, %v4919_v52  ;;  %4579 = vmatprep.mubr.msk.f32.mxu1 %vm1018_vm3, %v1220_v53 }
 0x19a   : > { %4924 = vmatpush3.bf16.xpose.msk.msra.mxu1 %vm5658_vm4, %v4919_v52 }
 0x19b   : > { %4941 = vmatprep.subr.msk.bf16.mxu1 %vm5658_vm4, %v4939_v54 }
 0x19c   : > { %v1583_v55 = vpop.permute.xlu0 %1582 }
 0x1a1   : > { %4580 = vmatmul.mubr.msk.f32.vlgmr.msra.gmra.mrb[4].mxu1 %vm1018_vm3, %v1222_v45 }
 0x1a2   : > { %4944 = vmatpush3.bf16.xpose.msk.msra.mxu1 %vm5658_vm4, %v4939_v54  ;;  %4607 = vmatprep.mubr.msk.f32.mxu1 %vm1018_vm3, %v1583_v55 }
 0x1a9   : > { %4608 = vmatmul.mubr.msk.f32.vlgmr.msra.gmra.mrb[6].mxu1 %vm1018_vm3, %v1585_v56 }
 0x1fe   : > { %v4567_v58 = vpop.f32.mrb[0].mxu0 }
 0x1ff   : > { %v1103_v59 = vadd.f32 %v4567_v58, %v5693_v57  ;;  %v1097_v60 = vpop.f32.mrb[1].mxu0 }
 0x200   : > { %v1098_v61 = vadd.f32 %v5693_v57, %v1097_v60 }
 0x201   : > { %v1111_v62 = vsel %vm1110_vm5, %v1103_v59, -inf }
 0x202   : > { %1112 = vmax.xlane.f32.xlu1 %v1111_v62  ;;  %v1107_v63 = vsel %vm1106_vm6, %v1098_v61, -inf }
 0x203   : > { %1108 = vmax.xlane.f32.xlu0 %v1107_v63 }
 0x274   : > { %v4581_v0 = vpop.f32.mrb[4].mxu1 }
 0x275   : > { %v1301_v1 = vpop.f32.mrb[5].mxu1  ;;  %v1307_v3 = vadd.f32 %v4581_v0, %v5693_v57 }
 0x276   : > { %v1302_v2 = vadd.f32 %v5693_v57, %v1301_v1 }
 0x277   : > { %v1313_v6 = vsel %vm1110_vm5, %v1307_v3, -inf }
 0x278   : > { %v1310_v4 = vsel %vm1106_vm6, %v1302_v2, -inf }
 0x279   : > { %1311 = vmax.xlane.f32.xlu0 %v1310_v4 }
 0x27c   : > { %v4609_v5 = vpop.f32.mrb[6].mxu1 }
 0x27d   : > { %v1664_v8 = vpop.f32.mrb[7].mxu1  ;;  %1314 = vmax.xlane.f32.xlu0 %v1313_v6  ;;  %v1670_v47 = vadd.f32 %v4609_v5, %v5693_v57 }
 0x27e   : > { %v1665_v48 = vadd.f32 %v5693_v57, %v1664_v8 }
 0x27f   : > { %v1676_v50 = vsel %vm1110_vm5, %v1670_v47, -inf }
 0x280   : > { %v1673_v49 = vsel %vm1106_vm6, %v1665_v48, -inf }
 0x28f   : > { %v1113_v10 = vpop.xlane.xlu1 %1112 }
 0x290   : > { %v1115_v11 = vsub.f32 %v1103_v59, %v1113_v10  ;;  %v1109_v14 = vpop.xlane.xlu0 %1108 }
 0x291   : > { %v1114_v15 = vsub.f32 %v1098_v61, %v1109_v14 }
 0x292   : > { %v1118_v17 = vmul.f32 1.442695, %v1115_v11 }
 0x293   : > { %v1116_v18 = vmul.f32 1.442695, %v1114_v15 }
 0x294   : > { %5261 = vpow2.f32 %v1118_v17 }
 0x295   : > { %5263 = vpow2.f32 %v1116_v18 }
 0x29e   : > { %v5262_v20 = vpop.eup %5261 }
 0x29f   : > { %v5264_v21 = vpop.eup %5263  ;;  %v1123_v24 = vsel %vm1110_vm5, %v5262_v20, 0.0 }
 0x2a0   : > { %1124 = vadd.xlane.f32.xlu0 %v1123_v24  ;;  %v1120_v25 = vsel %vm1106_vm6, %v5264_v21, 0.0 }
 0x2a1   : > { %1121 = vadd.xlane.f32.xlu1 %v1120_v25 }
 0x306   : > { %v1312_v27 = vpop.xlane.xlu0 %1311 }
 0x307   : > { %v1316_v28 = vsub.f32 %v1302_v2, %v1312_v27 }
 0x309   : > { %v1318_v31 = vmul.f32 1.442695, %v1316_v28 }
 0x30a   : > { %v1315_v32 = vpop.xlane.xlu0 %1314 }
 0x30b   : > { %5265 = vpow2.f32 %v1318_v31  ;;  %v1317_v33 = vsub.f32 %v1307_v3, %v1315_v32  ;;  %v801_v31 = vld [vmem:[%s5496_s28 + $0x10] sm:$0xff]  ;;  %v802_v32 = vld [vmem:[%s5496_s28 + $0x18] sm:$0xff] }
 0x30d   : > { %v1320_v34 = vmul.f32 1.442695, %v1317_v33  ;;  %v5747_v33 = vpack.c.bf16 %v802_v32, %v801_v31 }
 0x30f   : > { %5267 = vpow2.f32 %v1320_v34  ;;  %v799_v34 = vld [vmem:[%s5496_s28] sm:$0xff] }
 0x315   : > { %v5266_v38 = vpop.eup %5265 }
 0x316   : > { %v1322_v39 = vsel %vm1106_vm6, %v5266_v38, 0.0 }
 0x317   : > { %1323 = vadd.xlane.f32.xlu1 %v1322_v39 }
 0x319   : > { %v5268_v40 = vpop.eup %5267 }
 0x31a   : > { %v1325_v41 = vsel %vm1110_vm5, %v5268_v40, 0.0 }
 0x31b   : > { %1326 = vadd.xlane.f32.xlu0 %v1325_v41 }
 0x328   : > { %5202 = vrot.lane.b32.xlu1 %v5654_v42, %s5359_s2 }
 0x32c   : > { %5212 = vrot.lane.b32.xlu1 %v5654_v42, %s5360_s4 }
 0x32e   : > { %v1122_v43 = vpop.xlane.xlu1 %1121 }
 0x32f   : > { %5269 = vrcp.f32 %v1122_v43 }
 0x330   : > { %1866 = vrot.lane.b32.xlu1 %v5639_v36, %s5360_s4  ;;  %v1125_v36 = vpop.xlane.xlu0 %1124 }
 0x331   : > { %5207 = vrot.lane.b32.xlu0 %v5654_v42, %s5361_s22  ;;  %5271 = vrcp.f32 %v1125_v36 }
 0x335   : > { %1868 = vrot.lane.b32.xlu0 %v5637_v35, %s5360_s4 }
 0x339   : > { %v5270_v45 = vpop.eup %5269 }
 0x33a   : > { %v1128_v46 = vmul.f32 %v5270_v45, %v5264_v21 }
 0x33b   : > { %v5272_v58 = vpop.eup %5271 }
 0x33c   : > { %4572 = vmatprep.mubr.msk.f32.mxu0 %vm1106_vm6, %v1128_v46  ;;  %v1129_v2 = vmul.f32 %v5272_v58, %v5262_v20 }
 0x354   : > { %1674 = vmax.xlane.f32.xlu1 %v1673_v49  ;;  %1677 = vmax.xlane.f32.xlu0 %v1676_v50 }
 0x3a4   : > { %v1324_v51 = vpop.xlane.xlu1 %1323 }
 0x3a5   : > { %5273 = vrcp.f32 %v1324_v51 }
 0x3a8   : > { %v5203_v35 = vpop.permute.xlu1 %5202  ;;  %v1327_v52 = vpop.xlane.xlu0 %1326 }
 0x3a9   : > { %v5205_v53 = vunpack.i.h.bf16 %v5203_v35  ;;  %v5204_v54 = vunpack.i.l.bf16 %v5203_v35  ;;  %5275 = vrcp.f32 %v1327_v52 }
 0x3ab   : > { %v4913_v56 = vpack.c.bf16 %v5205_v53, %v5204_v54 }
 0x3ac   : > { %v5213_v59 = vpop.permute.xlu1 %5212  ;;  %v5208_v60 = vpop.permute.xlu0 %5207 }
 0x3ad   : > { %v5215_v61 = vunpack.i.h.bf16 %v5213_v59  ;;  %v5214_v62 = vunpack.i.l.bf16 %v5213_v59  ;;  %v5210_v63 = vunpack.i.h.bf16 %v5208_v60  ;;  %v5209_v0 = vunpack.i.l.bf16 %v5208_v60  ;;  %4915 = vmatprep.subr.msk.bf16.mxu0 %vm5722_vm9, %v4913_v56 }
 0x3ae   : > { %4918 = vmatpush3.bf16.msk.msra.mxu0 %vm5722_vm9, %v4913_v56 }
 0x3af   : > { %v5274_v1 = vpop.eup %5273  ;;  %v4955_v3 = vpack.c.bf16 %v5215_v61, %v5214_v62  ;;  %v4925_v4 = vpack.c.bf16 %v5210_v63, %v5209_v0  ;;  %v803_v62 = vld [vmem:[%s5496_s28 + $0x20] sm:$0xff] }
 0x3b0   : > { %v1867_v5 = vpop.permute.xlu1 %1866  ;;  %v1330_v6 = vmul.f32 %v5274_v1, %v5266_v38  ;;  %v1869_v11 = vpop.permute.xlu0 %1868  ;;  %v800_v38 = vld [vmem:[%s5496_s28 + $0x8] sm:$0xff] }
 0x3b1   : > { %4573 = vmatmul.mubr.msk.f32.vlgmr.msra.gmra.mrb[2].mxu0 %vm1106_vm6, %v1129_v2  ;;  %4927 = vmatprep.subr.msk.bf16.mxu0 %vm5722_vm9, %v4925_v4  ;;  %v5755_v39 = vpack.c.bf16 %v800_v38, %v799_v34 }
 0x3b2   : > { %4957 = vmatprep.subr.msk.bf16.mxu1 %vm5658_vm4, %v4955_v3  ;;  %4628 = vmatprep.mubr.msk.f32.mxu1 %vm1018_vm3, %v1867_v5 }
 0x3b3   : > { %v5276_v8 = vpop.eup %5275  ;;  %4930 = vmatpush3.bf16.msk.msra.mxu0 %vm5722_vm9, %v4925_v4  ;;  %4586 = vmatprep.mubr.msk.f32.mxu0 %vm1106_vm6, %v1330_v6 }
 0x3b4   : > { %v1331_v10 = vmul.f32 %v5276_v8, %v5268_v40  ;;  %4960 = vmatpush3.bf16.xpose.msk.msra.mxu1 %vm5658_vm4, %v4955_v3  ;;  %4932 = vmatprep.subr.bf16.mxu0 %v5747_v33 }
 0x3b6   : > { %4587 = vmatmul.mubr.msk.f32.vlgmr.msra.gmra.mrb[4].mxu0 %vm1106_vm6, %v1331_v10 }
 0x3b7   : > { %4934 = vmatpush3.bf16.msra.mxu0 %v5747_v33 }
 0x3b8   : > { %4936 = vmatprep.subr.bf16.mxu0 %v5755_v39 }
 0x3bb   : > { %4629 = vmatmul.mubr.msk.f32.vlgmr.msra.gmra.mrb[8].mxu1 %vm1018_vm3, %v1869_v11 }
 0x3e1   : > { %v1675_v14 = vpop.xlane.xlu1 %1674  ;;  %v1678_v15 = vpop.xlane.xlu0 %1677 }
 0x3e2   : > { %v1679_v17 = vsub.f32 %v1665_v48, %v1675_v14  ;;  %v1680_v18 = vsub.f32 %v1670_v47, %v1678_v15 }
 0x3e4   : > { %v1681_v20 = vmul.f32 1.442695, %v1679_v17  ;;  %v1683_v21 = vmul.f32 1.442695, %v1680_v18 }
 0x3e6   : > { %5277 = vpow2.f32 %v1681_v20 }
 0x3e7   : > { %5279 = vpow2.f32 %v1683_v21  ;;  %v805_v21 = vld [vmem:[%s5496_s28 + $0x30] sm:$0xff] }
 0x3f0   : > { %v5278_v24 = vpop.eup %5277 }
 0x3f1   : > { %v5280_v25 = vpop.eup %5279  ;;  %v1685_v27 = vsel %vm1106_vm6, %v5278_v24, 0.0 }
 0x3f2   : > { %1686 = vadd.xlane.f32.xlu0 %v1685_v27  ;;  %v1688_v28 = vsel %vm1110_vm5, %v5280_v25, 0.0 }
 0x3f3   : > { %1689 = vadd.xlane.f32.xlu1 %v1688_v28 }
 0x408   : > { %5217 = vrot.lane.b32.xlu0 %v5654_v42, %s5363_s24 }
 0x47f   : > { %v1687_v40 = vpop.xlane.xlu0 %1686 }
 0x480   : > { %v1690_v46 = vpop.xlane.xlu1 %1689  ;;  %5281 = vrcp.f32 %v1687_v40 }
 0x481   : > { %5283 = vrcp.f32 %v1690_v46 }
 0x483   : > { %v5218_v43 = vpop.permute.xlu0 %5217 }
 0x484   : > { %v4574_v41 = vpop.f32.mrb[2].mxu0  ;;  %v5220_v47 = vunpack.i.h.bf16 %v5218_v43  ;;  %v5219_v48 = vunpack.i.l.bf16 %v5218_v43  ;;  %v5804_v43 = vld [vmem:[%s6282_s16] ss:$0 sm:$0xff] }
 0x485   : > { %v1210_v45 = vpop.f32.mrb[3].mxu0 }
 0x486   : > { %v4945_v36 = vpack.c.bf16 %v5220_v47, %v5219_v48 }
 0x489   : > { %v4588_v49 = vpop.f32.mrb[4].mxu0 }
 0x48a   : > { %v1411_v50 = vpop.f32.mrb[5].mxu0  ;;  %v5282_v52 = vpop.eup %5281 }
 0x48b   : > { %4593 = vmatprep.mubr.msk.f32.mxu0 %vm1018_vm3, %v1411_v50  ;;  %v5284_v58 = vpop.eup %5283  ;;  %v1693_v59 = vmul.f32 %v5282_v52, %v5278_v24  ;;  %v806_v24 = vld [vmem:[%s5496_s28 + $0x38] sm:$0xff] }
 0x48c   : > { %4594 = vmatmul.mubr.msk.f32.vlgmr.msra.gmra.mrb[6].mxu0 %vm1018_vm3, %v4588_v49  ;;  %v1694_v60 = vmul.f32 %v5284_v58, %v5280_v25  ;;  %v5787_v31 = vpack.c.bf16 %v806_v24, %v805_v21  ;;  %v823_v21 = vld [vmem:[%s5523_s20 + $0x20] sm:$0xff]  ;;  %v824_v24 = vld [vmem:[%s5523_s20 + $0x28] sm:$0xff] }
 0x48d   : > { %4938 = vmatpush3.bf16.msra.mxu0 %v5755_v39  ;;  %4600 = vmatprep.mubr.msk.f32.mxu0 %vm1018_vm3, %v1210_v45 }
 0x48e   : > { %v4630_v51 = vpop.f32.mrb[8].mxu1  ;;  %4947 = vmatprep.subr.msk.bf16.mxu0 %vm5722_vm9, %v4945_v36 }
 0x48f   : > { %v1948_v35 = vpop.f32.mrb[9].mxu1  ;;  %v1954_v54 = vadd.f32 %v4630_v51, %v5693_v57 }
 0x490   : > { %v1949_v53 = vadd.f32 %v5693_v57, %v1948_v35  ;;  %v804_v57 = vld [vmem:[%s5496_s28 + $0x28] sm:$0xff]  ;;  %s6284_s28 = scalar_lea.vmem %s6238_s9, %s5472_s29 }
 0x491   : > { %v1960_v61 = vsel %vm1110_vm5, %v1954_v54, -inf  ;;  %v5775_v63 = vpack.c.bf16 %v804_v57, %v803_v62  ;;  %v811_v62 = vld [vmem:[%s5513_s26 + $0x8] sm:$0xff] }
 0x492   : > { %v1957_v56 = vsel %vm1106_vm6, %v1949_v53, -inf }
 0x493   : > { %1958 = vmax.xlane.f32.xlu1 %v1957_v56 }
 0x494   : > { %4601 = vmatmul.mubr.msk.f32.vlgmr.msra.gmra.mrb[6].mxu0 %vm1018_vm3, %v4574_v41 }
 0x495   : > { %4950 = vmatpush3.bf16.msk.msra.mxu0 %vm5722_vm9, %v4945_v36  ;;  %4614 = vmatprep.mubr.msk.f32.mxu0 %vm1106_vm6, %v1693_v59 }
 0x496   : > { %4952 = vmatprep.subr.bf16.mxu0 %v5775_v63 }
 0x497   : > { %1961 = vmax.xlane.f32.xlu1 %v1960_v61  ;;  %v810_v61 = vld [vmem:[%s5513_s26] sm:$0xff] }
 0x498   : > { %4615 = vmatmul.mubr.msk.f32.vlgmr.msra.gmra.mrb[8].mxu0 %vm1106_vm6, %v1694_v60  ;;  %v5824_v57 = vpack.c.bf16 %v811_v62, %v810_v61 }
 0x499   : > { %4954 = vmatpush3.bf16.msra.mxu0 %v5775_v63 }
 0x49a   : > { %4972 = vmatprep.subr.bf16.mxu1 %v5824_v57 }
 0x49b   : > { %4974 = vmatpush3.bf16.msra.mxu1 %v5824_v57 }
 0x520   : > { %v1959_v0 = vpop.xlane.xlu1 %1958 }
 0x521   : > { %v1963_v1 = vsub.f32 %v1949_v53, %v1959_v0  ;;  %v812_v0 = vld [vmem:[%s5513_s26 + $0x10] sm:$0xff] }
 0x523   : > { %v1965_v4 = vmul.f32 1.442695, %v1963_v1  ;;  %v813_v1 = vld [vmem:[%s5513_s26 + $0x18] sm:$0xff] }
 0x524   : > { %v1962_v2 = vpop.xlane.xlu1 %1961 }
 0x525   : > { %v1964_v3 = vsub.f32 %v1954_v54, %v1962_v2  ;;  %v5830_v2 = vpack.c.bf16 %v813_v1, %v812_v0  ;;  %v5918_v1 = vld [vmem:[%s6273_s21 + $0x10] sm:$0xff] }
 0x527   : > { %v1967_v5 = vmul.f32 1.442695, %v1964_v3  ;;  %4976 = vmatprep.subr.bf16.mxu1 %v5830_v2  ;;  %v814_v3 = vld [vmem:[%s5513_s26 + $0x20] sm:$0xff] }
 0x528   : > { %4978 = vmatpush3.bf16.msra.mxu1 %v5830_v2 }
 0x529   : > { %5285 = vpow2.f32 %v1967_v5 }
 0x52a   : > { %5287 = vpow2.f32 %v1965_v4  ;;  %v815_v4 = vld [vmem:[%s5513_s26 + $0x28] sm:$0xff] }
 0x52b   : > { %v5836_v5 = vpack.c.bf16 %v815_v4, %v814_v3 }
 0x52d   : > { %4980 = vmatprep.subr.bf16.mxu1 %v5836_v5 }
 0x52e   : > { %4982 = vmatpush3.bf16.msra.mxu1 %v5836_v5 }
 0x533   : > { %v5286_v6 = vpop.eup %5285 }
 0x534   : > { %v1972_v8 = vsel %vm1110_vm5, %v5286_v6, 0.0  ;;  %v5288_v10 = vpop.eup %5287 }
 0x535   : > { %1973 = vadd.xlane.f32.xlu1 %v1972_v8  ;;  %v1969_v11 = vsel %vm1106_vm6, %v5288_v10, 0.0  ;;  %v817_v8 = vld [vmem:[%s5513_s26 + $0x38] sm:$0xff] }
 0x539   : > { %1970 = vadd.xlane.f32.xlu1 %v1969_v11  ;;  %v819_v11 = vld [vmem:[%s5523_s20] sm:$0xff] }
 0x54a   : > { %5222 = vrot.lane.b32.xlu1 %v5654_v42, %s5364_s30 }
 0x56b   : > { %v4616_v14 = vpop.f32.mrb[8].mxu0 }
 0x56c   : > { %v1774_v15 = vpop.f32.mrb[9].mxu0 }
 0x56d   : > { %4621 = vmatprep.mubr.msk.f32.mxu0 %vm1018_vm3, %v1774_v15  ;;  %v821_v15 = vld [vmem:[%s5523_s20 + $0x10] sm:$0xff] }
 0x56e   : > { %4622 = vmatmul.mubr.msk.f32.vlgmr.msra.gmra.mrb[6].mxu0 %vm1018_vm3, %v4616_v14  ;;  %v820_v14 = vld [vmem:[%s5523_s20 + $0x8] sm:$0xff] }
 0x5c2   : > { %v1974_v17 = vpop.xlane.xlu1 %1973 }
 0x5c3   : > { %5289 = vrcp.f32 %v1974_v17  ;;  %v5850_v17 = vpack.c.bf16 %v820_v14, %v819_v11 }
 0x5c6   : > { %v1971_v18 = vpop.xlane.xlu1 %1970 }
 0x5c7   : > { %5291 = vrcp.f32 %v1971_v18  ;;  %v822_v18 = vld [vmem:[%s5523_s20 + $0x18] sm:$0xff] }
 0x5ca   : > { %v5223_v20 = vpop.permute.xlu1 %5222 }
 0x5cb   : > { %v5225_v25 = vunpack.i.h.bf16 %v5223_v20  ;;  %v5224_v27 = vunpack.i.l.bf16 %v5223_v20  ;;  %v5853_v20 = vpack.c.bf16 %v822_v18, %v821_v15 }
 0x5cd   : > { %v4961_v28 = vpack.c.bf16 %v5225_v25, %v5224_v27  ;;  %v5290_v42 = vpop.eup %5289  ;;  %v5860_v25 = vpack.c.bf16 %v824_v24, %v823_v21  ;;  %v825_v27 = vld [vmem:[%s5523_s20 + $0x30] sm:$0xff] }
 0x5ce   : > { %v1978_v38 = vmul.f32 %v5290_v42, %v5286_v6  ;;  %v816_v6 = vld [vmem:[%s5513_s26 + $0x30] sm:$0xff] }
 0x5cf   : > { %4963 = vmatprep.subr.msk.bf16.mxu0 %vm5722_vm9, %v4961_v28 }
 0x5d0   : > { %4966 = vmatpush3.bf16.msk.msra.mxu0 %vm5722_vm9, %v4961_v28  ;;  %v826_v28 = vld [vmem:[%s5523_s20 + $0x38] sm:$0xff] }
 0x5d1   : > { %v5292_v32 = vpop.eup %5291  ;;  %4968 = vmatprep.subr.bf16.mxu0 %v5787_v31  ;;  %v5866_v42 = vpack.c.bf16 %v826_v28, %v825_v27 }
 0x5d2   : > { %v1977_v34 = vmul.f32 %v5292_v32, %v5288_v10  ;;  %v5842_v10 = vpack.c.bf16 %v817_v8, %v816_v6  ;;  %v827_v32 = vld [vmem:[%s5523_s20 + $0x40] sm:$0xff] }
 0x5d4   : > { %4635 = vmatprep.mubr.msk.f32.mxu0 %vm1106_vm6, %v1977_v34  ;;  %4984 = vmatprep.subr.bf16.mxu1 %v5842_v10  ;;  %v828_v34 = vld [vmem:[%s5523_s20 + $0x48] sm:$0xff] }
 0x5d5   : > { %4636 = vmatmul.mubr.msk.f32.vlgmr.msra.gmra.mrb[10].mxu0 %vm1106_vm6, %v1978_v38  ;;  %4986 = vmatpush3.bf16.msra.mxu1 %v5842_v10  ;;  %v5872_v38 = vpack.c.bf16 %v828_v34, %v827_v32 }
 0x5d6   : > { %4970 = vmatpush3.bf16.msra.mxu0 %v5787_v31  ;;  %5020 = vmatprep.subr.bf16.mxu1 %v5565_v7 }
 0x5d7   : > { %4988 = vmatprep.subr.bf16.mxu0 %v5850_v17 }
 0x6a8   : > { %v4637_v40 = vpop.f32.mrb[10].mxu0 }
 0x6a9   : > { %v2058_v41 = vpop.f32.mrb[11].mxu0 }
 0x6aa   : > { %4642 = vmatprep.mubr.msk.f32.mxu0 %vm1018_vm3, %v2058_v41  ;;  %v830_v41 = vld [vmem:[%s5523_s20 + $0x58] sm:$0xff] }
 0x6ab   : > { %4643 = vmatmul.mubr.msk.f32.vlgmr.msra.gmra.mrb[6].mxu0 %vm1018_vm3, %v4637_v40  ;;  %v829_v40 = vld [vmem:[%s5523_s20 + $0x50] sm:$0xff] }
 0x6ac   : > { %4990 = vmatpush3.bf16.msra.mxu0 %v5850_v17 }
 0x6ad   : > { %4992 = vmatprep.subr.bf16.mxu0 %v5853_v20 }
 0x6b0   : > { %4994 = vmatpush3.bf16.msra.mxu0 %v5853_v20 }
 0x6b1   : > { %4996 = vmatprep.subr.bf16.mxu0 %v5860_v25 }
 0x6b4   : > { %4998 = vmatpush3.bf16.msra.mxu0 %v5860_v25 }
 0x6b5   : > { %5000 = vmatprep.subr.bf16.mxu0 %v5866_v42 }
 0x6b8   : > { %5002 = vmatpush3.bf16.msra.mxu0 %v5866_v42 }
 0x6b9   : > { %5004 = vmatprep.subr.bf16.mxu0 %v5872_v38 }
 0x6bc   : > { %5006 = vmatpush3.bf16.msra.mxu0 %v5872_v38 }
 0x77e   : > { %v4644_v45 = vpop.f32.mrb[6].mxu0 }
 0x77f   : > { %v2157_v46 = vadd.f32 %v4644_v45, %v5804_v43  ;;  %v2139_v47 = vpop.f32.mrb[7].mxu0  ;;  %v5878_v45 = vpack.c.bf16 %v830_v41, %v829_v40 }
 0x780   : > { %v2156_v48 = vadd.f32 %v5804_v43, %v2139_v47  ;;  %v832_v47 = vld [vmem:[%s5523_s20 + $0x68] sm:$0xff] }
 0x781   : > { %v2159_v49 = vadd.f32 %v2157_v46, %v5602_v22  ;;  %v831_v46 = vld [vmem:[%s5523_s20 + $0x60] sm:$0xff]  ;;  %5008 = vmatprep.subr.bf16.mxu0 %v5878_v45 }
 0x782   : > { %v2158_v50 = vadd.f32 %v2156_v48, %v5575_v12  ;;  %v5884_v48 = vpack.c.bf16 %v832_v47, %v831_v46  ;;  %5010 = vmatpush3.bf16.msra.mxu0 %v5878_v45 }
 0x783   : > { %v2164_v36 = vsel %vm2163_vm10, %v2159_v49, 0.0 }
 0x784   : > { %2165 = vadd.xlane.f32.xlu1 %v2164_v36  ;;  %v2160_v51 = vsel %vm847_vm2, %v2158_v50, 0.0  ;;  %5012 = vmatprep.subr.bf16.mxu0 %v5884_v48 }
 0x785   : > { %2161 = vadd.xlane.f32.xlu0 %v2160_v51 }
 0x786   : > { %5014 = vmatpush3.bf16.msra.mxu0 %v5884_v48 }
 0x811   : > { %v2166_v35 = vpop.xlane.xlu1 %2165 }
 0x812   : > { %v2169_v52 = vmul.f32 0.015625, %v2166_v35  ;;  %v2162_v53 = vpop.xlane.xlu0 %2161 }
 0x813   : > { %v2168_v54 = vmul.f32 0.015625, %v2162_v53 }
 0x814   : > { %v5812_v56 = vsub.f32 %v2159_v49, %v2169_v52 }
 0x815   : > { %v5814_v58 = vsub.f32 %v2158_v50, %v2168_v54  ;;  %v5894_v54 = vld [vmem:[%s6283_s18] ss:$0 sm:$0xff] }
 0x816   : > { %v2173_v59 = vmul.f32 %v5812_v56, %v5812_v56 }
 0x817   : > { %v2172_v12 = vmul.f32 %v5814_v58, %v5814_v58 }
 0x818   : > { %v2177_v60 = vsel %vm2163_vm10, %v2173_v59, 0.0 }
 0x819   : > { %v2174_v22 = vsel %vm847_vm2, %v2172_v12, 0.0 }
 0x81a   : > { %2175 = vadd.xlane.f32.xlu0 %v2174_v22  ;;  %v5902_v22 = vld [vmem:[%s6284_s28] ss:$0 sm:$0xff]  ;;  %s6287_s28 = scalar_lea.vmem %s6244_s15, %s5472_s29 }
 0x81e   : > { %2178 = vadd.xlane.f32.xlu0 %v2177_v60 }
 0x8a7   : > { %v2176_v49 = vpop.xlane.xlu0 %2175 }
 0x8a8   : > { %v2180_v50 = vmul.f32 0.015625, %v2176_v49 }
 0x8aa   : > { %v2182_v36 = vadd.f32 1e-05, %v2180_v50 }
 0x8ab   : > { %v2179_v51 = vpop.xlane.xlu0 %2178 }
 0x8ac   : > { %5293 = vrsqrt.f32 %v2182_v36  ;;  %v2181_v35 = vmul.f32 0.015625, %v2179_v51 }
 0x8ae   : > { %v2183_v52 = vadd.f32 1e-05, %v2181_v35 }
 0x8b0   : > { %5295 = vrsqrt.f32 %v2183_v52 }
 0x8b6   : > { %v5294_v53 = vpop.eup %5293 }
 0x8b7   : > { %v2186_v12 = vmul.f32 %v5294_v53, %v5814_v58 }
 0x8b9   : > { %v2194_v59 = vmul.f32 %v5894_v54, %v2186_v12 }
 0x8ba   : > { %v5296_v60 = vpop.eup %5295 }
 0x8bb   : > { %v2187_v61 = vmul.f32 %v5296_v60, %v5812_v56  ;;  %v5907_v62 = vadd.f32 %v5902_v22, %v2194_v59  ;;  %v6014_v59 = vld [vmem:[%s6279_s3 + $0x1] ss:$0 sm:$0xff] }
 0x8bd   : > { %4661 = vmatprep.mubr.msk.f32.mxu1 %vm847_vm2, %v5907_v62  ;;  %v2195_v0 = vmul.f32 %v5894_v54, %v2187_v61 }
 0x8bf   : > { %v5913_v58 = vadd.f32 %v5902_v22, %v2195_v0 }
 0x8c1   : > { %4662 = vmatmul.mubr.msk.f32.vlgmr.msra.gmra.mrb[10].mxu1 %vm847_vm2, %v5913_v58 }
 0x8c2   : > { %5022 = vmatpush3.bf16.msra.mxu1 %v5565_v7  ;;  %4715 = vmatprep.mubr.msk.f32.mxu1 %vm847_vm2, %v5918_v1  ;;  %v5934_v7 = vld [vmem:[%s6273_s21 + $0x18] sm:$0xf] }
 0x8c3   : > { %5024 = vmatprep.subr.bf16.mxu1 %v5568_v9 }
 0x8c6   : > { %5026 = vmatpush3.bf16.msra.mxu1 %v5568_v9  ;;  %v833_v9 = vld [vmem:[%s5523_s20 + $0x70] sm:$0xff] }
 0x8c7   : > { %5028 = vmatprep.subr.bf16.mxu1 %v5582_v13 }
 0x8ca   : > { %5030 = vmatpush3.bf16.msra.mxu1 %v5582_v13  ;;  %v834_v13 = vld [vmem:[%s5523_s20 + $0x78] sm:$0xff]  ;;  %s6288_s20 = sld [smem:[#allocation3_spill]] }
 0x8cb   : > { %5032 = vmatprep.subr.bf16.mxu1 %v5588_v16 }
 0x8ce   : > { %5034 = vmatpush3.bf16.msra.mxu1 %v5588_v16  ;;  %v5952_v16 = vpack.c.bf16 %v834_v13, %v833_v9 }
 0x8cf   : > { %5036 = vmatprep.subr.bf16.mxu1 %v5594_v19 }
 0x8d0   : > { %5016 = vmatprep.subr.bf16.mxu0 %v5952_v16  ;;  %p4315_p5 = scmp.ne.s32.totalorder %s6288_s20, 1 }
 0x8d1   : > { %4716 = vmatmul.mubr.msk.f32.vlgmr.msra.gmra.mrb[12].mxu1 %vm847_vm2, %v5934_v7  ;;  %5018 = vmatpush3.bf16.msra.mxu0 %v5952_v16  ;;  %s6290_s16 = sld [smem:[#allocation10_spill]] (!%p4315_p5) }
 0x8d2   : > { %5038 = vmatpush3.bf16.msra.mxu1 %v5594_v19  ;;  %4734 = vmatprep.mubr.msk.f32.mxu1 %vm847_vm2, %v5918_v1  ;;  %v5961_v19 = vld [vmem:[%s6285_s1] ss:$0 sm:$0xff] }
 0x8d3   : > { %5040 = vmatprep.subr.bf16.mxu1 %v5605_v23 }
 0x8d6   : > { %5042 = vmatpush3.bf16.msra.mxu1 %v5605_v23 }
 0x8d7   : > { %5044 = vmatprep.subr.bf16.mxu1 %v5615_v26 }
 0x8da   : > { %5046 = vmatpush3.bf16.msra.mxu1 %v5615_v26 }
 0x8db   : > { %5048 = vmatprep.subr.bf16.mxu1 %v5621_v29 }
 0x8de   : > { %5050 = vmatpush3.bf16.msra.mxu1 %v5621_v29 }
 0x8e1   : > { %4735 = vmatmul.mubr.msk.f32.vlgmr.msra.gmra.mrb[14].mxu1 %vm847_vm2, %v5934_v7 }
 0x994   : > { %v4663_v23 = vpop.f32.mrb[10].mxu1 }
 0x995   : > { %v2288_v26 = vadd.f32 %v4663_v23, %v5961_v19  ;;  %v2282_v29 = vpop.f32.mrb[11].mxu1 }
 0x996   : > { %v2283_v56 = vadd.f32 %v5961_v19, %v2282_v29 }
 0x997   : > { %v2292_v4 = vmax.f32 %v2288_v26, 0.0 }
 0x998   : > { %v2291_v3 = vmax.f32 %v2283_v56, 0.0 }
 0x99a   : > { %4696 = vmatprep.mubr.f32.mxu0 %v2291_v3 }
 0x99b   : > { %4697 = vmatmul.mubr.f32.vlgmr.msra.gmra.mrb[12].mxu0 %v2292_v4 }
 0x9a4   : > { %v4717_v6 = vpop.f32.mrb[12].mxu1 }
 0x9a5   : > { %v2497_v8 = vpop.f32.mrb[13].mxu1  ;;  %v2503_v27 = vadd.f32 %v4717_v6, %v5633_v30 }
 0x9a6   : > { %v2498_v11 = vadd.f32 %v5633_v30, %v2497_v8 }
 0x9a7   : > { %v5985_v34 = vmul.f32 0.25, %v2503_v27 }
 0x9a8   : > { %v5966_v14 = vmul.f32 0.25, %v2498_v11 }
 0x9aa   : > { %2786 = vrot.lane.b32.xlu1 %v5966_v14, %s5357_s27  ;;  %4741 = vmatprep.mubr.msk.f32.mxu0 %vm1018_vm3, %v5966_v14 }
 0x9ae   : > { %3149 = vrot.lane.b32.xlu1 %v5966_v14, %s5358_s6 }
 0x9b4   : > { %v4736_v15 = vpop.f32.mrb[14].mxu1 }
 0x9b5   : > { %v2580_v18 = vadd.f32 %v4736_v15, %v5650_v37  ;;  %v2574_v21 = vpop.f32.mrb[15].mxu1 }
 0x9b6   : > { %v2575_v24 = vadd.f32 %v5650_v37, %v2574_v21 }
 0x9b8   : > { %v5977_v28 = vpack.i.bf16 %v2580_v18, %v2575_v24  ;;  %v5051_v32 = vpack.c.bf16 %v2580_v18, %v2575_v24 }
 0x9ba   : > { %5227 = vrot.lane.b32.xlu0 %v5977_v28, %s5357_s27  ;;  %5053 = vmatprep.subr.msk.bf16.mxu0 %vm5658_vm4, %v5051_v32 }
 0x9bb   : > { %5056 = vmatpush3.bf16.xpose.msk.msra.mxu0 %vm5658_vm4, %v5051_v32 }
 0x9be   : > { %2788 = vrot.lane.b32.xlu0 %v5985_v34, %s5357_s27 }
 0x9c2   : > { %5232 = vrot.lane.b32.xlu0 %v5977_v28, %s5358_s6  ;;  %4742 = vmatmul.mubr.msk.f32.vlgmr.msra.gmra.mrb[14].mxu0 %vm1018_vm3, %v5985_v34 }
 0x9c6   : > { %3151 = vrot.lane.b32.xlu0 %v5985_v34, %s5358_s6 }
 0xa1c   : > { %v2787_v30 = vpop.permute.xlu1 %2786 }
 0xa1d   : > { %4755 = vmatprep.mubr.msk.f32.mxu1 %vm1018_vm3, %v2787_v30 }
 0xa20   : > { %v3150_v35 = vpop.permute.xlu1 %3149 }
 0xa2c   : > { %v5228_v37 = vpop.permute.xlu0 %5227 }
 0xa2d   : > { %v5230_v40 = vunpack.i.h.bf16 %v5228_v37  ;;  %v5229_v41 = vunpack.i.l.bf16 %v5228_v37 }
 0xa2f   : > { %v5063_v46 = vpack.c.bf16 %v5230_v40, %v5229_v41 }
 0xa30   : > { %v2789_v47 = vpop.permute.xlu0 %2788 }
 0xa31   : > { %5065 = vmatprep.subr.msk.bf16.mxu1 %vm5658_vm4, %v5063_v46 }
 0xa32   : > { %5068 = vmatpush3.bf16.xpose.msk.msra.mxu1 %vm5658_vm4, %v5063_v46 }
 0xa34   : > { %v5233_v49 = vpop.permute.xlu0 %5232 }
 0xa35   : > { %v5235_v50 = vunpack.i.h.bf16 %v5233_v49  ;;  %v5234_v36 = vunpack.i.l.bf16 %v5233_v49 }
 0xa37   : > { %v5083_v51 = vpack.c.bf16 %v5235_v50, %v5234_v36 }
 0xa38   : > { %v3152_v52 = vpop.permute.xlu0 %3151 }
 0xa39   : > { %4756 = vmatmul.mubr.msk.f32.vlgmr.msra.gmra.mrb[16].mxu1 %vm1018_vm3, %v2789_v47  ;;  %5085 = vmatprep.subr.msk.bf16.mxu1 %vm5658_vm4, %v5083_v51 }
 0xa3a   : > { %5088 = vmatpush3.bf16.xpose.msk.msra.mxu1 %vm5658_vm4, %v5083_v51  ;;  %4783 = vmatprep.mubr.msk.f32.mxu1 %vm1018_vm3, %v3150_v35 }
 0xa41   : > { %4784 = vmatmul.mubr.msk.f32.vlgmr.msra.gmra.mrb[18].mxu1 %vm1018_vm3, %v3152_v52 }
 0xa6e   : > { %v6007_v53 = vpop.f32.mrb[12].mxu0 }
 0xa6f   : > { %v6009_v12 = vpop.f32.mrb[13].mxu0 }
 0xa95   : > { %v4743_v60 = vpop.f32.mrb[14].mxu0 }
 0xa96   : > { %v2673_v61 = vadd.f32 %v4743_v60, %v6014_v59  ;;  %v2667_v0 = vpop.f32.mrb[15].mxu0 }
 0xa97   : > { %v2668_v9 = vadd.f32 %v6014_v59, %v2667_v0 }
 0xa98   : > { %v2679_v13 = vsel %vm1110_vm5, %v2673_v61, -inf }
 0xa99   : > { %2680 = vmax.xlane.f32.xlu0 %v2679_v13  ;;  %v2676_v23 = vsel %vm1106_vm6, %v2668_v9, -inf }
 0xa9a   : > { %2677 = vmax.xlane.f32.xlu1 %v2676_v23 }
 0xb0c   : > { %v4757_v26 = vpop.f32.mrb[16].mxu1 }
 0xb0d   : > { %v2874_v29 = vadd.f32 %v4757_v26, %v6014_v59  ;;  %v2868_v56 = vpop.f32.mrb[17].mxu1 }
 0xb0e   : > { %v2869_v3 = vadd.f32 %v6014_v59, %v2868_v56 }
 0xb0f   : > { %v2880_v4 = vsel %vm1110_vm5, %v2874_v29, -inf }
 0xb10   : > { %2881 = vmax.xlane.f32.xlu1 %v2880_v4  ;;  %v2877_v6 = vsel %vm1106_vm6, %v2869_v3, -inf }
 0xb11   : > { %2878 = vmax.xlane.f32.xlu0 %v2877_v6 }
 0xb14   : > { %v4785_v8 = vpop.f32.mrb[18].mxu1 }
 0xb15   : > { %v3231_v11 = vpop.f32.mrb[19].mxu1  ;;  %v3237_v26 = vadd.f32 %v4785_v8, %v6014_v59 }
 0xb16   : > { %v3232_v23 = vadd.f32 %v6014_v59, %v3231_v11 }
 0xb17   : > { %v3243_v56 = vsel %vm1110_vm5, %v3237_v26, -inf }
 0xb26   : > { %v2681_v15 = vpop.xlane.xlu0 %2680 }
 0xb27   : > { %v2683_v18 = vsub.f32 %v2673_v61, %v2681_v15  ;;  %v2678_v21 = vpop.xlane.xlu1 %2677 }
 0xb28   : > { %v2682_v24 = vsub.f32 %v2668_v9, %v2678_v21 }
 0xb29   : > { %v2686_v27 = vmul.f32 1.442695, %v2683_v18 }
 0xb2a   : > { %v2684_v32 = vmul.f32 1.442695, %v2682_v24 }
 0xb2b   : > { %5297 = vpow2.f32 %v2686_v27 }
 0xb2c   : > { %5299 = vpow2.f32 %v2684_v32 }
 0xb35   : > { %v5298_v30 = vpop.eup %5297 }
 0xb36   : > { %v5300_v37 = vpop.eup %5299  ;;  %v2691_v40 = vsel %vm1110_vm5, %v5298_v30, 0.0 }
 0xb37   : > { %2692 = vadd.xlane.f32.xlu1 %v2691_v40  ;;  %v2688_v41 = vsel %vm1106_vm6, %v5300_v37, 0.0 }
 0xb38   : > { %2689 = vadd.xlane.f32.xlu0 %v2688_v41 }
 0xb9d   : > { %v2882_v46 = vpop.xlane.xlu1 %2881 }
 0xb9e   : > { %v2884_v47 = vsub.f32 %v2874_v29, %v2882_v46  ;;  %v2879_v49 = vpop.xlane.xlu0 %2878  ;;  %v3240_v29 = vsel %vm1106_vm6, %v3232_v23, -inf }
 0xb9f   : > { %v2883_v50 = vsub.f32 %v2869_v3, %v2879_v49 }
 0xba0   : > { %v2887_v36 = vmul.f32 1.442695, %v2884_v47 }
 0xba1   : > { %v2885_v51 = vmul.f32 1.442695, %v2883_v50 }
 0xba2   : > { %5301 = vpow2.f32 %v2887_v36 }
 0xba3   : > { %5303 = vpow2.f32 %v2885_v51 }
 0xbac   : > { %v5302_v35 = vpop.eup %5301 }
 0xbad   : > { %v5304_v52 = vpop.eup %5303  ;;  %v2892_v60 = vsel %vm1110_vm5, %v5302_v35, 0.0 }
 0xbae   : > { %2893 = vadd.xlane.f32.xlu1 %v2892_v60  ;;  %v2889_v61 = vsel %vm1106_vm6, %v5304_v52, 0.0 }
 0xbaf   : > { %2890 = vadd.xlane.f32.xlu0 %v2889_v61 }
 0xbbf   : > { %5242 = vrot.lane.b32.xlu1 %v5977_v28, %s5361_s22  ;;  %s6286_s22 = scalar_lea.vmem %s6243_s14, %s5472_s29  ;;  %s6291_s29 = sld [smem:[#allocation11_spill]] (!%p4315_p5) }
 0xbc3   : > { %5247 = vrot.lane.b32.xlu1 %v5977_v28, %s5360_s4 }
 0xbc5   : > { %5237 = vrot.lane.b32.xlu0 %v5977_v28, %s5359_s2  ;;  %v2690_v0 = vpop.xlane.xlu0 %2689  ;;  %s6289_s2 = sld [smem:[#allocation12_spill]] (!%p4315_p5) }
 0xbc6   : > { %5305 = vrcp.f32 %v2690_v0 }
 0xbc7   : > { %3435 = vrot.lane.b32.xlu1 %v5985_v34, %s5360_s4 }
 0xbc9   : > { %3433 = vrot.lane.b32.xlu0 %v5966_v14, %s5360_s4  ;;  %v2693_v14 = vpop.xlane.xlu1 %2692 }
 0xbca   : > { %5307 = vrcp.f32 %v2693_v14 }
 0xbd0   : > { %v5306_v9 = vpop.eup %5305 }
 0xbd1   : > { %v2696_v13 = vmul.f32 %v5306_v9, %v5300_v37 }
 0xbd3   : > { %4748 = vmatprep.mubr.msk.f32.mxu0 %vm1106_vm6, %v2696_v13 }
 0xbd4   : > { %v5308_v27 = vpop.eup %5307 }
 0xbd5   : > { %v2697_v47 = vmul.f32 %v5308_v27, %v5298_v30 }
 0xbe8   : > { %3241 = vmax.xlane.f32.xlu0 %v3240_v29 }
 0xbeb   : > { %3244 = vmax.xlane.f32.xlu1 %v3243_v56 }
 0xbfc   : > { %5252 = vrot.lane.b32.xlu1 %v5977_v28, %s5363_s24 }
 0xc00   : > { %5257 = vrot.lane.b32.xlu1 %v5977_v28, %s5364_s30 }
 0xc3b   : > { %v2894_v34 = vpop.xlane.xlu1 %2893 }
 0xc3c   : > { %v2891_v3 = vpop.xlane.xlu0 %2890 }
 0xc3d   : > { %5309 = vrcp.f32 %v2891_v3 }
 0xc3e   : > { %5311 = vrcp.f32 %v2894_v34 }
 0xc3f   : > { %v5243_v4 = vpop.permute.xlu1 %5242 }
 0xc40   : > { %v5238_v6 = vpop.permute.xlu0 %5237  ;;  %v5245_v8 = vunpack.i.h.bf16 %v5243_v4  ;;  %v5244_v11 = vunpack.i.l.bf16 %v5243_v4 }
 0xc41   : > { %v5240_v15 = vunpack.i.h.bf16 %v5238_v6  ;;  %v5239_v18 = vunpack.i.l.bf16 %v5238_v6 }
 0xc42   : > { %v5069_v41 = vpack.c.bf16 %v5245_v8, %v5244_v11 }
 0xc43   : > { %v5057_v21 = vpack.c.bf16 %v5240_v15, %v5239_v18  ;;  %v5248_v24 = vpop.permute.xlu1 %5247 }
 0xc44   : > { %v5250_v32 = vunpack.i.h.bf16 %v5248_v24  ;;  %v5249_v37 = vunpack.i.l.bf16 %v5248_v24  ;;  %v3434_v40 = vpop.permute.xlu0 %3433 }
 0xc45   : > { %5059 = vmatprep.subr.msk.bf16.mxu0 %vm5722_vm9, %v5057_v21  ;;  %4804 = vmatprep.mubr.msk.f32.mxu1 %vm1018_vm3, %v3434_v40 }
 0xc46   : > { %v5099_v28 = vpack.c.bf16 %v5250_v32, %v5249_v37  ;;  %5062 = vmatpush3.bf16.msk.msra.mxu0 %vm5722_vm9, %v5057_v21 }
 0xc47   : > { %v5310_v46 = vpop.eup %5309  ;;  %5071 = vmatprep.subr.msk.bf16.mxu0 %vm5722_vm9, %v5069_v41  ;;  %v3436_v30 = vpop.permute.xlu1 %3435 }
 0xc48   : > { %v5312_v49 = vpop.eup %5311  ;;  %5101 = vmatprep.subr.msk.bf16.mxu1 %vm5658_vm4, %v5099_v28  ;;  %v2897_v50 = vmul.f32 %v5310_v46, %v5304_v52 }
 0xc49   : > { %4749 = vmatmul.mubr.msk.f32.vlgmr.msra.gmra.mrb[16].mxu0 %vm1106_vm6, %v2697_v47  ;;  %5104 = vmatpush3.bf16.xpose.msk.msra.mxu1 %vm5658_vm4, %v5099_v28  ;;  %v2898_v36 = vmul.f32 %v5312_v49, %v5302_v35 }
 0xc4a   : > { %5074 = vmatpush3.bf16.msk.msra.mxu0 %vm5722_vm9, %v5069_v41  ;;  %4762 = vmatprep.mubr.msk.f32.mxu0 %vm1106_vm6, %v2897_v50 }
 0xc4b   : > { %5076 = vmatprep.subr.bf16.mxu0 %v5747_v33  ;;  %5116 = vmatprep.subr.bf16.mxu1 %v5824_v57 }
 0xc4d   : > { %4763 = vmatmul.mubr.msk.f32.vlgmr.msra.gmra.mrb[18].mxu0 %vm1106_vm6, %v2898_v36 }
 0xc4e   : > { %5078 = vmatpush3.bf16.msra.mxu0 %v5747_v33 }
 0xc4f   : > { %5080 = vmatprep.subr.bf16.mxu0 %v5755_v39 }
 0xc50   : > { %4805 = vmatmul.mubr.msk.f32.vlgmr.msra.gmra.mrb[20].mxu1 %vm1018_vm3, %v3436_v30 }
 0xc51   : > { %5118 = vmatpush3.bf16.msra.mxu1 %v5824_v57 }
 0xc52   : > { %5120 = vmatprep.subr.bf16.mxu1 %v5830_v2 }
 0xc55   : > { %5122 = vmatpush3.bf16.msra.mxu1 %v5830_v2 }
 0xc56   : > { %5124 = vmatprep.subr.bf16.mxu1 %v5836_v5 }
 0xc59   : > { %5126 = vmatpush3.bf16.msra.mxu1 %v5836_v5 }
 0xc5a   : > { %5128 = vmatprep.subr.bf16.mxu1 %v5842_v10 }
 0xc5d   : > { %5130 = vmatpush3.bf16.msra.mxu1 %v5842_v10 }
 0xc75   : > { %v3242_v44 = vpop.xlane.xlu0 %3241 }
 0xc76   : > { %v3246_v33 = vsub.f32 %v3232_v23, %v3242_v44 }
 0xc78   : > { %v3248_v51 = vmul.f32 1.442695, %v3246_v33  ;;  %v3245_v35 = vpop.xlane.xlu1 %3244 }
 0xc79   : > { %v3247_v52 = vsub.f32 %v3237_v26, %v3245_v35 }
 0xc7a   : > { %5313 = vpow2.f32 %v3248_v51 }
 0xc7b   : > { %v3250_v60 = vmul.f32 1.442695, %v3247_v52 }
 0xc7c   : > { %v5253_v9 = vpop.permute.xlu1 %5252 }
 0xc7d   : > { %5315 = vpow2.f32 %v3250_v60  ;;  %v5255_v23 = vunpack.i.h.bf16 %v5253_v9  ;;  %v5254_v56 = vunpack.i.l.bf16 %v5253_v9 }
 0xc7f   : > { %v5089_v34 = vpack.c.bf16 %v5255_v23, %v5254_v56 }
 0xc80   : > { %v5258_v18 = vpop.permute.xlu1 %5257 }
 0xc81   : > { %v5260_v24 = vunpack.i.h.bf16 %v5258_v18  ;;  %v5259_v27 = vunpack.i.l.bf16 %v5258_v18 }
 0xc84   : > { %v5314_v57 = vpop.eup %5313 }
 0xc85   : > { %v3252_v61 = vsel %vm1106_vm6, %v5314_v57, 0.0 }
 0xc86   : > { %3253 = vadd.xlane.f32.xlu0 %v3252_v61 }
 0xc87   : > { %v5316_v2 = vpop.eup %5315 }
 0xc88   : > { %v3255_v0 = vsel %vm1110_vm5, %v5316_v2, 0.0 }
 0xc8a   : > { %3256 = vadd.xlane.f32.xlu0 %v3255_v0 }
 0xd13   : > { %v3254_v5 = vpop.xlane.xlu0 %3253 }
 0xd14   : > { %5317 = vrcp.f32 %v3254_v5 }
 0xd17   : > { %v3257_v10 = vpop.xlane.xlu0 %3256 }
 0xd18   : > { %5319 = vrcp.f32 %v3257_v10 }
 0xd1c   : > { %v4750_v13 = vpop.f32.mrb[16].mxu0 }
 0xd1d   : > { %v2777_v29 = vpop.f32.mrb[17].mxu0 }
 0xd1e   : > { %v5318_v15 = vpop.eup %5317 }
 0xd1f   : > { %v3260_v32 = vmul.f32 %v5318_v15, %v5314_v57 }
 0xd20   : > { %v4764_v26 = vpop.f32.mrb[18].mxu0 }
 0xd21   : > { %v2978_v14 = vpop.f32.mrb[19].mxu0 }
 0xd22   : > { %4769 = vmatprep.mubr.msk.f32.mxu0 %vm1018_vm3, %v2978_v14  ;;  %v5320_v21 = vpop.eup %5319 }
 0xd23   : > { %4770 = vmatmul.mubr.msk.f32.vlgmr.msra.gmra.mrb[20].mxu0 %vm1018_vm3, %v4764_v26  ;;  %v4806_v3 = vpop.f32.mrb[20].mxu1  ;;  %v3261_v37 = vmul.f32 %v5320_v21, %v5316_v2 }
 0xd24   : > { %5082 = vmatpush3.bf16.msra.mxu0 %v5755_v39  ;;  %4776 = vmatprep.mubr.msk.f32.mxu0 %vm1018_vm3, %v2777_v29  ;;  %v3515_v4 = vpop.f32.mrb[21].mxu1  ;;  %v3521_v8 = vadd.f32 %v4806_v3, %v6014_v59 }
 0xd25   : > { %5091 = vmatprep.subr.msk.bf16.mxu0 %vm5722_vm9, %v5089_v34  ;;  %v3516_v6 = vadd.f32 %v6014_v59, %v3515_v4  ;;  %v5105_v59 = vpack.c.bf16 %v5260_v24, %v5259_v27 }
 0xd26   : > { %v3527_v39 = vsel %vm1110_vm5, %v3521_v8, -inf }
 0xd27   : > { %v3524_v11 = vsel %vm1106_vm6, %v3516_v6, -inf }
 0xd28   : > { %3525 = vmax.xlane.f32.xlu0 %v3524_v11 }
 0xd2b   : > { %4777 = vmatmul.mubr.msk.f32.vlgmr.msra.gmra.mrb[20].mxu0 %vm1018_vm3, %v4750_v13 }
 0xd2c   : > { %5094 = vmatpush3.bf16.msk.msra.mxu0 %vm5722_vm9, %v5089_v34  ;;  %3528 = vmax.xlane.f32.xlu0 %v3527_v39 }
 0xd2d   : > { %4790 = vmatprep.mubr.msk.f32.mxu0 %vm1106_vm6, %v3260_v32  ;;  %5096 = vmatprep.subr.bf16.mxu0 %v5775_v63 }
 0xd2f   : > { %4791 = vmatmul.mubr.msk.f32.vlgmr.msra.gmra.mrb[22].mxu0 %vm1106_vm6, %v3261_v37 }
 0xd30   : > { %5098 = vmatpush3.bf16.msra.mxu0 %v5775_v63 }
 0xd31   : > { %5107 = vmatprep.subr.msk.bf16.mxu0 %vm5722_vm9, %v5105_v59 }
 0xdb5   : > { %v3526_v40 = vpop.xlane.xlu0 %3525 }
 0xdb6   : > { %v3530_v41 = vsub.f32 %v3516_v6, %v3526_v40 }
 0xdb8   : > { %v3532_v28 = vmul.f32 1.442695, %v3530_v41 }
 0xdb9   : > { %v3529_v46 = vpop.xlane.xlu0 %3528 }
 0xdba   : > { %5321 = vpow2.f32 %v3532_v28  ;;  %v3531_v47 = vsub.f32 %v3521_v8, %v3529_v46 }
 0xdbc   : > { %v3534_v49 = vmul.f32 1.442695, %v3531_v47 }
 0xdbe   : > { %5323 = vpow2.f32 %v3534_v49 }
 0xdc4   : > { %v5322_v50 = vpop.eup %5321 }
 0xdc5   : > { %v3536_v36 = vsel %vm1106_vm6, %v5322_v50, 0.0 }
 0xdc6   : > { %3537 = vadd.xlane.f32.xlu0 %v3536_v36 }
 0xdc8   : > { %v5324_v30 = vpop.eup %5323 }
 0xdc9   : > { %v3539_v44 = vsel %vm1110_vm5, %v5324_v30, 0.0 }
 0xdca   : > { %3540 = vadd.xlane.f32.xlu0 %v3539_v44 }
 0xe02   : > { %v4792_v63 = vpop.f32.mrb[22].mxu0 }
 0xe03   : > { %v3341_v33 = vpop.f32.mrb[23].mxu0 }
 0xe04   : > { %4797 = vmatprep.mubr.msk.f32.mxu0 %vm1018_vm3, %v3341_v33 }
 0xe05   : > { %4798 = vmatmul.mubr.msk.f32.vlgmr.msra.gmra.mrb[20].mxu0 %vm1018_vm3, %v4792_v63 }
 0xe06   : > { %5110 = vmatpush3.bf16.msk.msra.mxu0 %vm5722_vm9, %v5105_v59 }
 0xe07   : > { %5112 = vmatprep.subr.bf16.mxu0 %v5787_v31 }
 0xe53   : > { %v3538_v51 = vpop.xlane.xlu0 %3537 }
 0xe54   : > { %5325 = vrcp.f32 %v3538_v51 }
 0xe57   : > { %v3541_v35 = vpop.xlane.xlu0 %3540 }
 0xe58   : > { %5327 = vrcp.f32 %v3541_v35 }
 0xe5e   : > { %v5326_v52 = vpop.eup %5325 }
 0xe5f   : > { %v3544_v60 = vmul.f32 %v5326_v52, %v5322_v50 }
 0xe61   : > { %4811 = vmatprep.mubr.msk.f32.mxu0 %vm1106_vm6, %v3544_v60 }
 0xe62   : > { %v5328_v57 = vpop.eup %5327 }
 0xe63   : > { %v3545_v61 = vmul.f32 %v5328_v57, %v5324_v30 }
 0xe65   : > { %4812 = vmatmul.mubr.msk.f32.vlgmr.msra.gmra.mrb[24].mxu0 %vm1106_vm6, %v3545_v61 }
 0xe66   : > { %5114 = vmatpush3.bf16.msra.mxu0 %v5787_v31 }
 0xe67   : > { %5132 = vmatprep.subr.bf16.mxu0 %v5850_v17 }
 0xf38   : > { %v4813_v55 = vpop.f32.mrb[24].mxu0 }
 0xf39   : > { %v3625_v2 = vpop.f32.mrb[25].mxu0 }
 0xf3a   : > { %4818 = vmatprep.mubr.msk.f32.mxu0 %vm1018_vm3, %v3625_v2 }
 0xf3b   : > { %4819 = vmatmul.mubr.msk.f32.vlgmr.msra.gmra.mrb[20].mxu0 %vm1018_vm3, %v4813_v55 }
 0xf3c   : > { %5134 = vmatpush3.bf16.msra.mxu0 %v5850_v17 }
 0xf3d   : > { %5136 = vmatprep.subr.bf16.mxu0 %v5853_v20 }
 0xf40   : > { %5138 = vmatpush3.bf16.msra.mxu0 %v5853_v20 }
 0xf41   : > { %5140 = vmatprep.subr.bf16.mxu0 %v5860_v25 }
 0xf44   : > { %5142 = vmatpush3.bf16.msra.mxu0 %v5860_v25 }
 0xf45   : > { %5144 = vmatprep.subr.bf16.mxu0 %v5866_v42 }
 0xf48   : > { %5146 = vmatpush3.bf16.msra.mxu0 %v5866_v42 }
 0xf49   : > { %5148 = vmatprep.subr.bf16.mxu0 %v5872_v38 }
 0xf4c   : > { %5150 = vmatpush3.bf16.msra.mxu0 %v5872_v38 }
 0xf4d   : > { %5152 = vmatprep.subr.bf16.mxu0 %v5878_v45 }
 0xf50   : > { %5154 = vmatpush3.bf16.msra.mxu0 %v5878_v45 }
 0xf51   : > { %5156 = vmatprep.subr.bf16.mxu0 %v5884_v48 }
 0xf54   : > { %5158 = vmatpush3.bf16.msra.mxu0 %v5884_v48 }
 0xf55   : > { %5160 = vmatprep.subr.bf16.mxu0 %v5952_v16 }
 0xf58   : > { %5162 = vmatpush3.bf16.msra.mxu0 %v5952_v16 }
0x100e   : > { %v4820_v31 = vpop.f32.mrb[20].mxu0 }
0x100f   : > { %v3718_v17 = vadd.f32 %v4820_v31, %v5804_v43  ;;  %v3706_v20 = vpop.f32.mrb[21].mxu0 }
0x1010   : > { %v3717_v25 = vadd.f32 %v5804_v43, %v3706_v20  ;;  %v4264_v43 = vld [vmem:[%s760_s23] ss:$0 sm:$0xff] }
0x1011   : > { %v3720_v42 = vadd.f32 %v5934_v7, %v3718_v17  ;;  %v2371_v56 = vadd.f32 %v6007_v53, %v4264_v43 }
0x1012   : > { %v3719_v38 = vadd.f32 %v5918_v1, %v3717_v25  ;;  %v2366_v1 = vadd.f32 %v4264_v43, %v6009_v12 }
0x1013   : > { %v3724_v45 = vsel %vm2163_vm10, %v3720_v42, 0.0  ;;  %v2375_v3 = vadd.f32 %v2371_v56, %v5913_v58 }
0x1014   : > { %3725 = vadd.xlane.f32.xlu1 %v3724_v45  ;;  %v3721_v48 = vsel %vm847_vm2, %v3719_v38, 0.0  ;;  %v2374_v14 = vadd.f32 %v2366_v1, %v5907_v62  ;;  %v4265_v1 = vld [vmem:[%s6286_s22] ss:$0 sm:$0xff] }
0x1015   : > { %3722 = vadd.xlane.f32.xlu0 %v3721_v48  ;;  %v2379_v4 = vsel %vm2163_vm10, %v2375_v3, 0.0 }
0x1016   : > { %v2376_v34 = vsel %vm847_vm2, %v2374_v14, 0.0 }
0x10a1   : > { %v3726_v0 = vpop.xlane.xlu1 %3725 }
0x10a2   : > { %v3728_v5 = vmul.f32 0.015625, %v3726_v0  ;;  %v3723_v16 = vpop.xlane.xlu0 %3722 }
0x10a3   : > { %v3727_v9 = vmul.f32 0.015625, %v3723_v16 }
0x10a4   : > { %v3730_v13 = vsub.f32 %v3720_v42, %v3728_v5 }
0x10a5   : > { %v3729_v10 = vsub.f32 %v3719_v38, %v3727_v9 }
0x10a6   : > { %v3732_v23 = vmul.f32 %v3730_v13, %v3730_v13 }
0x10a7   : > { %v3731_v7 = vmul.f32 %v3729_v10, %v3729_v10 }
0x10a8   : > { %v3736_v26 = vsel %vm2163_vm10, %v3732_v23, 0.0  ;;  %v4266_v23 = vld [vmem:[%s6287_s28] ss:$0 sm:$0xff] }
0x10a9   : > { %v3733_v29 = vsel %vm847_vm2, %v3731_v7, 0.0 }
0x10aa   : > { %3734 = vadd.xlane.f32.xlu0 %v3733_v29 }
0x10ae   : > { %3737 = vadd.xlane.f32.xlu0 %v3736_v26 }
0x10b2   : > { %2377 = vadd.xlane.f32.xlu0 %v2376_v34 }
0x10b6   : > { %2380 = vadd.xlane.f32.xlu0 %v2379_v4 }
0x1137   : > { %v3735_v12 = vpop.xlane.xlu0 %3734 }
0x1138   : > { %v3739_v6 = vmul.f32 0.015625, %v3735_v12 }
0x113a   : > { %v3741_v8 = vadd.f32 1e-05, %v3739_v6 }
0x113b   : > { %v3738_v11 = vpop.xlane.xlu0 %3737 }
0x113c   : > { %5329 = vrsqrt.f32 %v3741_v8  ;;  %v3740_v15 = vmul.f32 0.015625, %v3738_v11 }
0x113e   : > { %v3742_v53 = vadd.f32 1e-05, %v3740_v15 }
0x113f   : > { %v2378_v47 = vpop.xlane.xlu0 %2377 }
0x1140   : > { %5331 = vrsqrt.f32 %v3742_v53  ;;  %v2382_v36 = vmul.f32 0.015625, %v2378_v47 }
0x1142   : > { %v2384_v63 = vsub.f32 %v2374_v14, %v2382_v36 }
0x1143   : > { %v2381_v44 = vpop.xlane.xlu0 %2380 }
0x1144   : > { %v2383_v33 = vmul.f32 0.015625, %v2381_v44  ;;  %v2386_v60 = vmul.f32 %v2384_v63, %v2384_v63 }
0x1146   : > { %v5330_v18 = vpop.eup %5329  ;;  %v2385_v52 = vsub.f32 %v2375_v3, %v2383_v33  ;;  %v2388_v57 = vsel %vm847_vm2, %v2386_v60, 0.0 }
0x1147   : > { %v3745_v21 = vmul.f32 %v5330_v18, %v3729_v10 }
0x1148   : > { %v2387_v61 = vmul.f32 %v2385_v52, %v2385_v52 }
0x1149   : > { %v3747_v62 = vmul.f32 %v5894_v54, %v3745_v21 }
0x114a   : > { %v5332_v24 = vpop.eup %5331  ;;  %v2391_v55 = vsel %vm2163_vm10, %v2387_v61, 0.0 }
0x114b   : > { %v3746_v27 = vmul.f32 %v5332_v24, %v3730_v13  ;;  %v3749_v58 = vadd.f32 %v5902_v22, %v3747_v62 }
0x114d   : > { %4837 = vmatprep.mubr.msk.f32.mxu1 %vm847_vm2, %v3749_v58  ;;  %v3748_v39 = vmul.f32 %v5894_v54, %v3746_v27 }
0x114f   : > { %v3750_v32 = vadd.f32 %v5902_v22, %v3748_v39 }
0x1151   : > { %4838 = vmatmul.mubr.msk.f32.vlgmr.msra.gmra.mrb[22].mxu1 %vm847_vm2, %v3750_v32 }
0x1224   : > { %v4839_v37 = vpop.f32.mrb[22].mxu1 }
0x1225   : > { %v3829_v59 = vadd.f32 %v4839_v37, %v5961_v19  ;;  %v3823_v40 = vpop.f32.mrb[23].mxu1 }
0x1226   : > { %v3824_v41 = vadd.f32 %v5961_v19, %v3823_v40 }
0x1227   : > { %v3833_v46 = vmax.f32 %v3829_v59, 0.0 }
0x1228   : > { %v3832_v28 = vmax.f32 %v3824_v41, 0.0 }
0x122a   : > { %4872 = vmatprep.mubr.f32.mxu0 %v3832_v28 }
0x122b   : > { %4873 = vmatmul.mubr.f32.vlgmr.msra.gmra.mrb[26].mxu0 %v3833_v46 }
0x12fe   : > { %v4874_v49 = vpop.f32.mrb[26].mxu0 }
0x12ff   : > { %v3900_v50 = vpop.f32.mrb[27].mxu0  ;;  %v3906_v30 = vadd.f32 %v4874_v49, %v4264_v43 }
0x1300   : > { %v3901_v54 = vadd.f32 %v4264_v43, %v3900_v50 }
0x1301   : > { %v3910_v35 = vadd.f32 %v3906_v30, %v3750_v32 }
0x1302   : > { %v3909_v22 = vadd.f32 %v3901_v54, %v3749_v58 }
0x1303   : > { %v3914_v19 = vsel %vm2163_vm10, %v3910_v35, 0.0 }
0x1304   : > { %v3911_v51 = vsel %vm847_vm2, %v3909_v22, 0.0 }
0x1305   : > { %3912 = vadd.xlane.f32.xlu0 %v3911_v51 }
0x1309   : > { %3915 = vadd.xlane.f32.xlu0 %v3914_v19 }
0x130d   : > { %2389 = vadd.xlane.f32.xlu0 %v2388_v57 }
0x1311   : > { %2392 = vadd.xlane.f32.xlu0 %v2391_v55 }
0x1392   : > { %v3913_v2 = vpop.xlane.xlu0 %3912 }
0x1393   : > { %v3917_v31 = vmul.f32 0.015625, %v3913_v2 }
0x1395   : > { %v3919_v17 = vsub.f32 %v3909_v22, %v3917_v31 }
0x1396   : > { %v3916_v20 = vpop.xlane.xlu0 %3915 }
0x1397   : > { %v3918_v25 = vmul.f32 0.015625, %v3916_v20  ;;  %v3921_v42 = vmul.f32 %v3919_v17, %v3919_v17 }
0x1399   : > { %v3920_v38 = vsub.f32 %v3910_v35, %v3918_v25  ;;  %v3923_v45 = vsel %vm847_vm2, %v3921_v42, 0.0 }
0x139a   : > { %3924 = vadd.xlane.f32.xlu0 %v3923_v45  ;;  %v2390_v48 = vpop.xlane.xlu0 %2389 }
0x139b   : > { %v2394_v0 = vmul.f32 0.015625, %v2390_v48  ;;  %v3922_v5 = vmul.f32 %v3920_v38, %v3920_v38 }
0x139d   : > { %v2396_v16 = vadd.f32 1e-05, %v2394_v0  ;;  %v3926_v9 = vsel %vm2163_vm10, %v3922_v5, 0.0 }
0x139e   : > { %3927 = vadd.xlane.f32.xlu1 %v3926_v9  ;;  %v2393_v13 = vpop.xlane.xlu0 %2392 }
0x139f   : > { %5333 = vrsqrt.f32 %v2396_v16  ;;  %v2395_v10 = vmul.f32 0.015625, %v2393_v13 }
0x13a1   : > { %v2397_v43 = vadd.f32 1e-05, %v2395_v10 }
0x13a3   : > { %5335 = vrsqrt.f32 %v2397_v43 }
0x13a9   : > { %v5334_v7 = vpop.eup %5333 }
0x13aa   : > { %v2400_v29 = vmul.f32 %v5334_v7, %v2384_v63 }
0x13ac   : > { %v2408_v56 = vmul.f32 %v4265_v1, %v2400_v29 }
0x13ad   : > { %v5336_v26 = vpop.eup %5335 }
0x13ae   : > { %v2416_v14 = vadd.f32 %v4266_v23, %v2408_v56  ;;  %v2401_v34 = vmul.f32 %v5336_v26, %v2385_v52 }
0x13b0   : > { %2418 = vst.msk [vmem:[%s6273_s21] sm:$0xff] %vm847_vm2, %v2416_v14  ;;  %v2409_v3 = vmul.f32 %v4265_v1, %v2401_v34 }
0x13b2   : > { %v2417_v4 = vadd.f32 %v4266_v23, %v2409_v3 }
0x13b4   : > { %2419 = vst.msk [vmem:[%s6273_s21 + $0x8] sm:$0xf] %vm2163_vm10, %v2417_v4 }
0x1427   : > { %v3925_v12 = vpop.xlane.xlu0 %3924 }
0x1428   : > { %v3929_v6 = vmul.f32 0.015625, %v3925_v12 }
0x142a   : > { %v3931_v8 = vadd.f32 1e-05, %v3929_v6 }
0x142b   : > { %v3928_v11 = vpop.xlane.xlu1 %3927 }
0x142c   : > { %5337 = vrsqrt.f32 %v3931_v8  ;;  %v3930_v15 = vmul.f32 0.015625, %v3928_v11 }
0x142e   : > { %v3932_v53 = vadd.f32 1e-05, %v3930_v15 }
0x1430   : > { %5339 = vrsqrt.f32 %v3932_v53 }
0x1436   : > { %v5338_v18 = vpop.eup %5337 }
0x1437   : > { %v3935_v21 = vmul.f32 %v5338_v18, %v3919_v17 }
0x1439   : > { %v3937_v62 = vmul.f32 %v4265_v1, %v3935_v21 }
0x143a   : > { %v5340_v24 = vpop.eup %5339 }
0x143b   : > { %v3939_v27 = vadd.f32 %v4266_v23, %v3937_v62  ;;  %v3936_v58 = vmul.f32 %v5340_v24, %v3920_v38  ;;  %3946 = sbr.rel (%p4315_p5) target bundleno = 5515 (0x158b), region = 100 }
0x143d   : > { %4313 = vst.msk [vmem:[%s6273_s21 + $0x10] sm:$0xff] %vm847_vm2, %v3939_v27  ;;  %v3938_v39 = vmul.f32 %v4265_v1, %v3936_v58  ;;  %v4316_v1 = vld [vmem:[%s6290_s16] ss:$0 sm:$0xff] (!%p4315_p5) }
0x143f   : > { %v3940_v32 = vadd.f32 %v4266_v23, %v3938_v39  ;;  %v4317_v23 = vld [vmem:[%s6291_s29] ss:$0 sm:$0xff] (!%p4315_p5) }
0x1441   : > { %4314 = vst.msk [vmem:[%s6273_s21 + $0x18] sm:$0xf] %vm2163_vm10, %v3940_v32 }
0x1448   : > { %v3947_v37 = vld [vmem:[%s6289_s2] sm:$0xff]  ;;  %v4318_v59 = vld [vmem:[%s6289_s2 + $0x10] sm:$0xff]  ;;  %v3948_v40 = vld [vmem:[%s6289_s2 + $0x8] sm:$0xf] }
0x1449   : > { %v3951_v41 = vsel %vm847_vm2, %v3947_v37, 0.0  ;;  %v3999_v28 = vsel %vm847_vm2, %v4318_v59, 0.0  ;;  %v4319_v46 = vld [vmem:[%s6289_s2 + $0x18] sm:$0xf]  ;;  %v3954_v47 = vsel %vm2163_vm10, %v3948_v40, 0.0 }
0x144a   : > { %3952 = vadd.xlane.f32.xlu0 %v3951_v41  ;;  %4000 = vadd.xlane.f32.xlu1 %v3999_v28  ;;  %v4002_v49 = vsel %vm2163_vm10, %v4319_v46, 0.0 }
0x144e   : > { %3955 = vadd.xlane.f32.xlu0 %v3954_v47  ;;  %4003 = vadd.xlane.f32.xlu1 %v4002_v49 }
0x14d7   : > { %v3953_v50 = vpop.xlane.xlu0 %3952  ;;  %v4001_v36 = vpop.xlane.xlu1 %4000 }
0x14d8   : > { %v3957_v30 = vmul.f32 0.015625, %v3953_v50  ;;  %v4005_v54 = vmul.f32 0.015625, %v4001_v36 }
0x14da   : > { %v3959_v44 = vsub.f32 %v3947_v37, %v3957_v30  ;;  %v4007_v22 = vsub.f32 %v4318_v59, %v4005_v54 }
0x14db   : > { %v3956_v63 = vpop.xlane.xlu0 %3955  ;;  %v4004_v33 = vpop.xlane.xlu1 %4003 }
0x14dc   : > { %v3958_v51 = vmul.f32 0.015625, %v3956_v63  ;;  %v4006_v35 = vmul.f32 0.015625, %v4004_v33  ;;  %v3961_v52 = vmul.f32 %v3959_v44, %v3959_v44  ;;  %v4009_v19 = vmul.f32 %v4007_v22, %v4007_v22 }
0x14de   : > { %v3960_v60 = vsub.f32 %v3948_v40, %v3958_v51  ;;  %v4008_v57 = vsub.f32 %v4319_v46, %v4006_v35  ;;  %v3963_v61 = vsel %vm847_vm2, %v3961_v52, 0.0  ;;  %v4011_v55 = vsel %vm847_vm2, %v4009_v19, 0.0 }
0x14df   : > { %3964 = vadd.xlane.f32.xlu0 %v3963_v61 }
0x14e0   : > { %v3962_v2 = vmul.f32 %v3960_v60, %v3960_v60  ;;  %v4010_v31 = vmul.f32 %v4008_v57, %v4008_v57 }
0x14e2   : > { %v3966_v17 = vsel %vm2163_vm10, %v3962_v2, 0.0  ;;  %v4014_v20 = vsel %vm2163_vm10, %v4010_v31, 0.0 }
0x14e3   : > { %4012 = vadd.xlane.f32.xlu0 %v4011_v55  ;;  %3967 = vadd.xlane.f32.xlu1 %v3966_v17 }
0x14e7   : > { %4015 = vadd.xlane.f32.xlu1 %v4014_v20 }
0x156c   : > { %v3965_v25 = vpop.xlane.xlu0 %3964 }
0x156d   : > { %v3969_v42 = vmul.f32 0.015625, %v3965_v25 }
0x156f   : > { %v3971_v38 = vadd.f32 1e-05, %v3969_v42 }
0x1570   : > { %v3968_v45 = vpop.xlane.xlu1 %3967  ;;  %v4013_v48 = vpop.xlane.xlu0 %4012 }
0x1571   : > { %5341 = vrsqrt.f32 %v3971_v38  ;;  %v3970_v0 = vmul.f32 0.015625, %v3968_v45  ;;  %v4017_v5 = vmul.f32 0.015625, %v4013_v48 }
0x1573   : > { %v3972_v16 = vadd.f32 1e-05, %v3970_v0  ;;  %v4019_v9 = vadd.f32 1e-05, %v4017_v5 }
0x1574   : > { %v4016_v13 = vpop.xlane.xlu1 %4015 }
0x1575   : > { %5343 = vrsqrt.f32 %v3972_v16  ;;  %v4018_v10 = vmul.f32 0.015625, %v4016_v13 }
0x1576   : > { %5345 = vrsqrt.f32 %v4019_v9 }
0x1577   : > { %v4020_v43 = vadd.f32 1e-05, %v4018_v10 }
0x1579   : > { %5347 = vrsqrt.f32 %v4020_v43 }
0x157b   : > { %v5342_v7 = vpop.eup %5341 }
0x157c   : > { %v3975_v29 = vmul.f32 %v5342_v7, %v3959_v44 }
0x157e   : > { %v3983_v56 = vmul.f32 %v4316_v1, %v3975_v29 }
0x157f   : > { %v5344_v26 = vpop.eup %5343 }
0x1580   : > { %v5346_v14 = vpop.eup %5345  ;;  %v3991_v34 = vadd.f32 %v4317_v23, %v3983_v56  ;;  %v3976_v3 = vmul.f32 %v5344_v26, %v3960_v60 }
0x1581   : > { %v4023_v4 = vmul.f32 %v5346_v14, %v4007_v22 }
0x1582   : > { %3993 = vst.msk [vmem:[%s6289_s2] sm:$0xff] %vm847_vm2, %v3991_v34  ;;  %v3984_v12 = vmul.f32 %v4316_v1, %v3976_v3 }
0x1583   : > { %v5348_v6 = vpop.eup %5347  ;;  %v4031_v8 = vmul.f32 %v4316_v1, %v4023_v4 }
0x1584   : > { %v3992_v11 = vadd.f32 %v4317_v23, %v3984_v12  ;;  %v4024_v15 = vmul.f32 %v5348_v6, %v4008_v57 }
0x1585   : > { %v4039_v53 = vadd.f32 %v4317_v23, %v4031_v8 }
0x1586   : > { %3994 = vst.msk [vmem:[%s6289_s2 + $0x8] sm:$0xf] %vm2163_vm10, %v3992_v11  ;;  %v4032_v18 = vmul.f32 %v4316_v1, %v4024_v15 }
0x1587   : > { %4322 = vst.msk [vmem:[%s6289_s2 + $0x10] sm:$0xff] %vm847_vm2, %v4039_v53 }
0x1588   : > { %v4040_v21 = vadd.f32 %v4317_v23, %v4032_v18 }
0x158a   : > { %4323 = vst.msk [vmem:[%s6289_s2 + $0x18] sm:$0xf] %vm2163_vm10, %v4040_v21 }
0x158b PF: > { %s6292_s22 = sld [smem:[#allocation2_spill]] }
0x1591   : > { %s28_s27 = sadd.s32 1, %s6292_s22  }
0x1592   : > { %p25_p6 = scmp.ge.s32.totalorder %s28_s27, 4  }
0x1594   :  { %27 = sbr.rel (!%p25_p6) target bundleno = 10 (0xa), region = 167 }

// kernel: transformer_forward.3
= control target key start
LH: loop header
LB: loop body
LE: loop exit
PB: predicated region body
PF: predicated region fallthrough
CT: control target
= control target key end

     0   :  { %s11249_s0 = inlined_call_operand.vmem [shape: f32[2,10,64], index: 0, kind: input, shape index: {}]   ;;  %s11250_s1 = inlined_call_operand.vmem [shape: f32[2,12,64], index: 1, kind: input, shape index: {}]   ;;  %s11251_s2 = inlined_call_operand.vmem [shape: f32[2,64,64], index: 2, kind: input, shape index: {}]   ;;  %s11252_s3 = inlined_call_operand.vmem [shape: f32[2,1,64], index: 3, kind: input, shape index: {}]   ;;  %s11253_s4 = inlined_call_operand.vmem [shape: f32[2,64,128], index: 4, kind: input, shape index: {}]   ;;  %s11254_s5 = inlined_call_operand.vmem [shape: f32[2,1,128], index: 5, kind: input, shape index: {}]   ;;  %s11255_s6 = inlined_call_operand.vmem [shape: f32[2,64,64], index: 6, kind: input, shape index: {}]   ;;  %s11256_s7 = inlined_call_operand.vmem [shape: f32[2,1,64], index: 7, kind: input, shape index: {}]   ;;  %s11257_s8 = inlined_call_operand.vmem [shape: f32[2,1,64], index: 8, kind: input, shape index: {}]   ;;  %s11258_s9 = inlined_call_operand.vmem [shape: f32[2,1,64], index: 9, kind: input, shape index: {}]   ;;  %s11259_s10 = inlined_call_operand.vmem [shape: f32[2,64,64], index: 10, kind: input, shape index: {}]   ;;  %s11260_s11 = inlined_call_operand.vmem [shape: f32[2,1,64], index: 11, kind: input, shape index: {}]   ;;  %s11261_s12 = inlined_call_operand.vmem [shape: f32[2,64,128], index: 12, kind: input, shape index: {}]   ;;  %s11262_s13 = inlined_call_operand.vmem [shape: f32[2,1,128], index: 13, kind: input, shape index: {}]   ;;  %s11263_s14 = inlined_call_operand.vmem [shape: f32[2,64,64], index: 14, kind: input, shape index: {}]   ;;  %s11264_s15 = inlined_call_operand.vmem [shape: f32[2,1,64], index: 15, kind: input, shape index: {}]   ;;  %s11265_s16 = inlined_call_operand.vmem [shape: f32[2,1,64], index: 16, kind: input, shape index: {}]   ;;  %s11266_s17 = inlined_call_operand.vmem [shape: f32[2,1,64], index: 17, kind: input, shape index: {}]   ;;  %s11267_s18 = inlined_call_operand.vmem [shape: f32[2,64,128], index: 18, kind: input, shape index: {}]   ;;  %s11268_s19 = inlined_call_operand.vmem [shape: f32[2,1,128], index: 19, kind: input, shape index: {}]   ;;  %s11269_s20 = inlined_call_operand.vmem [shape: f32[2,128,64], index: 20, kind: input, shape index: {}]   ;;  %s11270_s21 = inlined_call_operand.vmem [shape: f32[2,1,64], index: 21, kind: input, shape index: {}]   ;;  %s11271_s22 = inlined_call_operand.vmem [shape: f32[2,1,64], index: 22, kind: input, shape index: {}]   ;;  %s11272_s23 = inlined_call_operand.vmem [shape: f32[2,1,64], index: 23, kind: input, shape index: {}]   ;;  %s11273_s24 = inlined_call_operand.hbm [shape: f32[1,64], index: 24, kind: input, shape index: {}]   ;;  %s11274_s25 = inlined_call_operand.hbm [shape: f32[1,64], index: 25, kind: input, shape index: {}]   ;;  %s11275_s26 = inlined_call_operand.vmem [shape: f32[64,128], index: 26, kind: input, shape index: {}]   ;;  %s11276_s27 = inlined_call_operand.hbm [shape: f32[1,128], index: 27, kind: input, shape index: {}]   ;;  %s11277_s28 = inlined_call_operand.vmem [shape: f32[2,10,128], index: 28, kind: output, shape index: {}]  }
   0x1   :  { %11298 = sst [smem:[#allocation20_spill]] %s11249_s0 }
   0x2   :  { %11299 = sst [smem:[#allocation21_spill]] %s11250_s1 }
   0x3   :  { %11300 = sst [smem:[#allocation22_spill]] %s11251_s2 }
   0x4   :  { %11301 = sst [smem:[#allocation23_spill]] %s11252_s3 }
   0x5   :  { %11302 = sst [smem:[#allocation24_spill]] %s11253_s4 }
   0x6   :  { %11303 = sst [smem:[#allocation25_spill]] %s11254_s5 }
   0x7   :  { %11304 = sst [smem:[#allocation26_spill]] %s11255_s6 }
   0x8   :  { %11305 = sst [smem:[#allocation27_spill]] %s11256_s7 }
   0x9   :  { %11306 = sst [smem:[#allocation28_spill]] %s11257_s8 }
   0xa   :  { %11307 = sst [smem:[#allocation29_spill]] %s11258_s9 }
   0xb   :  { %11308 = sst [smem:[#allocation30_spill]] %s11259_s10 }
   0xc   :  { %11309 = sst [smem:[#allocation31_spill]] %s11260_s11 }
   0xd   :  { %11310 = sst [smem:[#allocation32_spill]] %s11261_s12 }
   0xe   :  { %11311 = sst [smem:[#allocation33_spill]] %s11262_s13 }
   0xf   :  { %11312 = sst [smem:[#allocation34_spill]] %s11263_s14 }
  0x10   :  { %11313 = sst [smem:[#allocation35_spill]] %s11264_s15 }
  0x11   :  { %11314 = sst [smem:[#allocation36_spill]] %s11265_s16 }
  0x12   :  { %11315 = sst [smem:[#allocation37_spill]] %s11266_s17 }
  0x13   :  { %11316 = sst [smem:[#allocation38_spill]] %s11267_s18 }
  0x14   :  { %11317 = sst [smem:[#allocation39_spill]] %s11273_s24 }
  0x15   :  { %11318 = sst [smem:[#allocation40_spill]] %s11274_s25 }
  0x16   :  { %11319 = sst [smem:[#allocation41_spill]] %s11275_s26 }
  0x17   :  { %11320 = sst [smem:[#allocation42_spill]] %s11276_s27 }
  0x18   :  { %11321 = sst [smem:[#allocation43_spill]] %s11277_s28 }
  0x19   :  { %33 = vsyncpa [#allocation4], 0 }
  0x1a   :  { %34 = vsyncpa [#allocation6], 0  ;;  %s10004_s8 = smov 0  }
  0x1b LB: > { %11322 = sst [smem:[#allocation10_spill]] %s9845_s8  ;;  %s10010_s5 = sadd.s32 4294967295, %s9845_s8   ;;  %s9845_s8 = sphi %s10004_s8, %s40_s8  }
  0x1c   : > { %p7642_p0 = scmp.ge.s32.totalorder %s9845_s8, 1  ;;  %p764_p1 = scmp.lt.s32.totalorder %s9845_s8, 3 }
  0x1d   : > { %p11280_p3 = scmp.eq.s32.totalorder %s10010_s5, 0  ;;  %s9847_s30 = smov [#allocation5]  }
  0x1e   : > { %p10016_p4 = pnand %p7642_p0, %p764_p1  ;;  %s794_s3 = sshll.u32 %s9847_s30, 4  ;;  %s795_s3 = int_to_ptr.vmem [resolvable:$true] %s794_s3 }
  0x1f   : > { %s9848_s6 = smov [#allocation3]   ;;  %s9849_s0 = smov [#allocation7]  }
  0x20   : > { %s11323_s9 = scalar_select %p10016_p4, 1, 0 }
  0x21   : > { %p9400_p5 = pneg %p10016_p4  ;;  %s783_s10 = sshll.u32 %s9848_s6, 4  ;;  %s10028_s10 = int_to_ptr.vmem [resolvable:$true] %s783_s10 }
  0x22   : > { %s808_s11 = sshll.u32 %s9849_s0, 4  ;;  %s11325_s25 = sld [smem:[#allocation40_spill]]  ;;  %s10030_s11 = int_to_ptr.vmem [resolvable:$true] %s808_s11 }
  0x23   : > { %p10024_p6 = pnand %p11280_p3, %p9400_p5 }
  0x25   : > { %p10040_p8 = pneg %p10024_p6 }
  0x28   : > { %s9747_s12 = scalar_lea.hbm %s11325_s25, 16 }
  0x29   : > { %p9748_p7 = scmp.ne.s32.totalorder %s11325_s25, %s9747_s12  ;;  %p9754_p11 = scmp.lt.u32.totalorder %s9747_s12, %s11325_s25 }
  0x2b   : > { %p9750_p9 = pnand %p10040_p8, %p9748_p7 }
  0x2d   : > { %p9751_p10 = pneg %p9750_p9 }
  0x2f   : > { %p9756_p12 = pnand %p9754_p11, %p9751_p10 }
  0x31   : > { %9759 = shalt.err (!%p9756_p12)
}
  0x32   : > { %s9760_s2 = scalar_lea.vmem %s795_s3, 16  ;;  %s9767_s7 = scalar_lea.vmem %s795_s3, 32 }
  0x33   : > { %p9761_p13 = scmp.ne.s32.totalorder %s795_s3, %s9760_s2  ;;  %p9768_p5 = scmp.lt.s32.totalorder %s795_s3, %s795_s3 }
  0x34   : > { %p9769_p2 = scmp.lt.s32.totalorder %s9767_s7, %s9760_s2 }
  0x35   : > { %p9763_p0 = pnand %p9761_p13, %p10040_p8 }
  0x36   : > { %p9770_p3 = por %p9769_p2, %p9768_p5 }
  0x37   : > { %p9764_p1 = pneg %p9763_p0 }
  0x39   : > { %p9771_p4 = pnand %p9770_p3, %p9764_p1 }
  0x3b   : > { %9774 = shalt.err (!%p9771_p4)
}
  0x3c   : > { %9406 = dma.hbm_to_vmem [thread:$0]  (!%p10024_p6), %s11325_s25, 16, %s795_s3, [#allocation6]  }
  0x3d   : > { %s11327_s24 = sld [smem:[#allocation39_spill]] }
  0x43   : > { %s9775_s0 = scalar_lea.hbm %s11327_s24, 16 }
  0x44   : > { %p9776_p7 = scmp.ne.s32.totalorder %s11327_s24, %s9775_s0  ;;  %p9782_p3 = scmp.lt.u32.totalorder %s9775_s0, %s11327_s24 }
  0x46   : > { %p9778_p9 = pnand %p9776_p7, %p10040_p8 }
  0x48   : > { %p9779_p2 = pneg %p9778_p9 }
  0x4a   : > { %p9784_p4 = pnand %p9782_p3, %p9779_p2 }
  0x4c   : > { %9787 = shalt.err (!%p9784_p4)
}
  0x4d   : > { %s9788_s3 = scalar_lea.vmem %s10028_s10, 16  ;;  %s9795_s28 = scalar_lea.vmem %s10028_s10, 32 }
  0x4e   : > { %p9789_p10 = scmp.ne.s32.totalorder %s10028_s10, %s9788_s3  ;;  %p9796_p13 = scmp.lt.s32.totalorder %s10028_s10, %s10028_s10 }
  0x4f   : > { %p9797_p0 = scmp.lt.s32.totalorder %s9795_s28, %s9788_s3 }
  0x50   : > { %p9791_p11 = pnand %p9789_p10, %p10040_p8 }
  0x51   : > { %p9798_p1 = por %p9797_p0, %p9796_p13 }
  0x52   : > { %p9792_p12 = pneg %p9791_p11 }
  0x54   : > { %p9799_p5 = pnand %p9798_p1, %p9792_p12 }
  0x56   : > { %9802 = shalt.err (!%p9799_p5)
}
  0x57   : > { %9403 = dma.hbm_to_vmem [thread:$0]  (!%p10024_p6), %s11327_s24, 16, %s10028_s10, [#allocation4]  }
  0x58   : > { %s11328_s27 = sld [smem:[#allocation42_spill]] }
  0x5e   : > { %s9803_s6 = scalar_lea.hbm %s11328_s27, 16 }
  0x5f   : > { %p9804_p7 = scmp.ne.s32.totalorder %s11328_s27, %s9803_s6  ;;  %p9810_p3 = scmp.lt.u32.totalorder %s9803_s6, %s11328_s27 }
  0x61   : > { %p9806_p9 = pnand %p9804_p7, %p10040_p8 }
  0x63   : > { %p9807_p2 = pneg %p9806_p9 }
  0x65   : > { %p9812_p4 = pnand %p9810_p3, %p9807_p2 }
  0x67   : > { %9815 = shalt.err (!%p9812_p4)
}
  0x68   : > { %s9816_s10 = scalar_lea.vmem %s10030_s11, 16  ;;  %s9823_s28 = scalar_lea.vmem %s10030_s11, 32 }
  0x69   : > { %p9817_p10 = scmp.ne.s32.totalorder %s10030_s11, %s9816_s10  ;;  %p9824_p13 = scmp.lt.s32.totalorder %s10030_s11, %s10030_s11 }
  0x6a   : > { %p9825_p0 = scmp.lt.s32.totalorder %s9823_s28, %s9816_s10 }
  0x6b   : > { %p9819_p11 = pnand %p9817_p10, %p10040_p8 }
  0x6c   : > { %p9826_p1 = por %p9825_p0, %p9824_p13 }
  0x6d   : > { %p9820_p12 = pneg %p9819_p11 }
  0x6f   : > { %p9827_p5 = pnand %p9826_p1, %p9820_p12 }
  0x71   : > { %9830 = shalt.err (!%p9827_p5)
}
  0x72   : > { %9409 = dma.hbm_to_vmem [thread:$0]  (!%p10024_p6), %s11328_s27, 16, %s10030_s11, [#allocation6]  }
  0x73   : > { %p11329_p7 = scmp.ne.s32.totalorder %s11323_s9, 0 }
  0x75   : > { %969 = sbr.rel (%p11329_p7) target bundleno = 10161 (0x27b1), region = 132 }
  0x7c   : > { %p11330_p8 = scmp.eq.s32.totalorder %s10010_s5, 0 }
  0x7e   : > { %9836 = dma.done.wait (%p11330_p8), [#allocation4], 16   ;;  %p11331_p9 = pmov %p11330_p8 }
  0x7f   : > { %p11332_p2 = pmov %p11330_p8 }
  0x80   : > { %9838 = vsyncadd (%p11331_p9), [#allocation4], 4294967280 }
  0x81   : > { %9840 = dma.done.wait (%p11332_p2), [#allocation6], 32   ;;  %p11333_p3 = pmov %p11332_p2 }
  0x82   : > { %p1123_p4 = scmp.lt.s32.totalorder %s10010_s5, 1  ;;  %s11334_s4 = sld [smem:[#allocation23_spill]] }
  0x83   : > { %9842 = vsyncadd (%p11333_p3), [#allocation6], 4294967264  ;;  %s11336_s2 = sld [smem:[#allocation22_spill]]  ;;  %s11338_s28 = sld [smem:[#allocation24_spill]] }
  0x84   : > { %s10116_s29 = scalar_select %p1123_p4, %s10010_s5, 1 }
  0x85   : > { %s11340_s25 = sld [smem:[#allocation25_spill]]  ;;  %s11348_s1 = sld [smem:[#allocation29_spill]] }
  0x86   : > { %s7862_s9 = sshll.u32 %s10116_s29, 6  ;;  %s11353_s13 = sld [smem:[#allocation33_spill]] }
  0x87   : > { %s11354_s14 = sld [smem:[#allocation34_spill]]  ;;  %s11355_s15 = sld [smem:[#allocation35_spill]] }
  0x88   : > { %s10123_s12 = scalar_lea.vmem %s11334_s4, %s10116_s29  ;;  %s11342_s4 = sld [smem:[#allocation26_spill]] }
  0x89   : > { %11335 = sst [smem:[#allocation11_spill]] %s10123_s12  ;;  %s10128_s7 = scalar_lea.vmem %s11336_s2, %s7862_s9 }
  0x8a   : > { %11337 = sst [smem:[#allocation12_spill]] %s10128_s7  ;;  %s10133_s8 = scalar_lea.vmem %s11338_s28, %s7862_s9 }
  0x8b   : > { %11339 = sst [smem:[#allocation13_spill]] %s10133_s8  ;;  %s10139_s27 = scalar_lea.vmem %s11340_s25, %s10116_s29 }
  0x8c   : > { %11341 = sst [smem:[#allocation14_spill]] %s10139_s27  ;;  %s11344_s2 = sld [smem:[#allocation27_spill]] }
  0x8d   : > { %s11346_s28 = sld [smem:[#allocation28_spill]]  ;;  %s10162_s27 = scalar_lea.vmem %s11348_s1, %s10116_s29 }
  0x8e   : > { %s10144_s26 = scalar_lea.vmem %s11342_s4, %s7862_s9  ;;  %11349 = sst [smem:[#allocation18_spill]] %s10162_s27 }
  0x8f   : > { %11343 = sst [smem:[#allocation15_spill]] %s10144_s26  ;;  %s11350_s4 = sld [smem:[#allocation30_spill]] }
  0x90   : > { %s10184_s25 = scalar_lea.vmem %s11353_s13, %s10116_s29  ;;  %s10189_s11 = scalar_lea.vmem %s11354_s14, %s7862_s9 }
  0x91   : > { %s10195_s6 = scalar_lea.vmem %s11355_s15, %s10116_s29  ;;  %s11356_s16 = sld [smem:[#allocation36_spill]] }
  0x92   : > { %s10150_s12 = scalar_lea.vmem %s11344_s2, %s10116_s29  ;;  %s11351_s2 = sld [smem:[#allocation31_spill]] }
  0x93   : > { %11345 = sst [smem:[#allocation16_spill]] %s10150_s12  ;;  %s10156_s8 = scalar_lea.vmem %s11346_s28, %s10116_s29 }
  0x94   : > { %11347 = sst [smem:[#allocation17_spill]] %s10156_s8  ;;  %s11352_s28 = sld [smem:[#allocation32_spill]] }
  0x95   : > { %s10167_s26 = scalar_lea.vmem %s11350_s4, %s7862_s9  ;;  %s11357_s17 = sld [smem:[#allocation37_spill]] }
  0x96   : > { %s11359_s18 = sld [smem:[#allocation38_spill]]  ;;  %s10218_s30 = scalar_lea.vmem %s11268_s19, %s10116_s29 }
  0x97   : > { %s10201_s3 = scalar_lea.vmem %s11356_s16, %s10116_s29  ;;  %s7869_s4 = sshll.u32 %s10116_s29, 7 }
  0x98   : > { %s10173_s12 = scalar_lea.vmem %s11351_s2, %s10116_s29  ;;  %s10224_s2 = scalar_lea.vmem %s11269_s20, %s7869_s4 }
  0x99   : > { %p11360_p6 = scmp.ne.s32.totalorder %s10010_s5, 0 }
  0x9a   : > { %s10178_s8 = scalar_lea.vmem %s11352_s28, %s7862_s9  ;;  %s11361_s15 = sld [smem:[#allocation20_spill]] (!%p11360_p6)  ;;  %vm1213_vm0 = vcmask (!%p11360_p6), 523264   ;;  %vm1215_vm1 = vcmask (!%p11360_p6), 517120  }
  0x9b   : > { %s10207_s7 = scalar_lea.vmem %s11357_s17, %s10116_s29  ;;  %1208 = sbr.rel (%p11360_p6) target bundleno = 163 (0xa3), region = 148 }
  0x9c   : > { %11358 = sst [smem:[#allocation19_spill]] %s10207_s7  ;;  %s10212_s27 = scalar_lea.vmem %s11359_s18, %s7862_s9 }
  0xa0   : > { %v1209_v0 = vld [vmem:[%s11361_s15] sm:$0xff] (!%p11360_p6)  ;;  %v1210_v1 = vld [vmem:[%s11361_s15 + $0x8] sm:$0x3] (!%p11360_p6)  ;;  %v1211_v2 = vld [vmem:[%s11361_s15 + $0x10] sm:$0xff] (!%p11360_p6) }
  0xa1   : > { %1214 = vst.msk [vmem:[#allocation2] sm:$0xff] (!%p11360_p6), %vm1213_vm0, %v1209_v0  ;;  %1217 = vst.msk [vmem:[#allocation2 + $0x10] sm:$0xff] (!%p11360_p6), %vm1213_vm0, %v1211_v2  ;;  %v1212_v3 = vld [vmem:[%s11361_s15 + $0x18] sm:$0x3] (!%p11360_p6) }
  0xa2   : > { %1216 = vst.msk [vmem:[#allocation2 + $0x8] sm:$0x3] %vm1215_vm1, %v1210_v1  ;;  %1218 = vst.msk [vmem:[#allocation2 + $0x18] sm:$0x3] %vm1215_vm1, %v1212_v3 }
  0xa3 PF: > { %s11362_s18 = sld [smem:[#allocation12_spill]]  ;;  %vm1324_vm2 = vcmask 523264   ;;  %s11363_s9 = sld [smem:[#allocation13_spill]]  ;;  %vm1489_vm3 = vcmask 130048   ;;  %v1219_v57 = vlaneseq  ;;  %v9852_v61 = vmov 0.0  }
  0xa4   : > { %s11364_s24 = sld [smem:[#allocation11_spill]]  ;;  %s11365_s1 = sld [smem:[#allocation14_spill]]  ;;  %vm10326_vm4 = vmpackc.low %vm1489_vm3, %vm1489_vm3  ;;  %vm1581_vm7 = vcmask 74752   ;;  %vm1577_vm8 = vcmask 80896   ;;  %vm1612_vm9 = vcmask 1041408   ;;  %vm9856_vm10 = vmmov 1  }
  0xa5   : > { %s9850_s4 = smov 112   ;;  %s9851_s0 = smov 96   ;;  %v1220_v58 = vshrl.u32 %v1219_v57, 7  ;;  %v1223_v60 = vand.u32 127, %v1219_v57  ;;  %vm10393_vm11 = vmpackc.low %vm1612_vm9, %vm9856_vm10  ;;  %vm2634_vm12 = vcmask 517120   ;;  %vm2942_vm13 = vcmask 91136  }
  0xa6   : > { %s9853_s16 = smov 64   ;;  %s9854_s17 = smov 80   ;;  %vm2938_vm14 = vcmask 97280   ;;  %vm2973_vm15 = vcmask 1043456  }
  0xa7   : > { %v1221_v59 = vadd.s32 8, %v1220_v58  ;;  %vm1224_vm6 = vcmp.gt.s32.totalorder %v1223_v60, %v1220_v58  ;;  %s9855_s7 = smov 48   ;;  %s11370_s10 = sld [smem:[#allocation15_spill]]  ;;  %vm10616_vm0 = vmpackc.low %vm2973_vm15, %vm9856_vm10 }
  0xa8   : > { %v10360_v63 = vsel %vm1224_vm6, -1e+09, %v9852_v61  ;;  %s11371_s14 = sld [smem:[#allocation16_spill]]  ;;  %s11374_s13 = sld [smem:[#allocation17_spill]] }
  0xa9   : > { %v1228_v4 = vld [vmem:[%s11362_s18] sm:$0xff]  ;;  %v1229_v5 = vld [vmem:[%s11362_s18 + $0x8] sm:$0xff]  ;;  %v1230_v6 = vld [vmem:[%s11362_s18 + $0x10] sm:$0xff]  ;;  %vm1225_vm5 = vcmp.gt.s32.totalorder %v1223_v60, %v1221_v59  ;;  %p7848_p10 = scmp.ne.s32.totalorder %s10010_s5, 1 }
  0xaa   : > { %v10255_v7 = vpack.c.bf16 %v1229_v5, %v1228_v4  ;;  %v1231_v8 = vld [vmem:[%s11362_s18 + $0x18] sm:$0xff]  ;;  %v1232_v10 = vld [vmem:[%s11362_s18 + $0x20] sm:$0xff]  ;;  %v1233_v11 = vld [vmem:[%s11362_s18 + $0x28] sm:$0xff]  ;;  %v10358_v62 = vsel %vm1225_vm5, -1e+09, %v9852_v61 }
  0xab   : > { %v10258_v9 = vpack.c.bf16 %v1231_v8, %v1230_v6  ;;  %v10262_v12 = vld [vmem:[#allocation2] sm:$0xff]  ;;  %v10269_v13 = vpack.c.bf16 %v1233_v11, %v1232_v10  ;;  %v1234_v14 = vld [vmem:[%s11362_s18 + $0x30] sm:$0xff]  ;;  %v1235_v15 = vld [vmem:[%s11362_s18 + $0x38] sm:$0xff]  ;;  %s11296_s18 = smov 32  }
  0xac   : > { %8853 = vmatprep.subr.bf16.mxu1 %v10255_v7  ;;  %8234 = vmatprep.mubr.msk.f32.mxu1 %vm1324_vm2, %v10262_v12  ;;  %v10275_v16 = vpack.c.bf16 %v1235_v15, %v1234_v14  ;;  %v1237_v17 = vld [vmem:[%s11363_s9] sm:$0xff]  ;;  %v1238_v18 = vld [vmem:[%s11363_s9 + $0x8] sm:$0xff]  ;;  %v1239_v20 = vld [vmem:[%s11363_s9 + $0x10] sm:$0xff] }
  0xad   : > { %8855 = vmatpush3.bf16.msra.mxu1 %v10255_v7  ;;  %v10281_v19 = vpack.c.bf16 %v1238_v18, %v1237_v17  ;;  %v1240_v21 = vld [vmem:[%s11363_s9 + $0x18] sm:$0xff]  ;;  %v10286_v22 = vld [vmem:[#allocation2 + $0x8] sm:$0x3]  ;;  %v1241_v24 = vld [vmem:[%s11363_s9 + $0x20] sm:$0xff] }
  0xae   : > { %8857 = vmatprep.subr.bf16.mxu1 %v10258_v9  ;;  %v10289_v23 = vpack.c.bf16 %v1240_v21, %v1239_v20  ;;  %v1242_v25 = vld [vmem:[%s11363_s9 + $0x28] sm:$0xff]  ;;  %v1243_v27 = vld [vmem:[%s11363_s9 + $0x30] sm:$0xff]  ;;  %v1244_v28 = vld [vmem:[%s11363_s9 + $0x38] sm:$0xff]  ;;  %s11294_s9 = smov 16  }
  0xaf   : > { %v10299_v26 = vpack.c.bf16 %v1242_v25, %v1241_v24  ;;  %v10305_v29 = vpack.c.bf16 %v1244_v28, %v1243_v27  ;;  %v7668_v30 = vld [vmem:[%s11364_s24] ss:$0 sm:$0xff] }
  0xb0   : > { %v7671_v37 = vld [vmem:[%s11365_s1] ss:$0 sm:$0xff] }
  0xb1   : > { %8859 = vmatpush3.bf16.msra.mxu1 %v10258_v9 }
  0xb2   : > { %8861 = vmatprep.subr.bf16.mxu1 %v10269_v13 }
  0xb5   : > { %8863 = vmatpush3.bf16.msra.mxu1 %v10269_v13 }
  0xb6   : > { %8865 = vmatprep.subr.bf16.mxu1 %v10275_v16 }
  0xb9   : > { %8867 = vmatpush3.bf16.msra.mxu1 %v10275_v16 }
  0xba   : > { %8869 = vmatprep.subr.bf16.mxu1 %v10281_v19 }
  0xbc   : > { %8235 = vmatmul.mubr.msk.f32.vlgmr.msra.gmra.mrb[0].mxu1 %vm1324_vm2, %v10286_v22 }
  0xbd   : > { %8871 = vmatpush3.bf16.msra.mxu1 %v10281_v19  ;;  %8253 = vmatprep.mubr.msk.f32.mxu1 %vm1324_vm2, %v10262_v12 }
  0xbe   : > { %8873 = vmatprep.subr.bf16.mxu1 %v10289_v23 }
  0xc1   : > { %8875 = vmatpush3.bf16.msra.mxu1 %v10289_v23 }
  0xc2   : > { %8877 = vmatprep.subr.bf16.mxu1 %v10299_v26 }
  0xc5   : > { %8879 = vmatpush3.bf16.msra.mxu1 %v10299_v26 }
  0xc6   : > { %8881 = vmatprep.subr.bf16.mxu1 %v10305_v29 }
  0xc9   : > { %8883 = vmatpush3.bf16.msra.mxu1 %v10305_v29 }
  0xcc   : > { %8254 = vmatmul.mubr.msk.f32.vlgmr.msra.gmra.mrb[2].mxu1 %vm1324_vm2, %v10286_v22 }
 0x18f   : > { %v8236_v31 = vpop.f32.mrb[0].mxu1 }
 0x190   : > { %v1403_v32 = vadd.f32 %v8236_v31, %v7668_v30  ;;  %v1397_v33 = vpop.f32.mrb[1].mxu1 }
 0x191   : > { %v1398_v34 = vadd.f32 %v7668_v30, %v1397_v33 }
 0x192   : > { %v10313_v35 = vmul.f32 0.25, %v1403_v32 }
 0x193   : > { %v10315_v36 = vmul.f32 0.25, %v1398_v34 }
 0x194   : > { %1692 = vrot.lane.b32.xlu1 %v10313_v35, %s9850_s4 }
 0x195   : > { %8260 = vmatprep.mubr.msk.f32.mxu0 %vm1489_vm3, %v10315_v36 }
 0x19f   : > { %v8255_v38 = vpop.f32.mrb[2].mxu1 }
 0x1a0   : > { %v1486_v39 = vadd.f32 %v8255_v38, %v7671_v37  ;;  %v1480_v40 = vpop.f32.mrb[3].mxu1 }
 0x1a1   : > { %v1481_v41 = vadd.f32 %v7671_v37, %v1480_v40 }
 0x1a3   : > { %v10322_v42 = vpack.i.bf16 %v1486_v39, %v1481_v41  ;;  %v8884_v43 = vpack.c.bf16 %v1486_v39, %v1481_v41 }
 0x1a5   : > { %9442 = vrot.lane.b32.xlu1 %v10322_v42, %s9851_s0  ;;  %9437 = vrot.lane.b32.xlu0 %v10322_v42, %s9850_s4 }
 0x1a6   : > { %8886 = vmatprep.subr.msk.bf16.mxu0 %vm10326_vm4, %v8884_v43 }
 0x1a7   : > { %8889 = vmatpush3.bf16.xpose.msk.msra.mxu0 %vm10326_vm4, %v8884_v43 }
 0x1a9   : > { %2055 = vrot.lane.b32.xlu1 %v10313_v35, %s9851_s0  ;;  %1690 = vrot.lane.b32.xlu0 %v10315_v36, %s9850_s4 }
 0x1ad   : > { %2053 = vrot.lane.b32.xlu0 %v10315_v36, %s9851_s0 }
 0x1ae   : > { %8261 = vmatmul.mubr.msk.f32.vlgmr.msra.gmra.mrb[0].mxu0 %vm1489_vm3, %v10313_v35 }
 0x206   : > { %v1693_v45 = vpop.permute.xlu1 %1692 }
 0x217   : > { %v9443_v46 = vpop.permute.xlu1 %9442  ;;  %v9438_v47 = vpop.permute.xlu0 %9437 }
 0x218   : > { %v9445_v48 = vunpack.i.h.bf16 %v9443_v46  ;;  %v9444_v49 = vunpack.i.l.bf16 %v9443_v46  ;;  %v9440_v50 = vunpack.i.h.bf16 %v9438_v47  ;;  %v9439_v51 = vunpack.i.l.bf16 %v9438_v47 }
 0x21a   : > { %v8896_v52 = vpack.c.bf16 %v9440_v50, %v9439_v51  ;;  %v8916_v54 = vpack.c.bf16 %v9445_v48, %v9444_v49 }
 0x21b   : > { %v1691_v53 = vpop.permute.xlu0 %1690  ;;  %v2056_v56 = vpop.permute.xlu1 %2055 }
 0x21c   : > { %8898 = vmatprep.subr.msk.bf16.mxu1 %vm10326_vm4, %v8896_v52  ;;  %8274 = vmatprep.mubr.msk.f32.mxu1 %vm1489_vm3, %v1691_v53 }
 0x21d   : > { %8901 = vmatpush3.bf16.xpose.msk.msra.mxu1 %vm10326_vm4, %v8896_v52 }
 0x21e   : > { %8918 = vmatprep.subr.msk.bf16.mxu1 %vm10326_vm4, %v8916_v54 }
 0x21f   : > { %v2054_v55 = vpop.permute.xlu0 %2053 }
 0x224   : > { %8275 = vmatmul.mubr.msk.f32.vlgmr.msra.gmra.mrb[4].mxu1 %vm1489_vm3, %v1693_v45 }
 0x225   : > { %8921 = vmatpush3.bf16.xpose.msk.msra.mxu1 %vm10326_vm4, %v8916_v54  ;;  %8302 = vmatprep.mubr.msk.f32.mxu1 %vm1489_vm3, %v2054_v55 }
 0x22c   : > { %8303 = vmatmul.mubr.msk.f32.vlgmr.msra.gmra.mrb[6].mxu1 %vm1489_vm3, %v2056_v56 }
 0x281   : > { %v8262_v0 = vpop.f32.mrb[0].mxu0 }
 0x282   : > { %v1574_v1 = vadd.f32 %v8262_v0, %v10358_v62  ;;  %v1568_v2 = vpop.f32.mrb[1].mxu0 }
 0x283   : > { %v1569_v3 = vadd.f32 %v1568_v2, %v10360_v63 }
 0x284   : > { %v1582_v4 = vsel %vm1581_vm7, %v1574_v1, -inf }
 0x285   : > { %1583 = vmax.xlane.f32.xlu1 %v1582_v4  ;;  %v1578_v5 = vsel %vm1577_vm8, %v1569_v3, -inf }
 0x286   : > { %1579 = vmax.xlane.f32.xlu0 %v1578_v5 }
 0x2f7   : > { %v8276_v6 = vpop.f32.mrb[4].mxu1 }
 0x2f8   : > { %v1772_v8 = vpop.f32.mrb[5].mxu1  ;;  %v1778_v11 = vadd.f32 %v8276_v6, %v10358_v62 }
 0x2f9   : > { %v1773_v10 = vadd.f32 %v1772_v8, %v10360_v63 }
 0x2fa   : > { %v1784_v17 = vsel %vm1581_vm7, %v1778_v11, -inf }
 0x2fb   : > { %v1781_v14 = vsel %vm1577_vm8, %v1773_v10, -inf }
 0x2fc   : > { %1782 = vmax.xlane.f32.xlu0 %v1781_v14 }
 0x2ff   : > { %v8304_v15 = vpop.f32.mrb[6].mxu1 }
 0x300   : > { %v2135_v18 = vpop.f32.mrb[7].mxu1  ;;  %1785 = vmax.xlane.f32.xlu0 %v1784_v17  ;;  %v2141_v51 = vadd.f32 %v8304_v15, %v10358_v62 }
 0x301   : > { %v2136_v52 = vadd.f32 %v2135_v18, %v10360_v63 }
 0x302   : > { %v2147_v54 = vsel %vm1581_vm7, %v2141_v51, -inf }
 0x303   : > { %v2144_v53 = vsel %vm1577_vm8, %v2136_v52, -inf }
 0x312   : > { %v1584_v20 = vpop.xlane.xlu1 %1583 }
 0x313   : > { %v1586_v21 = vsub.f32 %v1574_v1, %v1584_v20  ;;  %v1580_v24 = vpop.xlane.xlu0 %1579 }
 0x314   : > { %v1585_v25 = vsub.f32 %v1569_v3, %v1580_v24 }
 0x315   : > { %v1589_v27 = vmul.f32 1.442695, %v1586_v21 }
 0x316   : > { %v1587_v28 = vmul.f32 1.442695, %v1585_v25 }
 0x317   : > { %9576 = vpow2.f32 %v1589_v27 }
 0x318   : > { %9578 = vpow2.f32 %v1587_v28 }
 0x321   : > { %v10370_v30 = vpop.eup %9576 }
 0x322   : > { %v9579_v31 = vpop.eup %9578  ;;  %v1594_v32 = vsel %vm1581_vm7, %v10370_v30, 0.0 }
 0x323   : > { %1595 = vadd.xlane.f32.xlu0 %v1594_v32  ;;  %v1591_v33 = vsel %vm1577_vm8, %v9579_v31, 0.0 }
 0x324   : > { %1592 = vadd.xlane.f32.xlu1 %v1591_v33 }
 0x389   : > { %v1783_v34 = vpop.xlane.xlu0 %1782 }
 0x38a   : > { %v1787_v37 = vsub.f32 %v1773_v10, %v1783_v34 }
 0x38c   : > { %v1789_v38 = vmul.f32 1.442695, %v1787_v37  ;;  %v1248_v37 = vld [vmem:[%s11370_s10 + $0x10] sm:$0xff] }
 0x38d   : > { %v1786_v39 = vpop.xlane.xlu0 %1785 }
 0x38e   : > { %9580 = vpow2.f32 %v1789_v38  ;;  %v1788_v40 = vsub.f32 %v1778_v11, %v1786_v39  ;;  %v1249_v38 = vld [vmem:[%s11370_s10 + $0x18] sm:$0xff] }
 0x38f   : > { %v10419_v39 = vpack.c.bf16 %v1249_v38, %v1248_v37 }
 0x390   : > { %v1791_v41 = vmul.f32 1.442695, %v1788_v40  ;;  %v1246_v40 = vld [vmem:[%s11370_s10] sm:$0xff] }
 0x392   : > { %9582 = vpow2.f32 %v1791_v41  ;;  %v1247_v41 = vld [vmem:[%s11370_s10 + $0x8] sm:$0xff] }
 0x398   : > { %v9581_v43 = vpop.eup %9580 }
 0x399   : > { %v1793_v45 = vsel %vm1577_vm8, %v9581_v43, 0.0 }
 0x39a   : > { %1794 = vadd.xlane.f32.xlu1 %v1793_v45 }
 0x39c   : > { %v9583_v46 = vpop.eup %9582 }
 0x39d   : > { %v1796_v47 = vsel %vm1581_vm7, %v9583_v46, 0.0 }
 0x39e   : > { %1797 = vadd.xlane.f32.xlu0 %v1796_v47 }
 0x3ab   : > { %9447 = vrot.lane.b32.xlu1 %v10322_v42, %s9853_s16 }
 0x3af   : > { %9457 = vrot.lane.b32.xlu1 %v10322_v42, %s9854_s17 }
 0x3b1   : > { %v1593_v48 = vpop.xlane.xlu1 %1592 }
 0x3b2   : > { %9584 = vrcp.f32 %v1593_v48 }
 0x3b3   : > { %2337 = vrot.lane.b32.xlu1 %v10315_v36, %s9854_s17  ;;  %v1596_v36 = vpop.xlane.xlu0 %1595 }
 0x3b4   : > { %9452 = vrot.lane.b32.xlu0 %v10322_v42, %s9855_s7  ;;  %9586 = vrcp.f32 %v1596_v36 }
 0x3b8   : > { %2339 = vrot.lane.b32.xlu0 %v10313_v35, %s9854_s17 }
 0x3bc   : > { %v9585_v49 = vpop.eup %9584 }
 0x3bd   : > { %v1599_v50 = vmul.f32 %v9585_v49, %v9579_v31 }
 0x3be   : > { %v9587_v61 = vpop.eup %9586 }
 0x3bf   : > { %8267 = vmatprep.mubr.msk.f32.mxu0 %vm1577_vm8, %v1599_v50  ;;  %v1600_v11 = vmul.f32 %v9587_v61, %v10370_v30 }
 0x3d7   : > { %2145 = vmax.xlane.f32.xlu1 %v2144_v53  ;;  %2148 = vmax.xlane.f32.xlu0 %v2147_v54 }
 0x427   : > { %v1795_v55 = vpop.xlane.xlu1 %1794 }
 0x428   : > { %9588 = vrcp.f32 %v1795_v55 }
 0x42b   : > { %v1798_v35 = vpop.xlane.xlu0 %1797  ;;  %v9448_v56 = vpop.permute.xlu1 %9447 }
 0x42c   : > { %9590 = vrcp.f32 %v1798_v35  ;;  %v9450_v57 = vunpack.i.h.bf16 %v9448_v56  ;;  %v9449_v58 = vunpack.i.l.bf16 %v9448_v56 }
 0x42e   : > { %v8890_v60 = vpack.c.bf16 %v9450_v57, %v9449_v58 }
 0x42f   : > { %v9453_v0 = vpop.permute.xlu0 %9452  ;;  %v9458_v1 = vpop.permute.xlu1 %9457 }
 0x430   : > { %v9455_v2 = vunpack.i.h.bf16 %v9453_v0  ;;  %v9454_v3 = vunpack.i.l.bf16 %v9453_v0  ;;  %v9460_v4 = vunpack.i.h.bf16 %v9458_v1  ;;  %v9459_v5 = vunpack.i.l.bf16 %v9458_v1  ;;  %8892 = vmatprep.subr.msk.bf16.mxu0 %vm10393_vm11, %v8890_v60 }
 0x431   : > { %8895 = vmatpush3.bf16.msk.msra.mxu0 %vm10393_vm11, %v8890_v60 }
 0x432   : > { %v9589_v6 = vpop.eup %9588  ;;  %v8902_v8 = vpack.c.bf16 %v9455_v2, %v9454_v3  ;;  %v8932_v10 = vpack.c.bf16 %v9460_v4, %v9459_v5  ;;  %v1250_v2 = vld [vmem:[%s11370_s10 + $0x20] sm:$0xff]  ;;  %v1251_v3 = vld [vmem:[%s11370_s10 + $0x28] sm:$0xff] }
 0x433   : > { %v2338_v14 = vpop.permute.xlu1 %2337  ;;  %v1801_v15 = vmul.f32 %v9589_v6, %v9581_v43  ;;  %v2340_v20 = vpop.permute.xlu0 %2339  ;;  %v10427_v43 = vpack.c.bf16 %v1247_v41, %v1246_v40  ;;  %v10447_v4 = vpack.c.bf16 %v1251_v3, %v1250_v2 }
 0x434   : > { %8268 = vmatmul.mubr.msk.f32.vlgmr.msra.gmra.mrb[2].mxu0 %vm1577_vm8, %v1600_v11  ;;  %8904 = vmatprep.subr.msk.bf16.mxu0 %vm10393_vm11, %v8902_v8 }
 0x435   : > { %8934 = vmatprep.subr.msk.bf16.mxu1 %vm10326_vm4, %v8932_v10  ;;  %8323 = vmatprep.mubr.msk.f32.mxu1 %vm1489_vm3, %v2338_v14 }
 0x436   : > { %v9591_v17 = vpop.eup %9590  ;;  %8907 = vmatpush3.bf16.msk.msra.mxu0 %vm10393_vm11, %v8902_v8  ;;  %8281 = vmatprep.mubr.msk.f32.mxu0 %vm1577_vm8, %v1801_v15 }
 0x437   : > { %8937 = vmatpush3.bf16.xpose.msk.msra.mxu1 %vm10326_vm4, %v8932_v10  ;;  %v1802_v18 = vmul.f32 %v9591_v17, %v9583_v46  ;;  %8909 = vmatprep.subr.bf16.mxu0 %v10419_v39 }
 0x439   : > { %8282 = vmatmul.mubr.msk.f32.vlgmr.msra.gmra.mrb[4].mxu0 %vm1577_vm8, %v1802_v18 }
 0x43a   : > { %8911 = vmatpush3.bf16.msra.mxu0 %v10419_v39 }
 0x43b   : > { %8913 = vmatprep.subr.bf16.mxu0 %v10427_v43 }
 0x43e   : > { %8324 = vmatmul.mubr.msk.f32.vlgmr.msra.gmra.mrb[8].mxu1 %vm1489_vm3, %v2340_v20 }
 0x464   : > { %v2149_v21 = vpop.xlane.xlu0 %2148  ;;  %v2146_v24 = vpop.xlane.xlu1 %2145 }
 0x465   : > { %v2151_v25 = vsub.f32 %v2141_v51, %v2149_v21  ;;  %v2150_v27 = vsub.f32 %v2136_v52, %v2146_v24 }
 0x467   : > { %v2154_v28 = vmul.f32 1.442695, %v2151_v25  ;;  %v2152_v30 = vmul.f32 1.442695, %v2150_v27 }
 0x469   : > { %9592 = vpow2.f32 %v2154_v28 }
 0x46a   : > { %9594 = vpow2.f32 %v2152_v30  ;;  %v1252_v30 = vld [vmem:[%s11370_s10 + $0x30] sm:$0xff] }
 0x473   : > { %v9593_v31 = vpop.eup %9592 }
 0x474   : > { %v9595_v32 = vpop.eup %9594  ;;  %v2159_v33 = vsel %vm1581_vm7, %v9593_v31, 0.0 }
 0x475   : > { %2160 = vadd.xlane.f32.xlu1 %v2159_v33  ;;  %v2156_v34 = vsel %vm1577_vm8, %v9595_v32, 0.0 }
 0x476   : > { %2157 = vadd.xlane.f32.xlu0 %v2156_v34 }
 0x48c   : > { %9462 = vrot.lane.b32.xlu0 %v10322_v42, %s11296_s18  ;;  %s11375_s18 = sld [smem:[#allocation18_spill]] }
 0x502   : > { %v2161_v49 = vpop.xlane.xlu1 %2160 }
 0x503   : > { %v2158_v45 = vpop.xlane.xlu0 %2157 }
 0x504   : > { %9596 = vrcp.f32 %v2158_v45 }
 0x505   : > { %9598 = vrcp.f32 %v2161_v49 }
 0x507   : > { %v8269_v46 = vpop.f32.mrb[2].mxu0  ;;  %v9463_v47 = vpop.permute.xlu0 %9462 }
 0x508   : > { %v1681_v48 = vpop.f32.mrb[3].mxu0  ;;  %v9465_v50 = vunpack.i.h.bf16 %v9463_v47  ;;  %v9464_v51 = vunpack.i.l.bf16 %v9463_v47  ;;  %v7710_v47 = vld [vmem:[%s11371_s14] ss:$0 sm:$0xff] }
 0x50a   : > { %v8922_v54 = vpack.c.bf16 %v9465_v50, %v9464_v51 }
 0x50c   : > { %v8283_v52 = vpop.f32.mrb[4].mxu0 }
 0x50d   : > { %v1882_v53 = vpop.f32.mrb[5].mxu0 }
 0x50e   : > { %8288 = vmatprep.mubr.msk.f32.mxu0 %vm1489_vm3, %v1882_v53  ;;  %v9597_v35 = vpop.eup %9596 }
 0x50f   : > { %8289 = vmatmul.mubr.msk.f32.vlgmr.msra.gmra.mrb[6].mxu0 %vm1489_vm3, %v8283_v52  ;;  %v9599_v60 = vpop.eup %9598  ;;  %v2164_v61 = vmul.f32 %v9597_v35, %v9595_v32  ;;  %v1267_v35 = vld [vmem:[%s10178_s8 + $0x8] sm:$0xff] }
 0x510   : > { %8915 = vmatpush3.bf16.msra.mxu0 %v10427_v43  ;;  %8295 = vmatprep.mubr.msk.f32.mxu0 %vm1489_vm3, %v1681_v48  ;;  %v2165_v0 = vmul.f32 %v9599_v60, %v9593_v31  ;;  %v1253_v31 = vld [vmem:[%s11370_s10 + $0x38] sm:$0xff] }
 0x511   : > { %v8325_v36 = vpop.f32.mrb[8].mxu1  ;;  %8924 = vmatprep.subr.msk.bf16.mxu0 %vm10393_vm11, %v8922_v54  ;;  %v10459_v37 = vpack.c.bf16 %v1253_v31, %v1252_v30 }
 0x512   : > { %v2419_v55 = vpop.f32.mrb[9].mxu1  ;;  %v2425_v57 = vadd.f32 %v8325_v36, %v10358_v62 }
 0x513   : > { %v2420_v56 = vadd.f32 %v2419_v55, %v10360_v63  ;;  %v1266_v55 = vld [vmem:[%s10178_s8] sm:$0xff] }
 0x514   : > { %v2431_v1 = vsel %vm1581_vm7, %v2425_v57, -inf }
 0x515   : > { %v2428_v58 = vsel %vm1577_vm8, %v2420_v56, -inf }
 0x516   : > { %2429 = vmax.xlane.f32.xlu1 %v2428_v58 }
 0x517   : > { %8296 = vmatmul.mubr.msk.f32.vlgmr.msra.gmra.mrb[6].mxu0 %vm1489_vm3, %v8269_v46 }
 0x518   : > { %8927 = vmatpush3.bf16.msk.msra.mxu0 %vm10393_vm11, %v8922_v54  ;;  %8309 = vmatprep.mubr.msk.f32.mxu0 %vm1577_vm8, %v2164_v61 }
 0x519   : > { %8929 = vmatprep.subr.bf16.mxu0 %v10447_v4 }
 0x51a   : > { %2432 = vmax.xlane.f32.xlu1 %v2431_v1 }
 0x51b   : > { %8310 = vmatmul.mubr.msk.f32.vlgmr.msra.gmra.mrb[8].mxu0 %vm1577_vm8, %v2165_v0 }
 0x51c   : > { %8931 = vmatpush3.bf16.msra.mxu0 %v10447_v4 }
 0x5a3   : > { %v2430_v5 = vpop.xlane.xlu1 %2429 }
 0x5a4   : > { %v2434_v6 = vsub.f32 %v2420_v56, %v2430_v5  ;;  %v10478_v56 = vpack.c.bf16 %v1267_v35, %v1266_v55  ;;  %v1268_v5 = vld [vmem:[%s10178_s8 + $0x10] sm:$0xff] }
 0x5a6   : > { %v2436_v11 = vmul.f32 1.442695, %v2434_v6  ;;  %v1269_v6 = vld [vmem:[%s10178_s8 + $0x18] sm:$0xff] }
 0x5a7   : > { %v2433_v8 = vpop.xlane.xlu1 %2432 }
 0x5a8   : > { %v2435_v10 = vsub.f32 %v2425_v57, %v2433_v8  ;;  %v10486_v8 = vpack.c.bf16 %v1269_v6, %v1268_v5 }
 0x5aa   : > { %v2438_v14 = vmul.f32 1.442695, %v2435_v10  ;;  %v1270_v10 = vld [vmem:[%s10178_s8 + $0x20] sm:$0xff] }
 0x5ac   : > { %9600 = vpow2.f32 %v2438_v14 }
 0x5ad   : > { %9602 = vpow2.f32 %v2436_v11  ;;  %v1271_v11 = vld [vmem:[%s10178_s8 + $0x28] sm:$0xff] }
 0x5ae   : > { %v10492_v14 = vpack.c.bf16 %v1271_v11, %v1270_v10  ;;  %v7713_v11 = vld [vmem:[%s10173_s12] ss:$0 sm:$0xff] }
 0x5b6   : > { %v9601_v15 = vpop.eup %9600 }
 0x5b7   : > { %v2443_v17 = vsel %vm1581_vm7, %v9601_v15, 0.0  ;;  %v9603_v18 = vpop.eup %9602 }
 0x5b8   : > { %2444 = vadd.xlane.f32.xlu1 %v2443_v17  ;;  %v2440_v20 = vsel %vm1577_vm8, %v9603_v18, 0.0  ;;  %v1273_v17 = vld [vmem:[%s10178_s8 + $0x38] sm:$0xff] }
 0x5bc   : > { %2441 = vadd.xlane.f32.xlu1 %v2440_v20  ;;  %v1257_v20 = vld [vmem:[%s10167_s26] sm:$0xff] }
 0x5cd   : > { %9467 = vrot.lane.b32.xlu1 %v10322_v42, %s11294_s9  ;;  %s11377_s9 = smov 16  }
 0x5ee   : > { %v8311_v21 = vpop.f32.mrb[8].mxu0 }
 0x5ef   : > { %v2245_v24 = vpop.f32.mrb[9].mxu0 }
 0x5f0   : > { %8316 = vmatprep.mubr.msk.f32.mxu0 %vm1489_vm3, %v2245_v24 }
 0x5f1   : > { %8317 = vmatmul.mubr.msk.f32.vlgmr.msra.gmra.mrb[6].mxu0 %vm1489_vm3, %v8311_v21  ;;  %v1258_v21 = vld [vmem:[%s10167_s26 + $0x8] sm:$0xff] }
 0x5f2   : > { %v10502_v24 = vpack.c.bf16 %v1258_v21, %v1257_v20 }
 0x5f4   : > { %8949 = vmatprep.subr.bf16.mxu1 %v10502_v24 }
 0x5f5   : > { %8951 = vmatpush3.bf16.msra.mxu1 %v10502_v24 }
 0x645   : > { %v2445_v25 = vpop.xlane.xlu1 %2444 }
 0x646   : > { %9604 = vrcp.f32 %v2445_v25 }
 0x649   : > { %v2442_v27 = vpop.xlane.xlu1 %2441 }
 0x64a   : > { %9606 = vrcp.f32 %v2442_v27  ;;  %v1259_v27 = vld [vmem:[%s10167_s26 + $0x10] sm:$0xff] }
 0x64d   : > { %v9468_v28 = vpop.permute.xlu1 %9467 }
 0x64e   : > { %v9470_v32 = vunpack.i.h.bf16 %v9468_v28  ;;  %v9469_v33 = vunpack.i.l.bf16 %v9468_v28  ;;  %v1260_v28 = vld [vmem:[%s10167_s26 + $0x18] sm:$0xff] }
 0x64f   : > { %v10517_v31 = vpack.c.bf16 %v1260_v28, %v1259_v27 }
 0x650   : > { %v8938_v34 = vpack.c.bf16 %v9470_v32, %v9469_v33  ;;  %v9605_v42 = vpop.eup %9604  ;;  %v1261_v32 = vld [vmem:[%s10167_s26 + $0x20] sm:$0xff]  ;;  %v1262_v33 = vld [vmem:[%s10167_s26 + $0x28] sm:$0xff] }
 0x651   : > { %v2449_v41 = vmul.f32 %v9605_v42, %v9601_v15  ;;  %v1272_v15 = vld [vmem:[%s10178_s8 + $0x30] sm:$0xff]  ;;  %s11372_s8 = sld [smem:[#allocation21_spill]]  ;;  %8953 = vmatprep.subr.bf16.mxu1 %v10517_v31 }
 0x652   : > { %8940 = vmatprep.subr.msk.bf16.mxu0 %vm10393_vm11, %v8938_v34  ;;  %8955 = vmatpush3.bf16.msra.mxu1 %v10517_v31  ;;  %v1263_v42 = vld [vmem:[%s10167_s26 + $0x30] sm:$0xff] }
 0x653   : > { %8943 = vmatpush3.bf16.msk.msra.mxu0 %vm10393_vm11, %v8938_v34  ;;  %v10524_v34 = vpack.c.bf16 %v1262_v33, %v1261_v32 }
 0x654   : > { %v9607_v38 = vpop.eup %9606  ;;  %8945 = vmatprep.subr.bf16.mxu0 %v10459_v37 }
 0x655   : > { %v2448_v40 = vmul.f32 %v9607_v38, %v9603_v18  ;;  %v10498_v18 = vpack.c.bf16 %v1273_v17, %v1272_v15  ;;  %8957 = vmatprep.subr.bf16.mxu1 %v10524_v34  ;;  %v1264_v38 = vld [vmem:[%s10167_s26 + $0x38] sm:$0xff]  ;;  %s11376_s26 = smov 32  }
 0x656   : > { %8959 = vmatpush3.bf16.msra.mxu1 %v10524_v34 }
 0x657   : > { %8330 = vmatprep.mubr.msk.f32.mxu0 %vm1577_vm8, %v2448_v40  ;;  %s11373_s28 = smov %s11372_s8  ;;  %v1316_v25 = vld [vmem:[%s11372_s8] sm:$0xff]  ;;  %v10530_v40 = vpack.c.bf16 %v1264_v38, %v1263_v42 }
 0x658   : > { %8331 = vmatmul.mubr.msk.f32.vlgmr.msra.gmra.mrb[10].mxu0 %vm1577_vm8, %v2449_v41  ;;  %v1317_v30 = vld [vmem:[%s11373_s28 + $0x8] sm:$0xf] }
 0x659   : > { %8947 = vmatpush3.bf16.msra.mxu0 %v10459_v37  ;;  %8961 = vmatprep.subr.bf16.mxu1 %v10530_v40 }
 0x65a   : > { %8965 = vmatprep.subr.bf16.mxu0 %v10478_v56  ;;  %8963 = vmatpush3.bf16.msra.mxu1 %v10530_v40 }
 0x72b   : > { %v8332_v45 = vpop.f32.mrb[10].mxu0 }
 0x72c   : > { %v2529_v46 = vpop.f32.mrb[11].mxu0 }
 0x72d   : > { %8337 = vmatprep.mubr.msk.f32.mxu0 %vm1489_vm3, %v2529_v46 }
 0x72e   : > { %8338 = vmatmul.mubr.msk.f32.vlgmr.msra.gmra.mrb[6].mxu0 %vm1489_vm3, %v8332_v45 }
 0x72f   : > { %8967 = vmatpush3.bf16.msra.mxu0 %v10478_v56  ;;  %8375 = vmatprep.mubr.msk.f32.mxu0 %vm1324_vm2, %v1316_v25 }
 0x730   : > { %8969 = vmatprep.subr.bf16.mxu0 %v10486_v8 }
 0x733   : > { %8971 = vmatpush3.bf16.msra.mxu0 %v10486_v8 }
 0x734   : > { %8973 = vmatprep.subr.bf16.mxu0 %v10492_v14 }
 0x737   : > { %8975 = vmatpush3.bf16.msra.mxu0 %v10492_v14 }
 0x738   : > { %8977 = vmatprep.subr.bf16.mxu0 %v10498_v18 }
 0x73b   : > { %8979 = vmatpush3.bf16.msra.mxu0 %v10498_v18 }
 0x73e   : > { %8376 = vmatmul.mubr.msk.f32.vlgmr.msra.gmra.mrb[12].mxu0 %vm1324_vm2, %v1317_v30 }
 0x801   : > { %v8339_v48 = vpop.f32.mrb[6].mxu0 }
 0x802   : > { %v2628_v49 = vadd.f32 %v8339_v48, %v7710_v47  ;;  %v2610_v50 = vpop.f32.mrb[7].mxu0 }
 0x803   : > { %v2627_v51 = vadd.f32 %v7710_v47, %v2610_v50 }
 0x804   : > { %v2630_v52 = vadd.f32 %v2628_v49, %v10286_v22 }
 0x805   : > { %v2629_v53 = vadd.f32 %v2627_v51, %v10262_v12  ;;  %v7711_v51 = vld [vmem:[%s11374_s13] ss:$0 sm:$0xff] }
 0x806   : > { %v2635_v54 = vsel %vm2634_vm12, %v2630_v52, 0.0 }
 0x807   : > { %2636 = vadd.xlane.f32.xlu1 %v2635_v54  ;;  %v2631_v36 = vsel %vm1324_vm2, %v2629_v53, 0.0 }
 0x808   : > { %2632 = vadd.xlane.f32.xlu0 %v2631_v36 }
 0x894   : > { %v2637_v57 = vpop.xlane.xlu1 %2636 }
 0x895   : > { %v2640_v22 = vmul.f32 0.015625, %v2637_v57  ;;  %v2633_v12 = vpop.xlane.xlu0 %2632 }
 0x896   : > { %v2639_v58 = vmul.f32 0.015625, %v2633_v12  ;;  %v7716_v12 = vld [vmem:[%s10184_s25] ss:$0 sm:$0xff] }
 0x897   : > { %v2642_v60 = vsub.f32 %v2630_v52, %v2640_v22 }
 0x898   : > { %v2641_v61 = vsub.f32 %v2629_v53, %v2639_v58  ;;  %v7712_v53 = vld [vmem:[%s11375_s18] ss:$0 sm:$0xff]  ;;  %v8377_v58 = vpop.f32.mrb[12].mxu0 }
 0x899   : > { %v2644_v2 = vmul.f32 %v2642_v60, %v2642_v60 }
 0x89a   : > { %v2643_v0 = vmul.f32 %v2641_v61, %v2641_v61 }
 0x89b   : > { %v2648_v3 = vsel %vm2634_vm12, %v2644_v2, 0.0 }
 0x89c   : > { %v2645_v1 = vsel %vm1324_vm2, %v2643_v0, 0.0  ;;  %v2848_v0 = vadd.f32 %v8377_v58, %v7716_v12 }
 0x89d   : > { %2646 = vadd.xlane.f32.xlu0 %v2645_v1 }
 0x8a1   : > { %2649 = vadd.xlane.f32.xlu0 %v2648_v3 }
 0x92a   : > { %v2647_v41 = vpop.xlane.xlu0 %2646 }
 0x92b   : > { %v2651_v45 = vmul.f32 0.015625, %v2647_v41 }
 0x92d   : > { %v2653_v46 = vadd.f32 1e-05, %v2651_v45 }
 0x92e   : > { %v2650_v47 = vpop.xlane.xlu0 %2649 }
 0x92f   : > { %9608 = vrsqrt.f32 %v2653_v46  ;;  %v2652_v48 = vmul.f32 0.015625, %v2650_v47 }
 0x931   : > { %v2654_v49 = vadd.f32 1e-05, %v2652_v48 }
 0x933   : > { %9610 = vrsqrt.f32 %v2654_v49 }
 0x939   : > { %v9609_v50 = vpop.eup %9608 }
 0x93a   : > { %v2657_v52 = vmul.f32 %v9609_v50, %v2641_v61  ;;  %v2842_v61 = vpop.f32.mrb[13].mxu0 }
 0x93b   : > { %v2843_v1 = vadd.f32 %v7716_v12, %v2842_v61 }
 0x93c   : > { %v2665_v54 = vmul.f32 %v7711_v51, %v2657_v52 }
 0x93d   : > { %v9611_v36 = vpop.eup %9610  ;;  %v8980_v2 = vpack.c.bf16 %v2848_v0, %v2843_v1  ;;  %v10545_v3 = vpack.i.bf16 %v2848_v0, %v2843_v1 }
 0x93e   : > { %v2658_v55 = vmul.f32 %v9611_v36, %v2642_v60  ;;  %v10536_v35 = vadd.f32 %v7712_v53, %v2665_v54 }
 0x93f   : > { %8982 = vmatprep.subr.msk.bf16.mxu1 %vm10326_vm4, %v8980_v2  ;;  %9472 = vrot.lane.b32.xlu0 %v10545_v3, %s9850_s4 }
 0x940   : > { %8356 = vmatprep.mubr.msk.f32.mxu1 %vm1324_vm2, %v10536_v35  ;;  %v2666_v57 = vmul.f32 %v7711_v51, %v2658_v55 }
 0x942   : > { %v10540_v22 = vadd.f32 %v7712_v53, %v2666_v57 }
 0x944   : > { %8357 = vmatmul.mubr.msk.f32.vlgmr.msra.gmra.mrb[10].mxu1 %vm1324_vm2, %v10540_v22 }
 0x945   : > { %8985 = vmatpush3.bf16.xpose.msk.msra.mxu1 %vm10326_vm4, %v8980_v2 }
 0x9b1   : > { %v9473_v60 = vpop.permute.xlu0 %9472 }
 0x9b2   : > { %v9475_v5 = vunpack.i.h.bf16 %v9473_v60  ;;  %v9474_v6 = vunpack.i.l.bf16 %v9473_v60 }
 0x9b4   : > { %v8992_v10 = vpack.c.bf16 %v9475_v5, %v9474_v6 }
 0x9b6   : > { %8994 = vmatprep.subr.msk.bf16.mxu1 %vm10326_vm4, %v8992_v10 }
 0xa17   : > { %v8358_v15 = vpop.f32.mrb[10].mxu1 }
 0xa18   : > { %v2759_v17 = vadd.f32 %v8358_v15, %v7713_v11  ;;  %v2753_v20 = vpop.f32.mrb[11].mxu1 }
 0xa19   : > { %v2754_v21 = vadd.f32 %v7713_v11, %v2753_v20 }
 0xa1a   : > { %v10556_v25 = vmul.f32 0.25, %v2759_v17 }
 0xa1b   : > { %v10558_v27 = vmul.f32 0.25, %v2754_v21 }
 0xa1c   : > { %3053 = vrot.lane.b32.xlu0 %v10556_v25, %s9850_s4 }
 0xa1d   : > { %3051 = vrot.lane.b32.xlu1 %v10558_v27, %s9850_s4  ;;  %8382 = vmatprep.mubr.msk.f32.mxu1 %vm1489_vm3, %v10558_v27 }
 0xa1e   : > { %8383 = vmatmul.mubr.msk.f32.vlgmr.msra.gmra.mrb[12].mxu1 %vm1489_vm3, %v10556_v25 }
 0xa1f   : > { %8997 = vmatpush3.bf16.xpose.msk.msra.mxu1 %vm10326_vm4, %v8992_v10 }
 0xa20   : > { %9477 = vrot.lane.b32.xlu0 %v10545_v3, %s9851_s0 }
 0xa21   : > { %3414 = vrot.lane.b32.xlu1 %v10558_v27, %s9851_s0 }
 0xa24   : > { %3416 = vrot.lane.b32.xlu0 %v10556_v25, %s9851_s0 }
 0xa8e   : > { %v3054_v28 = vpop.permute.xlu0 %3053 }
 0xa8f   : > { %v3052_v30 = vpop.permute.xlu1 %3051 }
 0xa90   : > { %8396 = vmatprep.mubr.msk.f32.mxu1 %vm1489_vm3, %v3052_v30 }
 0xa91   : > { %8397 = vmatmul.mubr.msk.f32.vlgmr.msra.gmra.mrb[14].mxu1 %vm1489_vm3, %v3054_v28 }
 0xa92   : > { %v9478_v32 = vpop.permute.xlu0 %9477 }
 0xa93   : > { %v9480_v33 = vunpack.i.h.bf16 %v9478_v32  ;;  %v9479_v42 = vunpack.i.l.bf16 %v9478_v32  ;;  %v3415_v38 = vpop.permute.xlu1 %3414 }
 0xa94   : > { %8424 = vmatprep.mubr.msk.f32.mxu1 %vm1489_vm3, %v3415_v38 }
 0xa95   : > { %v9012_v41 = vpack.c.bf16 %v9480_v33, %v9479_v42 }
 0xa96   : > { %v3417_v45 = vpop.permute.xlu0 %3416 }
 0xa97   : > { %9014 = vmatprep.subr.msk.bf16.mxu1 %vm10326_vm4, %v9012_v41 }
 0xa98   : > { %9017 = vmatpush3.bf16.xpose.msk.msra.mxu1 %vm10326_vm4, %v9012_v41 }
 0xa9f   : > { %8425 = vmatmul.mubr.msk.f32.vlgmr.msra.gmra.mrb[16].mxu1 %vm1489_vm3, %v3417_v45 }
 0xaf1   : > { %v8384_v46 = vpop.f32.mrb[12].mxu1 }
 0xaf2   : > { %v2929_v47 = vpop.f32.mrb[13].mxu1  ;;  %v2943_v48 = vsel %vm2942_vm13, %v8384_v46, -inf }
 0xaf3   : > { %2944 = vmax.xlane.f32.xlu0 %v2943_v48  ;;  %v2939_v49 = vsel %vm2938_vm14, %v2929_v47, -inf }
 0xaf4   : > { %2940 = vmax.xlane.f32.xlu1 %v2939_v49 }
 0xb64   : > { %v8398_v50 = vpop.f32.mrb[14].mxu1 }
 0xb65   : > { %v3133_v51 = vpop.f32.mrb[15].mxu1  ;;  %v3145_v52 = vsel %vm2942_vm13, %v8398_v50, -inf }
 0xb66   : > { %3146 = vmax.xlane.f32.xlu1 %v3145_v52  ;;  %v3142_v53 = vsel %vm2938_vm14, %v3133_v51, -inf }
 0xb67   : > { %3143 = vmax.xlane.f32.xlu0 %v3142_v53 }
 0xb72   : > { %v10588_v54 = vpop.f32.mrb[16].mxu1 }
 0xb73   : > { %v10590_v36 = vpop.f32.mrb[17].mxu1  ;;  %v3508_v45 = vsel %vm2942_vm13, %v10588_v54, -inf }
 0xb74   : > { %v3505_v41 = vsel %vm2938_vm14, %v10590_v36, -inf }
 0xb80   : > { %v2945_v55 = vpop.xlane.xlu0 %2944 }
 0xb81   : > { %v2947_v57 = vsub.f32 %v8384_v46, %v2945_v55  ;;  %v2941_v12 = vpop.xlane.xlu1 %2940 }
 0xb82   : > { %v2946_v58 = vsub.f32 %v2929_v47, %v2941_v12 }
 0xb83   : > { %v2950_v0 = vmul.f32 1.442695, %v2947_v57 }
 0xb84   : > { %v2948_v61 = vmul.f32 1.442695, %v2946_v58 }
 0xb85   : > { %9612 = vpow2.f32 %v2950_v0 }
 0xb86   : > { %9614 = vpow2.f32 %v2948_v61 }
 0xb8f   : > { %v9613_v1 = vpop.eup %9612 }
 0xb90   : > { %v9615_v2 = vpop.eup %9614  ;;  %v2955_v60 = vsel %vm2942_vm13, %v9613_v1, 0.0 }
 0xb91   : > { %2956 = vadd.xlane.f32.xlu1 %v2955_v60  ;;  %v2952_v5 = vsel %vm2938_vm14, %v9615_v2, 0.0 }
 0xb92   : > { %2953 = vadd.xlane.f32.xlu0 %v2952_v5 }
 0xbf3   : > { %v3147_v6 = vpop.xlane.xlu1 %3146 }
 0xbf4   : > { %v3149_v10 = vsub.f32 %v8398_v50, %v3147_v6  ;;  %v3144_v11 = vpop.xlane.xlu0 %3143 }
 0xbf5   : > { %v3148_v15 = vsub.f32 %v3133_v51, %v3144_v11 }
 0xbf6   : > { %v3152_v17 = vmul.f32 1.442695, %v3149_v10 }
 0xbf7   : > { %v3150_v20 = vmul.f32 1.442695, %v3148_v15 }
 0xbf8   : > { %9616 = vpow2.f32 %v3152_v17 }
 0xbf9   : > { %9618 = vpow2.f32 %v3150_v20 }
 0xc02   : > { %v9617_v21 = vpop.eup %9616 }
 0xc03   : > { %v9619_v28 = vpop.eup %9618  ;;  %v3157_v30 = vsel %vm2942_vm13, %v9617_v21, 0.0 }
 0xc04   : > { %3158 = vadd.xlane.f32.xlu1 %v3157_v30  ;;  %v3154_v32 = vsel %vm2938_vm14, %v9619_v28, 0.0 }
 0xc05   : > { %3155 = vadd.xlane.f32.xlu0 %v3154_v32 }
 0xc15   : > { %9487 = vrot.lane.b32.xlu1 %v10545_v3, %s9855_s7 }
 0xc19   : > { %9492 = vrot.lane.b32.xlu1 %v10545_v3, %s9854_s17 }
 0xc1b   : > { %9482 = vrot.lane.b32.xlu0 %v10545_v3, %s9853_s16 }
 0xc1d   : > { %3700 = vrot.lane.b32.xlu1 %v10556_v25, %s9854_s17 }
 0xc1e   : > { %v2957_v25 = vpop.xlane.xlu1 %2956 }
 0xc1f   : > { %3698 = vrot.lane.b32.xlu0 %v10558_v27, %s9854_s17  ;;  %v2954_v33 = vpop.xlane.xlu0 %2953 }
 0xc20   : > { %9620 = vrcp.f32 %v2954_v33 }
 0xc21   : > { %9622 = vrcp.f32 %v2957_v25  ;;  %v1276_v25 = vld [vmem:[%s10189_s11 + $0x8] sm:$0xff] }
 0xc2a   : > { %v9621_v42 = vpop.eup %9620 }
 0xc2b   : > { %v2960_v38 = vmul.f32 %v9621_v42, %v9615_v2  ;;  %v9623_v57 = vpop.eup %9622 }
 0xc2c   : > { %v2961_v5 = vmul.f32 %v9623_v57, %v9613_v1 }
 0xc2d   : > { %8389 = vmatprep.mubr.msk.f32.mxu0 %vm2938_vm14, %v2960_v38 }
 0xc3e   : > { %3506 = vmax.xlane.f32.xlu0 %v3505_v41  ;;  %v1277_v41 = vld [vmem:[%s10189_s11 + $0x10] sm:$0xff] }
 0xc41   : > { %3509 = vmax.xlane.f32.xlu1 %v3508_v45  ;;  %v1278_v45 = vld [vmem:[%s10189_s11 + $0x18] sm:$0xff] }
 0xc52   : > { %9497 = vrot.lane.b32.xlu1 %v10545_v3, %s11376_s26 }
 0xc56   : > { %9502 = vrot.lane.b32.xlu1 %v10545_v3, %s11377_s9 }
 0xc91   : > { %v3159_v27 = vpop.xlane.xlu1 %3158 }
 0xc92   : > { %v3156_v46 = vpop.xlane.xlu0 %3155 }
 0xc93   : > { %9624 = vrcp.f32 %v3156_v46 }
 0xc94   : > { %9626 = vrcp.f32 %v3159_v27 }
 0xc95   : > { %v9488_v47 = vpop.permute.xlu1 %9487 }
 0xc96   : > { %v9483_v48 = vpop.permute.xlu0 %9482  ;;  %v9490_v49 = vunpack.i.h.bf16 %v9488_v47  ;;  %v9489_v50 = vunpack.i.l.bf16 %v9488_v47 }
 0xc97   : > { %v9485_v51 = vunpack.i.h.bf16 %v9483_v48  ;;  %v9484_v52 = vunpack.i.l.bf16 %v9483_v48 }
 0xc98   : > { %v8998_v61 = vpack.c.bf16 %v9490_v49, %v9489_v50 }
 0xc99   : > { %v8986_v55 = vpack.c.bf16 %v9485_v51, %v9484_v52  ;;  %v9493_v3 = vpop.permute.xlu1 %9492 }
 0xc9a   : > { %v9495_v12 = vunpack.i.h.bf16 %v9493_v3  ;;  %v9494_v58 = vunpack.i.l.bf16 %v9493_v3  ;;  %v3699_v0 = vpop.permute.xlu0 %3698 }
 0xc9b   : > { %8988 = vmatprep.subr.msk.bf16.mxu0 %vm10616_vm0, %v8986_v55  ;;  %8445 = vmatprep.mubr.msk.f32.mxu1 %vm1489_vm3, %v3699_v0 }
 0xc9c   : > { %v9028_v2 = vpack.c.bf16 %v9495_v12, %v9494_v58  ;;  %8991 = vmatpush3.bf16.msk.msra.mxu0 %vm10616_vm0, %v8986_v55 }
 0xc9d   : > { %v9625_v60 = vpop.eup %9624  ;;  %9000 = vmatprep.subr.msk.bf16.mxu0 %vm10616_vm0, %v8998_v61  ;;  %v3701_v1 = vpop.permute.xlu1 %3700 }
 0xc9e   : > { %v9627_v6 = vpop.eup %9626  ;;  %9030 = vmatprep.subr.msk.bf16.mxu1 %vm10326_vm4, %v9028_v2  ;;  %v3162_v10 = vmul.f32 %v9625_v60, %v9619_v28 }
 0xc9f   : > { %8390 = vmatmul.mubr.msk.f32.vlgmr.msra.gmra.mrb[14].mxu0 %vm2938_vm14, %v2961_v5  ;;  %9033 = vmatpush3.bf16.xpose.msk.msra.mxu1 %vm10326_vm4, %v9028_v2  ;;  %v3163_v11 = vmul.f32 %v9627_v6, %v9617_v21  ;;  %v1280_v2 = vld [vmem:[%s10189_s11 + $0x28] sm:$0xff] }
 0xca0   : > { %9003 = vmatpush3.bf16.msk.msra.mxu0 %vm10616_vm0, %v8998_v61  ;;  %8403 = vmatprep.mubr.msk.f32.mxu0 %vm2938_vm14, %v3162_v10  ;;  %v1279_v61 = vld [vmem:[%s10189_s11 + $0x20] sm:$0xff] }
 0xca1   : > { %v10662_v10 = vpack.c.bf16 %v1280_v2, %v1279_v61  ;;  %v7755_v61 = vld [vmem:[%s10195_s6] ss:$0 sm:$0xff] }
 0xca3   : > { %8404 = vmatmul.mubr.msk.f32.vlgmr.msra.gmra.mrb[16].mxu0 %vm2938_vm14, %v3163_v11 }
 0xca6   : > { %8446 = vmatmul.mubr.msk.f32.vlgmr.msra.gmra.mrb[18].mxu1 %vm1489_vm3, %v3701_v1 }
 0xccb   : > { %v3507_v15 = vpop.xlane.xlu0 %3506 }
 0xccc   : > { %v3511_v17 = vsub.f32 %v10590_v36, %v3507_v15  ;;  %v10643_v36 = vpack.c.bf16 %v1278_v45, %v1277_v41 }
 0xcce   : > { %v3513_v20 = vmul.f32 1.442695, %v3511_v17  ;;  %v3510_v28 = vpop.xlane.xlu1 %3509  ;;  %9005 = vmatprep.subr.bf16.mxu0 %v10643_v36 }
 0xccf   : > { %v3512_v30 = vsub.f32 %v10588_v54, %v3510_v28  ;;  %9007 = vmatpush3.bf16.msra.mxu0 %v10643_v36  ;;  %v1275_v54 = vld [vmem:[%s10189_s11] sm:$0xff] }
 0xcd0   : > { %9628 = vpow2.f32 %v3513_v20  ;;  %v10649_v27 = vpack.c.bf16 %v1276_v25, %v1275_v54 }
 0xcd1   : > { %v3515_v32 = vmul.f32 1.442695, %v3512_v30 }
 0xcd2   : > { %9009 = vmatprep.subr.bf16.mxu0 %v10649_v27  ;;  %v9498_v47 = vpop.permute.xlu1 %9497 }
 0xcd3   : > { %9630 = vpow2.f32 %v3515_v32  ;;  %v9500_v51 = vunpack.i.h.bf16 %v9498_v47  ;;  %v9499_v52 = vunpack.i.l.bf16 %v9498_v47  ;;  %v1282_v47 = vld [vmem:[%s10189_s11 + $0x38] sm:$0xff] }
 0xcd5   : > { %v9018_v57 = vpack.c.bf16 %v9500_v51, %v9499_v52 }
 0xcd6   : > { %v9503_v5 = vpop.permute.xlu1 %9502 }
 0xcd7   : > { %v9505_v15 = vunpack.i.h.bf16 %v9503_v5  ;;  %v9504_v17 = vunpack.i.l.bf16 %v9503_v5 }
 0xcd9   : > { %v9034_v28 = vpack.c.bf16 %v9505_v15, %v9504_v17 }
 0xcda   : > { %v9629_v21 = vpop.eup %9628 }
 0xcdb   : > { %v3517_v33 = vsel %vm2938_vm14, %v9629_v21, 0.0 }
 0xcdc   : > { %3518 = vadd.xlane.f32.xlu0 %v3517_v33 }
 0xcdd   : > { %v9631_v42 = vpop.eup %9630 }
 0xcde   : > { %v3520_v38 = vsel %vm2942_vm13, %v9631_v42, 0.0 }
 0xce0   : > { %3521 = vadd.xlane.f32.xlu0 %v3520_v38 }
 0xd69   : > { %v3519_v46 = vpop.xlane.xlu0 %3518 }
 0xd6a   : > { %9632 = vrcp.f32 %v3519_v46  ;;  %v1281_v46 = vld [vmem:[%s10189_s11 + $0x30] sm:$0xff]  ;;  %s11380_s11 = sld [smem:[#allocation19_spill]] }
 0xd6d   : > { %v3522_v49 = vpop.xlane.xlu0 %3521 }
 0xd6e   : > { %9634 = vrcp.f32 %v3522_v49 }
 0xd72   : > { %v8391_v48 = vpop.f32.mrb[14].mxu0 }
 0xd73   : > { %v3042_v50 = vpop.f32.mrb[15].mxu0 }
 0xd74   : > { %v9633_v60 = vpop.eup %9632 }
 0xd75   : > { %v3525_v1 = vmul.f32 %v9633_v60, %v9629_v21 }
 0xd76   : > { %v8405_v55 = vpop.f32.mrb[16].mxu0 }
 0xd77   : > { %v3243_v3 = vpop.f32.mrb[17].mxu0 }
 0xd78   : > { %8410 = vmatprep.mubr.msk.f32.mxu0 %vm1489_vm3, %v3243_v3  ;;  %v9635_v11 = vpop.eup %9634 }
 0xd79   : > { %8411 = vmatmul.mubr.msk.f32.vlgmr.msra.gmra.mrb[18].mxu0 %vm1489_vm3, %v8405_v55  ;;  %v8447_v12 = vpop.f32.mrb[18].mxu1  ;;  %v3526_v20 = vmul.f32 %v9635_v11, %v9631_v42 }
 0xd7a   : > { %9011 = vmatpush3.bf16.msra.mxu0 %v10649_v27  ;;  %8417 = vmatprep.mubr.msk.f32.mxu0 %vm1489_vm3, %v3042_v50  ;;  %v3780_v58 = vpop.f32.mrb[19].mxu1  ;;  %v3792_v6 = vsel %vm2942_vm13, %v8447_v12, -inf  ;;  %v10677_v50 = vpack.c.bf16 %v1282_v47, %v1281_v46  ;;  %v1289_v46 = vld [vmem:[%s10212_s27 + $0x18] sm:$0xff] }
 0xd7b   : > { %9020 = vmatprep.subr.msk.bf16.mxu0 %vm10616_vm0, %v9018_v57  ;;  %v3789_v0 = vsel %vm2938_vm14, %v3780_v58, -inf }
 0xd7c   : > { %3790 = vmax.xlane.f32.xlu0 %v3789_v0 }
 0xd80   : > { %3793 = vmax.xlane.f32.xlu0 %v3792_v6 }
 0xd81   : > { %8418 = vmatmul.mubr.msk.f32.vlgmr.msra.gmra.mrb[18].mxu0 %vm1489_vm3, %v8391_v48 }
 0xd82   : > { %9023 = vmatpush3.bf16.msk.msra.mxu0 %vm10616_vm0, %v9018_v57  ;;  %8431 = vmatprep.mubr.msk.f32.mxu0 %vm2938_vm14, %v3525_v1 }
 0xd83   : > { %9025 = vmatprep.subr.bf16.mxu0 %v10662_v10 }
 0xd85   : > { %8432 = vmatmul.mubr.msk.f32.vlgmr.msra.gmra.mrb[20].mxu0 %vm2938_vm14, %v3526_v20 }
 0xd86   : > { %9027 = vmatpush3.bf16.msra.mxu0 %v10662_v10 }
 0xd87   : > { %9036 = vmatprep.subr.msk.bf16.mxu0 %vm10616_vm0, %v9034_v28 }
 0xe09   : > { %v3791_v30 = vpop.xlane.xlu0 %3790 }
 0xe0a   : > { %v3795_v32 = vsub.f32 %v3780_v58, %v3791_v30 }
 0xe0c   : > { %v3797_v21 = vmul.f32 1.442695, %v3795_v32 }
 0xe0d   : > { %v3794_v33 = vpop.xlane.xlu0 %3793 }
 0xe0e   : > { %9636 = vpow2.f32 %v3797_v21  ;;  %v3796_v38 = vsub.f32 %v8447_v12, %v3794_v33 }
 0xe10   : > { %v3799_v41 = vmul.f32 1.442695, %v3796_v38 }
 0xe12   : > { %9638 = vpow2.f32 %v3799_v41 }
 0xe18   : > { %v9637_v45 = vpop.eup %9636 }
 0xe19   : > { %v3801_v42 = vsel %vm2938_vm14, %v9637_v45, 0.0 }
 0xe1a   : > { %3802 = vadd.xlane.f32.xlu0 %v3801_v42  ;;  %v1287_v42 = vld [vmem:[%s10212_s27 + $0x8] sm:$0xff] }
 0xe1c   : > { %v9639_v54 = vpop.eup %9638 }
 0xe1d   : > { %v3804_v25 = vsel %vm2942_vm13, %v9639_v54, 0.0 }
 0xe1e   : > { %3805 = vadd.xlane.f32.xlu0 %v3804_v25  ;;  %v1288_v25 = vld [vmem:[%s10212_s27 + $0x10] sm:$0xff] }
 0xe1f   : > { %v10712_v47 = vpack.c.bf16 %v1289_v46, %v1288_v25 }
 0xe58   : > { %v8433_v48 = vpop.f32.mrb[20].mxu0 }
 0xe59   : > { %v3606_v49 = vpop.f32.mrb[21].mxu0 }
 0xe5a   : > { %8438 = vmatprep.mubr.msk.f32.mxu0 %vm1489_vm3, %v3606_v49  ;;  %v1291_v49 = vld [vmem:[%s10212_s27 + $0x28] sm:$0xff] }
 0xe5b   : > { %8439 = vmatmul.mubr.msk.f32.vlgmr.msra.gmra.mrb[18].mxu0 %vm1489_vm3, %v8433_v48  ;;  %v1290_v48 = vld [vmem:[%s10212_s27 + $0x20] sm:$0xff] }
 0xe5c   : > { %9039 = vmatpush3.bf16.msk.msra.mxu0 %vm10616_vm0, %v9034_v28 }
 0xe5d   : > { %9041 = vmatprep.subr.bf16.mxu0 %v10677_v50 }
 0xea7   : > { %v3803_v51 = vpop.xlane.xlu0 %3802 }
 0xea8   : > { %9640 = vrcp.f32 %v3803_v51  ;;  %v10718_v51 = vpack.c.bf16 %v1291_v49, %v1290_v48 }
 0xeab   : > { %v3806_v52 = vpop.xlane.xlu0 %3805 }
 0xeac   : > { %9642 = vrcp.f32 %v3806_v52  ;;  %v1292_v52 = vld [vmem:[%s10212_s27 + $0x30] sm:$0xff] }
 0xeb2   : > { %v9641_v55 = vpop.eup %9640 }
 0xeb3   : > { %v3809_v3 = vmul.f32 %v9641_v55, %v9637_v45  ;;  %v1286_v45 = vld [vmem:[%s10212_s27] sm:$0xff]  ;;  %v1293_v55 = vld [vmem:[%s10212_s27 + $0x38] sm:$0xff] }
 0xeb5   : > { %8452 = vmatprep.mubr.msk.f32.mxu0 %vm2938_vm14, %v3809_v3  ;;  %v10724_v3 = vpack.c.bf16 %v1293_v55, %v1292_v52  ;;  %v7756_v55 = vld [vmem:[%s10201_s3] ss:$0 sm:$0xff] }
 0xeb6   : > { %v9643_v57 = vpop.eup %9642 }
 0xeb7   : > { %v3810_v12 = vmul.f32 %v9643_v57, %v9639_v54  ;;  %v10706_v54 = vpack.c.bf16 %v1287_v42, %v1286_v45  ;;  %v1295_v57 = vld [vmem:[%s10224_s2] sm:$0xff] }
 0xeb9   : > { %8453 = vmatmul.mubr.msk.f32.vlgmr.msra.gmra.mrb[22].mxu0 %vm2938_vm14, %v3810_v12  ;;  %9045 = vmatprep.subr.bf16.mxu1 %v10706_v54  ;;  %v1296_v12 = vld [vmem:[%s10224_s2 + $0x8] sm:$0xff] }
 0xeba   : > { %9043 = vmatpush3.bf16.msra.mxu0 %v10677_v50  ;;  %9047 = vmatpush3.bf16.msra.mxu1 %v10706_v54 }
 0xebb   : > { %9049 = vmatprep.subr.bf16.mxu1 %v10712_v47 }
 0xebe   : > { %9051 = vmatpush3.bf16.msra.mxu1 %v10712_v47 }
 0xebf   : > { %9053 = vmatprep.subr.bf16.mxu1 %v10718_v51 }
 0xec2   : > { %9055 = vmatpush3.bf16.msra.mxu1 %v10718_v51 }
 0xec3   : > { %9057 = vmatprep.subr.bf16.mxu1 %v10724_v3 }
 0xec6   : > { %9059 = vmatpush3.bf16.msra.mxu1 %v10724_v3 }
 0xec7   : > { %9093 = vmatprep.subr.bf16.mxu1 %v10255_v7 }
 0xf8c   : > { %v8454_v58 = vpop.f32.mrb[22].mxu0 }
 0xf8d   : > { %v3890_v0 = vpop.f32.mrb[23].mxu0 }
 0xf8e   : > { %8459 = vmatprep.mubr.msk.f32.mxu0 %vm1489_vm3, %v3890_v0  ;;  %v10732_v0 = vpack.c.bf16 %v1296_v12, %v1295_v57  ;;  %v7757_v12 = vld [vmem:[%s11380_s11] ss:$0 sm:$0xff] }
 0xf8f   : > { %8460 = vmatmul.mubr.msk.f32.vlgmr.msra.gmra.mrb[18].mxu0 %vm1489_vm3, %v8454_v58  ;;  %v1297_v58 = vld [vmem:[%s10224_s2 + $0x10] sm:$0xff] }
 0xf90   : > { %9061 = vmatprep.subr.bf16.mxu0 %v10732_v0 }
 0xf91   : > { %9063 = vmatpush3.bf16.msra.mxu0 %v10732_v0 }
0x1062   : > { %v8461_v2 = vpop.f32.mrb[18].mxu0 }
0x1063   : > { %v3989_v60 = vadd.f32 %v8461_v2, %v7755_v61  ;;  %v3971_v5 = vpop.f32.mrb[19].mxu0 }
0x1064   : > { %v3988_v6 = vadd.f32 %v7755_v61, %v3971_v5  ;;  %v1298_v61 = vld [vmem:[%s10224_s2 + $0x18] sm:$0xff]  ;;  %v1300_v5 = vld [vmem:[%s10224_s2 + $0x28] sm:$0xff] }
0x1065   : > { %v3991_v11 = vadd.f32 %v3989_v60, %v10540_v22  ;;  %v10735_v2 = vpack.c.bf16 %v1298_v61, %v1297_v58  ;;  %v1299_v60 = vld [vmem:[%s10224_s2 + $0x20] sm:$0xff] }
0x1066   : > { %v3990_v1 = vadd.f32 %v3988_v6, %v10536_v35  ;;  %v10742_v6 = vpack.c.bf16 %v1300_v5, %v1299_v60 }
0x1067   : > { %v3995_v15 = vsel %vm2634_vm12, %v3991_v11, 0.0  ;;  %9065 = vmatprep.subr.bf16.mxu0 %v10735_v2 }
0x1068   : > { %3996 = vadd.xlane.f32.xlu1 %v3995_v15  ;;  %v3992_v17 = vsel %vm1324_vm2, %v3990_v1, 0.0  ;;  %9067 = vmatpush3.bf16.msra.mxu0 %v10735_v2 }
0x1069   : > { %3993 = vadd.xlane.f32.xlu0 %v3992_v17  ;;  %9069 = vmatprep.subr.bf16.mxu0 %v10742_v6  ;;  %v1303_v17 = vld [vmem:[%s10224_s2 + $0x40] sm:$0xff] }
0x106c   : > { %9071 = vmatpush3.bf16.msra.mxu0 %v10742_v6 }
0x10f5   : > { %v3997_v20 = vpop.xlane.xlu1 %3996 }
0x10f6   : > { %v3999_v28 = vmul.f32 0.015625, %v3997_v20  ;;  %v3994_v30 = vpop.xlane.xlu0 %3993  ;;  %v1304_v20 = vld [vmem:[%s10224_s2 + $0x48] sm:$0xff] }
0x10f7   : > { %v3998_v32 = vmul.f32 0.015625, %v3994_v30  ;;  %v1305_v30 = vld [vmem:[%s10224_s2 + $0x50] sm:$0xff] }
0x10f8   : > { %v10694_v21 = vsub.f32 %v3991_v11, %v3999_v28  ;;  %v1301_v11 = vld [vmem:[%s10224_s2 + $0x30] sm:$0xff]  ;;  %v10754_v28 = vpack.c.bf16 %v1304_v20, %v1303_v17 }
0x10f9   : > { %v10696_v33 = vsub.f32 %v3990_v1, %v3998_v32  ;;  %v1302_v1 = vld [vmem:[%s10224_s2 + $0x38] sm:$0xff]  ;;  %v10781_v17 = vld [vmem:[#allocation2 + $0x10] sm:$0xff] }
0x10fa   : > { %v4003_v38 = vmul.f32 %v10694_v21, %v10694_v21  ;;  %v10748_v15 = vpack.c.bf16 %v1302_v1, %v1301_v11  ;;  %v1306_v32 = vld [vmem:[%s10224_s2 + $0x58] sm:$0xff] }
0x10fb   : > { %v4002_v35 = vmul.f32 %v10696_v33, %v10696_v33 }
0x10fc   : > { %v4007_v41 = vsel %vm2634_vm12, %v4003_v38, 0.0  ;;  %9073 = vmatprep.subr.bf16.mxu0 %v10748_v15  ;;  %v1308_v38 = vld [vmem:[%s10224_s2 + $0x68] sm:$0xff] }
0x10fd   : > { %v4004_v22 = vsel %vm1324_vm2, %v4002_v35, 0.0  ;;  %9075 = vmatpush3.bf16.msra.mxu0 %v10748_v15  ;;  %v10760_v35 = vpack.c.bf16 %v1306_v32, %v1305_v30 }
0x10fe   : > { %4005 = vadd.xlane.f32.xlu0 %v4004_v22  ;;  %9077 = vmatprep.subr.bf16.mxu0 %v10754_v28  ;;  %v1307_v22 = vld [vmem:[%s10224_s2 + $0x60] sm:$0xff] }
0x1101   : > { %9079 = vmatpush3.bf16.msra.mxu0 %v10754_v28 }
0x1102   : > { %4008 = vadd.xlane.f32.xlu0 %v4007_v41  ;;  %9081 = vmatprep.subr.bf16.mxu0 %v10760_v35  ;;  %v10766_v41 = vpack.c.bf16 %v1308_v38, %v1307_v22  ;;  %v9728_v22 = vld [vmem:[%s11364_s24] ss:$0 sm:$0xff] }
0x1105   : > { %9083 = vmatpush3.bf16.msra.mxu0 %v10760_v35 }
0x1106   : > { %9085 = vmatprep.subr.bf16.mxu0 %v10766_v41 }
0x1109   : > { %9087 = vmatpush3.bf16.msra.mxu0 %v10766_v41 }
0x118b   : > { %v4006_v45 = vpop.xlane.xlu0 %4005 }
0x118c   : > { %v4010_v42 = vmul.f32 0.015625, %v4006_v45 }
0x118e   : > { %v4012_v25 = vadd.f32 1e-05, %v4010_v42 }
0x118f   : > { %v4009_v46 = vpop.xlane.xlu0 %4008 }
0x1190   : > { %9644 = vrsqrt.f32 %v4012_v25  ;;  %v4011_v48 = vmul.f32 0.015625, %v4009_v46  ;;  %v9729_v25 = vld [vmem:[%s11365_s1] ss:$0 sm:$0xff]  ;;  %s11382_s1 = scalar_lea.vmem %s11271_s22, %s10116_s29 }
0x1192   : > { %v4013_v49 = vadd.f32 1e-05, %v4011_v48 }
0x1194   : > { %9646 = vrsqrt.f32 %v4013_v49 }
0x119a   : > { %v9645_v52 = vpop.eup %9644 }
0x119b   : > { %v4016_v57 = vmul.f32 %v9645_v52, %v10696_v33 }
0x119d   : > { %v4024_v58 = vmul.f32 %v7756_v55, %v4016_v57 }
0x119e   : > { %v9647_v61 = vpop.eup %9646 }
0x119f   : > { %v4017_v60 = vmul.f32 %v9647_v61, %v10694_v21  ;;  %v10775_v5 = vadd.f32 %v7757_v12, %v4024_v58  ;;  %v10794_v21 = vld [vmem:[#allocation2 + $0x18] sm:$0x3] }
0x11a1   : > { %8478 = vmatprep.mubr.msk.f32.mxu1 %vm1324_vm2, %v10775_v5  ;;  %v4025_v11 = vmul.f32 %v7756_v55, %v4017_v60 }
0x11a3   : > { %v10779_v1 = vadd.f32 %v7757_v12, %v4025_v11 }
0x11a5   : > { %8479 = vmatmul.mubr.msk.f32.vlgmr.msra.gmra.mrb[20].mxu1 %vm1324_vm2, %v10779_v1 }
0x11a6   : > { %9095 = vmatpush3.bf16.msra.mxu1 %v10255_v7  ;;  %8532 = vmatprep.mubr.msk.f32.mxu1 %vm1324_vm2, %v10781_v17  ;;  %v1309_v7 = vld [vmem:[%s10224_s2 + $0x70] sm:$0xff] }
0x11a7   : > { %9097 = vmatprep.subr.bf16.mxu1 %v10258_v9 }
0x11aa   : > { %9099 = vmatpush3.bf16.msra.mxu1 %v10258_v9  ;;  %v1310_v9 = vld [vmem:[%s10224_s2 + $0x78] sm:$0xff] }
0x11ab   : > { %9101 = vmatprep.subr.bf16.mxu1 %v10269_v13 }
0x11ae   : > { %9103 = vmatpush3.bf16.msra.mxu1 %v10269_v13  ;;  %v10812_v13 = vpack.c.bf16 %v1310_v9, %v1309_v7 }
0x11af   : > { %9105 = vmatprep.subr.bf16.mxu1 %v10275_v16 }
0x11b0   : > { %9089 = vmatprep.subr.bf16.mxu0 %v10812_v13 }
0x11b1   : > { %9091 = vmatpush3.bf16.msra.mxu0 %v10812_v13 }
0x11b2   : > { %9107 = vmatpush3.bf16.msra.mxu1 %v10275_v16  ;;  %v7758_v16 = vld [vmem:[%s10218_s30] ss:$0 sm:$0xff] }
0x11b3   : > { %9109 = vmatprep.subr.bf16.mxu1 %v10281_v19 }
0x11b5   : > { %8533 = vmatmul.mubr.msk.f32.vlgmr.msra.gmra.mrb[22].mxu1 %vm1324_vm2, %v10794_v21 }
0x11b6   : > { %9111 = vmatpush3.bf16.msra.mxu1 %v10281_v19  ;;  %8551 = vmatprep.mubr.msk.f32.mxu1 %vm1324_vm2, %v10781_v17 }
0x11b7   : > { %9113 = vmatprep.subr.bf16.mxu1 %v10289_v23 }
0x11ba   : > { %9115 = vmatpush3.bf16.msra.mxu1 %v10289_v23 }
0x11bb   : > { %9117 = vmatprep.subr.bf16.mxu1 %v10299_v26 }
0x11be   : > { %9119 = vmatpush3.bf16.msra.mxu1 %v10299_v26 }
0x11bf   : > { %9121 = vmatprep.subr.bf16.mxu1 %v10305_v29 }
0x11c2   : > { %9123 = vmatpush3.bf16.msra.mxu1 %v10305_v29 }
0x11c5   : > { %8552 = vmatmul.mubr.msk.f32.vlgmr.msra.gmra.mrb[24].mxu1 %vm1324_vm2, %v10794_v21 }
0x1278   : > { %v8480_v19 = vpop.f32.mrb[20].mxu1 }
0x1279   : > { %v4118_v23 = vadd.f32 %v8480_v19, %v7758_v16  ;;  %v4112_v26 = vpop.f32.mrb[21].mxu1 }
0x127a   : > { %v4113_v33 = vadd.f32 %v7758_v16, %v4112_v26 }
0x127b   : > { %v4122_v29 = vmax.f32 %v4118_v23, 0.0 }
0x127c   : > { %v4121_v20 = vmax.f32 %v4113_v33, 0.0 }
0x127e   : > { %8513 = vmatprep.mubr.f32.mxu0 %v4121_v20 }
0x127f   : > { %8514 = vmatmul.mubr.f32.vlgmr.msra.gmra.mrb[24].mxu0 %v4122_v29 }
0x1288   : > { %v8534_v30 = vpop.f32.mrb[22].mxu1 }
0x1289   : > { %v4328_v32 = vpop.f32.mrb[23].mxu1  ;;  %v4334_v57 = vadd.f32 %v9728_v22, %v8534_v30 }
0x128a   : > { %v4329_v38 = vadd.f32 %v9728_v22, %v4328_v32 }
0x128b   : > { %v10835_v12 = vmul.f32 0.25, %v4334_v57 }
0x128c   : > { %v10818_v45 = vmul.f32 0.25, %v4329_v38 }
0x128e   : > { %8558 = vmatprep.mubr.msk.f32.mxu0 %vm1489_vm3, %v10818_v45 }
0x1298   : > { %v8553_v42 = vpop.f32.mrb[24].mxu1 }
0x1299   : > { %v4411_v46 = vadd.f32 %v9729_v25, %v8553_v42  ;;  %v4405_v48 = vpop.f32.mrb[25].mxu1 }
0x129a   : > { %v4406_v49 = vadd.f32 %v9729_v25, %v4405_v48 }
0x129c   : > { %v10823_v52 = vpack.i.bf16 %v4411_v46, %v4406_v49  ;;  %v9124_v55 = vpack.c.bf16 %v4411_v46, %v4406_v49 }
0x129e   : > { %9512 = vrot.lane.b32.xlu1 %v10823_v52, %s9851_s0  ;;  %9507 = vrot.lane.b32.xlu0 %v10823_v52, %s9850_s4 }
0x129f   : > { %9126 = vmatprep.subr.msk.bf16.mxu0 %vm10326_vm4, %v9124_v55 }
0x12a0   : > { %9129 = vmatpush3.bf16.xpose.msk.msra.mxu0 %vm10326_vm4, %v9124_v55 }
0x12a2   : > { %4611 = vrot.lane.b32.xlu0 %v10818_v45, %s9850_s4 }
0x12a6   : > { %4613 = vrot.lane.b32.xlu0 %v10835_v12, %s9850_s4 }
0x12a7   : > { %8559 = vmatmul.mubr.msk.f32.vlgmr.msra.gmra.mrb[26].mxu0 %vm1489_vm3, %v10835_v12 }
0x12aa   : > { %4974 = vrot.lane.b32.xlu0 %v10818_v45, %s9851_s0 }
0x12ae   : > { %4976 = vrot.lane.b32.xlu0 %v10835_v12, %s9851_s0 }
0x1310   : > { %v9513_v58 = vpop.permute.xlu1 %9512  ;;  %v9508_v61 = vpop.permute.xlu0 %9507 }
0x1311   : > { %v9515_v60 = vunpack.i.h.bf16 %v9513_v58  ;;  %v9514_v11 = vunpack.i.l.bf16 %v9513_v58  ;;  %v9510_v7 = vunpack.i.h.bf16 %v9508_v61  ;;  %v9509_v9 = vunpack.i.l.bf16 %v9508_v61 }
0x1313   : > { %v9136_v16 = vpack.c.bf16 %v9510_v7, %v9509_v9  ;;  %v9156_v23 = vpack.c.bf16 %v9515_v60, %v9514_v11 }
0x1314   : > { %v4612_v19 = vpop.permute.xlu0 %4611 }
0x1315   : > { %9138 = vmatprep.subr.msk.bf16.mxu1 %vm10326_vm4, %v9136_v16  ;;  %8572 = vmatprep.mubr.msk.f32.mxu1 %vm1489_vm3, %v4612_v19 }
0x1316   : > { %9141 = vmatpush3.bf16.xpose.msk.msra.mxu1 %vm10326_vm4, %v9136_v16 }
0x1317   : > { %9158 = vmatprep.subr.msk.bf16.mxu1 %vm10326_vm4, %v9156_v23 }
0x1318   : > { %v4614_v26 = vpop.permute.xlu0 %4613 }
0x131c   : > { %v4975_v33 = vpop.permute.xlu0 %4974 }
0x131d   : > { %8573 = vmatmul.mubr.msk.f32.vlgmr.msra.gmra.mrb[26].mxu1 %vm1489_vm3, %v4614_v26 }
0x131e   : > { %9161 = vmatpush3.bf16.xpose.msk.msra.mxu1 %vm10326_vm4, %v9156_v23  ;;  %8600 = vmatprep.mubr.msk.f32.mxu1 %vm1489_vm3, %v4975_v33 }
0x1320   : > { %v4977_v20 = vpop.permute.xlu0 %4976 }
0x1325   : > { %8601 = vmatmul.mubr.msk.f32.vlgmr.msra.gmra.mrb[28].mxu1 %vm1489_vm3, %v4977_v20 }
0x1352   : > { %v10857_v29 = vpop.f32.mrb[24].mxu0 }
0x1353   : > { %v10859_v30 = vpop.f32.mrb[25].mxu0 }
0x137a   : > { %v8560_v32 = vpop.f32.mrb[26].mxu0 }
0x137b   : > { %v4498_v22 = vadd.f32 %v8560_v32, %v10358_v62  ;;  %v4492_v38 = vpop.f32.mrb[27].mxu0 }
0x137c   : > { %v4493_v42 = vadd.f32 %v4492_v38, %v10360_v63 }
0x137d   : > { %v4504_v25 = vsel %vm1581_vm7, %v4498_v22, -inf }
0x137e   : > { %4505 = vmax.xlane.f32.xlu1 %v4504_v25  ;;  %v4501_v46 = vsel %vm1577_vm8, %v4493_v42, -inf }
0x137f   : > { %4502 = vmax.xlane.f32.xlu0 %v4501_v46 }
0x13f0   : > { %v8574_v48 = vpop.f32.mrb[26].mxu1 }
0x13f1   : > { %v4693_v49 = vpop.f32.mrb[27].mxu1  ;;  %v4699_v57 = vadd.f32 %v8574_v48, %v10358_v62 }
0x13f2   : > { %v4694_v55 = vadd.f32 %v4693_v49, %v10360_v63 }
0x13f3   : > { %v4705_v60 = vsel %vm1581_vm7, %v4699_v57, -inf }
0x13f4   : > { %v4702_v58 = vsel %vm1577_vm8, %v4694_v55, -inf }
0x13f5   : > { %4703 = vmax.xlane.f32.xlu0 %v4702_v58 }
0x13f8   : > { %v8602_v61 = vpop.f32.mrb[28].mxu1 }
0x13f9   : > { %v5056_v11 = vpop.f32.mrb[29].mxu1  ;;  %4706 = vmax.xlane.f32.xlu0 %v4705_v60 }
0x140b   : > { %v4506_v7 = vpop.xlane.xlu1 %4505 }
0x140c   : > { %v4508_v9 = vsub.f32 %v4498_v22, %v4506_v7  ;;  %v4503_v16 = vpop.xlane.xlu0 %4502 }
0x140d   : > { %v4507_v19 = vsub.f32 %v4493_v42, %v4503_v16 }
0x140e   : > { %v4511_v23 = vmul.f32 1.442695, %v4508_v9 }
0x140f   : > { %v4509_v26 = vmul.f32 1.442695, %v4507_v19  ;;  %v5057_v19 = vadd.f32 %v5056_v11, %v10360_v63 }
0x1410   : > { %9648 = vpow2.f32 %v4511_v23 }
0x1411   : > { %9650 = vpow2.f32 %v4509_v26  ;;  %v5065_v23 = vsel %vm1577_vm8, %v5057_v19, -inf  ;;  %v5062_v26 = vadd.f32 %v8602_v61, %v10358_v62 }
0x141a   : > { %v9649_v33 = vpop.eup %9648 }
0x141b   : > { %v9651_v20 = vpop.eup %9650  ;;  %v4516_v32 = vsel %vm1581_vm7, %v9649_v33, 0.0 }
0x141c   : > { %4517 = vadd.xlane.f32.xlu1 %v4516_v32  ;;  %v4513_v38 = vsel %vm1577_vm8, %v9651_v20, 0.0  ;;  %v5068_v32 = vsel %vm1581_vm7, %v5062_v26, -inf }
0x141d   : > { %4514 = vadd.xlane.f32.xlu0 %v4513_v38 }
0x1482   : > { %v4704_v25 = vpop.xlane.xlu0 %4703 }
0x1483   : > { %v4708_v46 = vsub.f32 %v4694_v55, %v4704_v25 }
0x1485   : > { %v4710_v48 = vmul.f32 1.442695, %v4708_v46 }
0x1486   : > { %v4707_v49 = vpop.xlane.xlu0 %4706 }
0x1487   : > { %9652 = vpow2.f32 %v4710_v48  ;;  %v4709_v22 = vsub.f32 %v4699_v57, %v4707_v49 }
0x1489   : > { %v4712_v58 = vmul.f32 1.442695, %v4709_v22 }
0x148b   : > { %9654 = vpow2.f32 %v4712_v58 }
0x1491   : > { %v9653_v42 = vpop.eup %9652 }
0x1492   : > { %v4714_v60 = vsel %vm1577_vm8, %v9653_v42, 0.0 }
0x1493   : > { %4715 = vadd.xlane.f32.xlu0 %v4714_v60 }
0x1495   : > { %v9655_v7 = vpop.eup %9654 }
0x1496   : > { %v4717_v9 = vsel %vm1581_vm7, %v9655_v7, 0.0 }
0x1497   : > { %4718 = vadd.xlane.f32.xlu1 %v4717_v9 }
0x14a8   : > { %9522 = vrot.lane.b32.xlu1 %v10823_v52, %s9855_s7 }
0x14a9   : > { %9517 = vrot.lane.b32.xlu0 %v10823_v52, %s9853_s16 }
0x14aa   : > { %v4515_v55 = vpop.xlane.xlu0 %4514 }
0x14ab   : > { %9656 = vrcp.f32 %v4515_v55 }
0x14ac   : > { %9527 = vrot.lane.b32.xlu1 %v10823_v52, %s9854_s17 }
0x14ad   : > { %5258 = vrot.lane.b32.xlu0 %v10818_v45, %s9854_s17  ;;  %v4518_v45 = vpop.xlane.xlu1 %4517 }
0x14ae   : > { %9658 = vrcp.f32 %v4518_v45 }
0x14b0   : > { %5260 = vrot.lane.b32.xlu1 %v10835_v12, %s9854_s17 }
0x14b5   : > { %v9657_v57 = vpop.eup %9656 }
0x14b6   : > { %v4521_v16 = vmul.f32 %v9657_v57, %v9651_v20 }
0x14b8   : > { %8565 = vmatprep.mubr.msk.f32.mxu0 %vm1577_vm8, %v4521_v16  ;;  %v9659_v61 = vpop.eup %9658 }
0x14b9   : > { %v4522_v60 = vmul.f32 %v9659_v61, %v9649_v33 }
0x14cc   : > { %5066 = vmax.xlane.f32.xlu0 %v5065_v23 }
0x14d4   : > { %5069 = vmax.xlane.f32.xlu1 %v5068_v32 }
0x14e5   : > { %9532 = vrot.lane.b32.xlu1 %v10823_v52, %s11376_s26 }
0x14e9   : > { %9537 = vrot.lane.b32.xlu1 %v10823_v52, %s11377_s9 }
0x1520   : > { %v4716_v12 = vpop.xlane.xlu0 %4715 }
0x1521   : > { %9660 = vrcp.f32 %v4716_v12 }
0x1524   : > { %v4719_v20 = vpop.xlane.xlu1 %4718  ;;  %v9518_v11 = vpop.permute.xlu0 %9517 }
0x1525   : > { %9662 = vrcp.f32 %v4719_v20  ;;  %v9520_v38 = vunpack.i.h.bf16 %v9518_v11  ;;  %v9519_v25 = vunpack.i.l.bf16 %v9518_v11 }
0x1527   : > { %v9130_v46 = vpack.c.bf16 %v9520_v38, %v9519_v25 }
0x1528   : > { %v9523_v48 = vpop.permute.xlu1 %9522  ;;  %v5259_v49 = vpop.permute.xlu0 %5258 }
0x1529   : > { %v9525_v22 = vunpack.i.h.bf16 %v9523_v48  ;;  %v9524_v58 = vunpack.i.l.bf16 %v9523_v48  ;;  %9132 = vmatprep.subr.msk.bf16.mxu0 %vm10393_vm11, %v9130_v46  ;;  %8621 = vmatprep.mubr.msk.f32.mxu1 %vm1489_vm3, %v5259_v49 }
0x152a   : > { %9135 = vmatpush3.bf16.msk.msra.mxu0 %vm10393_vm11, %v9130_v46 }
0x152b   : > { %v9661_v52 = vpop.eup %9660  ;;  %v9142_v9 = vpack.c.bf16 %v9525_v22, %v9524_v58 }
0x152c   : > { %v9528_v55 = vpop.permute.xlu1 %9527  ;;  %v4722_v57 = vmul.f32 %v9661_v52, %v9653_v42 }
0x152d   : > { %v9530_v16 = vunpack.i.h.bf16 %v9528_v55  ;;  %v9529_v23 = vunpack.i.l.bf16 %v9528_v55  ;;  %8566 = vmatmul.mubr.msk.f32.vlgmr.msra.gmra.mrb[28].mxu0 %vm1577_vm8, %v4522_v60  ;;  %9144 = vmatprep.subr.msk.bf16.mxu0 %vm10393_vm11, %v9142_v9 }
0x152e   : > { %9147 = vmatpush3.bf16.msk.msra.mxu0 %vm10393_vm11, %v9142_v9  ;;  %8579 = vmatprep.mubr.msk.f32.mxu0 %vm1577_vm8, %v4722_v57 }
0x152f   : > { %v9663_v32 = vpop.eup %9662  ;;  %v9172_v45 = vpack.c.bf16 %v9530_v16, %v9529_v23  ;;  %9149 = vmatprep.subr.bf16.mxu0 %v10419_v39 }
0x1530   : > { %v4723_v33 = vmul.f32 %v9663_v32, %v9655_v7  ;;  %v5261_v42 = vpop.permute.xlu1 %5260 }
0x1531   : > { %9174 = vmatprep.subr.msk.bf16.mxu1 %vm10326_vm4, %v9172_v45 }
0x1532   : > { %8580 = vmatmul.mubr.msk.f32.vlgmr.msra.gmra.mrb[30].mxu0 %vm1577_vm8, %v4723_v33  ;;  %9177 = vmatpush3.bf16.xpose.msk.msra.mxu1 %vm10326_vm4, %v9172_v45 }
0x1533   : > { %9151 = vmatpush3.bf16.msra.mxu0 %v10419_v39  ;;  %9189 = vmatprep.subr.bf16.mxu1 %v10502_v24 }
0x1534   : > { %9153 = vmatprep.subr.bf16.mxu0 %v10427_v43 }
0x1539   : > { %8622 = vmatmul.mubr.msk.f32.vlgmr.msra.gmra.mrb[30].mxu1 %vm1489_vm3, %v5261_v42 }
0x153a   : > { %9191 = vmatpush3.bf16.msra.mxu1 %v10502_v24 }
0x153b   : > { %9193 = vmatprep.subr.bf16.mxu1 %v10517_v31 }
0x153e   : > { %9195 = vmatpush3.bf16.msra.mxu1 %v10517_v31 }
0x153f   : > { %9197 = vmatprep.subr.bf16.mxu1 %v10524_v34 }
0x1542   : > { %9199 = vmatpush3.bf16.msra.mxu1 %v10524_v34 }
0x1543   : > { %9201 = vmatprep.subr.bf16.mxu1 %v10530_v40 }
0x1546   : > { %9203 = vmatpush3.bf16.msra.mxu1 %v10530_v40 }
0x1559   : > { %v5067_v39 = vpop.xlane.xlu0 %5066 }
0x155a   : > { %v5071_v7 = vsub.f32 %v5057_v19, %v5067_v39 }
0x155c   : > { %v5073_v12 = vmul.f32 1.442695, %v5071_v7 }
0x155e   : > { %9664 = vpow2.f32 %v5073_v12 }
0x1561   : > { %v5070_v20 = vpop.xlane.xlu1 %5069 }
0x1562   : > { %v5072_v11 = vsub.f32 %v5062_v26, %v5070_v20 }
0x1564   : > { %v5075_v38 = vmul.f32 1.442695, %v5072_v11 }
0x1565   : > { %v9533_v48 = vpop.permute.xlu1 %9532 }
0x1566   : > { %9666 = vpow2.f32 %v5075_v38  ;;  %v9535_v19 = vunpack.i.h.bf16 %v9533_v48  ;;  %v9534_v22 = vunpack.i.l.bf16 %v9533_v48 }
0x1568   : > { %v9665_v24 = vpop.eup %9664  ;;  %v9162_v52 = vpack.c.bf16 %v9535_v19, %v9534_v22 }
0x1569   : > { %v5077_v25 = vsel %vm1577_vm8, %v9665_v24, 0.0  ;;  %v9538_v60 = vpop.permute.xlu1 %9537 }
0x156a   : > { %5078 = vadd.xlane.f32.xlu0 %v5077_v25  ;;  %v9540_v32 = vunpack.i.h.bf16 %v9538_v60  ;;  %v9539_v45 = vunpack.i.l.bf16 %v9538_v60 }
0x1570   : > { %v9667_v31 = vpop.eup %9666 }
0x1571   : > { %v5080_v46 = vsel %vm1581_vm7, %v9667_v31, 0.0 }
0x1572   : > { %5081 = vadd.xlane.f32.xlu0 %v5080_v46 }
0x15f7   : > { %v5079_v34 = vpop.xlane.xlu0 %5078 }
0x15f8   : > { %9668 = vrcp.f32 %v5079_v34 }
0x15ff   : > { %v5082_v49 = vpop.xlane.xlu0 %5081 }
0x1600   : > { %v8567_v61 = vpop.f32.mrb[28].mxu0  ;;  %9670 = vrcp.f32 %v5082_v49 }
0x1601   : > { %v4602_v40 = vpop.f32.mrb[29].mxu0 }
0x1602   : > { %v9669_v55 = vpop.eup %9668 }
0x1603   : > { %v5085_v42 = vmul.f32 %v9669_v55, %v9665_v24 }
0x1605   : > { %v8581_v26 = vpop.f32.mrb[30].mxu0 }
0x1606   : > { %v4803_v58 = vpop.f32.mrb[31].mxu0 }
0x1607   : > { %8586 = vmatprep.mubr.msk.f32.mxu0 %vm1489_vm3, %v4803_v58 }
0x1608   : > { %8587 = vmatmul.mubr.msk.f32.vlgmr.msra.gmra.mrb[32].mxu0 %vm1489_vm3, %v8581_v26 }
0x1609   : > { %9155 = vmatpush3.bf16.msra.mxu0 %v10427_v43  ;;  %8593 = vmatprep.mubr.msk.f32.mxu0 %vm1489_vm3, %v4602_v40 }
0x160a   : > { %9164 = vmatprep.subr.msk.bf16.mxu0 %vm10393_vm11, %v9162_v52  ;;  %v9671_v23 = vpop.eup %9670 }
0x160b   : > { %v5086_v39 = vmul.f32 %v9671_v23, %v9667_v31 }
0x160c   : > { %v8623_v9 = vpop.f32.mrb[30].mxu1 }
0x160d   : > { %v5340_v57 = vpop.f32.mrb[31].mxu1  ;;  %v5346_v33 = vadd.f32 %v8623_v9, %v10358_v62 }
0x160e   : > { %v5341_v16 = vadd.f32 %v5340_v57, %v10360_v63  ;;  %v9178_v63 = vpack.c.bf16 %v9540_v32, %v9539_v45 }
0x160f   : > { %v5352_v7 = vsel %vm1581_vm7, %v5346_v33, -inf }
0x1610   : > { %8594 = vmatmul.mubr.msk.f32.vlgmr.msra.gmra.mrb[32].mxu0 %vm1489_vm3, %v8567_v61  ;;  %v5349_v43 = vsel %vm1577_vm8, %v5341_v16, -inf }
0x1611   : > { %9167 = vmatpush3.bf16.msk.msra.mxu0 %vm10393_vm11, %v9162_v52  ;;  %5350 = vmax.xlane.f32.xlu0 %v5349_v43  ;;  %v9730_v52 = vld [vmem:[%s11371_s14] ss:$0 sm:$0xff] }
0x1612   : > { %8607 = vmatprep.mubr.msk.f32.mxu0 %vm1577_vm8, %v5085_v42  ;;  %9169 = vmatprep.subr.bf16.mxu0 %v10447_v4 }
0x1614   : > { %8608 = vmatmul.mubr.msk.f32.vlgmr.msra.gmra.mrb[34].mxu0 %vm1577_vm8, %v5086_v39 }
0x1615   : > { %9171 = vmatpush3.bf16.msra.mxu0 %v10447_v4  ;;  %5353 = vmax.xlane.f32.xlu0 %v5352_v7 }
0x1616   : > { %9180 = vmatprep.subr.msk.bf16.mxu0 %vm10393_vm11, %v9178_v63 }
0x169e   : > { %v5351_v62 = vpop.xlane.xlu0 %5350 }
0x169f   : > { %v5355_v12 = vsub.f32 %v5341_v16, %v5351_v62 }
0x16a1   : > { %v5357_v20 = vmul.f32 1.442695, %v5355_v12 }
0x16a2   : > { %v5354_v11 = vpop.xlane.xlu0 %5353 }
0x16a3   : > { %9672 = vpow2.f32 %v5357_v20  ;;  %v5356_v38 = vsub.f32 %v5346_v33, %v5354_v11 }
0x16a5   : > { %v5359_v24 = vmul.f32 1.442695, %v5356_v38 }
0x16a7   : > { %9674 = vpow2.f32 %v5359_v24 }
0x16ad   : > { %v9673_v25 = vpop.eup %9672 }
0x16ae   : > { %v5361_v31 = vsel %vm1577_vm8, %v9673_v25, 0.0 }
0x16af   : > { %5362 = vadd.xlane.f32.xlu0 %v5361_v31  ;;  %v9731_v31 = vld [vmem:[%s11374_s13] ss:$0 sm:$0xff] }
0x16b1   : > { %v9675_v46 = vpop.eup %9674 }
0x16b2   : > { %v5364_v34 = vsel %vm1581_vm7, %v9675_v46, 0.0 }
0x16b3   : > { %5365 = vadd.xlane.f32.xlu0 %v5364_v34 }
0x16e7   : > { %v8609_v4 = vpop.f32.mrb[34].mxu0 }
0x16e8   : > { %v5166_v61 = vpop.f32.mrb[35].mxu0 }
0x16e9   : > { %8614 = vmatprep.mubr.msk.f32.mxu0 %vm1489_vm3, %v5166_v61  ;;  %v9732_v61 = vld [vmem:[%s11375_s18] ss:$0 sm:$0xff] }
0x16ea   : > { %8615 = vmatmul.mubr.msk.f32.vlgmr.msra.gmra.mrb[32].mxu0 %vm1489_vm3, %v8609_v4 }
0x16eb   : > { %9183 = vmatpush3.bf16.msk.msra.mxu0 %vm10393_vm11, %v9178_v63  ;;  %v7765_v63 = vld [vmem:[%s11373_s28 + $0x18] sm:$0xf] }
0x16ec   : > { %9185 = vmatprep.subr.bf16.mxu0 %v10459_v37 }
0x173c   : > { %v5363_v48 = vpop.xlane.xlu0 %5362 }
0x173d   : > { %9676 = vrcp.f32 %v5363_v48 }
0x1740   : > { %v5366_v40 = vpop.xlane.xlu0 %5365 }
0x1741   : > { %9678 = vrcp.f32 %v5366_v40 }
0x1747   : > { %v9677_v49 = vpop.eup %9676 }
0x1748   : > { %v5369_v19 = vmul.f32 %v9677_v49, %v9673_v25 }
0x174a   : > { %8628 = vmatprep.mubr.msk.f32.mxu0 %vm1577_vm8, %v5369_v19 }
0x174b   : > { %v9679_v22 = vpop.eup %9678 }
0x174c   : > { %v5370_v26 = vmul.f32 %v9679_v22, %v9675_v46  ;;  %v9733_v22 = vld [vmem:[%s10184_s25] ss:$0 sm:$0xff] }
0x174e   : > { %8629 = vmatmul.mubr.msk.f32.vlgmr.msra.gmra.mrb[36].mxu0 %vm1577_vm8, %v5370_v26 }
0x174f   : > { %9187 = vmatpush3.bf16.msra.mxu0 %v10459_v37 }
0x1750   : > { %9205 = vmatprep.subr.bf16.mxu0 %v10478_v56 }
0x1821   : > { %v8630_v59 = vpop.f32.mrb[36].mxu0 }
0x1822   : > { %v5450_v58 = vpop.f32.mrb[37].mxu0 }
0x1823   : > { %8635 = vmatprep.mubr.msk.f32.mxu0 %vm1489_vm3, %v5450_v58 }
0x1824   : > { %8636 = vmatmul.mubr.msk.f32.vlgmr.msra.gmra.mrb[32].mxu0 %vm1489_vm3, %v8630_v59 }
0x1825   : > { %9207 = vmatpush3.bf16.msra.mxu0 %v10478_v56 }
0x1826   : > { %9209 = vmatprep.subr.bf16.mxu0 %v10486_v8 }
0x1829   : > { %9211 = vmatpush3.bf16.msra.mxu0 %v10486_v8 }
0x182a   : > { %9213 = vmatprep.subr.bf16.mxu0 %v10492_v14 }
0x182d   : > { %9215 = vmatpush3.bf16.msra.mxu0 %v10492_v14 }
0x182e   : > { %9217 = vmatprep.subr.bf16.mxu0 %v10498_v18 }
0x1831   : > { %9219 = vmatpush3.bf16.msra.mxu0 %v10498_v18 }
0x18f7   : > { %v8637_v37 = vpop.f32.mrb[32].mxu0 }
0x18f8   : > { %v5543_v60 = vadd.f32 %v9730_v52, %v8637_v37  ;;  %v5531_v9 = vpop.f32.mrb[33].mxu0 }
0x18f9   : > { %v5542_v55 = vadd.f32 %v9730_v52, %v5531_v9 }
0x18fa   : > { %v5545_v57 = vadd.f32 %v5543_v60, %v10794_v21 }
0x18fb   : > { %v5544_v56 = vadd.f32 %v5542_v55, %v10781_v17  ;;  %v7764_v17 = vld [vmem:[%s11373_s28 + $0x10] sm:$0xff] }
0x18fc   : > { %v5549_v16 = vsel %vm2634_vm12, %v5545_v57, 0.0  ;;  %8673 = vmatprep.mubr.msk.f32.mxu0 %vm1324_vm2, %v7764_v17 }
0x18fd   : > { %5550 = vadd.xlane.f32.xlu1 %v5549_v16  ;;  %v5546_v8 = vsel %vm1324_vm2, %v5544_v56, 0.0  ;;  %8674 = vmatmul.mubr.msk.f32.vlgmr.msra.gmra.mrb[38].mxu0 %vm1324_vm2, %v7765_v63 }
0x18fe   : > { %5547 = vadd.xlane.f32.xlu0 %v5546_v8  ;;  %v9734_v8 = vld [vmem:[%s10173_s12] ss:$0 sm:$0xff] }
0x198a   : > { %v5551_v14 = vpop.xlane.xlu1 %5550 }
0x198b   : > { %v5553_v23 = vmul.f32 0.015625, %v5551_v14  ;;  %v5548_v32 = vpop.xlane.xlu0 %5547 }
0x198c   : > { %v5552_v45 = vmul.f32 0.015625, %v5548_v32 }
0x198d   : > { %v5555_v18 = vsub.f32 %v5545_v57, %v5553_v23 }
0x198e   : > { %v5554_v33 = vsub.f32 %v5544_v56, %v5552_v45 }
0x198f   : > { %v5557_v39 = vmul.f32 %v5555_v18, %v5555_v18 }
0x1990   : > { %v5556_v43 = vmul.f32 %v5554_v33, %v5554_v33 }
0x1991   : > { %v5561_v21 = vsel %vm2634_vm12, %v5557_v39, 0.0 }
0x1992   : > { %v5558_v42 = vsel %vm1324_vm2, %v5556_v43, 0.0 }
0x1993   : > { %5559 = vadd.xlane.f32.xlu0 %v5558_v42 }
0x1997   : > { %5562 = vadd.xlane.f32.xlu0 %v5561_v21 }
0x19d0   : > { %v8675_v19 = vpop.f32.mrb[38].mxu0 }
0x19d1   : > { %v5737_v26 = vadd.f32 %v9733_v22, %v8675_v19  ;;  %v5731_v59 = vpop.f32.mrb[39].mxu0 }
0x19d2   : > { %v5732_v58 = vadd.f32 %v9733_v22, %v5731_v59 }
0x19d4   : > { %v10987_v37 = vpack.i.bf16 %v5737_v26, %v5732_v58  ;;  %v9220_v52 = vpack.c.bf16 %v5737_v26, %v5732_v58 }
0x19d6   : > { %9542 = vrot.lane.b32.xlu0 %v10987_v37, %s9850_s4  ;;  %9222 = vmatprep.subr.msk.bf16.mxu1 %vm10326_vm4, %v9220_v52 }
0x19d7   : > { %9547 = vrot.lane.b32.xlu1 %v10987_v37, %s9851_s0 }
0x1a20   : > { %v5560_v7 = vpop.xlane.xlu0 %5559 }
0x1a21   : > { %v5564_v62 = vmul.f32 0.015625, %v5560_v7 }
0x1a23   : > { %v5566_v12 = vadd.f32 1e-05, %v5564_v62 }
0x1a24   : > { %v5563_v20 = vpop.xlane.xlu0 %5562 }
0x1a25   : > { %9680 = vrsqrt.f32 %v5566_v12  ;;  %v5565_v11 = vmul.f32 0.015625, %v5563_v20 }
0x1a27   : > { %v5567_v38 = vadd.f32 1e-05, %v5565_v11 }
0x1a29   : > { %9682 = vrsqrt.f32 %v5567_v38 }
0x1a2f   : > { %v9681_v24 = vpop.eup %9680 }
0x1a30   : > { %v5570_v25 = vmul.f32 %v9681_v24, %v5554_v33 }
0x1a32   : > { %v5572_v46 = vmul.f32 %v9731_v31, %v5570_v25 }
0x1a33   : > { %v9683_v34 = vpop.eup %9682 }
0x1a34   : > { %v5571_v4 = vmul.f32 %v9683_v34, %v5555_v18  ;;  %v10978_v48 = vadd.f32 %v9732_v61, %v5572_v46 }
0x1a36   : > { %8654 = vmatprep.mubr.msk.f32.mxu1 %vm1324_vm2, %v10978_v48  ;;  %v5573_v40 = vmul.f32 %v9731_v31, %v5571_v4 }
0x1a38   : > { %v10982_v49 = vadd.f32 %v9732_v61, %v5573_v40 }
0x1a3a   : > { %8655 = vmatmul.mubr.msk.f32.vlgmr.msra.gmra.mrb[32].mxu1 %vm1324_vm2, %v10982_v49 }
0x1a3b   : > { %9225 = vmatpush3.bf16.xpose.msk.msra.mxu1 %vm10326_vm4, %v9220_v52 }
0x1a48   : > { %v9543_v60 = vpop.permute.xlu0 %9542 }
0x1a49   : > { %v9545_v9 = vunpack.i.h.bf16 %v9543_v60  ;;  %v9544_v55 = vunpack.i.l.bf16 %v9543_v60  ;;  %v9548_v56 = vpop.permute.xlu1 %9547 }
0x1a4a   : > { %v9550_v32 = vunpack.i.h.bf16 %v9548_v56  ;;  %v9549_v45 = vunpack.i.l.bf16 %v9548_v56 }
0x1a4b   : > { %v9232_v57 = vpack.c.bf16 %v9545_v9, %v9544_v55 }
0x1a4c   : > { %v9252_v42 = vpack.c.bf16 %v9550_v32, %v9549_v45 }
0x1a4d   : > { %9234 = vmatprep.subr.msk.bf16.mxu1 %vm10326_vm4, %v9232_v57 }
0x1b0d   : > { %v8656_v16 = vpop.f32.mrb[32].mxu1 }
0x1b0e   : > { %v5654_v14 = vadd.f32 %v9734_v8, %v8656_v16  ;;  %v5648_v23 = vpop.f32.mrb[33].mxu1 }
0x1b0f   : > { %v5649_v18 = vadd.f32 %v9734_v8, %v5648_v23 }
0x1b10   : > { %v11002_v43 = vmul.f32 0.25, %v5654_v14 }
0x1b11   : > { %v11000_v33 = vmul.f32 0.25, %v5649_v18 }
0x1b13   : > { %5937 = vrot.lane.b32.xlu0 %v11000_v33, %s9850_s4  ;;  %8680 = vmatprep.mubr.msk.f32.mxu1 %vm1489_vm3, %v11000_v33 }
0x1b14   : > { %8681 = vmatmul.mubr.msk.f32.vlgmr.msra.gmra.mrb[34].mxu1 %vm1489_vm3, %v11002_v43 }
0x1b15   : > { %9237 = vmatpush3.bf16.xpose.msk.msra.mxu1 %vm10326_vm4, %v9232_v57 }
0x1b16   : > { %9254 = vmatprep.subr.msk.bf16.mxu1 %vm10326_vm4, %v9252_v42 }
0x1b17   : > { %5939 = vrot.lane.b32.xlu0 %v11002_v43, %s9850_s4 }
0x1b1b   : > { %6300 = vrot.lane.b32.xlu0 %v11000_v33, %s9851_s0 }
0x1b1f   : > { %6302 = vrot.lane.b32.xlu0 %v11002_v43, %s9851_s0 }
0x1b85   : > { %v5938_v39 = vpop.permute.xlu0 %5937 }
0x1b86   : > { %8694 = vmatprep.mubr.msk.f32.mxu1 %vm1489_vm3, %v5938_v39 }
0x1b89   : > { %v5940_v21 = vpop.permute.xlu0 %5939 }
0x1b8a   : > { %8695 = vmatmul.mubr.msk.f32.vlgmr.msra.gmra.mrb[36].mxu1 %vm1489_vm3, %v5940_v21 }
0x1b8b   : > { %9257 = vmatpush3.bf16.xpose.msk.msra.mxu1 %vm10326_vm4, %v9252_v42 }
0x1b8d   : > { %v6301_v17 = vpop.permute.xlu0 %6300 }
0x1b8e   : > { %8722 = vmatprep.mubr.msk.f32.mxu1 %vm1489_vm3, %v6301_v17 }
0x1b91   : > { %v6303_v63 = vpop.permute.xlu0 %6302 }
0x1b92   : > { %8723 = vmatmul.mubr.msk.f32.vlgmr.msra.gmra.mrb[38].mxu1 %vm1489_vm3, %v6303_v63 }
0x1be7   : > { %v8682_v7 = vpop.f32.mrb[34].mxu1 }
0x1be8   : > { %v5818_v62 = vpop.f32.mrb[35].mxu1  ;;  %v5830_v12 = vsel %vm2942_vm13, %v8682_v7, -inf }
0x1be9   : > { %5831 = vmax.xlane.f32.xlu1 %v5830_v12  ;;  %v5827_v20 = vsel %vm2938_vm14, %v5818_v62, -inf }
0x1bea   : > { %5828 = vmax.xlane.f32.xlu0 %v5827_v20 }
0x1c5d   : > { %v8696_v11 = vpop.f32.mrb[36].mxu1 }
0x1c5e   : > { %v6019_v38 = vpop.f32.mrb[37].mxu1  ;;  %v6031_v25 = vsel %vm2942_vm13, %v8696_v11, -inf }
0x1c5f   : > { %v6028_v24 = vsel %vm2938_vm14, %v6019_v38, -inf }
0x1c60   : > { %6029 = vmax.xlane.f32.xlu0 %v6028_v24 }
0x1c64   : > { %6032 = vmax.xlane.f32.xlu0 %v6031_v25 }
0x1c65   : > { %v11030_v31 = vpop.f32.mrb[38].mxu1 }
0x1c66   : > { %v11032_v46 = vpop.f32.mrb[39].mxu1  ;;  %v6394_v21 = vsel %vm2942_vm13, %v11030_v31, -inf }
0x1c67   : > { %v6391_v39 = vsel %vm2938_vm14, %v11032_v46, -inf }
0x1c76   : > { %v5832_v34 = vpop.xlane.xlu1 %5831 }
0x1c77   : > { %v5834_v4 = vsub.f32 %v8682_v7, %v5832_v34  ;;  %v5829_v61 = vpop.xlane.xlu0 %5828 }
0x1c78   : > { %v5833_v40 = vsub.f32 %v5818_v62, %v5829_v61 }
0x1c79   : > { %v5837_v19 = vmul.f32 1.442695, %v5834_v4 }
0x1c7a   : > { %v5835_v22 = vmul.f32 1.442695, %v5833_v40 }
0x1c7b   : > { %9684 = vpow2.f32 %v5837_v19 }
0x1c7c   : > { %9686 = vpow2.f32 %v5835_v22 }
0x1c85   : > { %v9685_v26 = vpop.eup %9684 }
0x1c86   : > { %v9687_v59 = vpop.eup %9686  ;;  %v5842_v58 = vsel %vm2942_vm13, %v9685_v26, 0.0 }
0x1c87   : > { %5843 = vadd.xlane.f32.xlu1 %v5842_v58  ;;  %v5839_v52 = vsel %vm2938_vm14, %v9687_v59, 0.0 }
0x1c88   : > { %5840 = vadd.xlane.f32.xlu0 %v5839_v52 }
0x1ced   : > { %v6030_v60 = vpop.xlane.xlu0 %6029 }
0x1cee   : > { %v6034_v9 = vsub.f32 %v6019_v38, %v6030_v60 }
0x1cf0   : > { %v6036_v55 = vmul.f32 1.442695, %v6034_v9 }
0x1cf1   : > { %v6033_v57 = vpop.xlane.xlu0 %6032 }
0x1cf2   : > { %9688 = vpow2.f32 %v6036_v55  ;;  %v6035_v56 = vsub.f32 %v8696_v11, %v6033_v57 }
0x1cf4   : > { %v6038_v16 = vmul.f32 1.442695, %v6035_v56 }
0x1cf6   : > { %9690 = vpow2.f32 %v6038_v16 }
0x1cfc   : > { %v9689_v8 = vpop.eup %9688 }
0x1cfd   : > { %v6040_v14 = vsel %vm2938_vm14, %v9689_v8, 0.0 }
0x1cfe   : > { %6041 = vadd.xlane.f32.xlu0 %v6040_v14 }
0x1d00   : > { %v9691_v23 = vpop.eup %9690 }
0x1d01   : > { %v6043_v32 = vsel %vm2942_vm13, %v9691_v23, 0.0 }
0x1d02   : > { %6044 = vadd.xlane.f32.xlu1 %v6043_v32 }
0x1d13   : > { %9557 = vrot.lane.b32.xlu1 %v10987_v37, %s9855_s7 }
0x1d14   : > { %9552 = vrot.lane.b32.xlu0 %v10987_v37, %s9853_s16  ;;  %v5844_v17 = vpop.xlane.xlu1 %5843  ;;  %s11383_s16 = scalar_lea.vmem %s11272_s23, %s10116_s29 }
0x1d15   : > { %v5841_v45 = vpop.xlane.xlu0 %5840 }
0x1d16   : > { %9692 = vrcp.f32 %v5841_v45 }
0x1d17   : > { %9562 = vrot.lane.b32.xlu1 %v10987_v37, %s9854_s17  ;;  %9694 = vrcp.f32 %v5844_v17 }
0x1d18   : > { %6584 = vrot.lane.b32.xlu0 %v11000_v33, %s9854_s17 }
0x1d1b   : > { %6586 = vrot.lane.b32.xlu1 %v11002_v43, %s9854_s17  ;;  %s11384_s17 = sld [smem:[#allocation41_spill]] (!%p7848_p10) }
0x1d20   : > { %v9693_v18 = vpop.eup %9692 }
0x1d21   : > { %v5847_v42 = vmul.f32 %v9693_v18, %v9687_v59  ;;  %v9695_v20 = vpop.eup %9694 }
0x1d22   : > { %v5848_v4 = vmul.f32 %v9695_v20, %v9685_v26 }
0x1d23   : > { %8687 = vmatprep.mubr.msk.f32.mxu0 %vm2938_vm14, %v5847_v42 }
0x1d37   : > { %6392 = vmax.xlane.f32.xlu0 %v6391_v39 }
0x1d3f   : > { %6395 = vmax.xlane.f32.xlu1 %v6394_v21 }
0x1d50   : > { %9567 = vrot.lane.b32.xlu1 %v10987_v37, %s11376_s26 }
0x1d8b   : > { %v6042_v33 = vpop.xlane.xlu0 %6041 }
0x1d8c   : > { %9696 = vrcp.f32 %v6042_v33 }
0x1d8f   : > { %v6045_v43 = vpop.xlane.xlu1 %6044  ;;  %v9553_v63 = vpop.permute.xlu0 %9552 }
0x1d90   : > { %9698 = vrcp.f32 %v6045_v43  ;;  %v9555_v7 = vunpack.i.h.bf16 %v9553_v63  ;;  %v9554_v62 = vunpack.i.l.bf16 %v9553_v63 }
0x1d92   : > { %v9226_v12 = vpack.c.bf16 %v9555_v7, %v9554_v62 }
0x1d93   : > { %v9558_v11 = vpop.permute.xlu1 %9557  ;;  %v6585_v38 = vpop.permute.xlu0 %6584 }
0x1d94   : > { %v9560_v24 = vunpack.i.h.bf16 %v9558_v11  ;;  %v9559_v25 = vunpack.i.l.bf16 %v9558_v11  ;;  %9228 = vmatprep.subr.msk.bf16.mxu0 %vm10616_vm0, %v9226_v12  ;;  %8743 = vmatprep.mubr.msk.f32.mxu1 %vm1489_vm3, %v6585_v38 }
0x1d95   : > { %9231 = vmatpush3.bf16.msk.msra.mxu0 %vm10616_vm0, %v9226_v12 }
0x1d96   : > { %v9697_v34 = vpop.eup %9696  ;;  %v9238_v61 = vpack.c.bf16 %v9560_v24, %v9559_v25 }
0x1d97   : > { %v9563_v40 = vpop.permute.xlu1 %9562  ;;  %v6048_v19 = vmul.f32 %v9697_v34, %v9689_v8 }
0x1d98   : > { %v9565_v22 = vunpack.i.h.bf16 %v9563_v40  ;;  %v9564_v59 = vunpack.i.l.bf16 %v9563_v40  ;;  %8688 = vmatmul.mubr.msk.f32.vlgmr.msra.gmra.mrb[40].mxu0 %vm2938_vm14, %v5848_v4  ;;  %9240 = vmatprep.subr.msk.bf16.mxu0 %vm10616_vm0, %v9238_v61 }
0x1d99   : > { %9243 = vmatpush3.bf16.msk.msra.mxu0 %vm10616_vm0, %v9238_v61  ;;  %8701 = vmatprep.mubr.msk.f32.mxu0 %vm2938_vm14, %v6048_v19 }
0x1d9a   : > { %v9699_v58 = vpop.eup %9698  ;;  %v9268_v52 = vpack.c.bf16 %v9565_v22, %v9564_v59  ;;  %9245 = vmatprep.subr.bf16.mxu0 %v10643_v36 }
0x1d9b   : > { %v6049_v26 = vmul.f32 %v9699_v58, %v9691_v23  ;;  %v6587_v60 = vpop.permute.xlu1 %6586 }
0x1d9c   : > { %9270 = vmatprep.subr.msk.bf16.mxu1 %vm10326_vm4, %v9268_v52 }
0x1d9d   : > { %8702 = vmatmul.mubr.msk.f32.vlgmr.msra.gmra.mrb[42].mxu0 %vm2938_vm14, %v6049_v26  ;;  %9273 = vmatpush3.bf16.xpose.msk.msra.mxu1 %vm10326_vm4, %v9268_v52 }
0x1d9e   : > { %9247 = vmatpush3.bf16.msra.mxu0 %v10643_v36  ;;  %9285 = vmatprep.subr.bf16.mxu1 %v10706_v54 }
0x1d9f   : > { %9249 = vmatprep.subr.bf16.mxu0 %v10649_v27 }
0x1da4   : > { %8744 = vmatmul.mubr.msk.f32.vlgmr.msra.gmra.mrb[40].mxu1 %vm1489_vm3, %v6587_v60 }
0x1da5   : > { %9287 = vmatpush3.bf16.msra.mxu1 %v10706_v54 }
0x1da6   : > { %9289 = vmatprep.subr.bf16.mxu1 %v10712_v47 }
0x1da9   : > { %9291 = vmatpush3.bf16.msra.mxu1 %v10712_v47 }
0x1daa   : > { %9293 = vmatprep.subr.bf16.mxu1 %v10718_v51 }
0x1dad   : > { %9295 = vmatpush3.bf16.msra.mxu1 %v10718_v51 }
0x1dae   : > { %9297 = vmatprep.subr.bf16.mxu1 %v10724_v3 }
0x1db1   : > { %9299 = vmatpush3.bf16.msra.mxu1 %v10724_v3 }
0x1dc4   : > { %v6393_v44 = vpop.xlane.xlu0 %6392 }
0x1dc5   : > { %v6397_v36 = vsub.f32 %v11032_v46, %v6393_v44 }
0x1dc7   : > { %v6399_v9 = vmul.f32 1.442695, %v6397_v36 }
0x1dc9   : > { %9700 = vpow2.f32 %v6399_v9 }
0x1dcc   : > { %v6396_v55 = vpop.xlane.xlu1 %6395 }
0x1dcd   : > { %v6398_v54 = vsub.f32 %v11030_v31, %v6396_v55 }
0x1dcf   : > { %v6401_v57 = vmul.f32 1.442695, %v6398_v54 }
0x1dd0   : > { %v9568_v14 = vpop.permute.xlu1 %9567 }
0x1dd1   : > { %9702 = vpow2.f32 %v6401_v57  ;;  %v9570_v32 = vunpack.i.h.bf16 %v9568_v14  ;;  %v9569_v45 = vunpack.i.l.bf16 %v9568_v14 }
0x1dd3   : > { %v9701_v56 = vpop.eup %9700  ;;  %v9258_v42 = vpack.c.bf16 %v9570_v32, %v9569_v45 }
0x1dd4   : > { %v6403_v47 = vsel %vm2938_vm14, %v9701_v56, 0.0 }
0x1dd5   : > { %6404 = vadd.xlane.f32.xlu0 %v6403_v47 }
0x1ddb   : > { %v9703_v16 = vpop.eup %9702 }
0x1ddc   : > { %v6406_v51 = vsel %vm2942_vm13, %v9703_v16, 0.0 }
0x1ddd   : > { %6407 = vadd.xlane.f32.xlu0 %v6406_v51 }
0x1e62   : > { %v6405_v8 = vpop.xlane.xlu0 %6404 }
0x1e63   : > { %9704 = vrcp.f32 %v6405_v8 }
0x1e6a   : > { %v6408_v46 = vpop.xlane.xlu0 %6407 }
0x1e6b   : > { %v8689_v3 = vpop.f32.mrb[40].mxu0  ;;  %9706 = vrcp.f32 %v6408_v46 }
0x1e6c   : > { %v5928_v23 = vpop.f32.mrb[41].mxu0 }
0x1e6d   : > { %v9705_v39 = vpop.eup %9704 }
0x1e6e   : > { %v6411_v63 = vmul.f32 %v9705_v39, %v9701_v56 }
0x1e70   : > { %v8703_v31 = vpop.f32.mrb[42].mxu0 }
0x1e71   : > { %v6129_v18 = vpop.f32.mrb[43].mxu0 }
0x1e72   : > { %8708 = vmatprep.mubr.msk.f32.mxu0 %vm1489_vm3, %v6129_v18 }
0x1e73   : > { %8709 = vmatmul.mubr.msk.f32.vlgmr.msra.gmra.mrb[44].mxu0 %vm1489_vm3, %v8703_v31 }
0x1e74   : > { %9251 = vmatpush3.bf16.msra.mxu0 %v10649_v27  ;;  %8715 = vmatprep.mubr.msk.f32.mxu0 %vm1489_vm3, %v5928_v23 }
0x1e75   : > { %9260 = vmatprep.subr.msk.bf16.mxu0 %vm10616_vm0, %v9258_v42  ;;  %v9707_v43 = vpop.eup %9706 }
0x1e76   : > { %v6412_v27 = vmul.f32 %v9707_v43, %v9703_v16 }
0x1e77   : > { %v8745_v21 = vpop.f32.mrb[40].mxu1 }
0x1e78   : > { %v6666_v17 = vpop.f32.mrb[41].mxu1  ;;  %v6678_v7 = vsel %vm2942_vm13, %v8745_v21, -inf }
0x1e79   : > { %v6675_v33 = vsel %vm2938_vm14, %v6666_v17, -inf }
0x1e7a   : > { %6676 = vmax.xlane.f32.xlu0 %v6675_v33  ;;  %v9736_v33 = vld [vmem:[%s10201_s3] ss:$0 sm:$0xff] }
0x1e7b   : > { %8716 = vmatmul.mubr.msk.f32.vlgmr.msra.gmra.mrb[44].mxu0 %vm1489_vm3, %v8689_v3 }
0x1e7c   : > { %9263 = vmatpush3.bf16.msk.msra.mxu0 %vm10616_vm0, %v9258_v42  ;;  %8729 = vmatprep.mubr.msk.f32.mxu0 %vm2938_vm14, %v6411_v63 }
0x1e7d   : > { %9265 = vmatprep.subr.bf16.mxu0 %v10662_v10 }
0x1e7e   : > { %6679 = vmax.xlane.f32.xlu0 %v6678_v7 }
0x1e7f   : > { %8730 = vmatmul.mubr.msk.f32.vlgmr.msra.gmra.mrb[46].mxu0 %vm2938_vm14, %v6412_v27  ;;  %v9737_v27 = vld [vmem:[%s11380_s11] ss:$0 sm:$0xff] }
0x1e80   : > { %9267 = vmatpush3.bf16.msra.mxu0 %v10662_v10 }
0x1f07   : > { %v6677_v62 = vpop.xlane.xlu0 %6676 }
0x1f08   : > { %v6681_v12 = vsub.f32 %v6666_v17, %v6677_v62 }
0x1f0a   : > { %v6683_v38 = vmul.f32 1.442695, %v6681_v12 }
0x1f0b   : > { %v6680_v20 = vpop.xlane.xlu0 %6679 }
0x1f0c   : > { %v6682_v11 = vsub.f32 %v8745_v21, %v6680_v20 }
0x1f0e   : > { %v6685_v24 = vmul.f32 1.442695, %v6682_v11  ;;  %v9738_v11 = vld [vmem:[%s10218_s30] ss:$0 sm:$0xff]  ;;  %s11385_s30 = sld [smem:[#allocation43_spill]] (!%p7848_p10) }
0x1f10   : > { %9708 = vpow2.f32 %v6685_v24 }
0x1f11   : > { %9710 = vpow2.f32 %v6683_v38 }
0x1f1a   : > { %v9709_v25 = vpop.eup %9708 }
0x1f1b   : > { %v6690_v34 = vsel %vm2942_vm13, %v9709_v25, 0.0  ;;  %v9711_v4 = vpop.eup %9710 }
0x1f1c   : > { %6691 = vadd.xlane.f32.xlu0 %v6690_v34  ;;  %v6687_v61 = vsel %vm2938_vm14, %v9711_v4, 0.0 }
0x1f20   : > { %6688 = vadd.xlane.f32.xlu0 %v6687_v61 }
0x1f36   : > { %9572 = vrot.lane.b32.xlu0 %v10987_v37, %s11377_s9 }
0x1f52   : > { %v8731_v10 = vpop.f32.mrb[46].mxu0 }
0x1f53   : > { %v6492_v40 = vpop.f32.mrb[47].mxu0 }
0x1f54   : > { %8736 = vmatprep.mubr.msk.f32.mxu0 %vm1489_vm3, %v6492_v40 }
0x1f55   : > { %8737 = vmatmul.mubr.msk.f32.vlgmr.msra.gmra.mrb[44].mxu0 %vm1489_vm3, %v8731_v10 }
0x1fa9   : > { %v6692_v19 = vpop.xlane.xlu0 %6691 }
0x1faa   : > { %9712 = vrcp.f32 %v6692_v19 }
0x1fad   : > { %v6689_v22 = vpop.xlane.xlu0 %6688 }
0x1fae   : > { %9714 = vrcp.f32 %v6689_v22 }
0x1fb1   : > { %v9573_v59 = vpop.permute.xlu0 %9572 }
0x1fb2   : > { %v9575_v58 = vunpack.i.h.bf16 %v9573_v59  ;;  %v9574_v52 = vunpack.i.l.bf16 %v9573_v59 }
0x1fb4   : > { %v9274_v26 = vpack.c.bf16 %v9575_v58, %v9574_v52  ;;  %v9713_v60 = vpop.eup %9712 }
0x1fb5   : > { %v6696_v36 = vmul.f32 %v9713_v60, %v9709_v25 }
0x1fb6   : > { %9276 = vmatprep.subr.msk.bf16.mxu0 %vm10616_vm0, %v9274_v26 }
0x1fb7   : > { %9279 = vmatpush3.bf16.msk.msra.mxu0 %vm10616_vm0, %v9274_v26 }
0x1fb8   : > { %v9715_v37 = vpop.eup %9714  ;;  %9281 = vmatprep.subr.bf16.mxu0 %v10677_v50 }
0x1fb9   : > { %v6695_v44 = vmul.f32 %v9715_v37, %v9711_v4 }
0x1fbb   : > { %8750 = vmatprep.mubr.msk.f32.mxu0 %vm2938_vm14, %v6695_v44 }
0x1fbc   : > { %8751 = vmatmul.mubr.msk.f32.vlgmr.msra.gmra.mrb[48].mxu0 %vm2938_vm14, %v6696_v36 }
0x1fbd   : > { %9283 = vmatpush3.bf16.msra.mxu0 %v10677_v50  ;;  %v9735_v50 = vld [vmem:[%s10195_s6] ss:$0 sm:$0xff]  ;;  %s11381_s6 = scalar_lea.vmem %s11270_s21, %s10116_s29 }
0x1fbe   : > { %9301 = vmatprep.subr.bf16.mxu0 %v10732_v0  ;;  %v7761_v51 = vld [vmem:[%s11381_s6] ss:$0 sm:$0xff] }
0x1fbf   : > { %v4201_v14 = vadd.f32 %v10857_v29, %v7761_v51 }
0x1fc1   : > { %v4205_v32 = vadd.f32 %v4201_v14, %v10779_v1  ;;  %v7762_v14 = vld [vmem:[%s11382_s1] ss:$0 sm:$0xff] }
0x1fc3   : > { %v4209_v31 = vsel %vm2634_vm12, %v4205_v32, 0.0 }
0x208f   : > { %v8752_v9 = vpop.f32.mrb[48].mxu0 }
0x2090   : > { %v6776_v55 = vpop.f32.mrb[49].mxu0 }
0x2091   : > { %8757 = vmatprep.mubr.msk.f32.mxu0 %vm1489_vm3, %v6776_v55 }
0x2092   : > { %8758 = vmatmul.mubr.msk.f32.vlgmr.msra.gmra.mrb[44].mxu0 %vm1489_vm3, %v8752_v9 }
0x2093   : > { %9303 = vmatpush3.bf16.msra.mxu0 %v10732_v0 }
0x2094   : > { %9305 = vmatprep.subr.bf16.mxu0 %v10735_v2 }
0x2097   : > { %9307 = vmatpush3.bf16.msra.mxu0 %v10735_v2 }
0x2098   : > { %9309 = vmatprep.subr.bf16.mxu0 %v10742_v6 }
0x209b   : > { %9311 = vmatpush3.bf16.msra.mxu0 %v10742_v6 }
0x209c   : > { %9313 = vmatprep.subr.bf16.mxu0 %v10748_v15 }
0x209f   : > { %9315 = vmatpush3.bf16.msra.mxu0 %v10748_v15 }
0x20a0   : > { %9317 = vmatprep.subr.bf16.mxu0 %v10754_v28 }
0x20a3   : > { %9319 = vmatpush3.bf16.msra.mxu0 %v10754_v28 }
0x20a4   : > { %9321 = vmatprep.subr.bf16.mxu0 %v10760_v35 }
0x20a7   : > { %9323 = vmatpush3.bf16.msra.mxu0 %v10760_v35 }
0x20a8   : > { %9325 = vmatprep.subr.bf16.mxu0 %v10766_v41 }
0x20ab   : > { %9327 = vmatpush3.bf16.msra.mxu0 %v10766_v41 }
0x20ac   : > { %9329 = vmatprep.subr.bf16.mxu0 %v10812_v13 }
0x20af   : > { %9331 = vmatpush3.bf16.msra.mxu0 %v10812_v13 }
0x2165   : > { %v8759_v53 = vpop.f32.mrb[44].mxu0 }
0x2166   : > { %v6869_v0 = vadd.f32 %v9735_v50, %v8759_v53  ;;  %v6857_v2 = vpop.f32.mrb[45].mxu0 }
0x2167   : > { %v6868_v6 = vadd.f32 %v9735_v50, %v6857_v2 }
0x2168   : > { %v6871_v15 = vadd.f32 %v6869_v0, %v10982_v49 }
0x2169   : > { %v6870_v28 = vadd.f32 %v6868_v6, %v10978_v48  ;;  %v4196_v48 = vadd.f32 %v7761_v51, %v10859_v30 }
0x216a   : > { %v6875_v35 = vsel %vm2634_vm12, %v6871_v15, 0.0 }
0x216b   : > { %6876 = vadd.xlane.f32.xlu0 %v6875_v35  ;;  %v6872_v54 = vsel %vm1324_vm2, %v6870_v28, 0.0  ;;  %v4204_v23 = vadd.f32 %v4196_v48, %v10775_v5 }
0x216c   : > { %6873 = vadd.xlane.f32.xlu1 %v6872_v54 }
0x216d   : > { %v4206_v45 = vsel %vm1324_vm2, %v4204_v23, 0.0 }
0x21f8   : > { %v6877_v41 = vpop.xlane.xlu0 %6876 }
0x21f9   : > { %v6879_v57 = vmul.f32 0.015625, %v6877_v41  ;;  %v6874_v56 = vpop.xlane.xlu1 %6873 }
0x21fa   : > { %v6878_v13 = vmul.f32 0.015625, %v6874_v56 }
0x21fb   : > { %v6881_v47 = vsub.f32 %v6871_v15, %v6879_v57 }
0x21fc   : > { %v6880_v16 = vsub.f32 %v6870_v28, %v6878_v13 }
0x21fd   : > { %v6883_v3 = vmul.f32 %v6881_v47, %v6881_v47 }
0x21fe   : > { %v6882_v49 = vmul.f32 %v6880_v16, %v6880_v16 }
0x21ff   : > { %v6887_v46 = vsel %vm2634_vm12, %v6883_v3, 0.0 }
0x2200   : > { %v6884_v8 = vsel %vm1324_vm2, %v6882_v49, 0.0 }
0x2201   : > { %6885 = vadd.xlane.f32.xlu1 %v6884_v8 }
0x2205   : > { %6888 = vadd.xlane.f32.xlu1 %v6887_v46 }
0x2209   : > { %4207 = vadd.xlane.f32.xlu1 %v4206_v45 }
0x220d   : > { %4210 = vadd.xlane.f32.xlu1 %v4209_v31 }
0x228e   : > { %v6886_v30 = vpop.xlane.xlu1 %6885 }
0x228f   : > { %v6890_v18 = vmul.f32 0.015625, %v6886_v30 }
0x2291   : > { %v6892_v42 = vadd.f32 1e-05, %v6890_v18 }
0x2292   : > { %v6889_v39 = vpop.xlane.xlu1 %6888 }
0x2293   : > { %9716 = vrsqrt.f32 %v6892_v42  ;;  %v6891_v29 = vmul.f32 0.015625, %v6889_v39 }
0x2295   : > { %v6893_v5 = vadd.f32 1e-05, %v6891_v29 }
0x2296   : > { %v4208_v61 = vpop.xlane.xlu1 %4207 }
0x2297   : > { %9718 = vrsqrt.f32 %v6893_v5  ;;  %v4212_v19 = vmul.f32 0.015625, %v4208_v61 }
0x2299   : > { %v4214_v26 = vsub.f32 %v4204_v23, %v4212_v19 }
0x229a   : > { %v4211_v10 = vpop.xlane.xlu1 %4210 }
0x229b   : > { %v4213_v40 = vmul.f32 0.015625, %v4211_v10  ;;  %v4216_v53 = vmul.f32 %v4214_v26, %v4214_v26 }
0x229d   : > { %v9717_v21 = vpop.eup %9716  ;;  %v4215_v59 = vsub.f32 %v4205_v32, %v4213_v40  ;;  %v4218_v0 = vsel %vm1324_vm2, %v4216_v53, 0.0  ;;  %v7763_v32 = vld [vmem:[%s11383_s16] ss:$0 sm:$0xff] }
0x229e   : > { %v6896_v17 = vmul.f32 %v9717_v21, %v6880_v16 }
0x229f   : > { %v4217_v9 = vmul.f32 %v4215_v59, %v4215_v59 }
0x22a0   : > { %v6898_v1 = vmul.f32 %v9736_v33, %v6896_v17 }
0x22a1   : > { %v9719_v43 = vpop.eup %9718  ;;  %v4221_v50 = vsel %vm2634_vm12, %v4217_v9, 0.0 }
0x22a2   : > { %v6897_v63 = vmul.f32 %v9719_v43, %v6881_v47  ;;  %v6900_v7 = vadd.f32 %v9737_v27, %v6898_v1 }
0x22a4   : > { %8776 = vmatprep.mubr.msk.f32.mxu1 %vm1324_vm2, %v6900_v7  ;;  %v6899_v62 = vmul.f32 %v9736_v33, %v6897_v63 }
0x22a6   : > { %v6901_v12 = vadd.f32 %v9737_v27, %v6899_v62 }
0x22a8   : > { %8777 = vmatmul.mubr.msk.f32.vlgmr.msra.gmra.mrb[42].mxu1 %vm1324_vm2, %v6901_v12 }
0x237b   : > { %v8778_v20 = vpop.f32.mrb[42].mxu1 }
0x237c   : > { %v6980_v38 = vadd.f32 %v9738_v11, %v8778_v20  ;;  %v6974_v24 = vpop.f32.mrb[43].mxu1 }
0x237d   : > { %v6975_v25 = vadd.f32 %v9738_v11, %v6974_v24 }
0x237e   : > { %v6984_v4 = vmax.f32 %v6980_v38, 0.0 }
0x237f   : > { %v6983_v34 = vmax.f32 %v6975_v25, 0.0 }
0x2381   : > { %8811 = vmatprep.mubr.f32.mxu0 %v6983_v34 }
0x2382   : > { %8812 = vmatmul.mubr.f32.vlgmr.msra.gmra.mrb[50].mxu0 %v6984_v4 }
0x2455   : > { %v8813_v22 = vpop.f32.mrb[50].mxu0 }
0x2456   : > { %v7057_v58 = vadd.f32 %v8813_v22, %v7761_v51  ;;  %v7051_v52 = vpop.f32.mrb[51].mxu0 }
0x2457   : > { %v7052_v60 = vadd.f32 %v7761_v51, %v7051_v52 }
0x2458   : > { %v7061_v37 = vadd.f32 %v7057_v58, %v6901_v12 }
0x2459   : > { %v7060_v44 = vadd.f32 %v7052_v60, %v6900_v7 }
0x245a   : > { %v7065_v36 = vsel %vm2634_vm12, %v7061_v37, 0.0 }
0x245b   : > { %7066 = vadd.xlane.f32.xlu0 %v7065_v36  ;;  %v7062_v55 = vsel %vm1324_vm2, %v7060_v44, 0.0 }
0x245c   : > { %7063 = vadd.xlane.f32.xlu1 %v7062_v55 }
0x245f   : > { %4222 = vadd.xlane.f32.xlu0 %v4221_v50 }
0x2460   : > { %4219 = vadd.xlane.f32.xlu1 %v4218_v0 }
0x24e8   : > { %v7067_v2 = vpop.xlane.xlu0 %7066 }
0x24e9   : > { %v7069_v6 = vmul.f32 0.015625, %v7067_v2  ;;  %v7064_v15 = vpop.xlane.xlu1 %7063 }
0x24ea   : > { %v7068_v28 = vmul.f32 0.015625, %v7064_v15 }
0x24eb   : > { %v7071_v35 = vsub.f32 %v7061_v37, %v7069_v6 }
0x24ec   : > { %v7070_v54 = vsub.f32 %v7060_v44, %v7068_v28  ;;  %v4223_v41 = vpop.xlane.xlu0 %4222 }
0x24ed   : > { %v4225_v57 = vmul.f32 0.015625, %v4223_v41  ;;  %v4220_v56 = vpop.xlane.xlu1 %4219  ;;  %v7073_v13 = vmul.f32 %v7071_v35, %v7071_v35 }
0x24ee   : > { %v4224_v47 = vmul.f32 0.015625, %v4220_v56  ;;  %v7072_v16 = vmul.f32 %v7070_v54, %v7070_v54  ;;  %v7101_v56 = vld [vmem:[%s11384_s17 + $0x18] sm:$0xff] (!%p7848_p10) }
0x24ef   : > { %v4227_v51 = vadd.f32 1e-05, %v4225_v57  ;;  %v7077_v49 = vsel %vm2634_vm12, %v7073_v13, 0.0  ;;  %v7100_v57 = vld [vmem:[%s11384_s17 + $0x10] sm:$0xff] (!%p7848_p10) }
0x24f0   : > { %v4226_v48 = vadd.f32 1e-05, %v4224_v47  ;;  %7078 = vadd.xlane.f32.xlu0 %v7077_v49  ;;  %v7074_v8 = vsel %vm1324_vm2, %v7072_v16, 0.0  ;;  %v9336_v13 = vpack.c.bf16 (!%p7848_p10), %v7101_v56, %v7100_v57  ;;  %v7102_v47 = vld [vmem:[%s11384_s17 + $0x20] sm:$0xff] (!%p7848_p10)  ;;  %v7103_v16 = vld [vmem:[%s11384_s17 + $0x28] sm:$0xff] (!%p7848_p10)  ;;  %v7104_v49 = vld [vmem:[%s11384_s17 + $0x30] sm:$0xff] (!%p7848_p10) }
0x24f1   : > { %9720 = vrsqrt.f32 %v4227_v51  ;;  %7075 = vadd.xlane.f32.xlu1 %v7074_v8  ;;  %v9340_v51 = vpack.c.bf16 (!%p7848_p10), %v7103_v16, %v7102_v47 }
0x24f2   : > { %9722 = vrsqrt.f32 %v4226_v48  ;;  %v7105_v48 = vld [vmem:[%s11384_s17 + $0x38] sm:$0xff] (!%p7848_p10) }
0x24f3   : > { %v9344_v8 = vpack.c.bf16 (!%p7848_p10), %v7105_v48, %v7104_v49 }
0x24fb   : > { %v9721_v3 = vpop.eup %9720 }
0x24fc   : > { %v9723_v23 = vpop.eup %9722  ;;  %v4231_v46 = vmul.f32 %v9721_v3, %v4215_v59 }
0x24fd   : > { %v4230_v45 = vmul.f32 %v9723_v23, %v4214_v26 }
0x24fe   : > { %v4239_v31 = vmul.f32 %v7762_v14, %v4231_v46 }
0x24ff   : > { %v4238_v30 = vmul.f32 %v7762_v14, %v4230_v45 }
0x2500   : > { %v4247_v18 = vadd.f32 %v7763_v32, %v4239_v31 }
0x2501   : > { %v4246_v42 = vadd.f32 %v7763_v32, %v4238_v30 }
0x2502   : > { %4249 = vst.msk [vmem:[#allocation2 + $0x8] sm:$0x3] %vm2634_vm12, %v4247_v18 }
0x2503   : > { %4248 = vst.msk [vmem:[#allocation2] sm:$0xff] %vm1324_vm2, %v4246_v42 }
0x2509   : > { %v7108_v38 = vld [vmem:[#allocation2 + $0x8] sm:$0x3] (!%p7848_p10) }
0x250a   : > { %v7107_v11 = vld [vmem:[#allocation2] sm:$0xff] (!%p7848_p10)  ;;  %v7114_v34 = vsel (!%p7848_p10), %vm2634_vm12, %v7108_v38, 0.0 }
0x250b   : > { %v7111_v25 = vsel (!%p7848_p10), %vm1324_vm2, %v7107_v11, 0.0  ;;  %7115 = vadd.xlane.f32.xlu1 (!%p7848_p10), %v7114_v34 }
0x250c   : > { %7112 = vadd.xlane.f32.xlu0 (!%p7848_p10), %v7111_v25 }
0x257d   : > { %v7079_v39 = vpop.xlane.xlu0 %7078 }
0x257e   : > { %v7081_v29 = vmul.f32 0.015625, %v7079_v39  ;;  %v7076_v5 = vpop.xlane.xlu1 %7075 }
0x257f   : > { %v7080_v21 = vmul.f32 0.015625, %v7076_v5 }
0x2580   : > { %v7083_v17 = vadd.f32 1e-05, %v7081_v29 }
0x2581   : > { %v7082_v33 = vadd.f32 1e-05, %v7080_v21  ;;  %v7849_v21 = vld [vmem:[#allocation3] ss:$0 sm:$0xff] (!%p7848_p10) }
0x2582   : > { %9724 = vrsqrt.f32 %v7083_v17 }
0x2583   : > { %9726 = vrsqrt.f32 %v7082_v33  ;;  %v7850_v33 = vld [vmem:[#allocation5] ss:$0 sm:$0xff] (!%p7848_p10) }
0x258c   : > { %v9725_v1 = vpop.eup %9724 }
0x258d   : > { %v9727_v43 = vpop.eup %9726  ;;  %v7087_v63 = vmul.f32 %v9725_v1, %v7071_v35  ;;  %v7098_v35 = vld [vmem:[%s11384_s17] sm:$0xff] (!%p7848_p10) }
0x258e   : > { %v7086_v27 = vmul.f32 %v9727_v43, %v7070_v54  ;;  %7097 = sbr.rel (%p7848_p10) target bundleno = 10161 (0x27b1), region = 152  ;;  %v7099_v54 = vld [vmem:[%s11384_s17 + $0x8] sm:$0xff] (!%p7848_p10) }
0x258f   : > { %v7089_v7 = vmul.f32 %v7762_v14, %v7087_v63  ;;  %v9332_v41 = vpack.c.bf16 (!%p7848_p10), %v7099_v54, %v7098_v35 }
0x2590   : > { %v7088_v62 = vmul.f32 %v7762_v14, %v7086_v27 }
0x2591   : > { %v7091_v12 = vadd.f32 %v7763_v32, %v7089_v7  ;;  %9333 = vmatprep.subr.bf16.mxu0 (!%p7848_p10), %v9332_v41  ;;  %9349 = vmatprep.subr.bf16.mxu1 (!%p7848_p10), %v9332_v41 }
0x2592   : > { %v7090_v20 = vadd.f32 %v7763_v32, %v7088_v62  ;;  %9335 = vmatpush3.bf16.msra.mxu0 (!%p7848_p10), %v9332_v41  ;;  %9351 = vmatpush3.bf16.msra.mxu1 (!%p7848_p10), %v9332_v41 }
0x2593   : > { %7093 = vst.msk [vmem:[#allocation2 + $0x18] sm:$0x3] %vm2634_vm12, %v7091_v12  ;;  %9337 = vmatprep.subr.bf16.mxu0 (!%p7848_p10), %v9336_v13  ;;  %9353 = vmatprep.subr.bf16.mxu1 (!%p7848_p10), %v9336_v13 }
0x2594   : > { %7092 = vst.msk [vmem:[#allocation2 + $0x10] sm:$0xff] %vm1324_vm2, %v7090_v20 }
0x2596   : > { %9339 = vmatpush3.bf16.msra.mxu0 %v9336_v13  ;;  %9355 = vmatpush3.bf16.msra.mxu1 %v9336_v13 }
0x2597   : > { %9341 = vmatprep.subr.bf16.mxu0 %v9340_v51  ;;  %9357 = vmatprep.subr.bf16.mxu1 %v9340_v51 }
0x2598   : > { %v7116_v19 = vpop.xlane.xlu1 %7115 }
0x2599   : > { %v7113_v40 = vpop.xlane.xlu0 %7112  ;;  %v7118_v59 = vmul.f32 0.015625, %v7116_v19 }
0x259a   : > { %v7243_v4 = vld [vmem:[#allocation2 + $0x18] sm:$0x3]  ;;  %v7117_v22 = vmul.f32 0.015625, %v7113_v40  ;;  %9343 = vmatpush3.bf16.msra.mxu0 %v9340_v51  ;;  %9359 = vmatpush3.bf16.msra.mxu1 %v9340_v51 }
0x259b   : > { %v7242_v24 = vld [vmem:[#allocation2 + $0x10] sm:$0xff]  ;;  %v7249_v10 = vsel %vm2634_vm12, %v7243_v4, 0.0  ;;  %v11184_v52 = vsub.f32 %v7108_v38, %v7118_v59  ;;  %9345 = vmatprep.subr.bf16.mxu0 %v9344_v8  ;;  %9361 = vmatprep.subr.bf16.mxu1 %v9344_v8 }
0x259c   : > { %v7246_v61 = vsel %vm1324_vm2, %v7242_v24, 0.0  ;;  %7250 = vadd.xlane.f32.xlu1 %v7249_v10  ;;  %v11182_v58 = vsub.f32 %v7107_v11, %v7117_v22 }
0x259d   : > { %7247 = vadd.xlane.f32.xlu0 %v7246_v61  ;;  %v7122_v9 = vmul.f32 %v11184_v52, %v11184_v52  ;;  %v7851_v61 = vld [vmem:[#allocation7] ss:$0 sm:$0xff] }
0x259e   : > { %v7121_v36 = vmul.f32 %v11182_v58, %v11182_v58  ;;  %9347 = vmatpush3.bf16.msra.mxu0 %v9344_v8  ;;  %9363 = vmatpush3.bf16.msra.mxu1 %v9344_v8 }
0x259f   : > { %v7126_v0 = vsel %vm2634_vm12, %v7122_v9, 0.0 }
0x25a0   : > { %v7123_v50 = vsel %vm1324_vm2, %v7121_v36, 0.0 }
0x25a1   : > { %7124 = vadd.xlane.f32.xlu0 %v7123_v50 }
0x25a5   : > { %7127 = vadd.xlane.f32.xlu0 %v7126_v0 }
0x2629   : > { %v7251_v60 = vpop.xlane.xlu1 %7250 }
0x262a   : > { %v7248_v26 = vpop.xlane.xlu0 %7247  ;;  %v7253_v44 = vmul.f32 0.015625, %v7251_v60 }
0x262b   : > { %v7252_v37 = vmul.f32 0.015625, %v7248_v26 }
0x262c   : > { %v11192_v53 = vsub.f32 %v7243_v4, %v7253_v44 }
0x262d   : > { %v11190_v55 = vsub.f32 %v7242_v24, %v7252_v37 }
0x262e   : > { %v7257_v6 = vmul.f32 %v11192_v53, %v11192_v53  ;;  %v7125_v3 = vpop.xlane.xlu0 %7124 }
0x262f   : > { %v7256_v2 = vmul.f32 %v11190_v55, %v11190_v55  ;;  %v7129_v14 = vmul.f32 0.015625, %v7125_v3 }
0x2630   : > { %v7261_v28 = vsel %vm2634_vm12, %v7257_v6, 0.0 }
0x2631   : > { %v7258_v15 = vsel %vm1324_vm2, %v7256_v2, 0.0  ;;  %v7131_v23 = vadd.f32 1e-05, %v7129_v14 }
0x2632   : > { %7259 = vadd.xlane.f32.xlu1 %v7258_v15  ;;  %v7128_v32 = vpop.xlane.xlu0 %7127 }
0x2633   : > { %9739 = vrsqrt.f32 %v7131_v23  ;;  %v7130_v31 = vmul.f32 0.015625, %v7128_v32 }
0x2635   : > { %v7132_v18 = vadd.f32 1e-05, %v7130_v31 }
0x2636   : > { %7262 = vadd.xlane.f32.xlu1 %v7261_v28 }
0x263d   : > { %v9740_v5 = vpop.eup %9739 }
0x263e   : > { %v7135_v17 = vmul.f32 %v9740_v5, %v11182_v58 }
0x2640   : > { %v7143_v1 = vmul.f32 %v7849_v21, %v7135_v17 }
0x2642   : > { %v7151_v27 = vadd.f32 %v7850_v33, %v7143_v1 }
0x2644   : > { %8830 = vmatprep.mubr.msk.f32.mxu0 %vm1324_vm2, %v7151_v27 }
0x26bf   : > { %v7260_v46 = vpop.xlane.xlu1 %7259 }
0x26c0   : > { %v7264_v45 = vmul.f32 0.015625, %v7260_v46 }
0x26c2   : > { %v7266_v30 = vadd.f32 1e-05, %v7264_v45 }
0x26c3   : > { %v7263_v42 = vpop.xlane.xlu1 %7262 }
0x26c4   : > { %9741 = vrsqrt.f32 %v7266_v30  ;;  %v7265_v39 = vmul.f32 0.015625, %v7263_v42 }
0x26c5   : > { %9743 = vrsqrt.f32 %v7132_v18 }
0x26c6   : > { %v7267_v29 = vadd.f32 1e-05, %v7265_v39 }
0x26c8   : > { %9745 = vrsqrt.f32 %v7267_v29 }
0x26ce   : > { %v9742_v43 = vpop.eup %9741 }
0x26cf   : > { %v9744_v63 = vpop.eup %9743  ;;  %v7270_v7 = vmul.f32 %v9742_v43, %v11190_v55 }
0x26d0   : > { %v7136_v62 = vmul.f32 %v9744_v63, %v11184_v52 }
0x26d1   : > { %v7278_v12 = vmul.f32 %v7849_v21, %v7270_v7 }
0x26d2   : > { %v9746_v20 = vpop.eup %9745  ;;  %v7144_v11 = vmul.f32 %v7849_v21, %v7136_v62 }
0x26d3   : > { %v7271_v38 = vmul.f32 %v9746_v20, %v11192_v53  ;;  %v7286_v24 = vadd.f32 %v7850_v33, %v7278_v12 }
0x26d4   : > { %v7152_v25 = vadd.f32 %v7850_v33, %v7144_v11 }
0x26d5   : > { %v7279_v34 = vmul.f32 %v7849_v21, %v7271_v38  ;;  %8849 = vmatprep.mubr.msk.f32.mxu1 %vm1324_vm2, %v7286_v24 }
0x26d6   : > { %8831 = vmatmul.mubr.msk.f32.vlgmr.msra.gmra.mrb[0].mxu0 %vm1324_vm2, %v7152_v25 }
0x26d7   : > { %v7287_v4 = vadd.f32 %v7850_v33, %v7279_v34 }
0x26d9   : > { %8850 = vmatmul.mubr.msk.f32.vlgmr.msra.gmra.mrb[0].mxu1 %vm1324_vm2, %v7287_v4 }
0x27a9   : > { %v8832_v10 = vpop.f32.mrb[0].mxu0 }
0x27aa   : > { %v7237_v40 = vadd.f32 %v8832_v10, %v7851_v61  ;;  %v7231_v19 = vpop.f32.mrb[1].mxu0 }
0x27ab   : > { %v7232_v22 = vadd.f32 %v7851_v61, %v7231_v19 }
0x27ac   : > { %7241 = vst [vmem:[%s11385_s30 + $0x8] sm:$0x3] %v7237_v40  ;;  %v8851_v59 = vpop.f32.mrb[0].mxu1 }
0x27ad   : > { %7240 = vst [vmem:[%s11385_s30] sm:$0xff] %v7232_v22  ;;  %v7366_v58 = vadd.f32 %v8851_v59, %v7851_v61  ;;  %v7360_v52 = vpop.f32.mrb[1].mxu1 }
0x27ae   : > { %v7361_v26 = vadd.f32 %v7851_v61, %v7360_v52 }
0x27af   : > { %7859 = vst [vmem:[%s11385_s30 + $0x18] sm:$0x3] %v7366_v58 }
0x27b0   : > { %7858 = vst [vmem:[%s11385_s30 + $0x10] sm:$0xff] %v7361_v26 }
0x27b1 PF: > { %s11386_s7 = sld [smem:[#allocation10_spill]] }
0x27b7   : > { %s40_s8 = sadd.s32 1, %s11386_s7  }
0x27b8   : > { %p37_p11 = scmp.ge.s32.totalorder %s40_s8, 4  }
0x27ba   :  { %39 = sbr.rel (!%p37_p11) target bundleno = 27 (0x1b), region = 245 }
0x27c1   :  { %7383 = vsyncpa [#allocation4], 1 }
0x27c2   :  { %7385 = vsyncpa [#allocation4 + $0x1], 1 }
0x27c3   :  { %7386 = vsyncpa [#allocation6], 1 }

</bundles_post_ra>
